<compile_context>
chip_gen: v6e
topology: v6e:2x2x1
jax: 0.10.0
libtpu: 0.0.40
codegen_flags: <defaults>
</compile_context>

<pallas_src>
import functools
import math

import numpy as np
import jax
import jax.numpy as jnp
from jax import lax
from jax.experimental import pallas as pl
from jax.experimental.pallas import tpu as pltpu

K = 7                     # Aligner conv kernel size
PAD = (K - 1) // 2        # "same" padding (3)
HALO = 4                  # column halo (>= PAD), chosen so KD is lane-aligned
NEG_SLOPE = 0.01          # nn.LeakyReLU default negative slope
CPAD = 16                 # channel slots per spatial column (hidden width)


def _round_up(x, m):
    return ((x + m - 1) // m) * m


# ----------------------------------------------------------------------------
# Fused Pallas kernel: the whole 5-layer conv stack for one batch *group*.
# ----------------------------------------------------------------------------
def _aligner_stack_kernel(x_ref, band0_ref, band_ref, bias_ref, o_ref, pad_ref,
                          *, H, W, Cin0, bg):
    """x_ref    : (bg, H, W*Cin0)   bf16  first-layer inputs, channel-fastest rows
       band0_ref: (K, KD0, N)       bf16  compact layer-0 block-banded weights
       band_ref : (L-1, K, KD, N)   bf16  hidden/final block-banded weights
       bias_ref : (L, N)            f32   per-output-column bias rows
       o_ref    : (1, M, N)         f32   last-layer output slab (N = W*CPAD)
       pad_ref  : (MP, KD)          bf16  zero-padded activation scratch (VMEM)

    Row layout: the bg images of this group are stacked along M, image j
    occupying pad rows [j*HP+PAD, j*HP+PAD+H) with HP = H + 2*PAD, so 2*PAD
    zero rows separate consecutive images and the 7 dy-shifted matmuls never
    mix batches."""
    n_hidden = band_ref.shape[0]          # layers 1..L-1
    N = o_ref.shape[2]
    KD0 = band0_ref.shape[1]
    M = o_ref.shape[1]                    # padded folded-row count (mult of 8)
    HP = H + 2 * PAD
    col0 = HALO * CPAD                    # first hidden-activation column

    # Zero the scratch (all halos) and place the layer-0 inputs at channel
    # stride Cin0 inside the low, lane-aligned KD0 columns.
    pad_ref[...] = jnp.zeros_like(pad_ref)
    for j in range(bg):
        r0 = j * HP + PAD
        pad_ref[r0:r0 + H, PAD * Cin0:PAD * Cin0 + W * Cin0] = x_ref[j]

    # Row-validity mask: zero the inter-image gap rows (and the 8-row padding
    # tail) before each activation write-back so batches never mix through the
    # conv halo.
    need_mask = (bg > 1) or (M != H)
    if need_mask:
        r = lax.broadcasted_iota(jnp.int32, (M, 1), 0)
        valid = r < H
        for j in range(1, bg):
            valid = jnp.logical_or(
                valid, jnp.logical_and(r >= j * HP, r < j * HP + H))

    for l in range(n_hidden + 1):
        # Accumulator starts at the broadcast bias; stays in f32 vregs
        # (M <= 64 rows by construction -> <= 16 vregs, no spills).
        acc = jnp.broadcast_to(bias_ref[l:l + 1, :], (M, N))
        # 7x7 conv == 7 sublane row-shifts; each is one (M, KD) x (KD, N)
        # matmul whose contraction dim folds (dx, cin).  Layer 0 uses the
        # compact KD0-wide band (input only has Cin0 channels).
        # TODO(synk): on v7x the 7 taps could be fused into one long-K matmul
        # (MRB accumulates in place); kept as 7 dots for v5e/v6e MRF.
        if l == 0:
            for dy in range(K):
                acc = acc + jnp.dot(pad_ref[dy:dy + M, :KD0], band0_ref[dy],
                                    preferred_element_type=jnp.float32)
        else:
            for dy in range(K):
                acc = acc + jnp.dot(pad_ref[dy:dy + M, :], band_ref[l - 1, dy],
                                    preferred_element_type=jnp.float32)
        if l < n_hidden:
            acc = jnp.where(acc >= 0.0, acc, acc * NEG_SLOPE)     # LeakyReLU f32
            if need_mask:
                acc = jnp.where(valid, acc, 0.0)
            if l == 0:
                # Clear the stale stride-Cin0 layer-0 input; columns >= col0
                # are overwritten by the store below.
                pad_ref[:, 0:col0] = jnp.zeros((pad_ref.shape[0], col0),
                                               pad_ref.dtype)
            pad_ref[PAD:PAD + M, col0:col0 + N] = acc.astype(pad_ref.dtype)
        else:
            o_ref[0] = acc                                        # lane-dense


def _pick_batch_group(B, H, max_rows=64):
    """Largest divisor of B whose folded row count stays <= max_rows (vreg
    pressure guard for the f32 accumulator).  On v7x, larger batches yield
    multiple groups -> the 'parallel' grid axis keeps both TensorCores busy."""
    best = 1
    for d in range(1, B + 1):
        if B % d == 0 and d * H + (d - 1) * 2 * PAD <= max_rows:
            best = d
    return best


def aligner_forward(prep, src_nchw, tgt_nchw):
    """Aligner.forward (channels == 1 branch): cat(src, tgt) -> fused 5-layer
    conv stack -> (B, H, W, 2) field (== seq(stack).permute(0, 2, 3, 1))."""
    band0, bands, biases = prep
    B, C, H, W = src_nchw.shape
    # TODO(synk): the channels > 1 branch of Aligner.forward (split into pairs,
    # average the per-pair fields) is not exercised here.
    assert C == 1
    N = W * CPAD
    KD = (W + 2 * HALO) * CPAD
    assert bands.shape[-2:] == (KD, N) and band0.shape[-1] == N

    bg = _pick_batch_group(B, H)
    G = B // bg
    HP = H + 2 * PAD
    M = _round_up(bg * H + (bg - 1) * 2 * PAD, 8)
    MP = _round_up(M + 2 * PAD, 8)

    x = jnp.concatenate([src_nchw, tgt_nchw], axis=1)            # (B, 2, H, W)
    x = jnp.transpose(x, (0, 2, 3, 1)).reshape(B, H, W * 2)      # channel-fastest
    x = x.astype(jnp.bfloat16)

    kernel = functools.partial(_aligner_stack_kernel, H=H, W=W, Cin0=2, bg=bg)
    # Band/bias operands are grid-invariant (constant index_map -> fetched
    # once).  Budget VMEM at 2x their footprint (double-buffered worst case)
    # plus activation slack: ~28 MB at W=16, ample headroom on v7x's 64 MiB
    # and explicitly above v5e's 16 MiB default scoped limit.
    band_bytes = int(bands.size) * 2 + int(band0.size) * 2
    vlim = min(2 * band_bytes + (16 << 20), 60 << 20)

    out = pl.pallas_call(
        kernel,
        out_shape=jax.ShapeDtypeStruct((G, M, N), jnp.float32),
        grid=(G,),
        in_specs=[
            pl.BlockSpec((bg, H, W * 2), lambda g: (g, 0, 0)),
            pl.BlockSpec(band0.shape, lambda g: (0, 0, 0)),
            pl.BlockSpec(bands.shape, lambda g: (0, 0, 0, 0)),
            pl.BlockSpec(biases.shape, lambda g: (0, 0)),
        ],
        out_specs=pl.BlockSpec((1, M, N), lambda g: (g, 0, 0)),
        scratch_shapes=[pltpu.VMEM((MP, KD), jnp.bfloat16)],
        compiler_params=pltpu.CompilerParams(
            dimension_semantics=("parallel",),
            vmem_limit_bytes=vlim),
    )(x, band0, bands, biases)

    # Unfold the batch groups: rows [j*HP, j*HP + H) of group g are image
    # g*bg + j.  (B, H, W*16) -> (B, H, W, 16), keep the 2 real channels.
    # TODO(synk): the production tiled variant should emit a compact 2-channel
    # lane-dense output instead of the 16-slot slab.
    rows = [out[g, j * HP:j * HP + H, :] for g in range(G) for j in range(bg)]
    field = jnp.stack(rows, axis=0).reshape(B, H, W, CPAD)[..., :2]
    return field


# ----------------------------------------------------------------------------
# Parameter construction / conversion to banded-matmul form.
# ----------------------------------------------------------------------------
def init_aligner_params(key, channels=1):
    """Deterministic synthetic init mimicking init_leaky_relu (kaiming_uniform
    with a=0.01) and PyTorch's default Conv2d bias init.  Weights are HWIO;
    porting real PyTorch Conv2d weights (OIHW) needs w.transpose(2, 3, 1, 0)."""
    dims = [(channels * 2, 16), (16, 16), (16, 16), (16, 16), (16, 2)]
    params = []
    for cin, cout in dims:
        key, kw, kb = jax.random.split(key, 3)
        fan_in = cin * K * K
        w_bound = math.sqrt(6.0 / ((1.0 + NEG_SLOPE ** 2) * fan_in))
        b_bound = 1.0 / math.sqrt(fan_in)
        w = jax.random.uniform(kw, (K, K, cin, cout), jnp.float32, -w_bound, w_bound)
        b = jax.random.uniform(kb, (cout,), jnp.float32, -b_bound, b_bound)
        params.append((w, b))
    return params


def prepare_aligner_params(params, W):
    """Turn raw HWIO conv weights into the block-banded matmul operands used
    by the fused kernel at spatial width W.

    Hidden/final layers (input channel stride CPAD, column halo HALO):
        band[l-1, dy, (x+dx+HALO-PAD)*CPAD + ci, x*CPAD + co] = w_l[dy,dx,ci,co]
    Layer 0 (compact, input channel stride Cin0, lane-aligned width KD0):
        band0[dy, (x+dx)*Cin0 + ci, x*CPAD + co] = w_0[dy,dx,ci,co]

    so out[r, x*CPAD+co] = sum_dy pad_row(r+dy) @ band[.., dy] reproduces the
    7x7 cross-correlation (PyTorch Conv2d) exactly."""
    # TODO(synk): deeper mips with W < 8 need the band's N padded to 128 lanes;
    # production sizes need a column-tiled weight-stationary band instead of
    # this O(W^2) block-banded form (it stores W shifted copies of the weights).
    assert W % 8 == 0, "lane-dense output requires W % 8 == 0"
    N = W * CPAD
    KD = (W + 2 * HALO) * CPAD
    L = len(params)
    cin0 = params[0][0].shape[2]
    KD0 = max(128, _round_up((W + 2 * PAD) * cin0, 128))
    assert KD0 <= KD

    band0 = np.zeros((K, KD0, N), np.float32)
    bands = np.zeros((L - 1, K, KD, N), np.float32)
    biases = np.zeros((L, N), np.float32)
    for l, (w, b) in enumerate(params):
        w = np.asarray(w, np.float32)                 # (K, K, Cin, Cout) HWIO
        b = np.asarray(b, np.float32)
        cin, cout = w.shape[2], w.shape[3]
        for dy in range(K):
            for dx in range(K):
                for x in range(W):
                    c0 = x * CPAD
                    if l == 0:
                        r0 = (x + dx) * cin0
                        band0[dy, r0:r0 + cin, c0:c0 + cout] = w[dy, dx]
                    else:
                        r0 = (x + dx + HALO - PAD) * CPAD
                        bands[l - 1, dy, r0:r0 + cin, c0:c0 + cout] = w[dy, dx]
        biases[l] = np.tile(np.pad(b, (0, CPAD - cout)), W)
    return (jnp.asarray(band0, jnp.bfloat16),
            jnp.asarray(bands, jnp.bfloat16),
            jnp.asarray(biases, jnp.float32))


def aligner_reference(params, src_nchw, tgt_nchw):
    """Pure-XLA conv reference with the same bf16 rounding points as the
    Pallas kernel (bf16 weights/activations, f32 accumulation)."""
    x = jnp.concatenate([src_nchw, tgt_nchw], axis=1).astype(jnp.float32)
    n = len(params)
    for l, (w, b) in enumerate(params):
        x = x.astype(jnp.bfloat16).astype(jnp.float32)
        w_oihw = jnp.transpose(w, (3, 2, 0, 1)).astype(jnp.bfloat16).astype(jnp.float32)
        x = lax.conv_general_dilated(
            x, w_oihw, window_strides=(1, 1),
            padding=[(PAD, PAD), (PAD, PAD)],
            dimension_numbers=("NCHW", "OIHW", "NCHW"))
        x = x + b.astype(jnp.float32)[None, :, None, None]
        if l + 1 < n:
            x = jnp.where(x >= 0.0, x, x * NEG_SLOPE)
    return jnp.transpose(x, (0, 2, 3, 1))


# ----------------------------------------------------------------------------
# Pyramid glue (plain JAX, off the hot path at these sizes).
# TODO(synk): downsample/upsample/grid_sample are external SEAMLeSS helpers not
# included in the provided module source; implemented with their standard
# semantics (avg-pool 2^i, bilinear x2 upsample, residual bilinear grid-sample
# with border padding and align_corners=True pixel mapping).
# ----------------------------------------------------------------------------
def downsample(x_nchw, level):
    if level == 0:
        return x_nchw
    f = 2 ** level
    B, C, H, W = x_nchw.shape
    assert H % f == 0 and W % f == 0
    return x_nchw.reshape(B, C, H // f, f, W // f, f).mean(axis=(3, 5))


def upsample2x(field_bhwc):
    B, h, w, C = field_bhwc.shape
    x = jnp.transpose(field_bhwc, (0, 3, 1, 2))
    x = jax.image.resize(x, (B, C, 2 * h, 2 * w), method="bilinear")
    return jnp.transpose(x, (0, 2, 3, 1))


def grid_sample_residual(src_nchw, residual_bhwc):
    """Bilinear sample of src at (identity + residual) normalized coords,
    border padding. residual[..., 0] = x-displacement, [..., 1] = y."""
    B, C, H, W = src_nchw.shape
    id_y, id_x = jnp.meshgrid(jnp.linspace(-1.0, 1.0, H),
                              jnp.linspace(-1.0, 1.0, W), indexing="ij")
    gx = residual_bhwc[..., 0] + id_x
    gy = residual_bhwc[..., 1] + id_y
    px = jnp.clip((gx + 1.0) * 0.5 * (W - 1), 0.0, W - 1)
    py = jnp.clip((gy + 1.0) * 0.5 * (H - 1), 0.0, H - 1)
    x0 = jnp.floor(px)
    y0 = jnp.floor(py)
    wx = (px - x0)[:, None]            # (B, 1, H, W)
    wy = (py - y0)[:, None]
    x0i = x0.astype(jnp.int32)
    y0i = y0.astype(jnp.int32)
    x1i = jnp.clip(x0i + 1, 0, W - 1)
    y1i = jnp.clip(y0i + 1, 0, H - 1)

    def gather(yy, xx):
        return jax.vmap(lambda s, y, x: s[:, y, x])(src_nchw, yy, xx)

    v00 = gather(y0i, x0i)
    v01 = gather(y0i, x1i)
    v10 = gather(y1i, x0i)
    v11 = gather(y1i, x1i)
    return (v00 * (1 - wx) * (1 - wy) + v01 * wx * (1 - wy)
            + v10 * (1 - wx) * wy + v11 * wx * wy)


def aligning_pyramid_forward(prepared_list, src_input, tgt_input, height,
                             accum_field=None):
    for i in reversed(range(height)):
        src = downsample(src_input, i)
        tgt = downsample(tgt_input, i)
        if accum_field is not None:
            accum_field = upsample2x(accum_field)
            src = grid_sample_residual(src, accum_field)
        factor = 2.0 / src.shape[-1]
        res_field = aligner_forward(prepared_list[i], src, tgt) * factor
        if accum_field is not None:
            resampled = jnp.transpose(
                grid_sample_residual(jnp.transpose(accum_field, (0, 3, 1, 2)),
                                     res_field),
                (0, 2, 3, 1))
            accum_field = res_field + resampled
        else:
            accum_field = res_field
    return accum_field


if __name__ == "__main__":
    HEIGHT = 2
    B, CH, S = 2, 1, 16
    key = jax.random.PRNGKey(0)
    k_src, k_tgt, k_par = jax.random.split(key, 3)
    src = jax.random.normal(k_src, (B, CH, S, S), jnp.float32)
    tgt = jax.random.normal(k_tgt, (B, CH, S, S), jnp.float32)
    param_keys = jax.random.split(k_par, HEIGHT)

    raw_params = [init_aligner_params(param_keys[i], channels=CH)
                  for i in range(HEIGHT)]
    prepared_list = [prepare_aligner_params(raw_params[i], W=S >> i)
                     for i in range(HEIGHT)]

    # Correctness gate: fused Pallas aligner vs plain-XLA conv reference at
    # full resolution (same bf16 rounding points, f32 accumulation).
    out0 = aligner_forward(prepared_list[0], src, tgt)
    ref0 = aligner_reference(raw_params[0], src, tgt)
    out0, ref0 = jax.block_until_ready((out0, ref0))
    err = float(jnp.max(jnp.abs(out0 - ref0)))
    tol = 5e-2 * max(1.0, float(jnp.max(jnp.abs(ref0))))
    assert err < tol, f"aligner mismatch: max abs err {err} (tol {tol})"

    field = aligning_pyramid_forward(prepared_list, src, tgt, HEIGHT)
    field = jax.block_until_ready(field)
    assert field.shape == (B, S, S, 2) and field.dtype == jnp.float32
    assert bool(jnp.all(jnp.isfinite(field)))
    print("KERNEL_OK")
</pallas_src>

<mosaic_0001>
module attributes {stable_mosaic.version = 11 : i64} {
  func.func @_aligner_stack_kernel(%arg0: i32, %arg1: memref<2x16x32xbf16, #tpu.memory_space<vmem>>, %arg2: memref<7x128x256xbf16, #tpu.memory_space<vmem>>, %arg3: memref<4x7x384x256xbf16, #tpu.memory_space<vmem>>, %arg4: memref<5x256xf32, #tpu.memory_space<vmem>>, %arg5: memref<1x40x256xf32, #tpu.memory_space<vmem>>, %arg6: memref<48x384xbf16, #tpu.memory_space<vmem>>) attributes {dimension_semantics = [#tpu.dimension_semantics<parallel>], iteration_bounds = array<i64: 1>, scalar_prefetch = 0 : i64, scratch_operands = 1 : i64, tpu.core_type = #tpu.core_type<tc>, window_params = [{transform_indices = @transform_0, window_bounds = array<i64: 2, 16, 32>}, {pipeline_mode = #tpu.pipeline_mode<synchronous>, transform_indices = @transform_1, window_bounds = array<i64: 7, 128, 256>}, {pipeline_mode = #tpu.pipeline_mode<synchronous>, transform_indices = @transform_2, window_bounds = array<i64: 4, 7, 384, 256>}, {pipeline_mode = #tpu.pipeline_mode<synchronous>, transform_indices = @transform_3, window_bounds = array<i64: 5, 256>}, {transform_indices = @transform_4, window_bounds = array<i64: 1, 40, 256>}]} {
    %cst = arith.constant 0.000000e+00 : bf16
    %0 = vector.broadcast %cst : bf16 to vector<48x384xbf16>
    %c0 = arith.constant 0 : index
    %c0_0 = arith.constant 0 : index
    %1 = vector.load %arg6[%c0, %c0_0] : memref<48x384xbf16, #tpu.memory_space<vmem>>, vector<48x384xbf16>
    tpu.vector_store %arg6[%c0, %c0_0], %0 {strides = array<i32>} : memref<48x384xbf16, #tpu.memory_space<vmem>>, vector<48x384xbf16>,
    %c0_1 = arith.constant 0 : index
    %c0_2 = arith.constant 0 : index
    %c0_3 = arith.constant 0 : index
    %2 = vector.load %arg1[%c0_1, %c0_2, %c0_3] : memref<2x16x32xbf16, #tpu.memory_space<vmem>>, vector<1x16x32xbf16>
    %3 = vector.shape_cast %2 : vector<1x16x32xbf16> to vector<16x32xbf16>
    %c3 = arith.constant 3 : index
    %c6 = arith.constant 6 : index
    %4 = vector.load %arg6[%c3, %c6] : memref<48x384xbf16, #tpu.memory_space<vmem>>, vector<16x32xbf16>
    tpu.vector_store %arg6[%c3, %c6], %3 {strides = array<i32>} : memref<48x384xbf16, #tpu.memory_space<vmem>>, vector<16x32xbf16>,
    %c1 = arith.constant 1 : index
    %c0_4 = arith.constant 0 : index
    %c0_5 = arith.constant 0 : index
    %5 = vector.load %arg1[%c1, %c0_4, %c0_5] : memref<2x16x32xbf16, #tpu.memory_space<vmem>>, vector<1x16x32xbf16>
    %6 = vector.shape_cast %5 : vector<1x16x32xbf16> to vector<16x32xbf16>
    %c25 = arith.constant 25 : index
    %c6_6 = arith.constant 6 : index
    %7 = vector.load %arg6[%c25, %c6_6] : memref<48x384xbf16, #tpu.memory_space<vmem>>, vector<16x32xbf16>
    tpu.vector_store %arg6[%c25, %c6_6], %6 {strides = array<i32>} : memref<48x384xbf16, #tpu.memory_space<vmem>>, vector<16x32xbf16>,
    %8 = tpu.iota {dimensions = array<i32: 0>} : vector<40x1xi32>
    %c16_i32 = arith.constant 16 : i32
    %9 = vector.broadcast %c16_i32 : i32 to vector<40x1xi32>
    %10 = arith.cmpi slt, %8, %9 : vector<40x1xi32>
    %c22_i32 = arith.constant 22 : i32
    %11 = vector.broadcast %c22_i32 : i32 to vector<40x1xi32>
    %12 = arith.cmpi sge, %8, %11 : vector<40x1xi32>
    %c38_i32 = arith.constant 38 : i32
    %13 = vector.broadcast %c38_i32 : i32 to vector<40x1xi32>
    %14 = arith.cmpi slt, %8, %13 : vector<40x1xi32>
    %15 = arith.andi %12, %14 : vector<40x1xi1>
    %16 = arith.ori %10, %15 : vector<40x1xi1>
    %c0_7 = arith.constant 0 : index
    %c0_8 = arith.constant 0 : index
    %17 = vector.load %arg4[%c0_7, %c0_8] : memref<5x256xf32, #tpu.memory_space<vmem>>, vector<1x256xf32>
    %18 = vector.shape_cast %17 : vector<1x256xf32> to vector<1x256xf32>
    %19 = vector.broadcast %18 : vector<1x256xf32> to vector<40x256xf32>
    %c0_9 = arith.constant 0 : index
    %c0_10 = arith.constant 0 : index
    %20 = vector.load %arg6[%c0_9, %c0_10] : memref<48x384xbf16, #tpu.memory_space<vmem>>, vector<40x128xbf16>
    %c0_11 = arith.constant 0 : index
    %c0_12 = arith.constant 0 : index
    %c0_13 = arith.constant 0 : index
    %21 = vector.load %arg2[%c0_11, %c0_12, %c0_13] : memref<7x128x256xbf16, #tpu.memory_space<vmem>>, vector<1x128x256xbf16>
    %22 = vector.shape_cast %21 : vector<1x128x256xbf16> to vector<128x256xbf16>
    %cst_14 = arith.constant dense<0.000000e+00> : vector<40x256xf32>
    %23 = tpu.matmul %20, %22, %cst_14 {dimension_numbers = #tpu.dot_dimension_numbers<[1], [0], [0], [1], [0, 0, 1, 1], [], []>} : vector<40x128xbf16>, vector<128x256xbf16>, vector<40x256xf32> -> vector<40x256xf32>
    %24 = arith.addf %19, %23 : vector<40x256xf32>
    %c1_15 = arith.constant 1 : index
    %c0_16 = arith.constant 0 : index
    %25 = vector.load %arg6[%c1_15, %c0_16] : memref<48x384xbf16, #tpu.memory_space<vmem>>, vector<40x128xbf16>
    %c1_17 = arith.constant 1 : index
    %c0_18 = arith.constant 0 : index
    %c0_19 = arith.constant 0 : index
    %26 = vector.load %arg2[%c1_17, %c0_18, %c0_19] : memref<7x128x256xbf16, #tpu.memory_space<vmem>>, vector<1x128x256xbf16>
    %27 = vector.shape_cast %26 : vector<1x128x256xbf16> to vector<128x256xbf16>
    %cst_20 = arith.constant dense<0.000000e+00> : vector<40x256xf32>
    %28 = tpu.matmul %25, %27, %cst_20 {dimension_numbers = #tpu.dot_dimension_numbers<[1], [0], [0], [1], [0, 0, 1, 1], [], []>} : vector<40x128xbf16>, vector<128x256xbf16>, vector<40x256xf32> -> vector<40x256xf32>
    %29 = arith.addf %24, %28 : vector<40x256xf32>
    %c2 = arith.constant 2 : index
    %c0_21 = arith.constant 0 : index
    %30 = vector.load %arg6[%c2, %c0_21] : memref<48x384xbf16, #tpu.memory_space<vmem>>, vector<40x128xbf16>
    %c2_22 = arith.constant 2 : index
    %c0_23 = arith.constant 0 : index
    %c0_24 = arith.constant 0 : index
    %31 = vector.load %arg2[%c2_22, %c0_23, %c0_24] : memref<7x128x256xbf16, #tpu.memory_space<vmem>>, vector<1x128x256xbf16>
    %32 = vector.shape_cast %31 : vector<1x128x256xbf16> to vector<128x256xbf16>
    %cst_25 = arith.constant dense<0.000000e+00> : vector<40x256xf32>
    %33 = tpu.matmul %30, %32, %cst_25 {dimension_numbers = #tpu.dot_dimension_numbers<[1], [0], [0], [1], [0, 0, 1, 1], [], []>} : vector<40x128xbf16>, vector<128x256xbf16>, vector<40x256xf32> -> vector<40x256xf32>
    %34 = arith.addf %29, %33 : vector<40x256xf32>
    %c3_26 = arith.constant 3 : index
    %c0_27 = arith.constant 0 : index
    %35 = vector.load %arg6[%c3_26, %c0_27] : memref<48x384xbf16, #tpu.memory_space<vmem>>, vector<40x128xbf16>
    %c3_28 = arith.constant 3 : index
    %c0_29 = arith.constant 0 : index
    %c0_30 = arith.constant 0 : index
    %36 = vector.load %arg2[%c3_28, %c0_29, %c0_30] : memref<7x128x256xbf16, #tpu.memory_space<vmem>>, vector<1x128x256xbf16>
    %37 = vector.shape_cast %36 : vector<1x128x256xbf16> to vector<128x256xbf16>
    %cst_31 = arith.constant dense<0.000000e+00> : vector<40x256xf32>
    %38 = tpu.matmul %35, %37, %cst_31 {dimension_numbers = #tpu.dot_dimension_numbers<[1], [0], [0], [1], [0, 0, 1, 1], [], []>} : vector<40x128xbf16>, vector<128x256xbf16>, vector<40x256xf32> -> vector<40x256xf32>
    %39 = arith.addf %34, %38 : vector<40x256xf32>
    %c4 = arith.constant 4 : index
    %c0_32 = arith.constant 0 : index
    %40 = vector.load %arg6[%c4, %c0_32] : memref<48x384xbf16, #tpu.memory_space<vmem>>, vector<40x128xbf16>
    %c4_33 = arith.constant 4 : index
    %c0_34 = arith.constant 0 : index
    %c0_35 = arith.constant 0 : index
    %41 = vector.load %arg2[%c4_33, %c0_34, %c0_35] : memref<7x128x256xbf16, #tpu.memory_space<vmem>>, vector<1x128x256xbf16>
    %42 = vector.shape_cast %41 : vector<1x128x256xbf16> to vector<128x256xbf16>
    %cst_36 = arith.constant dense<0.000000e+00> : vector<40x256xf32>
    %43 = tpu.matmul %40, %42, %cst_36 {dimension_numbers = #tpu.dot_dimension_numbers<[1], [0], [0], [1], [0, 0, 1, 1], [], []>} : vector<40x128xbf16>, vector<128x256xbf16>, vector<40x256xf32> -> vector<40x256xf32>
    %44 = arith.addf %39, %43 : vector<40x256xf32>
    %c5 = arith.constant 5 : index
    %c0_37 = arith.constant 0 : index
    %45 = vector.load %arg6[%c5, %c0_37] : memref<48x384xbf16, #tpu.memory_space<vmem>>, vector<40x128xbf16>
    %c5_38 = arith.constant 5 : index
    %c0_39 = arith.constant 0 : index
    %c0_40 = arith.constant 0 : index
    %46 = vector.load %arg2[%c5_38, %c0_39, %c0_40] : memref<7x128x256xbf16, #tpu.memory_space<vmem>>, vector<1x128x256xbf16>
    %47 = vector.shape_cast %46 : vector<1x128x256xbf16> to vector<128x256xbf16>
    %cst_41 = arith.constant dense<0.000000e+00> : vector<40x256xf32>
    %48 = tpu.matmul %45, %47, %cst_41 {dimension_numbers = #tpu.dot_dimension_numbers<[1], [0], [0], [1], [0, 0, 1, 1], [], []>} : vector<40x128xbf16>, vector<128x256xbf16>, vector<40x256xf32> -> vector<40x256xf32>
    %49 = arith.addf %44, %48 : vector<40x256xf32>
    %c6_42 = arith.constant 6 : index
    %c0_43 = arith.constant 0 : index
    %50 = vector.load %arg6[%c6_42, %c0_43] : memref<48x384xbf16, #tpu.memory_space<vmem>>, vector<40x128xbf16>
    %c6_44 = arith.constant 6 : index
    %c0_45 = arith.constant 0 : index
    %c0_46 = arith.constant 0 : index
    %51 = vector.load %arg2[%c6_44, %c0_45, %c0_46] : memref<7x128x256xbf16, #tpu.memory_space<vmem>>, vector<1x128x256xbf16>
    %52 = vector.shape_cast %51 : vector<1x128x256xbf16> to vector<128x256xbf16>
    %cst_47 = arith.constant dense<0.000000e+00> : vector<40x256xf32>
    %53 = tpu.matmul %50, %52, %cst_47 {dimension_numbers = #tpu.dot_dimension_numbers<[1], [0], [0], [1], [0, 0, 1, 1], [], []>} : vector<40x128xbf16>, vector<128x256xbf16>, vector<40x256xf32> -> vector<40x256xf32>
    %54 = arith.addf %49, %53 : vector<40x256xf32>
    %cst_48 = arith.constant 0.000000e+00 : f32
    %55 = vector.broadcast %cst_48 : f32 to vector<40x256xf32>
    %56 = arith.cmpf oge, %54, %55 : vector<40x256xf32>
    %cst_49 = arith.constant 0.00999999977 : f32
    %57 = vector.broadcast %cst_49 : f32 to vector<40x256xf32>
    %58 = arith.mulf %54, %57 : vector<40x256xf32>
    %59 = arith.select %56, %54, %58 : vector<40x256xi1>, vector<40x256xf32>
    %cst_50 = arith.constant 0.000000e+00 : f32
    %60 = vector.shape_cast %16 : vector<40x1xi1> to vector<40x1xi1>
    %61 = vector.broadcast %60 : vector<40x1xi1> to vector<40x256xi1>
    %62 = vector.broadcast %cst_50 : f32 to vector<40x256xf32>
    %63 = arith.select %61, %59, %62 : vector<40x256xi1>, vector<40x256xf32>
    %cst_51 = arith.constant 0.000000e+00 : bf16
    %64 = vector.broadcast %cst_51 : bf16 to vector<48x64xbf16>
    %c0_52 = arith.constant 0 : index
    %c0_53 = arith.constant 0 : index
    %65 = vector.load %arg6[%c0_52, %c0_53] : memref<48x384xbf16, #tpu.memory_space<vmem>>, vector<48x64xbf16>
    tpu.vector_store %arg6[%c0_52, %c0_53], %64 {strides = array<i32>} : memref<48x384xbf16, #tpu.memory_space<vmem>>, vector<48x64xbf16>,
    %66 = arith.truncf %63 : vector<40x256xf32> to vector<40x256xbf16>
    %c3_54 = arith.constant 3 : index
    %c64 = arith.constant 64 : index
    %67 = vector.load %arg6[%c3_54, %c64] : memref<48x384xbf16, #tpu.memory_space<vmem>>, vector<40x256xbf16>
    tpu.vector_store %arg6[%c3_54, %c64], %66 {strides = array<i32>} : memref<48x384xbf16, #tpu.memory_space<vmem>>, vector<40x256xbf16>,
    %c1_55 = arith.constant 1 : index
    %c0_56 = arith.constant 0 : index
    %68 = vector.load %arg4[%c1_55, %c0_56] : memref<5x256xf32, #tpu.memory_space<vmem>>, vector<1x256xf32>
    %69 = vector.shape_cast %68 : vector<1x256xf32> to vector<1x256xf32>
    %70 = vector.broadcast %69 : vector<1x256xf32> to vector<40x256xf32>
    %c0_57 = arith.constant 0 : index
    %c0_58 = arith.constant 0 : index
    %71 = vector.load %arg6[%c0_57, %c0_58] : memref<48x384xbf16, #tpu.memory_space<vmem>>, vector<40x384xbf16>
    %c0_59 = arith.constant 0 : index
    %c0_60 = arith.constant 0 : index
    %c0_61 = arith.constant 0 : index
    %c0_62 = arith.constant 0 : index
    %72 = vector.load %arg3[%c0_59, %c0_60, %c0_61, %c0_62] : memref<4x7x384x256xbf16, #tpu.memory_space<vmem>>, vector<1x1x384x256xbf16>
    %73 = vector.shape_cast %72 : vector<1x1x384x256xbf16> to vector<384x256xbf16>
    %cst_63 = arith.constant dense<0.000000e+00> : vector<40x256xf32>
    %74 = tpu.matmul %71, %73, %cst_63 {dimension_numbers = #tpu.dot_dimension_numbers<[1], [0], [0], [1], [0, 0, 1, 1], [], []>} : vector<40x384xbf16>, vector<384x256xbf16>, vector<40x256xf32> -> vector<40x256xf32>
    %75 = arith.addf %70, %74 : vector<40x256xf32>
    %c1_64 = arith.constant 1 : index
    %c0_65 = arith.constant 0 : index
    %76 = vector.load %arg6[%c1_64, %c0_65] : memref<48x384xbf16, #tpu.memory_space<vmem>>, vector<40x384xbf16>
    %c0_66 = arith.constant 0 : index
    %c1_67 = arith.constant 1 : index
    %c0_68 = arith.constant 0 : index
    %c0_69 = arith.constant 0 : index
    %77 = vector.load %arg3[%c0_66, %c1_67, %c0_68, %c0_69] : memref<4x7x384x256xbf16, #tpu.memory_space<vmem>>, vector<1x1x384x256xbf16>
    %78 = vector.shape_cast %77 : vector<1x1x384x256xbf16> to vector<384x256xbf16>
    %cst_70 = arith.constant dense<0.000000e+00> : vector<40x256xf32>
    %79 = tpu.matmul %76, %78, %cst_70 {dimension_numbers = #tpu.dot_dimension_numbers<[1], [0], [0], [1], [0, 0, 1, 1], [], []>} : vector<40x384xbf16>, vector<384x256xbf16>, vector<40x256xf32> -> vector<40x256xf32>
    %80 = arith.addf %75, %79 : vector<40x256xf32>
    %c2_71 = arith.constant 2 : index
    %c0_72 = arith.constant 0 : index
    %81 = vector.load %arg6[%c2_71, %c0_72] : memref<48x384xbf16, #tpu.memory_space<vmem>>, vector<40x384xbf16>
    %c0_73 = arith.constant 0 : index
    %c2_74 = arith.constant 2 : index
    %c0_75 = arith.constant 0 : index
    %c0_76 = arith.constant 0 : index
    %82 = vector.load %arg3[%c0_73, %c2_74, %c0_75, %c0_76] : memref<4x7x384x256xbf16, #tpu.memory_space<vmem>>, vector<1x1x384x256xbf16>
    %83 = vector.shape_cast %82 : vector<1x1x384x256xbf16> to vector<384x256xbf16>
    %cst_77 = arith.constant dense<0.000000e+00> : vector<40x256xf32>
    %84 = tpu.matmul %81, %83, %cst_77 {dimension_numbers = #tpu.dot_dimension_numbers<[1], [0], [0], [1], [0, 0, 1, 1], [], []>} : vector<40x384xbf16>, vector<384x256xbf16>, vector<40x256xf32> -> vector<40x256xf32>
    %85 = arith.addf %80, %84 : vector<40x256xf32>
    %c3_78 = arith.constant 3 : index
    %c0_79 = arith.constant 0 : index
    %86 = vector.load %arg6[%c3_78, %c0_79] : memref<48x384xbf16, #tpu.memory_space<vmem>>, vector<40x384xbf16>
    %c0_80 = arith.constant 0 : index
    %c3_81 = arith.constant 3 : index
    %c0_82 = arith.constant 0 : index
    %c0_83 = arith.constant 0 : index
    %87 = vector.load %arg3[%c0_80, %c3_81, %c0_82, %c0_83] : memref<4x7x384x256xbf16, #tpu.memory_space<vmem>>, vector<1x1x384x256xbf16>
    %88 = vector.shape_cast %87 : vector<1x1x384x256xbf16> to vector<384x256xbf16>
    %cst_84 = arith.constant dense<0.000000e+00> : vector<40x256xf32>
    %89 = tpu.matmul %86, %88, %cst_84 {dimension_numbers = #tpu.dot_dimension_numbers<[1], [0], [0], [1], [0, 0, 1, 1], [], []>} : vector<40x384xbf16>, vector<384x256xbf16>, vector<40x256xf32> -> vector<40x256xf32>
    %90 = arith.addf %85, %89 : vector<40x256xf32>
    %c4_85 = arith.constant 4 : index
    %c0_86 = arith.constant 0 : index
    %91 = vector.load %arg6[%c4_85, %c0_86] : memref<48x384xbf16, #tpu.memory_space<vmem>>, vector<40x384xbf16>
    %c0_87 = arith.constant 0 : index
    %c4_88 = arith.constant 4 : index
    %c0_89 = arith.constant 0 : index
    %c0_90 = arith.constant 0 : index
    %92 = vector.load %arg3[%c0_87, %c4_88, %c0_89, %c0_90] : memref<4x7x384x256xbf16, #tpu.memory_space<vmem>>, vector<1x1x384x256xbf16>
    %93 = vector.shape_cast %92 : vector<1x1x384x256xbf16> to vector<384x256xbf16>
    %cst_91 = arith.constant dense<0.000000e+00> : vector<40x256xf32>
    %94 = tpu.matmul %91, %93, %cst_91 {dimension_numbers = #tpu.dot_dimension_numbers<[1], [0], [0], [1], [0, 0, 1, 1], [], []>} : vector<40x384xbf16>, vector<384x256xbf16>, vector<40x256xf32> -> vector<40x256xf32>
    %95 = arith.addf %90, %94 : vector<40x256xf32>
    %c5_92 = arith.constant 5 : index
    %c0_93 = arith.constant 0 : index
    %96 = vector.load %arg6[%c5_92, %c0_93] : memref<48x384xbf16, #tpu.memory_space<vmem>>, vector<40x384xbf16>
    %c0_94 = arith.constant 0 : index
    %c5_95 = arith.constant 5 : index
    %c0_96 = arith.constant 0 : index
    %c0_97 = arith.constant 0 : index
    %97 = vector.load %arg3[%c0_94, %c5_95, %c0_96, %c0_97] : memref<4x7x384x256xbf16, #tpu.memory_space<vmem>>, vector<1x1x384x256xbf16>
    %98 = vector.shape_cast %97 : vector<1x1x384x256xbf16> to vector<384x256xbf16>
    %cst_98 = arith.constant dense<0.000000e+00> : vector<40x256xf32>
    %99 = tpu.matmul %96, %98, %cst_98 {dimension_numbers = #tpu.dot_dimension_numbers<[1], [0], [0], [1], [0, 0, 1, 1], [], []>} : vector<40x384xbf16>, vector<384x256xbf16>, vector<40x256xf32> -> vector<40x256xf32>
    %100 = arith.addf %95, %99 : vector<40x256xf32>
    %c6_99 = arith.constant 6 : index
    %c0_100 = arith.constant 0 : index
    %101 = vector.load %arg6[%c6_99, %c0_100] : memref<48x384xbf16, #tpu.memory_space<vmem>>, vector<40x384xbf16>
    %c0_101 = arith.constant 0 : index
    %c6_102 = arith.constant 6 : index
    %c0_103 = arith.constant 0 : index
    %c0_104 = arith.constant 0 : index
    %102 = vector.load %arg3[%c0_101, %c6_102, %c0_103, %c0_104] : memref<4x7x384x256xbf16, #tpu.memory_space<vmem>>, vector<1x1x384x256xbf16>
    %103 = vector.shape_cast %102 : vector<1x1x384x256xbf16> to vector<384x256xbf16>
    %cst_105 = arith.constant dense<0.000000e+00> : vector<40x256xf32>
    %104 = tpu.matmul %101, %103, %cst_105 {dimension_numbers = #tpu.dot_dimension_numbers<[1], [0], [0], [1], [0, 0, 1, 1], [], []>} : vector<40x384xbf16>, vector<384x256xbf16>, vector<40x256xf32> -> vector<40x256xf32>
    %105 = arith.addf %100, %104 : vector<40x256xf32>
    %cst_106 = arith.constant 0.000000e+00 : f32
    %106 = vector.broadcast %cst_106 : f32 to vector<40x256xf32>
    %107 = arith.cmpf oge, %105, %106 : vector<40x256xf32>
    %cst_107 = arith.constant 0.00999999977 : f32
    %108 = vector.broadcast %cst_107 : f32 to vector<40x256xf32>
    %109 = arith.mulf %105, %108 : vector<40x256xf32>
    %110 = arith.select %107, %105, %109 : vector<40x256xi1>, vector<40x256xf32>
    %cst_108 = arith.constant 0.000000e+00 : f32
    %111 = vector.shape_cast %16 : vector<40x1xi1> to vector<40x1xi1>
    %112 = vector.broadcast %111 : vector<40x1xi1> to vector<40x256xi1>
    %113 = vector.broadcast %cst_108 : f32 to vector<40x256xf32>
    %114 = arith.select %112, %110, %113 : vector<40x256xi1>, vector<40x256xf32>
    %115 = arith.truncf %114 : vector<40x256xf32> to vector<40x256xbf16>
    %c3_109 = arith.constant 3 : index
    %c64_110 = arith.constant 64 : index
    %116 = vector.load %arg6[%c3_109, %c64_110] : memref<48x384xbf16, #tpu.memory_space<vmem>>, vector<40x256xbf16>
    tpu.vector_store %arg6[%c3_109, %c64_110], %115 {strides = array<i32>} : memref<48x384xbf16, #tpu.memory_space<vmem>>, vector<40x256xbf16>,
    %c2_111 = arith.constant 2 : index
    %c0_112 = arith.constant 0 : index
    %117 = vector.load %arg4[%c2_111, %c0_112] : memref<5x256xf32, #tpu.memory_space<vmem>>, vector<1x256xf32>
    %118 = vector.shape_cast %117 : vector<1x256xf32> to vector<1x256xf32>
    %119 = vector.broadcast %118 : vector<1x256xf32> to vector<40x256xf32>
    %c0_113 = arith.constant 0 : index
    %c0_114 = arith.constant 0 : index
    %120 = vector.load %arg6[%c0_113, %c0_114] : memref<48x384xbf16, #tpu.memory_space<vmem>>, vector<40x384xbf16>
    %c1_115 = arith.constant 1 : index
    %c0_116 = arith.constant 0 : index
    %c0_117 = arith.constant 0 : index
    %c0_118 = arith.constant 0 : index
    %121 = vector.load %arg3[%c1_115, %c0_116, %c0_117, %c0_118] : memref<4x7x384x256xbf16, #tpu.memory_space<vmem>>, vector<1x1x384x256xbf16>
    %122 = vector.shape_cast %121 : vector<1x1x384x256xbf16> to vector<384x256xbf16>
    %cst_119 = arith.constant dense<0.000000e+00> : vector<40x256xf32>
    %123 = tpu.matmul %120, %122, %cst_119 {dimension_numbers = #tpu.dot_dimension_numbers<[1], [0], [0], [1], [0, 0, 1, 1], [], []>} : vector<40x384xbf16>, vector<384x256xbf16>, vector<40x256xf32> -> vector<40x256xf32>
    %124 = arith.addf %119, %123 : vector<40x256xf32>
    %c1_120 = arith.constant 1 : index
    %c0_121 = arith.constant 0 : index
    %125 = vector.load %arg6[%c1_120, %c0_121] : memref<48x384xbf16, #tpu.memory_space<vmem>>, vector<40x384xbf16>
    %c1_122 = arith.constant 1 : index
    %c1_123 = arith.constant 1 : index
    %c0_124 = arith.constant 0 : index
    %c0_125 = arith.constant 0 : index
    %126 = vector.load %arg3[%c1_122, %c1_123, %c0_124, %c0_125] : memref<4x7x384x256xbf16, #tpu.memory_space<vmem>>, vector<1x1x384x256xbf16>
    %127 = vector.shape_cast %126 : vector<1x1x384x256xbf16> to vector<384x256xbf16>
    %cst_126 = arith.constant dense<0.000000e+00> : vector<40x256xf32>
    %128 = tpu.matmul %125, %127, %cst_126 {dimension_numbers = #tpu.dot_dimension_numbers<[1], [0], [0], [1], [0, 0, 1, 1], [], []>} : vector<40x384xbf16>, vector<384x256xbf16>, vector<40x256xf32> -> vector<40x256xf32>
    %129 = arith.addf %124, %128 : vector<40x256xf32>
    %c2_127 = arith.constant 2 : index
    %c0_128 = arith.constant 0 : index
    %130 = vector.load %arg6[%c2_127, %c0_128] : memref<48x384xbf16, #tpu.memory_space<vmem>>, vector<40x384xbf16>
    %c1_129 = arith.constant 1 : index
    %c2_130 = arith.constant 2 : index
    %c0_131 = arith.constant 0 : index
    %c0_132 = arith.constant 0 : index
    %131 = vector.load %arg3[%c1_129, %c2_130, %c0_131, %c0_132] : memref<4x7x384x256xbf16, #tpu.memory_space<vmem>>, vector<1x1x384x256xbf16>
    %132 = vector.shape_cast %131 : vector<1x1x384x256xbf16> to vector<384x256xbf16>
    %cst_133 = arith.constant dense<0.000000e+00> : vector<40x256xf32>
    %133 = tpu.matmul %130, %132, %cst_133 {dimension_numbers = #tpu.dot_dimension_numbers<[1], [0], [0], [1], [0, 0, 1, 1], [], []>} : vector<40x384xbf16>, vector<384x256xbf16>, vector<40x256xf32> -> vector<40x256xf32>
    %134 = arith.addf %129, %133 : vector<40x256xf32>
    %c3_134 = arith.constant 3 : index
    %c0_135 = arith.constant 0 : index
    %135 = vector.load %arg6[%c3_134, %c0_135] : memref<48x384xbf16, #tpu.memory_space<vmem>>, vector<40x384xbf16>
    %c1_136 = arith.constant 1 : index
    %c3_137 = arith.constant 3 : index
    %c0_138 = arith.constant 0 : index
    %c0_139 = arith.constant 0 : index
    %136 = vector.load %arg3[%c1_136, %c3_137, %c0_138, %c0_139] : memref<4x7x384x256xbf16, #tpu.memory_space<vmem>>, vector<1x1x384x256xbf16>
    %137 = vector.shape_cast %136 : vector<1x1x384x256xbf16> to vector<384x256xbf16>
    %cst_140 = arith.constant dense<0.000000e+00> : vector<40x256xf32>
    %138 = tpu.matmul %135, %137, %cst_140 {dimension_numbers = #tpu.dot_dimension_numbers<[1], [0], [0], [1], [0, 0, 1, 1], [], []>} : vector<40x384xbf16>, vector<384x256xbf16>, vector<40x256xf32> -> vector<40x256xf32>
    %139 = arith.addf %134, %138 : vector<40x256xf32>
    %c4_141 = arith.constant 4 : index
    %c0_142 = arith.constant 0 : index
    %140 = vector.load %arg6[%c4_141, %c0_142] : memref<48x384xbf16, #tpu.memory_space<vmem>>, vector<40x384xbf16>
    %c1_143 = arith.constant 1 : index
    %c4_144 = arith.constant 4 : index
    %c0_145 = arith.constant 0 : index
    %c0_146 = arith.constant 0 : index
    %141 = vector.load %arg3[%c1_143, %c4_144, %c0_145, %c0_146] : memref<4x7x384x256xbf16, #tpu.memory_space<vmem>>, vector<1x1x384x256xbf16>
    %142 = vector.shape_cast %141 : vector<1x1x384x256xbf16> to vector<384x256xbf16>
    %cst_147 = arith.constant dense<0.000000e+00> : vector<40x256xf32>
    %143 = tpu.matmul %140, %142, %cst_147 {dimension_numbers = #tpu.dot_dimension_numbers<[1], [0], [0], [1], [0, 0, 1, 1], [], []>} : vector<40x384xbf16>, vector<384x256xbf16>, vector<40x256xf32> -> vector<40x256xf32>
    %144 = arith.addf %139, %143 : vector<40x256xf32>
    %c5_148 = arith.constant 5 : index
    %c0_149 = arith.constant 0 : index
    %145 = vector.load %arg6[%c5_148, %c0_149] : memref<48x384xbf16, #tpu.memory_space<vmem>>, vector<40x384xbf16>
    %c1_150 = arith.constant 1 : index
    %c5_151 = arith.constant 5 : index
    %c0_152 = arith.constant 0 : index
    %c0_153 = arith.constant 0 : index
    %146 = vector.load %arg3[%c1_150, %c5_151, %c0_152, %c0_153] : memref<4x7x384x256xbf16, #tpu.memory_space<vmem>>, vector<1x1x384x256xbf16>
    %147 = vector.shape_cast %146 : vector<1x1x384x256xbf16> to vector<384x256xbf16>
    %cst_154 = arith.constant dense<0.000000e+00> : vector<40x256xf32>
    %148 = tpu.matmul %145, %147, %cst_154 {dimension_numbers = #tpu.dot_dimension_numbers<[1], [0], [0], [1], [0, 0, 1, 1], [], []>} : vector<40x384xbf16>, vector<384x256xbf16>, vector<40x256xf32> -> vector<40x256xf32>
    %149 = arith.addf %144, %148 : vector<40x256xf32>
    %c6_155 = arith.constant 6 : index
    %c0_156 = arith.constant 0 : index
    %150 = vector.load %arg6[%c6_155, %c0_156] : memref<48x384xbf16, #tpu.memory_space<vmem>>, vector<40x384xbf16>
    %c1_157 = arith.constant 1 : index
    %c6_158 = arith.constant 6 : index
    %c0_159 = arith.constant 0 : index
    %c0_160 = arith.constant 0 : index
    %151 = vector.load %arg3[%c1_157, %c6_158, %c0_159, %c0_160] : memref<4x7x384x256xbf16, #tpu.memory_space<vmem>>, vector<1x1x384x256xbf16>
    %152 = vector.shape_cast %151 : vector<1x1x384x256xbf16> to vector<384x256xbf16>
    %cst_161 = arith.constant dense<0.000000e+00> : vector<40x256xf32>
    %153 = tpu.matmul %150, %152, %cst_161 {dimension_numbers = #tpu.dot_dimension_numbers<[1], [0], [0], [1], [0, 0, 1, 1], [], []>} : vector<40x384xbf16>, vector<384x256xbf16>, vector<40x256xf32> -> vector<40x256xf32>
    %154 = arith.addf %149, %153 : vector<40x256xf32>
    %cst_162 = arith.constant 0.000000e+00 : f32
    %155 = vector.broadcast %cst_162 : f32 to vector<40x256xf32>
    %156 = arith.cmpf oge, %154, %155 : vector<40x256xf32>
    %cst_163 = arith.constant 0.00999999977 : f32
    %157 = vector.broadcast %cst_163 : f32 to vector<40x256xf32>
    %158 = arith.mulf %154, %157 : vector<40x256xf32>
    %159 = arith.select %156, %154, %158 : vector<40x256xi1>, vector<40x256xf32>
    %cst_164 = arith.constant 0.000000e+00 : f32
    %160 = vector.shape_cast %16 : vector<40x1xi1> to vector<40x1xi1>
    %161 = vector.broadcast %160 : vector<40x1xi1> to vector<40x256xi1>
    %162 = vector.broadcast %cst_164 : f32 to vector<40x256xf32>
    %163 = arith.select %161, %159, %162 : vector<40x256xi1>, vector<40x256xf32>
    %164 = arith.truncf %163 : vector<40x256xf32> to vector<40x256xbf16>
    %c3_165 = arith.constant 3 : index
    %c64_166 = arith.constant 64 : index
    %165 = vector.load %arg6[%c3_165, %c64_166] : memref<48x384xbf16, #tpu.memory_space<vmem>>, vector<40x256xbf16>
    tpu.vector_store %arg6[%c3_165, %c64_166], %164 {strides = array<i32>} : memref<48x384xbf16, #tpu.memory_space<vmem>>, vector<40x256xbf16>,
    %c3_167 = arith.constant 3 : index
    %c0_168 = arith.constant 0 : index
    %166 = vector.load %arg4[%c3_167, %c0_168] : memref<5x256xf32, #tpu.memory_space<vmem>>, vector<1x256xf32>
    %167 = vector.shape_cast %166 : vector<1x256xf32> to vector<1x256xf32>
    %168 = vector.broadcast %167 : vector<1x256xf32> to vector<40x256xf32>
    %c0_169 = arith.constant 0 : index
    %c0_170 = arith.constant 0 : index
    %169 = vector.load %arg6[%c0_169, %c0_170] : memref<48x384xbf16, #tpu.memory_space<vmem>>, vector<40x384xbf16>
    %c2_171 = arith.constant 2 : index
    %c0_172 = arith.constant 0 : index
    %c0_173 = arith.constant 0 : index
    %c0_174 = arith.constant 0 : index
    %170 = vector.load %arg3[%c2_171, %c0_172, %c0_173, %c0_174] : memref<4x7x384x256xbf16, #tpu.memory_space<vmem>>, vector<1x1x384x256xbf16>
    %171 = vector.shape_cast %170 : vector<1x1x384x256xbf16> to vector<384x256xbf16>
    %cst_175 = arith.constant dense<0.000000e+00> : vector<40x256xf32>
    %172 = tpu.matmul %169, %171, %cst_175 {dimension_numbers = #tpu.dot_dimension_numbers<[1], [0], [0], [1], [0, 0, 1, 1], [], []>} : vector<40x384xbf16>, vector<384x256xbf16>, vector<40x256xf32> -> vector<40x256xf32>
    %173 = arith.addf %168, %172 : vector<40x256xf32>
    %c1_176 = arith.constant 1 : index
    %c0_177 = arith.constant 0 : index
    %174 = vector.load %arg6[%c1_176, %c0_177] : memref<48x384xbf16, #tpu.memory_space<vmem>>, vector<40x384xbf16>
    %c2_178 = arith.constant 2 : index
    %c1_179 = arith.constant 1 : index
    %c0_180 = arith.constant 0 : index
    %c0_181 = arith.constant 0 : index
    %175 = vector.load %arg3[%c2_178, %c1_179, %c0_180, %c0_181] : memref<4x7x384x256xbf16, #tpu.memory_space<vmem>>, vector<1x1x384x256xbf16>
    %176 = vector.shape_cast %175 : vector<1x1x384x256xbf16> to vector<384x256xbf16>
    %cst_182 = arith.constant dense<0.000000e+00> : vector<40x256xf32>
    %177 = tpu.matmul %174, %176, %cst_182 {dimension_numbers = #tpu.dot_dimension_numbers<[1], [0], [0], [1], [0, 0, 1, 1], [], []>} : vector<40x384xbf16>, vector<384x256xbf16>, vector<40x256xf32> -> vector<40x256xf32>
    %178 = arith.addf %173, %177 : vector<40x256xf32>
    %c2_183 = arith.constant 2 : index
    %c0_184 = arith.constant 0 : index
    %179 = vector.load %arg6[%c2_183, %c0_184] : memref<48x384xbf16, #tpu.memory_space<vmem>>, vector<40x384xbf16>
    %c2_185 = arith.constant 2 : index
    %c2_186 = arith.constant 2 : index
    %c0_187 = arith.constant 0 : index
    %c0_188 = arith.constant 0 : index
    %180 = vector.load %arg3[%c2_185, %c2_186, %c0_187, %c0_188] : memref<4x7x384x256xbf16, #tpu.memory_space<vmem>>, vector<1x1x384x256xbf16>
    %181 = vector.shape_cast %180 : vector<1x1x384x256xbf16> to vector<384x256xbf16>
    %cst_189 = arith.constant dense<0.000000e+00> : vector<40x256xf32>
    %182 = tpu.matmul %179, %181, %cst_189 {dimension_numbers = #tpu.dot_dimension_numbers<[1], [0], [0], [1], [0, 0, 1, 1], [], []>} : vector<40x384xbf16>, vector<384x256xbf16>, vector<40x256xf32> -> vector<40x256xf32>
    %183 = arith.addf %178, %182 : vector<40x256xf32>
    %c3_190 = arith.constant 3 : index
    %c0_191 = arith.constant 0 : index
    %184 = vector.load %arg6[%c3_190, %c0_191] : memref<48x384xbf16, #tpu.memory_space<vmem>>, vector<40x384xbf16>
    %c2_192 = arith.constant 2 : index
    %c3_193 = arith.constant 3 : index
    %c0_194 = arith.constant 0 : index
    %c0_195 = arith.constant 0 : index
    %185 = vector.load %arg3[%c2_192, %c3_193, %c0_194, %c0_195] : memref<4x7x384x256xbf16, #tpu.memory_space<vmem>>, vector<1x1x384x256xbf16>
    %186 = vector.shape_cast %185 : vector<1x1x384x256xbf16> to vector<384x256xbf16>
    %cst_196 = arith.constant dense<0.000000e+00> : vector<40x256xf32>
    %187 = tpu.matmul %184, %186, %cst_196 {dimension_numbers = #tpu.dot_dimension_numbers<[1], [0], [0], [1], [0, 0, 1, 1], [], []>} : vector<40x384xbf16>, vector<384x256xbf16>, vector<40x256xf32> -> vector<40x256xf32>
    %188 = arith.addf %183, %187 : vector<40x256xf32>
    %c4_197 = arith.constant 4 : index
    %c0_198 = arith.constant 0 : index
    %189 = vector.load %arg6[%c4_197, %c0_198] : memref<48x384xbf16, #tpu.memory_space<vmem>>, vector<40x384xbf16>
    %c2_199 = arith.constant 2 : index
    %c4_200 = arith.constant 4 : index
    %c0_201 = arith.constant 0 : index
    %c0_202 = arith.constant 0 : index
    %190 = vector.load %arg3[%c2_199, %c4_200, %c0_201, %c0_202] : memref<4x7x384x256xbf16, #tpu.memory_space<vmem>>, vector<1x1x384x256xbf16>
    %191 = vector.shape_cast %190 : vector<1x1x384x256xbf16> to vector<384x256xbf16>
    %cst_203 = arith.constant dense<0.000000e+00> : vector<40x256xf32>
    %192 = tpu.matmul %189, %191, %cst_203 {dimension_numbers = #tpu.dot_dimension_numbers<[1], [0], [0], [1], [0, 0, 1, 1], [], []>} : vector<40x384xbf16>, vector<384x256xbf16>, vector<40x256xf32> -> vector<40x256xf32>
    %193 = arith.addf %188, %192 : vector<40x256xf32>
    %c5_204 = arith.constant 5 : index
    %c0_205 = arith.constant 0 : index
    %194 = vector.load %arg6[%c5_204, %c0_205] : memref<48x384xbf16, #tpu.memory_space<vmem>>, vector<40x384xbf16>
    %c2_206 = arith.constant 2 : index
    %c5_207 = arith.constant 5 : index
    %c0_208 = arith.constant 0 : index
    %c0_209 = arith.constant 0 : index
    %195 = vector.load %arg3[%c2_206, %c5_207, %c0_208, %c0_209] : memref<4x7x384x256xbf16, #tpu.memory_space<vmem>>, vector<1x1x384x256xbf16>
    %196 = vector.shape_cast %195 : vector<1x1x384x256xbf16> to vector<384x256xbf16>
    %cst_210 = arith.constant dense<0.000000e+00> : vector<40x256xf32>
    %197 = tpu.matmul %194, %196, %cst_210 {dimension_numbers = #tpu.dot_dimension_numbers<[1], [0], [0], [1], [0, 0, 1, 1], [], []>} : vector<40x384xbf16>, vector<384x256xbf16>, vector<40x256xf32> -> vector<40x256xf32>
    %198 = arith.addf %193, %197 : vector<40x256xf32>
    %c6_211 = arith.constant 6 : index
    %c0_212 = arith.constant 0 : index
    %199 = vector.load %arg6[%c6_211, %c0_212] : memref<48x384xbf16, #tpu.memory_space<vmem>>, vector<40x384xbf16>
    %c2_213 = arith.constant 2 : index
    %c6_214 = arith.constant 6 : index
    %c0_215 = arith.constant 0 : index
    %c0_216 = arith.constant 0 : index
    %200 = vector.load %arg3[%c2_213, %c6_214, %c0_215, %c0_216] : memref<4x7x384x256xbf16, #tpu.memory_space<vmem>>, vector<1x1x384x256xbf16>
    %201 = vector.shape_cast %200 : vector<1x1x384x256xbf16> to vector<384x256xbf16>
    %cst_217 = arith.constant dense<0.000000e+00> : vector<40x256xf32>
    %202 = tpu.matmul %199, %201, %cst_217 {dimension_numbers = #tpu.dot_dimension_numbers<[1], [0], [0], [1], [0, 0, 1, 1], [], []>} : vector<40x384xbf16>, vector<384x256xbf16>, vector<40x256xf32> -> vector<40x256xf32>
    %203 = arith.addf %198, %202 : vector<40x256xf32>
    %cst_218 = arith.constant 0.000000e+00 : f32
    %204 = vector.broadcast %cst_218 : f32 to vector<40x256xf32>
    %205 = arith.cmpf oge, %203, %204 : vector<40x256xf32>
    %cst_219 = arith.constant 0.00999999977 : f32
    %206 = vector.broadcast %cst_219 : f32 to vector<40x256xf32>
    %207 = arith.mulf %203, %206 : vector<40x256xf32>
    %208 = arith.select %205, %203, %207 : vector<40x256xi1>, vector<40x256xf32>
    %cst_220 = arith.constant 0.000000e+00 : f32
    %209 = vector.shape_cast %16 : vector<40x1xi1> to vector<40x1xi1>
    %210 = vector.broadcast %209 : vector<40x1xi1> to vector<40x256xi1>
    %211 = vector.broadcast %cst_220 : f32 to vector<40x256xf32>
    %212 = arith.select %210, %208, %211 : vector<40x256xi1>, vector<40x256xf32>
    %213 = arith.truncf %212 : vector<40x256xf32> to vector<40x256xbf16>
    %c3_221 = arith.constant 3 : index
    %c64_222 = arith.constant 64 : index
    %214 = vector.load %arg6[%c3_221, %c64_222] : memref<48x384xbf16, #tpu.memory_space<vmem>>, vector<40x256xbf16>
    tpu.vector_store %arg6[%c3_221, %c64_222], %213 {strides = array<i32>} : memref<48x384xbf16, #tpu.memory_space<vmem>>, vector<40x256xbf16>,
    %c4_223 = arith.constant 4 : index
    %c0_224 = arith.constant 0 : index
    %215 = vector.load %arg4[%c4_223, %c0_224] : memref<5x256xf32, #tpu.memory_space<vmem>>, vector<1x256xf32>
    %216 = vector.shape_cast %215 : vector<1x256xf32> to vector<1x256xf32>
    %217 = vector.broadcast %216 : vector<1x256xf32> to vector<40x256xf32>
    %c0_225 = arith.constant 0 : index
    %c0_226 = arith.constant 0 : index
    %218 = vector.load %arg6[%c0_225, %c0_226] : memref<48x384xbf16, #tpu.memory_space<vmem>>, vector<40x384xbf16>
    %c3_227 = arith.constant 3 : index
    %c0_228 = arith.constant 0 : index
    %c0_229 = arith.constant 0 : index
    %c0_230 = arith.constant 0 : index
    %219 = vector.load %arg3[%c3_227, %c0_228, %c0_229, %c0_230] : memref<4x7x384x256xbf16, #tpu.memory_space<vmem>>, vector<1x1x384x256xbf16>
    %220 = vector.shape_cast %219 : vector<1x1x384x256xbf16> to vector<384x256xbf16>
    %cst_231 = arith.constant dense<0.000000e+00> : vector<40x256xf32>
    %221 = tpu.matmul %218, %220, %cst_231 {dimension_numbers = #tpu.dot_dimension_numbers<[1], [0], [0], [1], [0, 0, 1, 1], [], []>} : vector<40x384xbf16>, vector<384x256xbf16>, vector<40x256xf32> -> vector<40x256xf32>
    %222 = arith.addf %217, %221 : vector<40x256xf32>
    %c1_232 = arith.constant 1 : index
    %c0_233 = arith.constant 0 : index
    %223 = vector.load %arg6[%c1_232, %c0_233] : memref<48x384xbf16, #tpu.memory_space<vmem>>, vector<40x384xbf16>
    %c3_234 = arith.constant 3 : index
    %c1_235 = arith.constant 1 : index
    %c0_236 = arith.constant 0 : index
    %c0_237 = arith.constant 0 : index
    %224 = vector.load %arg3[%c3_234, %c1_235, %c0_236, %c0_237] : memref<4x7x384x256xbf16, #tpu.memory_space<vmem>>, vector<1x1x384x256xbf16>
    %225 = vector.shape_cast %224 : vector<1x1x384x256xbf16> to vector<384x256xbf16>
    %cst_238 = arith.constant dense<0.000000e+00> : vector<40x256xf32>
    %226 = tpu.matmul %223, %225, %cst_238 {dimension_numbers = #tpu.dot_dimension_numbers<[1], [0], [0], [1], [0, 0, 1, 1], [], []>} : vector<40x384xbf16>, vector<384x256xbf16>, vector<40x256xf32> -> vector<40x256xf32>
    %227 = arith.addf %222, %226 : vector<40x256xf32>
    %c2_239 = arith.constant 2 : index
    %c0_240 = arith.constant 0 : index
    %228 = vector.load %arg6[%c2_239, %c0_240] : memref<48x384xbf16, #tpu.memory_space<vmem>>, vector<40x384xbf16>
    %c3_241 = arith.constant 3 : index
    %c2_242 = arith.constant 2 : index
    %c0_243 = arith.constant 0 : index
    %c0_244 = arith.constant 0 : index
    %229 = vector.load %arg3[%c3_241, %c2_242, %c0_243, %c0_244] : memref<4x7x384x256xbf16, #tpu.memory_space<vmem>>, vector<1x1x384x256xbf16>
    %230 = vector.shape_cast %229 : vector<1x1x384x256xbf16> to vector<384x256xbf16>
    %cst_245 = arith.constant dense<0.000000e+00> : vector<40x256xf32>
    %231 = tpu.matmul %228, %230, %cst_245 {dimension_numbers = #tpu.dot_dimension_numbers<[1], [0], [0], [1], [0, 0, 1, 1], [], []>} : vector<40x384xbf16>, vector<384x256xbf16>, vector<40x256xf32> -> vector<40x256xf32>
    %232 = arith.addf %227, %231 : vector<40x256xf32>
    %c3_246 = arith.constant 3 : index
    %c0_247 = arith.constant 0 : index
    %233 = vector.load %arg6[%c3_246, %c0_247] : memref<48x384xbf16, #tpu.memory_space<vmem>>, vector<40x384xbf16>
    %c3_248 = arith.constant 3 : index
    %c3_249 = arith.constant 3 : index
    %c0_250 = arith.constant 0 : index
    %c0_251 = arith.constant 0 : index
    %234 = vector.load %arg3[%c3_248, %c3_249, %c0_250, %c0_251] : memref<4x7x384x256xbf16, #tpu.memory_space<vmem>>, vector<1x1x384x256xbf16>
    %235 = vector.shape_cast %234 : vector<1x1x384x256xbf16> to vector<384x256xbf16>
    %cst_252 = arith.constant dense<0.000000e+00> : vector<40x256xf32>
    %236 = tpu.matmul %233, %235, %cst_252 {dimension_numbers = #tpu.dot_dimension_numbers<[1], [0], [0], [1], [0, 0, 1, 1], [], []>} : vector<40x384xbf16>, vector<384x256xbf16>, vector<40x256xf32> -> vector<40x256xf32>
    %237 = arith.addf %232, %236 : vector<40x256xf32>
    %c4_253 = arith.constant 4 : index
    %c0_254 = arith.constant 0 : index
    %238 = vector.load %arg6[%c4_253, %c0_254] : memref<48x384xbf16, #tpu.memory_space<vmem>>, vector<40x384xbf16>
    %c3_255 = arith.constant 3 : index
    %c4_256 = arith.constant 4 : index
    %c0_257 = arith.constant 0 : index
    %c0_258 = arith.constant 0 : index
    %239 = vector.load %arg3[%c3_255, %c4_256, %c0_257, %c0_258] : memref<4x7x384x256xbf16, #tpu.memory_space<vmem>>, vector<1x1x384x256xbf16>
    %240 = vector.shape_cast %239 : vector<1x1x384x256xbf16> to vector<384x256xbf16>
    %cst_259 = arith.constant dense<0.000000e+00> : vector<40x256xf32>
    %241 = tpu.matmul %238, %240, %cst_259 {dimension_numbers = #tpu.dot_dimension_numbers<[1], [0], [0], [1], [0, 0, 1, 1], [], []>} : vector<40x384xbf16>, vector<384x256xbf16>, vector<40x256xf32> -> vector<40x256xf32>
    %242 = arith.addf %237, %241 : vector<40x256xf32>
    %c5_260 = arith.constant 5 : index
    %c0_261 = arith.constant 0 : index
    %243 = vector.load %arg6[%c5_260, %c0_261] : memref<48x384xbf16, #tpu.memory_space<vmem>>, vector<40x384xbf16>
    %c3_262 = arith.constant 3 : index
    %c5_263 = arith.constant 5 : index
    %c0_264 = arith.constant 0 : index
    %c0_265 = arith.constant 0 : index
    %244 = vector.load %arg3[%c3_262, %c5_263, %c0_264, %c0_265] : memref<4x7x384x256xbf16, #tpu.memory_space<vmem>>, vector<1x1x384x256xbf16>
    %245 = vector.shape_cast %244 : vector<1x1x384x256xbf16> to vector<384x256xbf16>
    %cst_266 = arith.constant dense<0.000000e+00> : vector<40x256xf32>
    %246 = tpu.matmul %243, %245, %cst_266 {dimension_numbers = #tpu.dot_dimension_numbers<[1], [0], [0], [1], [0, 0, 1, 1], [], []>} : vector<40x384xbf16>, vector<384x256xbf16>, vector<40x256xf32> -> vector<40x256xf32>
    %247 = arith.addf %242, %246 : vector<40x256xf32>
    %c6_267 = arith.constant 6 : index
    %c0_268 = arith.constant 0 : index
    %248 = vector.load %arg6[%c6_267, %c0_268] : memref<48x384xbf16, #tpu.memory_space<vmem>>, vector<40x384xbf16>
    %c3_269 = arith.constant 3 : index
    %c6_270 = arith.constant 6 : index
    %c0_271 = arith.constant 0 : index
    %c0_272 = arith.constant 0 : index
    %249 = vector.load %arg3[%c3_269, %c6_270, %c0_271, %c0_272] : memref<4x7x384x256xbf16, #tpu.memory_space<vmem>>, vector<1x1x384x256xbf16>
    %250 = vector.shape_cast %249 : vector<1x1x384x256xbf16> to vector<384x256xbf16>
    %cst_273 = arith.constant dense<0.000000e+00> : vector<40x256xf32>
    %251 = tpu.matmul %248, %250, %cst_273 {dimension_numbers = #tpu.dot_dimension_numbers<[1], [0], [0], [1], [0, 0, 1, 1], [], []>} : vector<40x384xbf16>, vector<384x256xbf16>, vector<40x256xf32> -> vector<40x256xf32>
    %252 = arith.addf %247, %251 : vector<40x256xf32>
    %c0_274 = arith.constant 0 : index
    %c0_275 = arith.constant 0 : index
    %c0_276 = arith.constant 0 : index
    %253 = vector.load %arg5[%c0_274, %c0_275, %c0_276] : memref<1x40x256xf32, #tpu.memory_space<vmem>>, vector<1x40x256xf32>
    %254 = vector.shape_cast %253 : vector<1x40x256xf32> to vector<40x256xf32>
    %255 = vector.shape_cast %252 : vector<40x256xf32> to vector<1x40x256xf32>
    tpu.vector_store %arg5[%c0_274, %c0_275, %c0_276], %255 {strides = array<i32>} : memref<1x40x256xf32, #tpu.memory_space<vmem>>, vector<1x40x256xf32>,
    return
  }
  func.func @transform_0(%arg0: i32) -> (i32, i32, i32) {
    %c0_i32 = arith.constant 0 : i32
    %c0_i32_0 = arith.constant 0 : i32
    %c0_i32_1 = arith.constant 0 : i32
    return %arg0, %c0_i32, %c0_i32_0 : i32, i32, i32
  }
  func.func @transform_1(%arg0: i32) -> (i32, i32, i32) {
    %c0_i32 = arith.constant 0 : i32
    %c0_i32_0 = arith.constant 0 : i32
    %c0_i32_1 = arith.constant 0 : i32
    %c0_i32_2 = arith.constant 0 : i32
    return %c0_i32, %c0_i32_0, %c0_i32_1 : i32, i32, i32
  }
  func.func @transform_2(%arg0: i32) -> (i32, i32, i32, i32) {
    %c0_i32 = arith.constant 0 : i32
    %c0_i32_0 = arith.constant 0 : i32
    %c0_i32_1 = arith.constant 0 : i32
    %c0_i32_2 = arith.constant 0 : i32
    %c0_i32_3 = arith.constant 0 : i32
    return %c0_i32, %c0_i32_0, %c0_i32_1, %c0_i32_2 : i32, i32, i32, i32
  }
  func.func @transform_3(%arg0: i32) -> (i32, i32) {
    %c0_i32 = arith.constant 0 : i32
    %c0_i32_0 = arith.constant 0 : i32
    %c0_i32_1 = arith.constant 0 : i32
    return %c0_i32, %c0_i32_0 : i32, i32
  }
  func.func @transform_4(%arg0: i32) -> (i32, i32, i32) {
    %c0_i32 = arith.constant 0 : i32
    %c0_i32_0 = arith.constant 0 : i32
    %c0_i32_1 = arith.constant 0 : i32
    return %arg0, %c0_i32, %c0_i32_0 : i32, i32, i32
  }
}

</mosaic_0001>

<bundles_post_ra>
// kernel: tpu_custom_call.1
= control target key start
LH: loop header
LB: loop body
LE: loop exit
PB: predicated region body
PF: predicated region fallthrough
CT: control target
= control target key end

     0   :  { %9 = vsyncpa [#allocation4], 0  ;;  %s22583_s0 = inlined_call_operand.hbm [shape: bf16[2,16,32], index: 0, kind: input, shape index: {}]   ;;  %s22584_s1 = inlined_call_operand.hbm [shape: bf16[7,128,256], index: 1, kind: input, shape index: {}]   ;;  %s22585_s2 = inlined_call_operand.hbm [shape: bf16[4,7,384,256], index: 2, kind: input, shape index: {}]   ;;  %s22586_s3 = inlined_call_operand.hbm [shape: f32[5,256], index: 3, kind: input, shape index: {}]   ;;  %s22587_s4 = inlined_call_operand.hbm [shape: f32[1,40,256], index: 4, kind: output, shape index: {}]  }
   0x1   :  { %10 = vsyncpa [#allocation7], 0 }
   0x2   :  { %11 = vsyncpa [#allocation10], 0 }
   0x3   :  { %12 = vsyncpa [#allocation5], 0  ;;  %s20031_s15 = smov [#allocation6]  }
   0x4   :  { %s30_s16 = sshll.u32 %s20031_s15, 4  ;;  %s31_s16 = int_to_ptr.vmem [resolvable:$true] %s30_s16 }
   0x5   :  { %s19931_s17 = scalar_lea.vmem %s31_s16, 14336  ;;  %p19936_p1 = scmp.lt.s32.totalorder %s31_s16, %s31_s16 }
   0x6   :  { %p19932_p0 = scmp.ne.s32.totalorder %s31_s16, %s19931_s17  ;;  %p19937_p2 = scmp.lt.s32.totalorder %s19931_s17, %s19931_s17 }
   0x8   :  { %p19938_p3 = por %p19937_p2, %p19936_p1 }
   0xa   :  { %p19939_p4 = pnand %p19938_p3, %p19932_p0 }
   0xc   :  { %19942 = shalt.err (!%p19939_p4)
}
   0xd   :  { %s20032_s18 = smov 128   ;;  %s20033_s19 = smov 8  }
   0xe   :  { %36 = dma.hbm_to_vmem [thread:$0]  %s22584_s1, 14336, %s31_s16, [#allocation7], %s20032_s18, %s20032_s18, %s20033_s19  }
   0xf   :  { %s20034_s22 = smov [#allocation3]  }
  0x10   :  { %s18_s23 = sshll.u32 %s20034_s22, 4  ;;  %s19_s23 = int_to_ptr.vmem [resolvable:$true] %s18_s23 }
  0x11   :  { %s19951_s24 = scalar_lea.vmem %s19_s23, 256  ;;  %p19956_p6 = scmp.lt.s32.totalorder %s19_s23, %s19_s23 }
  0x12   :  { %p19952_p5 = scmp.ne.s32.totalorder %s19_s23, %s19951_s24  ;;  %p19957_p7 = scmp.lt.s32.totalorder %s19951_s24, %s19951_s24 }
  0x14   :  { %p19958_p8 = por %p19957_p7, %p19956_p6 }
  0x16   :  { %p19959_p9 = pnand %p19958_p8, %p19952_p5 }
  0x18   :  { %19962 = shalt.err (!%p19959_p9)
}
  0x19   :  { %s20035_s25 = smov 64   ;;  %s20036_s26 = smov 4  }
  0x1a   :  { %24 = dma.hbm_to_vmem [thread:$0]  %s22583_s0, 256, %s19_s23, [#allocation4], %s20035_s25, %s20035_s25, %s20036_s26  }
  0x1b   :  { %s20037_s29 = smov [#allocation8]   ;;  %s20038_s30 = smov [#allocation9]  }
  0x1c   :  { %s42_s1 = sshll.u32 %s20037_s29, 4  ;;  %s55_s5 = sshll.u32 %s20038_s30, 4  ;;  %s43_s1 = int_to_ptr.vmem [resolvable:$true] %s42_s1  ;;  %s56_s5 = int_to_ptr.vmem [resolvable:$true] %s55_s5 }
  0x1d   :  { %s19971_s6 = scalar_lea.vmem %s43_s1, 172032  ;;  %p19976_p11 = scmp.lt.s32.totalorder %s43_s1, %s43_s1 }
  0x1e   :  { %p19972_p10 = scmp.ne.s32.totalorder %s43_s1, %s19971_s6  ;;  %p19977_p12 = scmp.lt.s32.totalorder %s19971_s6, %s19971_s6 }
  0x20   :  { %p19978_p13 = por %p19977_p12, %p19976_p11 }
  0x22   :  { %p19979_p0 = pnand %p19978_p13, %p19972_p10 }
  0x24   :  { %19982 = shalt.err (!%p19979_p0)
}
  0x25   :  { %48 = dma.hbm_to_vmem [thread:$0]  %s22585_s2, 172032, %s43_s1, [#allocation7], %s20032_s18, %s20032_s18, %s20033_s19  }
  0x26   :  { %s19991_s0 = scalar_lea.vmem %s56_s5, 256  ;;  %p19996_p2 = scmp.lt.s32.totalorder %s56_s5, %s56_s5 }
  0x27   :  { %p19992_p1 = scmp.ne.s32.totalorder %s56_s5, %s19991_s0  ;;  %p19997_p3 = scmp.lt.s32.totalorder %s19991_s0, %s19991_s0 }
  0x29   :  { %p19998_p4 = por %p19997_p3, %p19996_p2 }
  0x2b   :  { %p19999_p5 = pnand %p19998_p4, %p19992_p1 }
  0x2d   :  { %20002 = shalt.err (!%p19999_p5)
}
  0x2e   :  { %58 = dma.hbm_to_vmem [thread:$0]  %s22586_s3, 256, %s56_s5, [#allocation10]  }
  0x2f   :  { %20023 = dma.done.wait [#allocation4], 256  }
  0x30   :  { %20024 = vsyncadd [#allocation4], 4294967040 }
  0x31   :  { %20025 = dma.done.wait [#allocation7], 186368  }
  0x32   :  { %20026 = vsyncadd [#allocation7], 4294780928 }
  0x33   :  { %20027 = dma.done.wait [#allocation10], 256  }
  0x34   :  { %20028 = vsyncadd [#allocation10], 4294967040  ;;  %v22588_v0 = vmov 0   ;;  %vm86_vm0 = vsmask.f32 1280  ;;  %s20040_s2 = smov 6  }
  0x35   :  { %72 = vst [vmem:[#allocation2] sm:$0xff] %v22588_v0  ;;  %73 = vst [vmem:[#allocation2 + $0x8] sm:$0xf] %v22588_v0  ;;  %366 = vmatprep.mubr.bf16.mxu0 %v22588_v0  ;;  %582 = vmatprep.mubr.bf16.mxu1 %v22588_v0  ;;  %vm87_vm1 = vsmask.f32 5392  ;;  %vm117_vm6 = vcmask 306225  }
  0x36   :  { %74 = vst [vmem:[#allocation2 + $0xc] sm:$0xff] %v22588_v0  ;;  %75 = vst [vmem:[#allocation2 + $0x14] sm:$0xf] %v22588_v0  ;;  %vm133_vm2 = vsmask.f32 256  ;;  %vm125_vm8 = vcmask 304176  }
  0x37   :  { %76 = vst [vmem:[#allocation2 + $0x18] sm:$0xff] %v22588_v0  ;;  %77 = vst [vmem:[#allocation2 + $0x20] sm:$0xf] %v22588_v0  ;;  %v84_v1 = vld [vmem:[#allocation3] sm:$0xf]  ;;  %vm123_vm11 = vcmask 306224  }
  0x38   :  { %78 = vst [vmem:[#allocation2 + $0x24] sm:$0xff] %v22588_v0  ;;  %79 = vst [vmem:[#allocation2 + $0x2c] sm:$0xf] %v22588_v0  ;;  %v85_v2 = vld [vmem:[#allocation3 + $0x4] sm:$0xf]  ;;  %v90_v4 = vshrl.u32 %v84_v1, 16 }
  0x39   :  { %80 = vst [vmem:[#allocation2 + $0x30] sm:$0xff] %v22588_v0  ;;  %81 = vst [vmem:[#allocation2 + $0x38] sm:$0xf] %v22588_v0  ;;  %v131_v3 = vld [vmem:[#allocation3 + $0x8] sm:$0xf]  ;;  %v93_v5 = vshll.u32 %v84_v1, 16 }
  0x3a   :  { %82 = vst [vmem:[#allocation2 + $0x3c] sm:$0xff] %v22588_v0  ;;  %83 = vst [vmem:[#allocation2 + $0x44] sm:$0xf] %v22588_v0  ;;  %v99_v6 = vshrl.u32 %v85_v2, 16  ;;  %v102_v7 = vshll.u32 %v85_v2, 16  ;;  %v137_v9 = vshrl.u32 %v131_v3, 16 }
  0x3b   :  { %v132_v8 = vld [vmem:[#allocation3 + $0xc] sm:$0xf]  ;;  %v140_v10 = vshll.u32 %v131_v3, 16  ;;  %v92_v12 = vrot.slane %v90_v4, 6  ;;  %v95_v13 = vrot.slane %v93_v5, 7  ;;  %vm20105_vm3 = vmor %vm86_vm0, %vm87_vm1  ;;  %vm169_vm14 = vcmask 303152  }
  0x3c   :  { %v145_v11 = vshrl.u32 %v132_v8, 16  ;;  %v101_v14 = vrot.slane %v99_v6, 6  ;;  %v104_v15 = vrot.slane %v102_v7, 7  ;;  %v17591_v17 = vld [vmem:[#allocation6 + $0x74] ss:$8 sps:$4 sm:$0xff]   ;;  %v148_v19 = vshll.u32 %v132_v8, 16  ;;  %vm126_vm10 = vmand %vm125_vm8, %vm86_vm0 }
  0x3d   :  { %v17593_v20 = vld [vmem:[#allocation6 + $0x70] ss:$8 sps:$4 sm:$0xff]   ;;  %v96_v21 = vor.u32 %v95_v13, %v92_v12  ;;  %v139_v23 = vrot.slane %v137_v9, 7  ;;  %334 = vmatprep.subr.bf16.mxu0 %v17591_v17  ;;  %v17594_v24 = vld [vmem:[#allocation6 + $0x64] ss:$8 sps:$4 sm:$0xff]   ;;  %vm20127_vm15 = vmand %vm169_vm14, %vm133_vm2  ;;  %vm1608_vm1 = vcmask 519168  }
  0x3e   :  { %v147_v18 = vrot.slane %v145_v11, 7  ;;  %v105_v22 = vor.u32 %v104_v15, %v101_v14  ;;  %v17596_v25 = vld [vmem:[#allocation6 + $0x60] ss:$8 sps:$4 sm:$0xff]   ;;  %vm134_vm4 = vsmask.f32 4368  ;;  %335 = vmatpush1.bf16.msra.mxu0 %v17593_v20  ;;  %s20041_s3 = smov [#allocation11]  }
  0x3f   :  { %v17597_v26 = vld [vmem:[#allocation6 + $0x54] ss:$8 sps:$4 sm:$0xff]   ;;  %108 = vrot.lane.b32.xlu0 %v96_v21, %s20040_s2  ;;  %v97_v27 = vrot.slane %v96_v21, 4  ;;  %336 = vmatprep.subr.bf16.mxu0 %v17594_v24  ;;  %v143_v30 = vrot.slane %v139_v23, 4  ;;  %v17602_v32 = vld [vmem:[#allocation6 + $0xf0] ss:$8 sps:$4 sm:$0xff]   ;;  %v142_v34 = vor.u32 %v140_v10, %v139_v23  ;;  %vm135_vm5 = vmor %vm133_vm2, %vm134_vm4 }
  0x40   :  { %v107_v28 = vrot.slane %v105_v22, 4  ;;  %v17599_v29 = vld [vmem:[#allocation6 + $0xf4] ss:$8 sps:$4 sm:$0xff]   ;;  %v150_v31 = vor.u32 %v148_v19, %v147_v18  ;;  %v17601_v35 = vld [vmem:[#allocation6 + $0x50] ss:$8 sps:$4 sm:$0xff]   ;;  %v152_v41 = vrot.slane %v147_v18, 4 }
  0x41   :  { %v106_v33 = vsel %vm20105_vm3, %v97_v27, %v105_v22  ;;  %550 = vmatprep.subr.bf16.mxu1 %v17599_v29  ;;  %v17605_v36 = vld [vmem:[#allocation6 + $0xe4] ss:$8 sps:$4 sm:$0xff]   ;;  %v17608_v37 = vld [vmem:[#allocation6 + $0xe0] ss:$8 sps:$4 sm:$0xff]   ;;  %v17611_v40 = vld [vmem:[#allocation6 + $0xd4] ss:$8 sps:$4 sm:$0xff]  }
  0x42   :  { %112 = vrot.lane.b32.xlu1 %v107_v28, %s20040_s2  ;;  %337 = vmatpush1.bf16.msra.mxu0 %v17596_v25  ;;  %v17603_v38 = vld [vmem:[#allocation6 + $0x44] ss:$8 sps:$4 sm:$0xff]   ;;  %v151_v39 = vsel %vm135_vm5, %v143_v30, %v150_v31  ;;  %v17607_v42 = vld [vmem:[#allocation6 + $0x40] ss:$8 sps:$4 sm:$0xff]   ;;  %v17609_v43 = vld [vmem:[#allocation6 + $0x34] ss:$8 sps:$4 sm:$0xff]  }
  0x43   :  { %551 = vmatpush1.bf16.msra.mxu1 %v17602_v32  ;;  %110 = vrot.lane.b32.xlu0 %v106_v33, %s20040_s2  ;;  %v17614_v44 = vld [vmem:[#allocation6 + $0xd0] ss:$8 sps:$4 sm:$0xff]   ;;  %v17617_v45 = vld [vmem:[#allocation6 + $0xc4] ss:$8 sps:$4 sm:$0xff]   ;;  %v17620_v47 = vld [vmem:[#allocation6 + $0xc0] ss:$8 sps:$4 sm:$0xff]  }
  0x44   :  { %338 = vmatprep.subr.bf16.mxu0 %v17597_v26  ;;  %552 = vmatprep.subr.bf16.mxu1 %v17605_v36  ;;  %v17613_v46 = vld [vmem:[#allocation6 + $0x30] ss:$8 sps:$4 sm:$0xff]   ;;  %v17615_v48 = vld [vmem:[#allocation6 + $0x24] ss:$8 sps:$4 sm:$0xff]   ;;  %v17623_v49 = vld [vmem:[#allocation6 + $0xb4] ss:$8 sps:$4 sm:$0xff]  }
  0x45   :  { %v17619_v50 = vld [vmem:[#allocation6 + $0x20] ss:$8 sps:$4 sm:$0xff]   ;;  %v17621_v51 = vld [vmem:[#allocation6 + $0x14] ss:$8 sps:$4 sm:$0xff]   ;;  %v17626_v52 = vld [vmem:[#allocation6 + $0xb0] ss:$8 sps:$4 sm:$0xff]  }
  0x46   :  { %153 = vrot.lane.b32.xlu1 %v142_v34, %s20040_s2  ;;  %339 = vmatpush1.bf16.msra.mxu0 %v17601_v35  ;;  %v17629_v53 = vld [vmem:[#allocation6 + $0xa4] ss:$8 sps:$4 sm:$0xff]   ;;  %v17625_v54 = vld [vmem:[#allocation6 + $0x10] ss:$8 sps:$4 sm:$0xff]   ;;  %v17632_v56 = vld [vmem:[#allocation6 + $0xa0] ss:$8 sps:$4 sm:$0xff]  }
  0x47   :  { %553 = vmatpush1.bf16.msra.mxu1 %v17608_v37  ;;  %155 = vrot.lane.b32.xlu0 %v151_v39, %s20040_s2  ;;  %v17627_v55 = vld [vmem:[#allocation6 + $0x4] ss:$8 sps:$4 sm:$0xff]   ;;  %v17633_v57 = vld [vmem:[#allocation6 + $0x94] ss:$8 sps:$4 sm:$0xff]   ;;  %v17631_v58 = vld [vmem:[#allocation6] ss:$8 sps:$4 sm:$0xff]  }
  0x48   :  { %340 = vmatprep.subr.bf16.mxu0 %v17603_v38  ;;  %554 = vmatprep.subr.bf16.mxu1 %v17611_v40  ;;  %v17637_v59 = vld [vmem:[#allocation6 + $0x174] ss:$8 sps:$4 sm:$0xff]   ;;  %v17638_v60 = vld [vmem:[#allocation6 + $0x90] ss:$8 sps:$4 sm:$0xff]   ;;  %v17640_v61 = vld [vmem:[#allocation6 + $0x84] ss:$8 sps:$4 sm:$0xff]  }
  0x49   :  { %v17645_v62 = vld [vmem:[#allocation6 + $0x80] ss:$8 sps:$4 sm:$0xff]   ;;  %v17651_v63 = vld [vmem:[#allocation6 + $0x1f4] ss:$8 sps:$4 sm:$0xff]   ;;  %vm118_vm7 = vsmask.f32 7942 }
  0x4a   :  { %157 = vrot.lane.b32.xlu1 %v152_v41, %s20040_s2  ;;  %341 = vmatpush1.bf16.msra.mxu0 %v17607_v42  ;;  %vm119_vm9 = vmand %vm117_vm6, %vm118_vm7  ;;  %vm163_vm12 = vsmask.f32 7938  ;;  %v120_v1 = vld [vmem:[#allocation2] sm:$0xe]  ;;  %v127_v3 = vld [vmem:[#allocation2 + $0x18] sm:$0x3] }
  0x4b   :  { %555 = vmatpush1.bf16.msra.mxu1 %v17614_v44  ;;  %342 = vmatprep.subr.bf16.mxu0 %v17609_v43  ;;  %vm20122_vm13 = vmand %vm123_vm11, %vm163_vm12  ;;  %v165_v8 = vld [vmem:[#allocation2 + $0x24] sm:$0xf]  ;;  %v171_v12 = vld [vmem:[#allocation2 + $0x3c] sm:$0x1]  ;;  %vm443_vm2 = vsmask.f32 7424 }
  0x4c   :  { %556 = vmatprep.subr.bf16.mxu1 %v17617_v45  ;;  %v17635_v15 = vld [vmem:[#allocation6 + $0x170] ss:$8 sps:$4 sm:$0xff]   ;;  %v17644_v18 = vld [vmem:[#allocation6 + $0x164] ss:$8 sps:$4 sm:$0xff]   ;;  %v17642_v27 = vld [vmem:[#allocation6 + $0x160] ss:$8 sps:$4 sm:$0xff]  }
  0x4d   :  { %v17648_v31 = vld [vmem:[#allocation6 + $0x154] ss:$8 sps:$4 sm:$0xff]   ;;  %v17646_v34 = vld [vmem:[#allocation6 + $0x150] ss:$8 sps:$4 sm:$0xff]   ;;  %v17655_v41 = vld [vmem:[#allocation6 + $0x144] ss:$8 sps:$4 sm:$0xff]  }
  0x4e   :  { %343 = vmatpush1.bf16.msra.mxu0 %v17613_v46  ;;  %v17649_v37 = vld [vmem:[#allocation6 + $0x1f0] ss:$8 sps:$4 sm:$0xff]   ;;  %v17658_v42 = vld [vmem:[#allocation6 + $0x1e4] ss:$8 sps:$4 sm:$0xff]   ;;  %v17675_v2 = vld [vmem:[#allocation6 + $0x114] ss:$8 sps:$4 sm:$0xff]  }
  0x4f   :  { %557 = vmatpush1.bf16.msra.mxu1 %v17620_v47  ;;  %344 = vmatprep.subr.bf16.mxu0 %v17615_v48  ;;  %v17673_v5 = vld [vmem:[#allocation6 + $0x110] ss:$8 sps:$4 sm:$0xff]   ;;  %vm642_vm4 = vcmask 1046528   ;;  %vm22598_vm5 = vsmask.f32 6400  ;;  %vm22597_vm6 = vcmask 1045504  }
  0x50   :  { %558 = vmatprep.subr.bf16.mxu1 %v17623_v49  ;;  %v17653_v49 = vld [vmem:[#allocation6 + $0x140] ss:$8 sps:$4 sm:$0xff]   ;;  %vm1201_vm8 = vsmask.f32 5376  ;;  %s15925_s11 = sshll.u32 %s20041_s3, 4  ;;  %s15926_s11 = int_to_ptr.vmem [resolvable:$true] %s15925_s11 }
  0x51   :  { %s20003_s12 = scalar_lea.vmem %s15926_s11, 1280  ;;  %p20008_p7 = scmp.lt.s32.totalorder %s15926_s11, %s15926_s11 }
  0x52   :  { %345 = vmatpush1.bf16.msra.mxu0 %v17619_v50  ;;  %p20004_p6 = scmp.ne.s32.totalorder %s15926_s11, %s20003_s12  ;;  %p20009_p8 = scmp.lt.s32.totalorder %s20003_s12, %s20003_s12 }
  0x53   :  { %559 = vmatpush1.bf16.msra.mxu1 %v17626_v52  ;;  %346 = vmatprep.subr.bf16.mxu0 %v17621_v51  ;;  %v17656_v51 = vld [vmem:[#allocation6 + $0x1e0] ss:$8 sps:$4 sm:$0xff]   ;;  %v17661_v52 = vld [vmem:[#allocation6 + $0x134] ss:$8 sps:$4 sm:$0xff]  }
  0x54   :  { %560 = vmatprep.subr.bf16.mxu1 %v17629_v53  ;;  %p20010_p9 = por %p20009_p8, %p20008_p7 }
  0x56   :  { %347 = vmatpush1.bf16.msra.mxu0 %v17625_v54  ;;  %p20011_p10 = pnand %p20010_p9, %p20004_p6 }
  0x57   :  { %561 = vmatpush1.bf16.msra.mxu1 %v17632_v56  ;;  %348 = vmatprep.subr.bf16.mxu0 %v17627_v55  ;;  %v17664_v55 = vld [vmem:[#allocation6 + $0x1d4] ss:$8 sps:$4 sm:$0xff]  }
  0x58   :  { %562 = vmatprep.subr.bf16.mxu1 %v17633_v57 }
  0x5a   :  { %349 = vmatpush1.bf16.msra.mxu0 %v17631_v58  ;;  %v17659_v58 = vld [vmem:[#allocation6 + $0x130] ss:$8 sps:$4 sm:$0xff]  }
  0x5b   :  { %563 = vmatpush1.bf16.msra.mxu1 %v17638_v60  ;;  %731 = vmatprep.subr.bf16.mxu0 %v17637_v59  ;;  %v17662_v59 = vld [vmem:[#allocation6 + $0x1d0] ss:$8 sps:$4 sm:$0xff]   ;;  %v17669_v60 = vld [vmem:[#allocation6 + $0x124] ss:$8 sps:$4 sm:$0xff]  }
  0x5c   :  { %564 = vmatprep.subr.bf16.mxu1 %v17640_v61  ;;  %v17672_v61 = vld [vmem:[#allocation6 + $0x1c4] ss:$8 sps:$4 sm:$0xff]  }
  0x5f   :  { %565 = vmatpush1.bf16.msra.mxu1 %v17645_v62 }
  0x60   :  { %928 = vmatprep.subr.bf16.mxu1 %v17651_v63  ;;  %v17667_v63 = vld [vmem:[#allocation6 + $0x120] ss:$8 sps:$4 sm:$0xff]  }
  0xb1   :  { %v109_v4 = vpop.permute.xlu0 %108 }
  0xb2   :  { %v121_v6 = vsel %vm119_vm9, %v109_v4, %v120_v1  ;;  %v17670_v1 = vld [vmem:[#allocation6 + $0x1c0] ss:$8 sps:$4 sm:$0xff]   ;;  %vm22596_vm9 = vcmask 1044480  }
  0xb3   :  { %122 = vst [vmem:[#allocation2] sm:$0xe] %v121_v6  ;;  %v17676_v6 = vld [vmem:[#allocation6 + $0x1b0] ss:$8 sps:$4 sm:$0xff]  }
  0xb4   :  { %v113_v7 = vpop.permute.xlu1 %112 }
  0xb5   :  { %v128_v9 = vsel %vm126_vm10, %v113_v7, %v127_v3  ;;  %v111_v10 = vpop.permute.xlu0 %110  ;;  %v17678_v3 = vld [vmem:[#allocation6 + $0x1b4] ss:$8 sps:$4 sm:$0xff]   ;;  %v17681_v7 = vld [vmem:[#allocation6 + $0x104] ss:$8 sps:$4 sm:$0xff]  }
  0xb6   :  { %129 = vst [vmem:[#allocation2 + $0x18] sm:$0x3] %v128_v9  ;;  %124 = vst.msk [vmem:[#allocation2 + $0xc] sm:$0xf] %vm123_vm11, %v111_v10  ;;  %v17684_v9 = vld [vmem:[#allocation6 + $0x1a4] ss:$8 sps:$4 sm:$0xff]  }
  0xb7   :  { %v17679_v10 = vld [vmem:[#allocation6 + $0x100] ss:$8 sps:$4 sm:$0xff]  }
  0xb8   :  { %v154_v11 = vpop.permute.xlu1 %153 }
  0xb9   :  { %v166_v13 = vsel %vm20122_vm13, %v154_v11, %v165_v8  ;;  %v156_v14 = vpop.permute.xlu0 %155  ;;  %v17682_v11 = vld [vmem:[#allocation6 + $0x1a0] ss:$8 sps:$4 sm:$0xff]  }
  0xba   :  { %167 = vst [vmem:[#allocation2 + $0x24] sm:$0xf] %v166_v13  ;;  %168 = vst.msk [vmem:[#allocation2 + $0x30] sm:$0xf] %vm123_vm11, %v156_v14  ;;  %v405_v19 = vld [vmem:[#allocation2] sm:$0xf] }
  0xbb   :  { %v20135_v20 = vld [vmem:[#allocation2] sm:$0xe]  ;;  %v17687_v14 = vld [vmem:[#allocation6 + $0x194] ss:$8 sps:$4 sm:$0xff]  }
  0xbc   :  { %v158_v17 = vpop.permute.xlu1 %157  ;;  %v20137_v21 = vld [vmem:[#allocation2] sm:$0xc] }
  0xbd   :  { %v20139_v22 = vld [vmem:[#allocation2] sm:$0x8]  ;;  %v407_v23 = vld [vmem:[#allocation2 + $0x18] sm:$0xf]  ;;  %v172_v24 = vsel %vm20127_vm15, %v158_v17, %v171_v12  ;;  %v20143_v26 = vld [vmem:[#allocation2 + $0xc] sm:$0xf] }
  0xbe   :  { %173 = vst [vmem:[#allocation2 + $0x3c] sm:$0x1] %v172_v24  ;;  %v17639_v25 = vld [vmem:[#allocation2] ss:$12 sps:$4 sm:$0xff]   ;;  %v15958_v28 = vcombine.low %v405_v19, %v20143_v26  ;;  %v15977_v13 = vcombine.low %v20135_v20, %v20143_v26  ;;  %v17688_v17 = vld [vmem:[#allocation6 + $0x270] ss:$8 sps:$4 sm:$0xff]  }
  0xbf   :  { %1610 = vst.msk [vmem:[#allocation2 + $0xc] sm:$0xf] %vm1608_vm1, %v22588_v0  ;;  %1609 = vst.msk [vmem:[#allocation2] sm:$0xf] %vm1608_vm1, %v22588_v0  ;;  %367 = vmatmul.mubr.bf16.vlgmr.msra.gmra.mxu0 %v17639_v25  ;;  %v17690_v12 = vld [vmem:[#allocation6 + $0x274] ss:$8 sps:$4 sm:$0xff]  }
  0xc0   :  { %732 = vmatpush1.bf16.msra.mxu0 %v17635_v15  ;;  %376 = vmatprep.mubr.bf16.mxu0 %v22588_v0  ;;  %v447_v33 = vshll.u32 %v15958_v28, 16  ;;  %v445_v38 = vshrl.u32 %v15958_v28, 16  ;;  %v17696_v19 = vld [vmem:[#allocation6 + $0x264] ss:$8 sps:$4 sm:$0xff]   ;;  %v825_v25 = vshrl.u32 %v15977_v13, 16 }
  0xc1   :  { %v17652_v29 = vld [vmem:[#allocation2 + $0x18] ss:$12 sps:$4 sm:$0xff]   ;;  %733 = vmatprep.subr.bf16.mxu0 %v17644_v18  ;;  %v20157_v35 = vld [vmem:[#allocation2 + $0x30] sm:$0xf] }
  0xc2   :  { %v408_v30 = vld [vmem:[#allocation2 + $0x24] sm:$0xf]  ;;  %1611 = vst.msk [vmem:[#allocation2 + $0x18] sm:$0xf] %vm1608_vm1, %v22588_v0  ;;  %v17666_v36 = vld [vmem:[#allocation2 + $0x30] ss:$0 sps:$4 sm:$0xff]  }
  0xc3   :  { %1612 = vst.msk [vmem:[#allocation2 + $0x24] sm:$0xf] %vm1608_vm1, %v22588_v0  ;;  %v20155_v32 = vcombine.low %v407_v23, %v408_v30  ;;  %v449_v39 = vrot.slane %v447_v33, 1  ;;  %1613 = vst.msk [vmem:[#allocation2 + $0x30] sm:$0xf] %vm1608_vm1, %v22588_v0  ;;  %v643_v23 = vrot.slane %v15977_v13, 1 }
  0xc4   :  { %734 = vmatpush1.bf16.msra.mxu0 %v17642_v27  ;;  %v17685_v18 = vld [vmem:[#allocation6 + $0x190] ss:$8 sps:$4 sm:$0xff]   ;;  %v17693_v24 = vld [vmem:[#allocation6 + $0x184] ss:$8 sps:$4 sm:$0xff]   ;;  %v828_v27 = vshll.u32 %v15977_v13, 16  ;;  %v16011_v13 = vcombine.low %v20137_v21, %v20143_v26 }
  0xc5   :  { %v20160_v40 = vshll.u32 %v20155_v32, 16  ;;  %v410_v43 = vld [vmem:[#allocation2 + $0x3c] sm:$0x1]  ;;  %735 = vmatprep.subr.bf16.mxu0 %v17648_v31  ;;  %v450_v45 = vor.u32 %v449_v39, %v445_v38  ;;  %v20176_v53 = vshrl.u32 %v20155_v32, 16  ;;  %v644_v15 = vrot.slane %v20155_v32, 1 }
  0xc6   :  { %v20164_v44 = vld [vmem:[#allocation2 + $0x3c] sm:$0x3]  ;;  %v20168_v47 = vcombine.low %v20157_v35, %v410_v43  ;;  %v17694_v28 = vld [vmem:[#allocation6 + $0x260] ss:$8 sps:$4 sm:$0xff]   ;;  %v17699_v33 = vld [vmem:[#allocation6 + $0x254] ss:$8 sps:$4 sm:$0xff]  }
  0xc7   :  { %v454_v46 = vrot.slane %v20160_v40, 1  ;;  %v20170_v48 = vld [vmem:[#allocation2 + $0x3c] sm:$0x7]  ;;  %377 = vmatmul.mubr.bf16.gmra.mxu0 %v17652_v29  ;;  %v645_v20 = vsel %vm642_vm4, %v643_v23, %v644_v15  ;;  %v17691_v29 = vld [vmem:[#allocation6 + $0x180] ss:$8 sps:$4 sm:$0xff]   ;;  %v832_v30 = vrot.slane %v20176_v53, 1 }
  0xc8   :  { %1614 = vst.msk [vmem:[#allocation2 + $0x3c] sm:$0xf] %vm1608_vm1, %v22588_v0  ;;  %v460_v54 = vshll.u32 %v20168_v47, 16  ;;  %736 = vmatpush1.bf16.msra.mxu0 %v17646_v34  ;;  %386 = vmatprep.mubr.bf16.mxu0 %v22588_v0  ;;  %v464_v4 = vshrl.u32 %v20168_v47, 16  ;;  %v833_v31 = vrot.slane %v20160_v40, 2  ;;  %v20195_v34 = vcombine.low %v20157_v35, %v20164_v44 }
  0xc9   :  { %v455_v50 = vsel %vm443_vm2, %v450_v45, %v454_v46  ;;  %737 = vmatprep.subr.bf16.mxu0 %v17655_v41  ;;  %v458_v56 = vor.u32 %v20176_v53, %v454_v46  ;;  %v830_v38 = vrot.slane %v828_v27, 2  ;;  %v646_v39 = vrot.slane %v20168_v47, 1  ;;  %v17697_v41 = vld [vmem:[#allocation6 + $0x250] ss:$8 sps:$4 sm:$0xff]   ;;  %v17705_v45 = vld [vmem:[#allocation6 + $0x244] ss:$8 sps:$4 sm:$0xff]  }
  0xca   :  { %583 = vmatmul.mubr.bf16.vlgmr.msra.gmra.mxu1 %v455_v50  ;;  %v462_v57 = vrot.slane %v460_v54, 1  ;;  %v17700_v43 = vld [vmem:[#allocation6 + $0x2f0] ss:$8 sps:$4 sm:$0xff]   ;;  %v837_v46 = vshrl.u32 %v20195_v34, 16  ;;  %v840_v44 = vshll.u32 %v20195_v34, 16  ;;  %v1021_v23 = vrot.slane %v16011_v13, 2 }
  0xcb   :  { %929 = vmatpush1.bf16.msra.mxu1 %v17649_v37  ;;  %592 = vmatprep.mubr.bf16.mxu1 %v22588_v0  ;;  %v827_v37 = vrot.slane %v825_v25, 1  ;;  %v17706_v54 = vld [vmem:[#allocation6 + $0x2e0] ss:$8 sps:$4 sm:$0xff]   ;;  %v1203_v25 = vshrl.u32 %v16011_v13, 16  ;;  %v1206_v27 = vshll.u32 %v16011_v13, 16 }
  0xcc   :  { %930 = vmatprep.subr.bf16.mxu1 %v17658_v42  ;;  %738 = vmatpush1.bf16.msra.mxu0 %v17653_v49  ;;  %v463_v62 = vsel %vm443_vm2, %v458_v56, %v462_v57  ;;  %v466_v8 = vor.u32 %v464_v4, %v462_v57  ;;  %v834_v42 = vor.u32 %v833_v31, %v832_v30  ;;  %v17708_v49 = vld [vmem:[#allocation6 + $0x2e4] ss:$8 sps:$4 sm:$0xff]   ;;  %v842_v56 = vrot.slane %v840_v44, 2  ;;  %v17711_v57 = vld [vmem:[#allocation6 + $0x234] ss:$8 sps:$4 sm:$0xff]  }
  0xcd   :  { %739 = vmatprep.subr.bf16.mxu0 %v17661_v52  ;;  %v831_v50 = vor.u32 %v830_v38, %v827_v37  ;;  %v17703_v52 = vld [vmem:[#allocation6 + $0x240] ss:$8 sps:$4 sm:$0xff]   ;;  %v17723_v4 = vld [vmem:[#allocation6 + $0x214] ss:$8 sps:$4 sm:$0xff]   ;;  %v1211_v30 = vrot.slane %v20160_v40, 3  ;;  %v1208_v37 = vrot.slane %v1206_v27, 3 }
  0xce   :  { %v17747_v31 = vld [vmem:[#allocation6 + $0x354] ss:$8 sps:$4 sm:$0xff]   ;;  %v1024_v38 = vrot.slane %v20195_v34, 2  ;;  %v17769_v27 = vld [vmem:[#allocation8 + $0x50] ss:$8 sps:$4 sm:$0xff]  }
  0xcf   :  { %931 = vmatpush1.bf16.msra.mxu1 %v17656_v51  ;;  %387 = vmatmul.mubr.bf16.gmra.mxu0 %v17666_v36  ;;  %v17702_v36 = vld [vmem:[#allocation6 + $0x2f4] ss:$8 sps:$4 sm:$0xff]   ;;  %v647_v51 = vsel %vm642_vm4, %v644_v15, %v646_v39  ;;  %v835_v47 = vsel %vm22598_vm5, %v831_v50, %v834_v42  ;;  %v1022_v15 = vrot.slane %v20155_v32, 2 }
  0xd0   :  { %932 = vmatprep.subr.bf16.mxu1 %v17664_v55  ;;  %740 = vmatpush1.bf16.msra.mxu0 %v17659_v58  ;;  %v839_v55 = vrot.slane %v837_v46, 1  ;;  %v17714_v58 = vld [vmem:[#allocation6 + $0x2d4] ss:$8 sps:$4 sm:$0xff]  }
  0xd1   :  { %741 = vmatprep.subr.bf16.mxu0 %v17669_v60  ;;  %763 = vmatprep.mubr.bf16.mxu0 %v22588_v0  ;;  %v1023_v21 = vsel %vm22597_vm6, %v1021_v23, %v1022_v15  ;;  %v17753_v44 = vld [vmem:[#allocation6 + $0x334] ss:$8 sps:$4 sm:$0xff]  }
  0xd2   :  { %593 = vmatmul.mubr.bf16.gmra.mxu1 %v463_v62  ;;  %v843_v60 = vor.u32 %v842_v56, %v839_v55  ;;  %v17717_v62 = vld [vmem:[#allocation6 + $0x224] ss:$8 sps:$4 sm:$0xff]   ;;  %v17757_v55 = vld [vmem:[#allocation6 + $0x310] ss:$8 sps:$4 sm:$0xff]   ;;  %v17771_v13 = vld [vmem:[#allocation8 + $0x54] ss:$8 sps:$4 sm:$0xff]  }
  0xd3   :  { %933 = vmatpush1.bf16.msra.mxu1 %v17662_v59  ;;  %602 = vmatprep.mubr.bf16.mxu1 %v22588_v0  ;;  %v17709_v59 = vld [vmem:[#allocation6 + $0x230] ss:$8 sps:$4 sm:$0xff]   ;;  %v17762_v56 = vld [vmem:[#allocation6 + $0x304] ss:$8 sps:$4 sm:$0xff]  }
  0xd4   :  { %934 = vmatprep.subr.bf16.mxu1 %v17672_v61  ;;  %742 = vmatpush1.bf16.msra.mxu0 %v17667_v63  ;;  %v17712_v61 = vld [vmem:[#allocation6 + $0x2d0] ss:$8 sps:$4 sm:$0xff]   ;;  %v17720_v63 = vld [vmem:[#allocation6 + $0x2c4] ss:$8 sps:$4 sm:$0xff]  }
  0xd5   :  { %743 = vmatprep.subr.bf16.mxu0 %v17675_v2  ;;  %v844_v2 = vsel %vm22598_vm5, %v834_v42, %v843_v60 }
  0xd7   :  { %935 = vmatpush1.bf16.msra.mxu1 %v17670_v1  ;;  %v17715_v1 = vld [vmem:[#allocation6 + $0x220] ss:$8 sps:$4 sm:$0xff]  }
  0xd8   :  { %936 = vmatprep.subr.bf16.mxu1 %v17678_v3  ;;  %744 = vmatpush1.bf16.msra.mxu0 %v17673_v5  ;;  %v17718_v3 = vld [vmem:[#allocation6 + $0x2c0] ss:$8 sps:$4 sm:$0xff]   ;;  %v17726_v5 = vld [vmem:[#allocation6 + $0x2b4] ss:$8 sps:$4 sm:$0xff]  }
  0xd9   :  { %745 = vmatprep.subr.bf16.mxu0 %v17681_v7  ;;  %v17724_v7 = vld [vmem:[#allocation6 + $0x2b0] ss:$8 sps:$4 sm:$0xff]  }
  0xda   :  { %603 = vmatmul.mubr.bf16.gmra.mxu1 %v466_v8  ;;  %v17729_v8 = vld [vmem:[#allocation6 + $0x204] ss:$8 sps:$4 sm:$0xff]  }
  0xdb   :  { %937 = vmatpush1.bf16.msra.mxu1 %v17676_v6  ;;  %960 = vmatprep.mubr.bf16.mxu1 %v22588_v0  ;;  %v17721_v6 = vld [vmem:[#allocation6 + $0x210] ss:$8 sps:$4 sm:$0xff]  }
  0xdc   :  { %938 = vmatprep.subr.bf16.mxu1 %v17684_v9  ;;  %746 = vmatpush1.bf16.msra.mxu0 %v17679_v10  ;;  %v17732_v9 = vld [vmem:[#allocation6 + $0x2a4] ss:$8 sps:$4 sm:$0xff]   ;;  %v17727_v10 = vld [vmem:[#allocation6 + $0x200] ss:$8 sps:$4 sm:$0xff]  }
  0xdd   :  { %1109 = vmatprep.subr.bf16.mxu0 %v17690_v12  ;;  %v17738_v12 = vld [vmem:[#allocation6 + $0x374] ss:$8 sps:$4 sm:$0xff]  }
  0xdf   :  { %939 = vmatpush1.bf16.msra.mxu1 %v17682_v11  ;;  %764 = vmatmul.mubr.bf16.vlgmr.msra.gmra.mxu0 %v645_v20  ;;  %v17730_v11 = vld [vmem:[#allocation6 + $0x2a0] ss:$8 sps:$4 sm:$0xff]  }
  0xe0   :  { %940 = vmatprep.subr.bf16.mxu1 %v17687_v14  ;;  %1110 = vmatpush1.bf16.msra.mxu0 %v17688_v17  ;;  %v17735_v14 = vld [vmem:[#allocation6 + $0x294] ss:$8 sps:$4 sm:$0xff]   ;;  %v17736_v17 = vld [vmem:[#allocation6 + $0x370] ss:$8 sps:$4 sm:$0xff]   ;;  %v17742_v20 = vld [vmem:[#allocation6 + $0x360] ss:$8 sps:$4 sm:$0xff]  }
  0xe1   :  { %773 = vmatprep.mubr.bf16.mxu0 %v22588_v0  ;;  %1111 = vmatprep.subr.bf16.mxu0 %v17696_v19  ;;  %v17744_v19 = vld [vmem:[#allocation6 + $0x364] ss:$8 sps:$4 sm:$0xff]  }
  0xe3   :  { %941 = vmatpush1.bf16.msra.mxu1 %v17685_v18  ;;  %v17733_v18 = vld [vmem:[#allocation6 + $0x290] ss:$8 sps:$4 sm:$0xff]  }
  0xe4   :  { %942 = vmatprep.subr.bf16.mxu1 %v17693_v24  ;;  %1112 = vmatpush1.bf16.msra.mxu0 %v17694_v28  ;;  %v17741_v24 = vld [vmem:[#allocation6 + $0x284] ss:$8 sps:$4 sm:$0xff]   ;;  %v17739_v28 = vld [vmem:[#allocation6 + $0x280] ss:$8 sps:$4 sm:$0xff]  }
  0xe5   :  { %1113 = vmatprep.subr.bf16.mxu0 %v17699_v33  ;;  %v20217_v33 = vcombine.low %v20157_v35, %v20170_v48  ;;  %v1025_v48 = vsel %vm22597_vm6, %v1022_v15, %v1024_v38  ;;  %vm1709_vm6 = vcmask 523264  }
  0xe7   :  { %943 = vmatpush1.bf16.msra.mxu1 %v17691_v29  ;;  %774 = vmatmul.mubr.bf16.gmra.mxu0 %v647_v51  ;;  %v1210_v29 = vrot.slane %v20176_v53, 2  ;;  %v17750_v53 = vld [vmem:[#allocation6 + $0x344] ss:$8 sps:$4 sm:$0xff]   ;;  %v1215_v40 = vshrl.u32 %v20217_v33, 16  ;;  %v1218_v42 = vshll.u32 %v20217_v33, 16 }
  0xe8   :  { %1306 = vmatprep.subr.bf16.mxu1 %v17702_v36  ;;  %1114 = vmatpush1.bf16.msra.mxu0 %v17697_v41  ;;  %v1205_v36 = vrot.slane %v1203_v25, 2  ;;  %v17756_v51 = vld [vmem:[#allocation6 + $0x324] ss:$8 sps:$4 sm:$0xff]  }
  0xe9   :  { %1115 = vmatprep.subr.bf16.mxu0 %v17705_v45  ;;  %783 = vmatprep.mubr.bf16.mxu0 %v22588_v0  ;;  %v1212_v41 = vor.u32 %v1211_v30, %v1210_v29  ;;  %v1217_v46 = vrot.slane %v1215_v40, 2  ;;  %v1220_v34 = vrot.slane %v1218_v42, 3  ;;  %v17793_v29 = vld [vmem:[#allocation8 + $0x160] ss:$8 sps:$4 sm:$0xff]   ;;  %v17799_v42 = vld [vmem:[#allocation8 + $0x150] ss:$8 sps:$4 sm:$0xff]  }
  0xea   :  { %961 = vmatmul.mubr.bf16.vlgmr.msra.gmra.mxu1 %v835_v47  ;;  %v1209_v35 = vor.u32 %v1208_v37, %v1205_v36  ;;  %v17801_v36 = vld [vmem:[#allocation8 + $0x154] ss:$8 sps:$4 sm:$0xff]  }
  0xeb   :  { %1307 = vmatpush1.bf16.msra.mxu1 %v17700_v43  ;;  %970 = vmatprep.mubr.bf16.mxu1 %v22588_v0  ;;  %v17748_v43 = vld [vmem:[#allocation6 + $0x340] ss:$8 sps:$4 sm:$0xff]   ;;  %v1221_v50 = vor.u32 %v1220_v34, %v1217_v46  ;;  %v17780_v34 = vld [vmem:[#allocation8 + $0x24] ss:$8 sps:$4 sm:$0xff]  }
  0xec   :  { %1308 = vmatprep.subr.bf16.mxu1 %v17708_v49  ;;  %1116 = vmatpush1.bf16.msra.mxu0 %v17703_v52  ;;  %v1213_v45 = vsel %vm1201_vm8, %v1209_v35, %v1212_v41  ;;  %v17751_v49 = vld [vmem:[#allocation6 + $0x330] ss:$8 sps:$4 sm:$0xff]   ;;  %v17754_v52 = vld [vmem:[#allocation6 + $0x320] ss:$8 sps:$4 sm:$0xff]  }
  0xed   :  { %1117 = vmatprep.subr.bf16.mxu0 %v17711_v57  ;;  %v1222_v47 = vsel %vm1201_vm8, %v1212_v41, %v1221_v50  ;;  %v17760_v57 = vld [vmem:[#allocation6 + $0x300] ss:$8 sps:$4 sm:$0xff]  }
  0xee   :  { %v17772_v41 = vld [vmem:[#allocation8 + $0x40] ss:$8 sps:$4 sm:$0xff]  }
  0xef   :  { %1309 = vmatpush1.bf16.msra.mxu1 %v17706_v54  ;;  %784 = vmatmul.mubr.bf16.gmra.mxu0 %v646_v39  ;;  %v17745_v39 = vld [vmem:[#allocation6 + $0x350] ss:$8 sps:$4 sm:$0xff]   ;;  %v17759_v54 = vld [vmem:[#allocation6 + $0x314] ss:$8 sps:$4 sm:$0xff]  }
  0xf0   :  { %1310 = vmatprep.subr.bf16.mxu1 %v17714_v58  ;;  %1118 = vmatpush1.bf16.msra.mxu0 %v17709_v59  ;;  %v16045_v58 = vcombine.low %v20139_v22, %v20143_v26  ;;  %v1400_v59 = vrot.slane %v20155_v32, 3  ;;  %v174_v22 = vlaneseq  ;;  %v205_v32 = vld [vmem:[#allocation9] ss:$8 sm:$0x3] }
  0xf1   :  { %1119 = vmatprep.subr.bf16.mxu0 %v17717_v62  ;;  %1141 = vmatprep.mubr.bf16.mxu0 %v22588_v0  ;;  %v1402_v62 = vrot.slane %v20217_v33, 3 }
  0xf2   :  { %971 = vmatmul.mubr.bf16.gmra.mxu1 %v844_v2  ;;  %v20239_v26 = vshrl.u32 %v174_v22, 7  ;;  %v17781_v22 = vld [vmem:[#allocation8 + $0x10] ss:$8 sps:$4 sm:$0xff]  }
  0xf3   :  { %1311 = vmatpush1.bf16.msra.mxu1 %v17712_v61  ;;  %980 = vmatprep.mubr.bf16.mxu1 %v22588_v0 }
  0xf4   :  { %1312 = vmatprep.subr.bf16.mxu1 %v17720_v63  ;;  %1120 = vmatpush1.bf16.msra.mxu0 %v17715_v1  ;;  %v1403_v63 = vsel %vm22596_vm9, %v1400_v59, %v1402_v62  ;;  %v20242_v1 = vsub.s32 0, %v20239_v26 }
  0xf5   :  { %1121 = vmatprep.subr.bf16.mxu0 %v17723_v4 }
  0xf6   :  { %22620 = vst [vmem:[#allocation16_spill] sm:$0xff] %v20242_v1 }
  0xf7   :  { %1313 = vmatpush1.bf16.msra.mxu1 %v17718_v3  ;;  %v20245_v3 = vsub.s32 1, %v20239_v26 }
  0xf8   :  { %1314 = vmatprep.subr.bf16.mxu1 %v17726_v5  ;;  %1122 = vmatpush1.bf16.msra.mxu0 %v17721_v6  ;;  %v17763_v5 = vld [vmem:[#allocation8 + $0x70] ss:$8 sps:$4 sm:$0xff]   ;;  %v17765_v6 = vld [vmem:[#allocation8 + $0x74] ss:$8 sps:$4 sm:$0xff]  }
  0xf9   :  { %1123 = vmatprep.subr.bf16.mxu0 %v17729_v8  ;;  %22621 = vst [vmem:[#allocation17_spill] sm:$0xff] %v20245_v3 }
  0xfa   :  { %981 = vmatmul.mubr.bf16.gmra.mxu1 %v843_v60  ;;  %v1399_v60 = vrot.slane %v16045_v58, 3  ;;  %v17783_v58 = vld [vmem:[#allocation8 + $0x14] ss:$8 sps:$4 sm:$0xff]  }
  0xfb   :  { %1315 = vmatpush1.bf16.msra.mxu1 %v17724_v7  ;;  %1338 = vmatprep.mubr.bf16.mxu1 %v22588_v0  ;;  %v20248_v7 = vrot.slane %v205_v32, %v20242_v1 }
  0xfc   :  { %1316 = vmatprep.subr.bf16.mxu1 %v17732_v9  ;;  %1124 = vmatpush1.bf16.msra.mxu0 %v17727_v10  ;;  %v1401_v61 = vsel %vm22596_vm9, %v1399_v60, %v1400_v59  ;;  %v17768_v9 = vld [vmem:[#allocation8 + $0x64] ss:$8 sps:$4 sm:$0xff]   ;;  %v20251_v10 = vrot.slane %v205_v32, %v20245_v3 }
  0xfd   :  { %1487 = vmatprep.subr.bf16.mxu0 %v17738_v12  ;;  %v17766_v12 = vld [vmem:[#allocation8 + $0x60] ss:$8 sps:$4 sm:$0xff]  }
  0xff   :  { %1317 = vmatpush1.bf16.msra.mxu1 %v17730_v11  ;;  %1142 = vmatmul.mubr.bf16.vlgmr.msra.gmra.mxu0 %v1023_v21  ;;  %v17795_v21 = vld [vmem:[#allocation8 + $0x164] ss:$8 sps:$4 sm:$0xff]  }
 0x100   :  { %1318 = vmatprep.subr.bf16.mxu1 %v17735_v14  ;;  %1488 = vmatpush1.bf16.msra.mxu0 %v17736_v17  ;;  %v17787_v17 = vld [vmem:[#allocation8 + $0x170] ss:$8 sps:$4 sm:$0xff]  }
 0x101   :  { %1151 = vmatprep.mubr.bf16.mxu0 %v22588_v0  ;;  %1489 = vmatprep.subr.bf16.mxu0 %v17744_v19 }
 0x103   :  { %1319 = vmatpush1.bf16.msra.mxu1 %v17733_v18  ;;  %v17789_v18 = vld [vmem:[#allocation8 + $0x174] ss:$8 sps:$4 sm:$0xff]  }
 0x104   :  { %1320 = vmatprep.subr.bf16.mxu1 %v17741_v24  ;;  %1490 = vmatpush1.bf16.msra.mxu0 %v17742_v20 }
 0x105   :  { %1491 = vmatprep.subr.bf16.mxu0 %v17747_v31 }
 0x107   :  { %1321 = vmatpush1.bf16.msra.mxu1 %v17739_v28  ;;  %1152 = vmatmul.mubr.bf16.gmra.mxu0 %v1025_v48  ;;  %v17774_v28 = vld [vmem:[#allocation8 + $0x44] ss:$8 sps:$4 sm:$0xff]  }
 0x108   :  { %1492 = vmatpush1.bf16.msra.mxu0 %v17745_v39  ;;  %1161 = vmatprep.mubr.bf16.mxu0 %v22588_v0 }
 0x109   :  { %1493 = vmatprep.subr.bf16.mxu0 %v17750_v53  ;;  %2120 = vmatprep.subr.bf16.mxu1 %v17765_v6  ;;  %v17777_v53 = vld [vmem:[#allocation8 + $0x34] ss:$8 sps:$4 sm:$0xff]  }
 0x10a   :  { %1339 = vmatmul.mubr.bf16.vlgmr.msra.gmra.mxu1 %v1213_v45  ;;  %v17807_v45 = vld [vmem:[#allocation8 + $0x144] ss:$8 sps:$4 sm:$0xff]  }
 0x10b   :  { %1348 = vmatprep.mubr.bf16.mxu1 %v22588_v0  ;;  %2121 = vmatpush1.bf16.msra.mxu1 %v17763_v5 }
 0x10c   :  { %1494 = vmatpush1.bf16.msra.mxu0 %v17748_v43  ;;  %2122 = vmatprep.subr.bf16.mxu1 %v17768_v9  ;;  %v17775_v43 = vld [vmem:[#allocation8 + $0x30] ss:$8 sps:$4 sm:$0xff]   ;;  %v17792_v9 = vld [vmem:[#allocation8 + $0xf4] ss:$8 sps:$4 sm:$0xff]  }
 0x10d   :  { %1495 = vmatprep.subr.bf16.mxu0 %v17753_v44  ;;  %v17805_v44 = vld [vmem:[#allocation8 + $0x140] ss:$8 sps:$4 sm:$0xff]  }
 0x10f   :  { %1162 = vmatmul.mubr.bf16.gmra.mxu0 %v1024_v38  ;;  %2123 = vmatpush1.bf16.msra.mxu1 %v17766_v12 }
 0x110   :  { %1496 = vmatpush1.bf16.msra.mxu0 %v17751_v49  ;;  %1519 = vmatprep.mubr.bf16.mxu0 %v22588_v0 }
 0x111   :  { %1497 = vmatprep.subr.bf16.mxu0 %v17756_v51  ;;  %2124 = vmatprep.subr.bf16.mxu1 %v17771_v13 }
 0x112   :  { %1349 = vmatmul.mubr.bf16.gmra.mxu1 %v1222_v47 }
 0x113   :  { %1358 = vmatprep.mubr.bf16.mxu1 %v22588_v0  ;;  %2125 = vmatpush1.bf16.msra.mxu1 %v17769_v27 }
 0x114   :  { %1498 = vmatpush1.bf16.msra.mxu0 %v17754_v52  ;;  %2126 = vmatprep.subr.bf16.mxu1 %v17774_v28  ;;  %v17810_v28 = vld [vmem:[#allocation8 + $0xc4] ss:$8 sps:$4 sm:$0xff]  }
 0x115   :  { %1499 = vmatprep.subr.bf16.mxu0 %v17759_v54 }
 0x117   :  { %2127 = vmatpush1.bf16.msra.mxu1 %v17772_v41 }
 0x118   :  { %1500 = vmatpush1.bf16.msra.mxu0 %v17757_v55  ;;  %2128 = vmatprep.subr.bf16.mxu1 %v17777_v53 }
 0x119   :  { %1501 = vmatprep.subr.bf16.mxu0 %v17762_v56  ;;  %v17778_v56 = vld [vmem:[#allocation8 + $0x20] ss:$8 sps:$4 sm:$0xff]  }
 0x11a   :  { %1359 = vmatmul.mubr.bf16.gmra.mxu1 %v1221_v50 }
 0x11b   :  { %2129 = vmatpush1.bf16.msra.mxu1 %v17775_v43 }
 0x11c   :  { %1502 = vmatpush1.bf16.msra.mxu0 %v17760_v57  ;;  %2130 = vmatprep.subr.bf16.mxu1 %v17780_v34 }
 0x11d   :  { %2181 = vmatprep.subr.bf16.mxu0 %v17789_v18 }
 0x11f   :  { %1520 = vmatmul.mubr.bf16.vlgmr.msra.gmra.mxu0 %v1401_v61  ;;  %2131 = vmatpush1.bf16.msra.mxu1 %v17778_v56 }
 0x120   :  { %1529 = vmatprep.mubr.bf16.mxu0 %v22588_v0  ;;  %2182 = vmatpush1.bf16.msra.mxu0 %v17787_v17 }
 0x121   :  { %2183 = vmatprep.subr.bf16.mxu0 %v17795_v21  ;;  %2132 = vmatprep.subr.bf16.mxu1 %v17783_v58  ;;  %v17802_v21 = vld [vmem:[#allocation8 + $0xd0] ss:$8 sps:$4 sm:$0xff]  }
 0x123   :  { %2133 = vmatpush1.bf16.msra.mxu1 %v17781_v22 }
 0x124   :  { %2184 = vmatpush1.bf16.msra.mxu0 %v17793_v29 }
 0x125   :  { %2185 = vmatprep.subr.bf16.mxu0 %v17801_v36  ;;  %v17808_v36 = vld [vmem:[#allocation8 + $0xc0] ss:$8 sps:$4 sm:$0xff]  }
 0x127   :  { %1530 = vmatmul.mubr.bf16.gmra.mxu0 %v1403_v63 }
 0x128   :  { %1539 = vmatprep.mubr.bf16.mxu0 %v22588_v0  ;;  %2186 = vmatpush1.bf16.msra.mxu0 %v17799_v42 }
 0x129   :  { %2187 = vmatprep.subr.bf16.mxu0 %v17807_v45 }
 0x12c   :  { %2188 = vmatpush1.bf16.msra.mxu0 %v17805_v44 }
 0x12f   :  { %1540 = vmatmul.mubr.bf16.gmra.mxu0 %v1402_v62 }
 0x130   :  { %2213 = vmatprep.mubr.bf16.mxu0 %v22588_v0 }
 0x17f   :  { %v368_v2 = vpop.f32.mrf.mxu0 }
 0x180   :  { %v395_v14 = vadd.f32 %v368_v2, %v20248_v7  ;;  %v17786_v2 = vld [vmem:[#allocation8 + $0x4] ss:$8 sps:$4 sm:$0xff]  }
 0x181   :  { %v370_v4 = vpop.f32.mrf.mxu0  ;;  %2134 = vmatprep.subr.bf16.mxu1 %v17786_v2 }
 0x182   :  { %v396_v23 = vadd.f32 %v370_v4, %v20251_v10 }
 0x183   :  { %v372_v8 = vpop.f32.mrf.mxu0 }
 0x184   :  { %v397_v30 = vadd.f32 %v372_v8, %v20248_v7 }
 0x185   :  { %v20253_v11 = vpop.f32.mrf.mxu0 }
 0x187   :  { %v378_v15 = vpop.f32.mrf.mxu0 }
 0x188   :  { %v399_v35 = vadd.f32 %v378_v15, %v20248_v7  ;;  %v17798_v15 = vld [vmem:[#allocation8 + $0xe4] ss:$8 sps:$4 sm:$0xff]  }
 0x189   :  { %v380_v25 = vpop.f32.mrf.mxu0 }
 0x18a   :  { %v584_v19 = vpop.f32.mrf.mxu1  ;;  %v400_v49 = vadd.f32 %v380_v25, %v20251_v10 }
 0x18b   :  { %v20257_v24 = vadd.f32 %v584_v19, %v395_v14  ;;  %v382_v33 = vpop.f32.mrf.mxu0  ;;  %v17790_v14 = vld [vmem:[#allocation8 + $0xf0] ss:$8 sps:$4 sm:$0xff]   ;;  %v17796_v19 = vld [vmem:[#allocation8 + $0xe0] ss:$8 sps:$4 sm:$0xff]  }
 0x18c   :  { %v586_v20 = vpop.f32.mrf.mxu1  ;;  %v401_v47 = vadd.f32 %v382_v33, %v20248_v7 }
 0x18d   :  { %v20260_v31 = vadd.f32 %v586_v20, %v396_v23  ;;  %v20264_v39 = vpop.f32.mrf.mxu0  ;;  %v17804_v23 = vld [vmem:[#allocation8 + $0xd4] ss:$8 sps:$4 sm:$0xff]  }
 0x18e   :  { %v588_v37 = vpop.f32.mrf.mxu1 }
 0x18f   :  { %v20262_v38 = vadd.f32 %v588_v37, %v397_v30  ;;  %v388_v48 = vpop.f32.mrf.mxu0 }
 0x190   :  { %v20266_v40 = vpop.f32.mrf.mxu1  ;;  %v403_v59 = vadd.f32 %v388_v48, %v20248_v7  ;;  %v17784_v7 = vld [vmem:[#allocation8] ss:$8 sps:$4 sm:$0xff]  }
 0x191   :  { %v390_v51 = vpop.f32.mrf.mxu0  ;;  %2135 = vmatpush1.bf16.msra.mxu1 %v17784_v7 }
 0x192   :  { %v594_v46 = vpop.f32.mrf.mxu1  ;;  %v404_v63 = vadd.f32 %v390_v51, %v20251_v10  ;;  %2136 = vmatprep.subr.bf16.mxu1 %v17792_v9 }
 0x193   :  { %v20270_v50 = vadd.f32 %v594_v46, %v399_v35  ;;  %v392_v55 = vpop.f32.mrf.mxu0 }
 0x194   :  { %v596_v52 = vpop.f32.mrf.mxu1 }
 0x195   :  { %v20273_v54 = vadd.f32 %v596_v52, %v400_v49  ;;  %v393_v61 = vpop.f32.mrf.mxu0  ;;  %2137 = vmatpush2.bf16.msra.mxu1 %v17790_v14 }
 0x196   :  { %v598_v57 = vpop.f32.mrf.mxu1  ;;  %2138 = vmatprep.subr.bf16.mxu1 %v17798_v15 }
 0x197   :  { %v20276_v60 = vadd.f32 %v598_v57, %v401_v47 }
 0x198   :  { %v20278_v62 = vpop.f32.mrf.mxu1 }
 0x199   :  { %2139 = vmatpush2.bf16.msra.mxu1 %v17796_v19 }
 0x19a   :  { %v604_v32 = vpop.f32.mrf.mxu1  ;;  %2140 = vmatprep.subr.bf16.mxu1 %v17804_v23 }
 0x19b   :  { %v20281_v4 = vadd.f32 %v604_v32, %v403_v59 }
 0x19c   :  { %v606_v5 = vpop.f32.mrf.mxu1 }
 0x19d   :  { %v20283_v6 = vadd.f32 %v606_v5, %v404_v63  ;;  %2141 = vmatpush2.bf16.msra.mxu1 %v17802_v21 }
 0x19e   :  { %v608_v8 = vpop.f32.mrf.mxu1  ;;  %2142 = vmatprep.subr.bf16.mxu1 %v17810_v28 }
 0x19f   :  { %v765_v13 = vpop.f32.mrf.mxu0 }
 0x1a0   :  { %v609_v12 = vpop.f32.mrf.mxu1  ;;  %v792_v28 = vadd.f32 %v765_v13, %v20257_v24  ;;  %v20324_v13 = vadd.s32 16, %v20239_v26 }
 0x1a1   :  { %v767_v17 = vpop.f32.mrf.mxu0  ;;  %2143 = vmatpush2.bf16.msra.mxu1 %v17808_v36 }
 0x1a2   :  { %vm22595_vm12 = vcmp.ge.s32.totalorder %v20324_v13, 22 }
 0x1a3   :  { %v769_v18 = vpop.f32.mrf.mxu0 }
 0x1a5   :  { %v20285_v25 = vpop.f32.mrf.mxu0 }
 0x1a7   :  { %v20287_v27 = vpop.f32.mrf.mxu0 }
 0x1a9   :  { %v777_v29 = vpop.f32.mrf.mxu0 }
 0x1aa   :  { %v962_v20 = vpop.f32.mrf.mxu1 }
 0x1ab   :  { %v779_v33 = vpop.f32.mrf.mxu0 }
 0x1ac   :  { %v964_v30 = vpop.f32.mrf.mxu1 }
 0x1ad   :  { %v781_v41 = vpop.f32.mrf.mxu0 }
 0x1ae   :  { %v966_v37 = vpop.f32.mrf.mxu1 }
 0x1af   :  { %v785_v42 = vpop.f32.mrf.mxu0 }
 0x1b0   :  { %v968_v53 = vpop.f32.mrf.mxu1 }
 0x1b1   :  { %v787_v48 = vpop.f32.mrf.mxu0 }
 0x1b2   :  { %v972_v35 = vpop.f32.mrf.mxu1 }
 0x1b3   :  { %v789_v45 = vpop.f32.mrf.mxu0 }
 0x1b4   :  { %v974_v43 = vpop.f32.mrf.mxu1  ;;  %v398_v45 = vadd.f32 %v20253_v11, %v20251_v10 }
 0x1b5   :  { %v790_v34 = vpop.f32.mrf.mxu0 }
 0x1b6   :  { %v976_v46 = vpop.f32.mrf.mxu1  ;;  %v793_v34 = vadd.f32 %v767_v17, %v20260_v31  ;;  %v614_v0 = vadd.f32 %v20266_v40, %v398_v45  ;;  %v796_v17 = vadd.f32 %v20287_v27, %v20270_v50 }
 0x1b8   :  { %v20289_v44 = vpop.f32.mrf.mxu1  ;;  %v990_v3 = vadd.f32 %v964_v30, %v793_v34  ;;  %v795_v31 = vadd.f32 %v20285_v25, %v614_v0  ;;  %v798_v30 = vadd.f32 %v779_v33, %v20276_v60  ;;  %v993_v0 = vadd.f32 %v972_v35, %v796_v17 }
 0x1ba   :  { %v20291_v49 = vpop.f32.mrf.mxu1 }
 0x1bc   :  { %v20293_v51 = vpop.f32.mrf.mxu1 }
 0x1be   :  { %v986_v52 = vpop.f32.mrf.mxu1 }
 0x1bf   :  { %v1143_v55 = vpop.f32.mrf.mxu0  ;;  %v989_v52 = vadd.f32 %v962_v20, %v792_v28  ;;  %v20331_v20 = vadd.s32 32, %v20239_v26  ;;  %v992_v28 = vadd.f32 %v968_v53, %v795_v31  ;;  %v801_v26 = vadd.f32 %v787_v48, %v20283_v6 }
 0x1c0   :  { %v987_v47 = vpop.f32.mrf.mxu1 }
 0x1c1   :  { %v1145_v56 = vpop.f32.mrf.mxu0  ;;  %v1170_v1 = vadd.f32 %v1143_v55, %v989_v52  ;;  %v995_v52 = vadd.f32 %v976_v46, %v798_v30 }
 0x1c3   :  { %v1147_v57 = vpop.f32.mrf.mxu0 }
 0x1c5   :  { %v1149_v58 = vpop.f32.mrf.mxu0 }
 0x1c7   :  { %v1153_v59 = vpop.f32.mrf.mxu0 }
 0x1c9   :  { %v20295_v63 = vpop.f32.mrf.mxu0 }
 0x1ca   :  { %v1340_v61 = vpop.f32.mrf.mxu1 }
 0x1cb   :  { %v20297_v32 = vpop.f32.mrf.mxu0  ;;  %v1367_v40 = vadd.f32 %v1340_v61, %v1170_v1 }
 0x1cc   :  { %v1342_v22 = vpop.f32.mrf.mxu1 }
 0x1cd   :  { %v20299_v5 = vpop.f32.mrf.mxu0 }
 0x1ce   :  { %v1344_v2 = vpop.f32.mrf.mxu1 }
 0x1cf   :  { %v20301_v8 = vpop.f32.mrf.mxu0 }
 0x1d0   :  { %v1346_v7 = vpop.f32.mrf.mxu1 }
 0x1d1   :  { %v20303_v12 = vpop.f32.mrf.mxu0 }
 0x1d2   :  { %v1350_v9 = vpop.f32.mrf.mxu1 }
 0x1d3   :  { %v1167_v15 = vpop.f32.mrf.mxu0 }
 0x1d4   :  { %v20305_v14 = vpop.f32.mrf.mxu1  ;;  %v402_v15 = vadd.f32 %v20264_v39, %v20251_v10  ;;  %v797_v10 = vadd.f32 %v777_v29, %v20273_v54  ;;  %v1173_v54 = vadd.f32 %v1149_v58, %v992_v28  ;;  %v17811_v58 = vld [vmem:[#allocation8 + $0x130] ss:$8 sps:$4 sm:$0xff]  }
 0x1d5   :  { %v1168_v23 = vpop.f32.mrf.mxu0 }
 0x1d6   :  { %v20307_v19 = vpop.f32.mrf.mxu1  ;;  %v794_v23 = vadd.f32 %v769_v18, %v20262_v38  ;;  %v618_v11 = vadd.f32 %v20278_v62, %v402_v15  ;;  %v1171_v38 = vadd.f32 %v1145_v56, %v990_v3  ;;  %v800_v62 = vadd.f32 %v785_v42, %v20281_v4  ;;  %v17814_v15 = vld [vmem:[#allocation8 + $0xb0] ss:$8 sps:$4 sm:$0xff]  }
 0x1d7   :  { %v994_v27 = vadd.f32 %v974_v43, %v797_v10  ;;  %v998_v4 = vadd.f32 %v20293_v51, %v801_v26  ;;  %v1370_v42 = vadd.f32 %v1346_v7, %v1173_v54  ;;  %v1176_v43 = vadd.f32 %v20297_v32, %v995_v52  ;;  %v17816_v32 = vld [vmem:[#allocation8 + $0xb4] ss:$8 sps:$4 sm:$0xff]  }
 0x1d8   :  { %v20309_v21 = vpop.f32.mrf.mxu1  ;;  %v991_v39 = vadd.f32 %v966_v37, %v794_v23  ;;  %v799_v55 = vadd.f32 %v781_v41, %v618_v11  ;;  %v1368_v34 = vadd.f32 %v1342_v22, %v1171_v38  ;;  %v997_v33 = vadd.f32 %v20291_v49, %v800_v62  ;;  %2144 = vmatprep.subr.bf16.mxu1 %v17816_v32  ;;  %v17822_v62 = vld [vmem:[#allocation8 + $0xa4] ss:$8 sps:$4 sm:$0xff]  }
 0x1d9   :  { %v1174_v41 = vadd.f32 %v1153_v59, %v993_v0  ;;  %v1175_v48 = vadd.f32 %v20295_v63, %v994_v27  ;;  %v1179_v22 = vadd.f32 %v20303_v12, %v998_v4  ;;  %v17813_v63 = vld [vmem:[#allocation8 + $0x134] ss:$8 sps:$4 sm:$0xff]   ;;  %v1373_v11 = vadd.f32 %v20307_v19, %v1176_v43  ;;  %v17819_v12 = vld [vmem:[#allocation8 + $0x124] ss:$8 sps:$4 sm:$0xff]   ;;  %2145 = vmatpush2.bf16.msra.mxu1 %v17814_v15  ;;  %v17832_v15 = vld [vmem:[#allocation8 + $0x80] ss:$8 sps:$4 sm:$0xff]  }
 0x1da   :  { %v20312_v36 = vpop.f32.mrf.mxu1  ;;  %v1172_v25 = vadd.f32 %v1147_v57, %v991_v39  ;;  %v996_v60 = vadd.f32 %v20289_v44, %v799_v55  ;;  %v1178_v61 = vadd.f32 %v20301_v8, %v997_v33  ;;  %2189 = vmatprep.subr.bf16.mxu0 %v17813_v63  ;;  %v17817_v8 = vld [vmem:[#allocation8 + $0x120] ss:$8 sps:$4 sm:$0xff]   ;;  %2146 = vmatprep.subr.bf16.mxu1 %v17822_v62 }
 0x1db   :  { %v1371_v46 = vadd.f32 %v1350_v9, %v1174_v41  ;;  %v1372_v9 = vadd.f32 %v20305_v14, %v1175_v48  ;;  %2190 = vmatpush1.bf16.msra.mxu0 %v17811_v58  ;;  %v17820_v14 = vld [vmem:[#allocation8 + $0xa0] ss:$8 sps:$4 sm:$0xff]  }
 0x1dc   :  { %v20317_v47 = vpop.f32.mrf.mxu1  ;;  %v1369_v3 = vadd.f32 %v1344_v2, %v1172_v25  ;;  %v1177_v59 = vadd.f32 %v20299_v5, %v996_v60  ;;  %2191 = vmatprep.subr.bf16.mxu0 %v17819_v12  ;;  %v1375_v26 = vadd.f32 %v20312_v36, %v1178_v61  ;;  %v17829_v61 = vld [vmem:[#allocation8 + $0x100] ss:$8 sps:$4 sm:$0xff]  }
 0x1dd   :  { %2147 = vmatpush2.bf16.msra.mxu1 %v17820_v14  ;;  %v1376_v41 = vadd.f32 %v20317_v47, %v1179_v22 }
 0x1de   :  { %v1364_v24 = vpop.f32.mrf.mxu1 }
 0x1df   :  { %v1521_v45 = vpop.f32.mrf.mxu0  ;;  %2192 = vmatpush1.bf16.msra.mxu0 %v17817_v8 }
 0x1e0   :  { %v1365_v18 = vpop.f32.mrf.mxu1  ;;  %v1548_v50 = vadd.f32 %v1521_v45, %v1367_v40 }
 0x1e1   :  { %v1523_v29 = vpop.f32.mrf.mxu0  ;;  %v1374_v18 = vadd.f32 %v20309_v21, %v1177_v59 }
 0x1e2   :  { %vm1558_vm10 = vcmp.ge.f32.partialorder %v1548_v50, 0.0  ;;  %v1568_v1 = vmul.f32 0.01, %v1548_v50  ;;  %v1549_v37 = vadd.f32 %v1523_v29, %v1368_v34  ;;  %v17823_v34 = vld [vmem:[#allocation8 + $0x110] ss:$8 sps:$4 sm:$0xff]  }
 0x1e3   :  { %v1525_v53 = vpop.f32.mrf.mxu0 }
 0x1e4   :  { %vm1559_vm11 = vcmp.ge.f32.partialorder %v1549_v37, 0.0  ;;  %v1569_v35 = vmul.f32 0.01, %v1549_v37  ;;  %v1550_v6 = vadd.f32 %v1525_v53, %v1369_v3  ;;  %v1578_v56 = vsel %vm1558_vm10, %v1548_v50, %v1568_v1  ;;  %v17825_v50 = vld [vmem:[#allocation8 + $0x114] ss:$8 sps:$4 sm:$0xff]  }
 0x1e5   :  { %v1527_v44 = vpop.f32.mrf.mxu0  ;;  %vm22594_vm10 = vcmp.lt.s32.totalorder %v20331_v20, 38  ;;  %2193 = vmatprep.subr.bf16.mxu0 %v17825_v50 }
 0x1e6   :  { %v1579_v57 = vsel %vm1559_vm11, %v1549_v37, %v1569_v35  ;;  %vm1560_vm13 = vcmp.ge.f32.partialorder %v1550_v6, 0.0  ;;  %v1570_v49 = vmul.f32 0.01, %v1550_v6  ;;  %v1551_v51 = vadd.f32 %v1527_v44, %v1370_v42  ;;  %v17826_v35 = vld [vmem:[#allocation8 + $0x90] ss:$8 sps:$4 sm:$0xff]   ;;  %2194 = vmatpush1.bf16.msra.mxu0 %v17823_v34 }
 0x1e7   :  { %v1531_v2 = vpop.f32.mrf.mxu0  ;;  %v17558_v7 = vpack.c.bf16 %v1579_v57, %v1578_v56  ;;  %v17828_v44 = vld [vmem:[#allocation8 + $0x94] ss:$8 sps:$4 sm:$0xff]   ;;  %v17831_v57 = vld [vmem:[#allocation8 + $0x104] ss:$8 sps:$4 sm:$0xff]  }
 0x1e8   :  { %vm1561_vm14 = vcmp.ge.f32.partialorder %v1551_v51, 0.0  ;;  %v1571_v23 = vmul.f32 0.01, %v1551_v51  ;;  %v1552_v24 = vadd.f32 %v1531_v2, %v1371_v46  ;;  %v1580_v31 = vsel %vm1560_vm13, %v1550_v6, %v1570_v49  ;;  %v17834_v2 = vld [vmem:[#allocation8 + $0x84] ss:$8 sps:$4 sm:$0xff]   ;;  %2148 = vmatprep.subr.bf16.mxu1 %v17828_v44  ;;  %2195 = vmatprep.subr.bf16.mxu0 %v17831_v57 }
 0x1e9   :  { %v1533_v17 = vpop.f32.mrf.mxu0  ;;  %v1643_v5 = vshrl.u32 %v17558_v7, 16  ;;  %v1646_v10 = vshll.u32 %v17558_v7, 16  ;;  %2149 = vmatpush2.bf16.msra.mxu1 %v17826_v35  ;;  %v17841_v57 = vld [vmem:[#allocation8 + $0x2f0] ss:$8 sps:$4 sm:$0xff]  }
 0x1ea   :  { %v1581_v39 = vsel %vm1561_vm14, %v1551_v51, %v1571_v23  ;;  %vm1562_vm15 = vcmp.ge.f32.partialorder %v1552_v24, 0.0  ;;  %v1572_v38 = vmul.f32 0.01, %v1552_v24  ;;  %v1553_v40 = vadd.f32 %v1533_v17, %v1372_v9  ;;  %2150 = vmatprep.subr.bf16.mxu1 %v17834_v2  ;;  %2196 = vmatpush1.bf16.msra.mxu0 %v17829_v61  ;;  %v17886_v61 = vld [vmem:[#allocation8 + $0x294] ss:$8 sps:$4 sm:$0xff]  }
 0x1eb   :  { %v17559_v30 = vpack.c.bf16 %v1581_v39, %v1580_v31  ;;  %v1535_v19 = vpop.f32.mrf.mxu0  ;;  %v1645_v55 = vrot.slane %v1643_v5, 6  ;;  %v1648_v28 = vrot.slane %v1646_v10, 7  ;;  %v17837_v5 = vld [vmem:[#allocation8 + $0x1f4] ss:$8 sps:$4 sm:$0xff]  }
 0x1ec   :  { %v1582_v45 = vsel %vm1562_vm15, %v1552_v24, %v1572_v38  ;;  %vm1563_vm11 = vcmp.ge.f32.partialorder %v1553_v40, 0.0  ;;  %v1573_v0 = vmul.f32 0.01, %v1553_v40  ;;  %v1554_v25 = vadd.f32 %v1535_v19, %v1373_v11  ;;  %2670 = vmatprep.subr.bf16.mxu0 %v17837_v5 }
 0x1ed   :  { %v1537_v27 = vpop.f32.mrf.mxu0  ;;  %v1649_v52 = vor.u32 %v1648_v28, %v1645_v55  ;;  %v1652_v54 = vshrl.u32 %v17559_v30, 16  ;;  %v1655_v21 = vshll.u32 %v17559_v30, 16  ;;  %v1602_v37 = vsel %vm22595_vm12, %v1582_v45, 0.0  ;;  %2151 = vmatpush2.bf16.msra.mxu1 %v17832_v15  ;;  %v17843_v30 = vld [vmem:[#allocation8 + $0x2f4] ss:$8 sps:$4 sm:$0xff]  }
 0x1ee   :  { %v1583_v29 = vsel %vm1563_vm11, %v1553_v40, %v1573_v0  ;;  %vm1564_vm13 = vcmp.ge.f32.partialorder %v1554_v25, 0.0  ;;  %v1574_v3 = vmul.f32 0.01, %v1554_v25  ;;  %v1555_v1 = vadd.f32 %v1537_v27, %v1374_v18  ;;  %2731 = vmatprep.subr.bf16.mxu1 %v17843_v30 }
 0x1ef   :  { %v1603_v60 = vsel %vm22595_vm12, %v1583_v29, 0.0  ;;  %1691 = vrot.lane.b32.xlu0 %v1649_v52, %s20035_s25  ;;  %v1541_v36 = vpop.f32.mrf.mxu0  ;;  %v1654_v33 = vrot.slane %v1652_v54, 6  ;;  %v1657_v4 = vrot.slane %v1655_v21, 7  ;;  %v1650_v48 = vrot.slane %v1649_v52, 4  ;;  %v1739_v21 = vld [vmem:[#allocation2 + $0x8] sm:$0xe] }
 0x1f0   :  { %v17560_v53 = vpack.c.bf16 %v1603_v60, %v1602_v37  ;;  %vm1565_vm14 = vcmp.ge.f32.partialorder %v1555_v1, 0.0  ;;  %v1575_v42 = vmul.f32 0.01, %v1555_v1  ;;  %v1584_v6 = vsel %vm1564_vm13, %v1554_v25, %v1574_v3 }
 0x1f1   :  { %v1556_v43 = vadd.f32 %v1541_v36, %v1375_v26  ;;  %v1543_v46 = vpop.f32.mrf.mxu0  ;;  %v1658_v56 = vor.u32 %v1657_v4, %v1654_v33  ;;  %vm1728_vm13 = vcmask 1043969  }
 0x1f2   :  { %v1585_v49 = vsel %vm1565_vm14, %v1555_v1, %v1575_v42  ;;  %v1557_v51 = vadd.f32 %v1543_v46, %v1376_v41  ;;  %v1662_v58 = vshrl.u32 %v17560_v53, 16  ;;  %v1665_v59 = vshll.u32 %v17560_v53, 16  ;;  %v1734_v1 = vld [vmem:[#allocation2] sm:$0xee] }
 0x1f3   :  { %v17561_v47 = vpack.c.bf16 %v1585_v49, %v1584_v6  ;;  %vm1566_vm15 = vcmp.ge.f32.partialorder %v1556_v43, 0.0  ;;  %v1576_v22 = vmul.f32 0.01, %v1556_v43  ;;  %v1545_v7 = vpop.f32.mrf.mxu0  ;;  %v1659_v63 = vsel %vm20105_vm3, %v1650_v48, %v1658_v56  ;;  %v17846_v49 = vld [vmem:[#allocation8 + $0x1e4] ss:$8 sps:$4 sm:$0xff]  }
 0x1f4   :  { %vm1567_vm11 = vcmp.ge.f32.partialorder %v1557_v51, 0.0  ;;  %v1577_v32 = vmul.f32 0.01, %v1557_v51  ;;  %1693 = vrot.lane.b32.xlu1 %v1659_v63, %s20035_s25  ;;  %v1664_v9 = vrot.slane %v1662_v58, 6  ;;  %v1667_v11 = vrot.slane %v1665_v59, 7 }
 0x1f5   :  { %v1586_v23 = vsel %vm1566_vm15, %v1556_v43, %v1576_v22  ;;  %v1546_v24 = vpop.f32.mrf.mxu0  ;;  %v1672_v31 = vshrl.u32 %v17561_v47, 16  ;;  %v1675_v17 = vshll.u32 %v17561_v47, 16  ;;  %v1660_v12 = vrot.slane %v1658_v56, 4  ;;  %v17835_v56 = vld [vmem:[#allocation8 + $0x1f0] ss:$8 sps:$4 sm:$0xff]  }
 0x1f6   :  { %v1606_v10 = vsel %vm22594_vm10, %v1586_v23, 0.0  ;;  %v1587_v8 = vsel %vm1567_vm11, %v1557_v51, %v1577_v32  ;;  %v1668_v38 = vor.u32 %v1667_v11, %v1664_v9  ;;  %vm1737_vm14 = vcmask 519169   ;;  %v1763_v22 = vld [vmem:[#allocation2 + $0x44] sm:$0x3]  ;;  %v17844_v7 = vld [vmem:[#allocation8 + $0x1e0] ss:$8 sps:$4 sm:$0xff]  }
 0x1f7   :  { %v1607_v39 = vsel %vm22594_vm10, %v1587_v8, 0.0  ;;  %v1674_v40 = vrot.slane %v1672_v31, 6  ;;  %v1677_v14 = vrot.slane %v1675_v17, 7  ;;  %vm1730_vm15 = vcmask 1047557   ;;  %vm1729_vm10 = vmand %vm1728_vm13, %vm118_vm7  ;;  %v17849_v63 = vld [vmem:[#allocation8 + $0x2e4] ss:$8 sps:$4 sm:$0xff]  }
 0x1f8   :  { %v17562_v18 = vpack.c.bf16 %v1607_v39, %v1606_v10  ;;  %v1669_v19 = vsel %vm20105_vm3, %v1660_v12, %v1668_v38  ;;  %v1670_v55 = vrot.slane %v1668_v38, 4  ;;  %vm1731_vm11 = vsmask.f32 7958  ;;  %vm20379_vm12 = vmand %vm1737_vm14, %vm118_vm7  ;;  %v17852_v11 = vld [vmem:[#allocation8 + $0x1d4] ss:$8 sps:$4 sm:$0xff]  }
 0x1f9   :  { %v1678_v28 = vor.u32 %v1677_v14, %v1674_v40  ;;  %1695 = vrot.lane.b32.xlu0 %v1669_v19, %s20035_s25  ;;  %vm1732_vm9 = vmand %vm1730_vm15, %vm1731_vm11  ;;  %vm1742_vm13 = vcmask 1043968   ;;  %vm1743_vm7 = vcmask 1047556   ;;  %vm1761_vm15 = vcmask 517120   ;;  %v1758_v17 = vld [vmem:[#allocation2 + $0x3c] sm:$0x33] }
 0x1fa   :  { %v1682_v62 = vshrl.u32 %v17562_v18, 16  ;;  %v1685_v45 = vshll.u32 %v17562_v18, 16  ;;  %vm20383_vm5 = vmor %vm1732_vm9, %vm1729_vm10  ;;  %vm1753_vm9 = vcmask 1041920   ;;  %vm1755_vm10 = vcmask 1045508   ;;  %v17847_v10 = vld [vmem:[#allocation8 + $0x2e0] ss:$8 sps:$4 sm:$0xff]  }
 0x1fb   :  { %v1679_v0 = vsel %vm20105_vm3, %v1670_v55, %v1678_v28  ;;  %v1680_v50 = vrot.slane %v1678_v28, 4  ;;  %vm20392_vm14 = vmor %vm1743_vm7, %vm1742_vm13  ;;  %v22632_v9 = vmov 0   ;;  %v22633_v31 = vmov 0  ;;  %v17850_v12 = vld [vmem:[#allocation8 + $0x1d0] ss:$8 sps:$4 sm:$0xff]  }
 0x1fc   :  { %1697 = vrot.lane.b32.xlu1 %v1679_v0, %s20035_s25  ;;  %v1684_v25 = vrot.slane %v1682_v62, 6  ;;  %v1687_v34 = vrot.slane %v1685_v45, 7  ;;  %vm20410_vm11 = vmand %vm1753_vm9, %vm86_vm0  ;;  %v17858_v40 = vld [vmem:[#allocation8 + $0x2d4] ss:$8 sps:$4 sm:$0xff]   ;;  %v17862_v14 = vld [vmem:[#allocation8 + $0x1c4] ss:$8 sps:$4 sm:$0xff]  }
 0x1fd   :  { %vm1756_vm13 = vmand %vm1755_vm10, %vm1201_vm8  ;;  %v17856_v28 = vld [vmem:[#allocation8 + $0x2d0] ss:$8 sps:$4 sm:$0xff]   ;;  %v17860_v62 = vld [vmem:[#allocation8 + $0x1c0] ss:$8 sps:$4 sm:$0xff]  }
 0x1fe   :  { %v1688_v26 = vor.u32 %v1687_v34, %v1684_v25  ;;  %vm20426_vm7 = vmand %vm1761_vm15, %vm86_vm0  ;;  %v17865_v0 = vld [vmem:[#allocation8 + $0x2c4] ss:$8 sps:$4 sm:$0xff]   ;;  %v17869_v34 = vld [vmem:[#allocation8 + $0x1b4] ss:$8 sps:$4 sm:$0xff]   ;;  %vm22636_vm0 = vsmask.f32 6400 }
 0x1ff   :  { %vm20434_vm9 = vmor %vm1756_vm13, %vm20410_vm11  ;;  %vm22639_vm11 = vcmask 1045504  }
 0x200   :  { %v1689_v27 = vsel %vm20105_vm3, %v1680_v50, %v1688_v26  ;;  %v1690_v52 = vrot.slane %v1688_v26, 4  ;;  %v22634_v31 = vsel %vm20434_vm9, 4294967295, %v22633_v31  ;;  %v17863_v26 = vld [vmem:[#allocation8 + $0x2c0] ss:$8 sps:$4 sm:$0xff]   ;;  %vm22637_vm10 = vmmov %vm22636_vm0 }
 0x201   :  { %1699 = vrot.lane.b32.xlu0 %v1689_v27, %s20035_s25  ;;  %22635 = vst [vmem:[#allocation18_spill] sm:$0xff] %v22634_v31  ;;  %vm22638_vm15 = vmmov %vm22636_vm0 }
 0x202   :  { %1701 = vrot.lane.b32.xlu1 %v1690_v52, %s20035_s25  ;;  %vm22640_vm13 = vmmov %vm22636_vm0 }
 0x261   :  { %v1692_v29 = vpop.permute.xlu0 %1691 }
 0x262   :  { %v1703_v37 = vrot.slane %v1692_v29, 4 }
 0x264   :  { %v1710_v60 = vsel %vm1709_vm6, %v1703_v37, %v1692_v29  ;;  %v1740_v36 = vsel %vm20379_vm12, %v1703_v37, %v1739_v21  ;;  %v17873_v37 = vld [vmem:[#allocation8 + $0x2b4] ss:$8 sps:$4 sm:$0xff]  }
 0x265   :  { %v1735_v33 = vsel %vm20383_vm5, %v1710_v60, %v1734_v1  ;;  %1741 = vst [vmem:[#allocation2 + $0x8] sm:$0xe] %v1740_v36  ;;  %v17867_v1 = vld [vmem:[#allocation8 + $0x1b0] ss:$8 sps:$4 sm:$0xff]  }
 0x266   :  { %1736 = vst [vmem:[#allocation2] sm:$0xee] %v1735_v33  ;;  %v1694_v4 = vpop.permute.xlu1 %1693  ;;  %v17877_v33 = vld [vmem:[#allocation8 + $0x1a4] ss:$8 sps:$4 sm:$0xff]  }
 0x267   :  { %v1704_v53 = vrot.slane %v1694_v4, 4 }
 0x269   :  { %v1711_v42 = vsel %vm1709_vm6, %v1704_v53, %v1694_v4  ;;  %1746 = vst.msk [vmem:[#allocation2 + $0x14] sm:$0xf] %vm1608_vm1, %v1704_v53 }
 0x26a   :  { %1745 = vst.msk [vmem:[#allocation2 + $0xc] sm:$0xff] %vm20392_vm14, %v1711_v42  ;;  %v17871_v42 = vld [vmem:[#allocation8 + $0x2b0] ss:$8 sps:$4 sm:$0xff]  }
 0x26b   :  { %v1696_v35 = vpop.permute.xlu0 %1695 }
 0x26c   :  { %v1705_v6 = vrot.slane %v1696_v35, 4 }
 0x26d   :  { %v1779_v58 = vld [vmem:[#allocation2] sm:$0xff] }
 0x26e   :  { %v1698_v48 = vpop.permute.xlu1 %1697  ;;  %v1712_v43 = vsel %vm1709_vm6, %v1705_v6, %v1696_v35  ;;  %1748 = vst.msk [vmem:[#allocation2 + $0x20] sm:$0xf] %vm1608_vm1, %v1705_v6  ;;  %v17875_v6 = vld [vmem:[#allocation8 + $0x1a0] ss:$8 sps:$4 sm:$0xff]  }
 0x26f   :  { %v1706_v46 = vrot.slane %v1698_v48, 4  ;;  %1747 = vst.msk [vmem:[#allocation2 + $0x18] sm:$0xff] %vm20392_vm14, %v1712_v43 }
 0x270   :  { %v17838_v44 = vld [vmem:[#allocation2 + $0x8] ss:$12 sps:$4 sm:$0xff]  }
 0x271   :  { %v1713_v51 = vsel %vm1709_vm6, %v1706_v46, %v1698_v48  ;;  %1750 = vst.msk [vmem:[#allocation2 + $0x2c] sm:$0xf] %vm1608_vm1, %v1706_v46  ;;  %v20406_v59 = vld [vmem:[#allocation2 + $0xc] sm:$0xff]  ;;  %2214 = vmatmul.mubr.bf16.vlgmr.msra.gmra.mxu0 %v17838_v44  ;;  %v17880_v48 = vld [vmem:[#allocation8 + $0x2a4] ss:$8 sps:$4 sm:$0xff]  }
 0x272   :  { %1749 = vst.msk [vmem:[#allocation2 + $0x24] sm:$0xff] %vm20392_vm14, %v1713_v51  ;;  %v20417_v2 = vcombine.low %v1779_v58, %v20406_v59  ;;  %v20420_v47 = vcombine.high %v1779_v58, %v20406_v59  ;;  %2671 = vmatpush1.bf16.msra.mxu0 %v17835_v56  ;;  %2223 = vmatprep.mubr.bf16.mxu0 %v22632_v9  ;;  %v20472_v43 = vld [vmem:[#allocation2 + $0x14] sm:$0xf]  ;;  %v2253_v44 = vld [vmem:[#allocation2 + $0x8] sm:$0xf] }
 0x273   :  { %v1700_v15 = vpop.permute.xlu0 %1699  ;;  %2672 = vmatprep.subr.bf16.mxu0 %v17846_v49  ;;  %v17883_v46 = vld [vmem:[#allocation8 + $0x194] ss:$8 sps:$4 sm:$0xff]   ;;  %v17878_v49 = vld [vmem:[#allocation8 + $0x2a0] ss:$8 sps:$4 sm:$0xff]   ;;  %v16126_v51 = vcombine.low %v2253_v44, %v20472_v43  ;;  %v17881_v58 = vld [vmem:[#allocation8 + $0x190] ss:$8 sps:$4 sm:$0xff]  }
 0x274   :  { %v1707_v23 = vrot.slane %v1700_v15, 4  ;;  %2152 = vmatprep.mubr.bf16.mxu1 %v20420_v47  ;;  %v1702_v24 = vpop.permute.xlu1 %1701  ;;  %v2367_v18 = vshll.u32 %v20420_v47, 16  ;;  %v2365_v52 = vshrl.u32 %v20420_v47, 16  ;;  %v17889_v47 = vld [vmem:[#allocation8 + $0x184] ss:$8 sps:$4 sm:$0xff]  }
 0x275   :  { %v1708_v5 = vrot.slane %v1702_v24, 4  ;;  %2153 = vmatmul.mubr.bf16.vlgmr.msra.gmra.mxu1 %v20417_v2 }
 0x276   :  { %v1714_v8 = vsel %vm1709_vm6, %v1707_v23, %v1700_v15  ;;  %1752 = vst.msk [vmem:[#allocation2 + $0x38] sm:$0xf] %vm1608_vm1, %v1707_v23  ;;  %2732 = vmatpush1.bf16.msra.mxu1 %v17841_v57  ;;  %2673 = vmatpush1.bf16.msra.mxu0 %v17844_v7  ;;  %v2369_v50 = vrot.slane %v2367_v18, 1  ;;  %v17884_v23 = vld [vmem:[#allocation8 + $0x290] ss:$8 sps:$4 sm:$0xff]  }
 0x277   :  { %1751 = vst.msk [vmem:[#allocation2 + $0x30] sm:$0xff] %vm20392_vm14, %v1714_v8  ;;  %v1715_v39 = vsel %vm1709_vm6, %v1708_v5, %v1702_v24  ;;  %v1764_v38 = vsel %vm20426_vm7, %v1708_v5, %v1763_v22  ;;  %2733 = vmatprep.subr.bf16.mxu1 %v17849_v63  ;;  %2674 = vmatprep.subr.bf16.mxu0 %v17852_v11  ;;  %v2379_v24 = vshll.u32 %v16126_v51, 16  ;;  %v17887_v11 = vld [vmem:[#allocation8 + $0x180] ss:$8 sps:$4 sm:$0xff]   ;;  %v17893_v18 = vld [vmem:[#allocation8 + $0x270] ss:$8 sps:$4 sm:$0xff]  }
 0x278   :  { %v1759_v30 = vsel %vm20434_vm9, %v1715_v39, %v1758_v17  ;;  %1765 = vst [vmem:[#allocation2 + $0x44] sm:$0x3] %v1764_v38  ;;  %v17853_v19 = vld [vmem:[#allocation2 + $0x20] ss:$12 sps:$4 sm:$0xff]   ;;  %v2370_v36 = vor.u32 %v2369_v50, %v2365_v52  ;;  %v17892_v17 = vld [vmem:[#allocation8 + $0x284] ss:$8 sps:$4 sm:$0xff]  }
 0x279   :  { %1760 = vst [vmem:[#allocation2 + $0x3c] sm:$0x33] %v1759_v30  ;;  %v20449_v55 = vld [vmem:[#allocation2 + $0x1c] ss:$12 sps:$4 sm:$0xff]   ;;  %2224 = vmatmul.mubr.bf16.gmra.mxu0 %v17853_v19  ;;  %v20452_v45 = vld [vmem:[#allocation2 + $0x18] ss:$12 sps:$4 sm:$0xff]  }
 0x27a   :  { %2734 = vmatpush1.bf16.msra.mxu1 %v17847_v10  ;;  %2675 = vmatpush1.bf16.msra.mxu0 %v17850_v12  ;;  %v20455_v25 = vshll.u32 %v20449_v55, 16  ;;  %v20465_v4 = vld [vmem:[#allocation2 + $0x20] ss:$12 sps:$4 sm:$0xff]   ;;  %v20483_v22 = vshll.u32 %v20452_v45, 16  ;;  %v20486_v7 = vshrl.u32 %v20452_v45, 16 }
 0x27b   :  { %2162 = vmatprep.mubr.bf16.mxu1 %v20449_v55  ;;  %2735 = vmatprep.subr.bf16.mxu1 %v17858_v40  ;;  %v20475_v56 = vshrl.u32 %v20465_v4, 16  ;;  %v20478_v57 = vshll.u32 %v20465_v4, 16  ;;  %v17895_v10 = vld [vmem:[#allocation8 + $0x274] ss:$8 sps:$4 sm:$0xff]   ;;  %v17890_v38 = vld [vmem:[#allocation8 + $0x280] ss:$8 sps:$4 sm:$0xff]  }
 0x27c   :  { %2676 = vmatprep.subr.bf16.mxu0 %v17862_v14  ;;  %2233 = vmatprep.mubr.bf16.mxu0 %v22632_v9  ;;  %v2374_v21 = vrot.slane %v20455_v25, 1  ;;  %v3324_v8 = vrot.slane %v20486_v7, 1  ;;  %v3325_v12 = vrot.slane %v20483_v22, 2  ;;  %v2381_v40 = vrot.slane %v2379_v24, 1  ;;  %v17900_v30 = vld [vmem:[#allocation8 + $0x374] ss:$8 sps:$4 sm:$0xff]  }
 0x27d   :  { %2163 = vmatmul.mubr.bf16.gmra.mxu1 %v20452_v45  ;;  %v17870_v60 = vld [vmem:[#allocation2 + $0x38] ss:$0 sps:$4 sm:$0xff]   ;;  %v3348_v63 = vrot.slane %v20475_v56, 1  ;;  %v3349_v15 = vrot.slane %v20478_v57, 2  ;;  %v4306_v44 = vrot.slane %v20475_v56, 2 }
 0x27e   :  { %2736 = vmatpush1.bf16.msra.mxu1 %v17856_v28  ;;  %v20459_v27 = vld [vmem:[#allocation2 + $0x30] sm:$0xff]  ;;  %2677 = vmatpush1.bf16.msra.mxu0 %v17860_v62  ;;  %v2375_v53 = vsel %vm443_vm2, %v2370_v36, %v2374_v21  ;;  %v20494_v14 = vor.u32 %v3325_v12, %v3324_v8  ;;  %v20496_v19 = vld [vmem:[#allocation2 + $0x38] sm:$0xf]  ;;  %v2377_v28 = vshrl.u32 %v16126_v51, 16  ;;  %v2386_v62 = vrot.slane %v20478_v57, 1 }
 0x27f   :  { %2737 = vmatprep.subr.bf16.mxu1 %v17865_v0  ;;  %v16074_v29 = vcombine.high %v20459_v27, %v20459_v27  ;;  %2678 = vmatprep.subr.bf16.mxu0 %v17869_v34  ;;  %v16073_v35 = vcombine.low %v20459_v27, %v20459_v27  ;;  %v20490_v5 = vor.u32 %v3349_v15, %v3348_v63  ;;  %v2263_v39 = vld [vmem:[#allocation2 + $0x44] sm:$0x1]  ;;  %v17901_v52 = vld [vmem:[#allocation8 + $0x260] ss:$8 sps:$4 sm:$0xff]   ;;  %v17922_v15 = vld [vmem:[#allocation8 + $0x234] ss:$8 sps:$4 sm:$0xff]  }
 0x280   :  { %v17903_v0 = vld [vmem:[#allocation8 + $0x264] ss:$8 sps:$4 sm:$0xff]   ;;  %v20500_v34 = vcombine.low %v20496_v19, %v2263_v39  ;;  %v2382_v50 = vor.u32 %v2381_v40, %v2377_v28  ;;  %v2406_v51 = vor.u32 %v20475_v56, %v2386_v62  ;;  %v17925_v8 = vld [vmem:[#allocation8 + $0x334] ss:$8 sps:$4 sm:$0xff]   ;;  %v17927_v28 = vld [vmem:[#allocation8 + $0x220] ss:$8 sps:$4 sm:$0xff]  }
 0x281   :  { %2172 = vmatprep.mubr.bf16.mxu1 %v16074_v29  ;;  %2234 = vmatmul.mubr.bf16.gmra.mxu0 %v17870_v60  ;;  %v17906_v29 = vld [vmem:[#allocation8 + $0x364] ss:$8 sps:$4 sm:$0xff]  }
 0x282   :  { %2738 = vmatpush1.bf16.msra.mxu1 %v17863_v26  ;;  %2679 = vmatpush1.bf16.msra.mxu0 %v17867_v1  ;;  %v17898_v26 = vld [vmem:[#allocation8 + $0x370] ss:$8 sps:$4 sm:$0xff]   ;;  %v17909_v1 = vld [vmem:[#allocation8 + $0x254] ss:$8 sps:$4 sm:$0xff]   ;;  %v2387_v60 = vsel %vm443_vm2, %v2382_v50, %v2386_v62  ;;  %v2408_v36 = vshll.u32 %v20500_v34, 16  ;;  %v2418_v40 = vshrl.u32 %v20500_v34, 16 }
 0x283   :  { %2702 = vmatprep.mubr.bf16.mxu0 %v2375_v53  ;;  %2739 = vmatprep.subr.bf16.mxu1 %v17873_v37  ;;  %v20503_v37 = vshrl.u32 %v20449_v55, 16  ;;  %v17907_v53 = vld [vmem:[#allocation8 + $0x250] ss:$8 sps:$4 sm:$0xff]   ;;  %v17919_v63 = vld [vmem:[#allocation8 + $0x344] ss:$8 sps:$4 sm:$0xff]  }
 0x284   :  { %2680 = vmatprep.subr.bf16.mxu0 %v17877_v33  ;;  %v17904_v33 = vld [vmem:[#allocation8 + $0x360] ss:$8 sps:$4 sm:$0xff]   ;;  %v17929_v39 = vld [vmem:[#allocation8 + $0x224] ss:$8 sps:$4 sm:$0xff]  }
 0x285   :  { %2173 = vmatmul.mubr.bf16.gmra.mxu1 %v16073_v35  ;;  %v17916_v35 = vld [vmem:[#allocation8 + $0x244] ss:$8 sps:$4 sm:$0xff]  }
 0x286   :  { %2740 = vmatpush1.bf16.msra.mxu1 %v17871_v42  ;;  %2763 = vmatprep.mubr.bf16.mxu1 %v22632_v9  ;;  %v17913_v42 = vld [vmem:[#allocation8 + $0x354] ss:$8 sps:$4 sm:$0xff]   ;;  %v20520_v56 = vld [vmem:[#allocation2] sm:$0xee] }
 0x287   :  { %2681 = vmatpush1.bf16.msra.mxu0 %v17875_v6  ;;  %2741 = vmatprep.subr.bf16.mxu1 %v17880_v48  ;;  %v4294_v6 = vrot.slane %v20503_v37, 2  ;;  %v2410_v48 = vrot.slane %v2408_v36, 1  ;;  %v20525_v12 = vcombine.high %v20520_v56, %v20406_v59  ;;  %v17932_v62 = vld [vmem:[#allocation8 + $0x324] ss:$8 sps:$4 sm:$0xff]  }
 0x288   :  { %2682 = vmatprep.subr.bf16.mxu0 %v17883_v46  ;;  %v4295_v46 = vrot.slane %v20455_v25, 3 }
 0x289   :  { %v2411_v24 = vsel %vm443_vm2, %v2406_v51, %v2410_v48  ;;  %v2864_v50 = vrot.slane %v20525_v12, 1  ;;  %v2353_v51 = vshrl.u32 %v20417_v2, 16 }
 0x28a   :  { %2742 = vmatpush1.bf16.msra.mxu1 %v17878_v49  ;;  %v4307_v49 = vrot.slane %v20478_v57, 3  ;;  %v17917_v57 = vld [vmem:[#allocation8 + $0x340] ss:$8 sps:$4 sm:$0xff]  }
 0x28b   :  { %2683 = vmatpush1.bf16.msra.mxu0 %v17881_v58  ;;  %2743 = vmatprep.subr.bf16.mxu1 %v17886_v61  ;;  %v17911_v58 = vld [vmem:[#allocation8 + $0x350] ss:$8 sps:$4 sm:$0xff]   ;;  %v20513_v61 = vor.u32 %v4295_v46, %v4294_v6  ;;  %v17939_v6 = vld [vmem:[#allocation8 + $0x200] ss:$8 sps:$4 sm:$0xff]   ;;  %v17944_v46 = vld [vmem:[#allocation8 + $0x304] ss:$8 sps:$4 sm:$0xff]  }
 0x28c   :  { %2684 = vmatprep.subr.bf16.mxu0 %v17889_v47  ;;  %v17914_v47 = vld [vmem:[#allocation8 + $0x240] ss:$8 sps:$4 sm:$0xff]  }
 0x28e   :  { %2744 = vmatpush1.bf16.msra.mxu1 %v17884_v23  ;;  %v20515_v23 = vor.u32 %v4307_v49, %v4306_v44  ;;  %v17947_v49 = vld [vmem:[#allocation8 + $0x474] ss:$8 sps:$4 sm:$0xff]  }
 0x28f   :  { %2685 = vmatpush1.bf16.msra.mxu0 %v17887_v11  ;;  %2745 = vmatprep.subr.bf16.mxu1 %v17892_v17  ;;  %v4282_v11 = vrot.slane %v20486_v7, 2  ;;  %v4283_v17 = vrot.slane %v20483_v22, 3 }
 0x290   :  { %2686 = vmatprep.subr.bf16.mxu0 %v17895_v10  ;;  %v17920_v10 = vld [vmem:[#allocation8 + $0x230] ss:$8 sps:$4 sm:$0xff]  }
 0x292   :  { %2746 = vmatpush1.bf16.msra.mxu1 %v17890_v38  ;;  %v20527_v38 = vor.u32 %v4283_v17, %v4282_v11  ;;  %v17954_v17 = vld [vmem:[#allocation8 + $0x464] ss:$8 sps:$4 sm:$0xff]  }
 0x293   :  { %2687 = vmatpush2.bf16.msra.mxu0 %v17893_v18  ;;  %3125 = vmatprep.subr.bf16.mxu1 %v17900_v30  ;;  %v2865_v18 = vrot.slane %v20449_v55, 1  ;;  %v17923_v30 = vld [vmem:[#allocation8 + $0x330] ss:$8 sps:$4 sm:$0xff]  }
 0x294   :  { %2688 = vmatprep.subr.bf16.mxu0 %v17903_v0  ;;  %v2420_v0 = vor.u32 %v2418_v40, %v2410_v48  ;;  %v17957_v40 = vld [vmem:[#allocation8 + $0x3e4] ss:$8 sps:$4 sm:$0xff]  }
 0x295   :  { %2764 = vmatmul.mubr.bf16.vlgmr.msra.gmra.mxu1 %v2387_v60  ;;  %v17933_v60 = vld [vmem:[#allocation8 + $0x210] ss:$8 sps:$4 sm:$0xff]  }
 0x296   :  { %3126 = vmatpush1.bf16.msra.mxu1 %v17898_v26  ;;  %2773 = vmatprep.mubr.bf16.mxu1 %v22632_v9  ;;  %v17935_v26 = vld [vmem:[#allocation8 + $0x214] ss:$8 sps:$4 sm:$0xff]  }
 0x297   :  { %2689 = vmatpush2.bf16.msra.mxu0 %v17901_v52  ;;  %3127 = vmatprep.subr.bf16.mxu1 %v17906_v29  ;;  %v2262_v52 = vld [vmem:[#allocation2 + $0x3c] sm:$0x11]  ;;  %v2866_v29 = vsel %vm642_vm4, %v2864_v50, %v2865_v18 }
 0x298   :  { %2690 = vmatprep.subr.bf16.mxu0 %v17909_v1  ;;  %v17930_v1 = vld [vmem:[#allocation8 + $0x320] ss:$8 sps:$4 sm:$0xff]   ;;  %v20536_v36 = vcombine.high %v20459_v27, %v2262_v52 }
 0x29a   :  { %3128 = vmatpush1.bf16.msra.mxu1 %v17904_v33  ;;  %v17938_v33 = vld [vmem:[#allocation8 + $0x314] ss:$8 sps:$4 sm:$0xff]   ;;  %v2400_v48 = vshll.u32 %v20536_v36, 16  ;;  %v2415_v50 = vshrl.u32 %v20536_v36, 16 }
 0x29b   :  { %2691 = vmatpush2.bf16.msra.mxu0 %v17907_v53  ;;  %3129 = vmatprep.subr.bf16.mxu1 %v17913_v42  ;;  %v17941_v53 = vld [vmem:[#allocation8 + $0x204] ss:$8 sps:$4 sm:$0xff]   ;;  %v2355_v42 = vshll.u32 %v20417_v2, 16  ;;  %v17949_v2 = vld [vmem:[#allocation8 + $0x3f0] ss:$8 sps:$4 sm:$0xff]  }
 0x29c   :  { %2692 = vmatprep.subr.bf16.mxu0 %v17916_v35  ;;  %v17936_v35 = vld [vmem:[#allocation8 + $0x310] ss:$8 sps:$4 sm:$0xff]  }
 0x29d   :  { %2774 = vmatmul.mubr.bf16.gmra.mxu1 %v2411_v24  ;;  %v2357_v44 = vrot.slane %v2355_v42, 1  ;;  %v2402_v24 = vrot.slane %v2400_v48, 1  ;;  %v17968_v42 = vld [vmem:[#allocation8 + $0x3c0] ss:$8 sps:$4 sm:$0xff]   ;;  %v17976_v48 = vld [vmem:[#allocation8 + $0x3b4] ss:$8 sps:$4 sm:$0xff]  }
 0x29e   :  { %3130 = vmatpush1.bf16.msra.mxu1 %v17911_v58  ;;  %2783 = vmatprep.mubr.bf16.mxu1 %v22632_v9  ;;  %v2362_v58 = vrot.slane %v20483_v22, 1 }
 0x29f   :  { %2693 = vmatpush2.bf16.msra.mxu0 %v17914_v47  ;;  %3131 = vmatprep.subr.bf16.mxu1 %v17919_v63  ;;  %v20543_v47 = vcombine.low %v20459_v27, %v2262_v52  ;;  %v17942_v63 = vld [vmem:[#allocation8 + $0x300] ss:$8 sps:$4 sm:$0xff]   ;;  %v2358_v11 = vor.u32 %v2357_v44, %v2353_v51  ;;  %v17964_v52 = vld [vmem:[#allocation8 + $0x3d4] ss:$8 sps:$4 sm:$0xff]   ;;  %v17974_v44 = vld [vmem:[#allocation8 + $0x3b0] ss:$8 sps:$4 sm:$0xff]  }
 0x2a0   :  { %2694 = vmatprep.subr.bf16.mxu0 %v17922_v15  ;;  %v17945_v15 = vld [vmem:[#allocation8 + $0x470] ss:$8 sps:$4 sm:$0xff]   ;;  %v17977_v51 = vld [vmem:[#allocation8 + $0x420] ss:$8 sps:$4 sm:$0xff]  }
 0x2a1   :  { %v2363_v22 = vsel %vm443_vm2, %v2358_v11, %v2362_v58  ;;  %v2392_v27 = vshll.u32 %v20543_v47, 16  ;;  %v17988_v11 = vld [vmem:[#allocation8 + $0x394] ss:$8 sps:$4 sm:$0xff]  }
 0x2a2   :  { %3132 = vmatpush1.bf16.msra.mxu1 %v17917_v57  ;;  %v17951_v57 = vld [vmem:[#allocation8 + $0x3f4] ss:$8 sps:$4 sm:$0xff]  }
 0x2a3   :  { %2695 = vmatpush2.bf16.msra.mxu0 %v17920_v10  ;;  %3133 = vmatprep.subr.bf16.mxu1 %v17925_v8  ;;  %v2398_v10 = vor.u32 %v20503_v37, %v2374_v21  ;;  %v17952_v8 = vld [vmem:[#allocation8 + $0x460] ss:$8 sps:$4 sm:$0xff]   ;;  %v17959_v21 = vld [vmem:[#allocation8 + $0x450] ss:$8 sps:$4 sm:$0xff]  }
 0x2a4   :  { %2696 = vmatprep.subr.bf16.mxu0 %v17929_v39 }
 0x2a5   :  { %2784 = vmatmul.mubr.bf16.gmra.mxu1 %v2420_v0  ;;  %v2403_v39 = vsel %vm443_vm2, %v2398_v10, %v2402_v24  ;;  %v2390_v0 = vor.u32 %v20486_v7, %v2362_v58  ;;  %v2412_v7 = vshrl.u32 %v20543_v47, 16  ;;  %v17982_v58 = vld [vmem:[#allocation8 + $0x3a4] ss:$8 sps:$4 sm:$0xff]   ;;  %v2803_v10 = vld [vmem:[#allocation2 + $0x8] sm:$0xe] }
 0x2a6   :  { %3134 = vmatpush1.bf16.msra.mxu1 %v17923_v30  ;;  %3157 = vmatprep.mubr.bf16.mxu1 %v2866_v29  ;;  %v17961_v30 = vld [vmem:[#allocation8 + $0x454] ss:$8 sps:$4 sm:$0xff]   ;;  %v17967_v29 = vld [vmem:[#allocation8 + $0x444] ss:$8 sps:$4 sm:$0xff]  }
 0x2a7   :  { %2697 = vmatpush2.bf16.msra.mxu0 %v17927_v28  ;;  %3135 = vmatprep.subr.bf16.mxu1 %v17932_v62  ;;  %v17955_v28 = vld [vmem:[#allocation8 + $0x3e0] ss:$8 sps:$4 sm:$0xff]   ;;  %v2394_v62 = vrot.slane %v2392_v27, 1  ;;  %v17998_v27 = vld [vmem:[#allocation8 + $0x4f4] ss:$8 sps:$4 sm:$0xff]  }
 0x2a8   :  { %2698 = vmatprep.subr.bf16.mxu0 %v17935_v26  ;;  %v17962_v26 = vld [vmem:[#allocation8 + $0x3d0] ss:$8 sps:$4 sm:$0xff]  }
 0x2aa   :  { %3136 = vmatpush1.bf16.msra.mxu1 %v17930_v1  ;;  %v2395_v1 = vsel %vm443_vm2, %v2390_v0, %v2394_v62  ;;  %v18005_v0 = vld [vmem:[#allocation8 + $0x4e4] ss:$8 sps:$4 sm:$0xff]  }
 0x2ab   :  { %2699 = vmatpush2.bf16.msra.mxu0 %v17933_v60  ;;  %3137 = vmatprep.subr.bf16.mxu1 %v17938_v33  ;;  %v2417_v60 = vor.u32 %v2415_v50, %v2402_v24  ;;  %v17965_v33 = vld [vmem:[#allocation8 + $0x440] ss:$8 sps:$4 sm:$0xff]   ;;  %v17983_v24 = vld [vmem:[#allocation8 + $0x410] ss:$8 sps:$4 sm:$0xff]  }
 0x2ac   :  { %2700 = vmatprep.subr.bf16.mxu0 %v17941_v53  ;;  %v17970_v53 = vld [vmem:[#allocation8 + $0x3c4] ss:$8 sps:$4 sm:$0xff]  }
 0x2ae   :  { %3138 = vmatpush1.bf16.msra.mxu1 %v17936_v35  ;;  %v17973_v35 = vld [vmem:[#allocation8 + $0x434] ss:$8 sps:$4 sm:$0xff]  }
 0x2af   :  { %2701 = vmatpush2.bf16.msra.mxu0 %v17939_v6  ;;  %3139 = vmatprep.subr.bf16.mxu1 %v17944_v46  ;;  %v17971_v6 = vld [vmem:[#allocation8 + $0x430] ss:$8 sps:$4 sm:$0xff]   ;;  %v2414_v46 = vor.u32 %v2412_v7, %v2394_v62  ;;  %v3329_v7 = vshrl.u32 %v20525_v12, 16 }
 0x2b0   :  { %3186 = vmatprep.subr.bf16.mxu0 %v17947_v49  ;;  %v17979_v49 = vld [vmem:[#allocation8 + $0x424] ss:$8 sps:$4 sm:$0xff]   ;;  %v17996_v62 = vld [vmem:[#allocation8 + $0x4f0] ss:$8 sps:$4 sm:$0xff]  }
 0x2b2   :  { %3140 = vmatpush1.bf16.msra.mxu1 %v17942_v63  ;;  %2703 = vmatmul.mubr.bf16.vlgmr.msra.gmra.mxu0 %v2363_v22  ;;  %v17980_v63 = vld [vmem:[#allocation8 + $0x3a0] ss:$8 sps:$4 sm:$0xff]   ;;  %v17994_v22 = vld [vmem:[#allocation8 + $0x384] ss:$8 sps:$4 sm:$0xff]  }
 0x2b3   :  { %2712 = vmatprep.mubr.bf16.mxu0 %v2403_v39  ;;  %3187 = vmatpush1.bf16.msra.mxu0 %v17945_v15  ;;  %v17985_v15 = vld [vmem:[#allocation8 + $0x414] ss:$8 sps:$4 sm:$0xff]   ;;  %v2868_v39 = vrot.slane %v20465_v4, 1  ;;  %v2872_v4 = vrot.slane %v20536_v36, 1 }
 0x2b4   :  { %3141 = vmatprep.subr.bf16.mxu1 %v17951_v57  ;;  %3188 = vmatprep.subr.bf16.mxu0 %v17954_v17  ;;  %v17991_v57 = vld [vmem:[#allocation8 + $0x404] ss:$8 sps:$4 sm:$0xff]   ;;  %v17986_v17 = vld [vmem:[#allocation8 + $0x390] ss:$8 sps:$4 sm:$0xff]  }
 0x2b5   :  { %v2873_v36 = vsel %vm642_vm4, %v2865_v18, %v2872_v4  ;;  %v3336_v18 = vrot.slane %v20503_v37, 1 }
 0x2b6   :  { %3142 = vmatpush2.bf16.msra.mxu1 %v17949_v2  ;;  %v17989_v2 = vld [vmem:[#allocation8 + $0x400] ss:$8 sps:$4 sm:$0xff]  }
 0x2b7   :  { %3189 = vmatpush1.bf16.msra.mxu0 %v17952_v8  ;;  %3143 = vmatprep.subr.bf16.mxu1 %v17957_v40  ;;  %v20557_v8 = vcombine.low %v2803_v10, %v20472_v43  ;;  %v17992_v40 = vld [vmem:[#allocation8 + $0x380] ss:$8 sps:$4 sm:$0xff]   ;;  %v2862_v43 = vrot.slane %v20452_v45, 1  ;;  %v18011_v45 = vld [vmem:[#allocation8 + $0x4d4] ss:$8 sps:$4 sm:$0xff]  }
 0x2b8   :  { %3190 = vmatprep.subr.bf16.mxu0 %v17961_v30  ;;  %v20562_v30 = vcombine.low %v20520_v56, %v20406_v59  ;;  %v18000_v59 = vld [vmem:[#allocation8 + $0x5f0] ss:$8 sps:$4 sm:$0xff]   ;;  %v18003_v56 = vld [vmem:[#allocation8 + $0x4e0] ss:$8 sps:$4 sm:$0xff]   ;;  %v18032_v10 = vld [vmem:[#allocation8 + $0x5a4] ss:$8 sps:$4 sm:$0xff]  }
 0x2ba   :  { %3144 = vmatpush2.bf16.msra.mxu1 %v17955_v28  ;;  %2713 = vmatmul.mubr.bf16.gmra.mxu0 %v2395_v1  ;;  %v2867_v28 = vrot.slane %v20557_v8, 1  ;;  %v2874_v1 = vrot.slane %v20500_v34, 1  ;;  %v18012_v34 = vld [vmem:[#allocation8 + $0x5d0] ss:$8 sps:$4 sm:$0xff]  }
 0x2bb   :  { %2722 = vmatprep.mubr.bf16.mxu0 %v2417_v60  ;;  %3191 = vmatpush1.bf16.msra.mxu0 %v17959_v21  ;;  %v18002_v21 = vld [vmem:[#allocation8 + $0x5f4] ss:$8 sps:$4 sm:$0xff]   ;;  %v18006_v60 = vld [vmem:[#allocation8 + $0x5e0] ss:$8 sps:$4 sm:$0xff]  }
 0x2bc   :  { %3145 = vmatprep.subr.bf16.mxu1 %v17964_v52  ;;  %3192 = vmatprep.subr.bf16.mxu0 %v17967_v29  ;;  %v2869_v50 = vsel %vm642_vm4, %v2867_v28, %v2868_v39  ;;  %v18008_v52 = vld [vmem:[#allocation8 + $0x5e4] ss:$8 sps:$4 sm:$0xff]   ;;  %v2875_v55 = vsel %vm642_vm4, %v2868_v39, %v2874_v1  ;;  %v18038_v39 = vld [vmem:[#allocation8 + $0x594] ss:$8 sps:$4 sm:$0xff]  }
 0x2bd   :  { %v3258_v28 = vld [vmem:[#allocation2 + $0x44] sm:$0x3] }
 0x2be   :  { %3146 = vmatpush2.bf16.msra.mxu1 %v17962_v26  ;;  %v2861_v26 = vrot.slane %v20562_v30, 1 }
 0x2bf   :  { %3193 = vmatpush1.bf16.msra.mxu0 %v17965_v33  ;;  %3147 = vmatprep.subr.bf16.mxu1 %v17970_v53  ;;  %v18009_v33 = vld [vmem:[#allocation8 + $0x4d0] ss:$8 sps:$4 sm:$0xff]   ;;  %v18014_v53 = vld [vmem:[#allocation8 + $0x5d4] ss:$8 sps:$4 sm:$0xff]  }
 0x2c0   :  { %3194 = vmatprep.subr.bf16.mxu0 %v17973_v35  ;;  %v2863_v29 = vsel %vm642_vm4, %v2861_v26, %v2862_v43  ;;  %v18017_v35 = vld [vmem:[#allocation8 + $0x4c4] ss:$8 sps:$4 sm:$0xff]   ;;  %v20591_v26 = vcombine.low %v20496_v19, %v3258_v28  ;;  %v18051_v19 = vld [vmem:[#allocation8 + $0x560] ss:$8 sps:$4 sm:$0xff]  }
 0x2c1   :  { %v18082_v28 = vld [vmem:[#allocation8 + $0x624] ss:$8 sps:$4 sm:$0xff]  }
 0x2c2   :  { %3148 = vmatpush2.bf16.msra.mxu1 %v17968_v42  ;;  %2723 = vmatmul.mubr.bf16.gmra.mxu0 %v2414_v46  ;;  %v2870_v42 = vrot.slane %v20543_v47, 1  ;;  %v18015_v46 = vld [vmem:[#allocation8 + $0x4c0] ss:$8 sps:$4 sm:$0xff]  }
 0x2c3   :  { %3195 = vmatpush1.bf16.msra.mxu0 %v17971_v6  ;;  %3149 = vmatprep.subr.bf16.mxu1 %v17976_v48  ;;  %v3332_v6 = vshll.u32 %v20525_v12, 16  ;;  %v3337_v48 = vrot.slane %v20455_v25, 2  ;;  %v3331_v12 = vrot.slane %v3329_v7, 1  ;;  %v18021_v25 = vld [vmem:[#allocation8 + $0x4b0] ss:$8 sps:$4 sm:$0xff]  }
 0x2c4   :  { %3196 = vmatprep.subr.bf16.mxu0 %v17979_v49  ;;  %3218 = vmatprep.mubr.bf16.mxu0 %v22632_v9  ;;  %v2871_v47 = vsel %vm642_vm4, %v2862_v43, %v2870_v42  ;;  %v18023_v49 = vld [vmem:[#allocation8 + $0x4b4] ss:$8 sps:$4 sm:$0xff]   ;;  %v3344_v43 = vshll.u32 %v20557_v8, 16 }
 0x2c6   :  { %3150 = vmatpush2.bf16.msra.mxu1 %v17974_v44  ;;  %v18020_v44 = vld [vmem:[#allocation8 + $0x5c4] ss:$8 sps:$4 sm:$0xff]  }
 0x2c7   :  { %3197 = vmatpush1.bf16.msra.mxu0 %v17977_v51  ;;  %3151 = vmatprep.subr.bf16.mxu1 %v17982_v58  ;;  %v3334_v51 = vrot.slane %v3332_v6, 2  ;;  %v18018_v58 = vld [vmem:[#allocation8 + $0x5c0] ss:$8 sps:$4 sm:$0xff]  }
 0x2c8   :  { %3198 = vmatprep.subr.bf16.mxu0 %v17985_v15  ;;  %v18026_v15 = vld [vmem:[#allocation8 + $0x5b4] ss:$8 sps:$4 sm:$0xff]  }
 0x2c9   :  { %v3335_v37 = vor.u32 %v3334_v51, %v3331_v12  ;;  %v18072_v51 = vld [vmem:[#allocation8 + $0x534] ss:$8 sps:$4 sm:$0xff]  }
 0x2ca   :  { %3152 = vmatpush2.bf16.msra.mxu1 %v17980_v63  ;;  %v20583_v63 = vor.u32 %v3337_v48, %v3336_v18  ;;  %v18063_v18 = vld [vmem:[#allocation8 + $0x654] ss:$8 sps:$4 sm:$0xff]  }
 0x2cb   :  { %3199 = vmatpush1.bf16.msra.mxu0 %v17983_v24  ;;  %3153 = vmatprep.subr.bf16.mxu1 %v17988_v11  ;;  %v18029_v24 = vld [vmem:[#allocation8 + $0x4a4] ss:$8 sps:$4 sm:$0xff]  }
 0x2cc   :  { %3200 = vmatprep.subr.bf16.mxu0 %v17991_v57  ;;  %v3339_v11 = vsel %vm22636_vm0, %v3335_v37, %v20583_v63  ;;  %v18024_v57 = vld [vmem:[#allocation8 + $0x5b0] ss:$8 sps:$4 sm:$0xff]  }
 0x2cd   :  { %v18070_v37 = vld [vmem:[#allocation8 + $0x530] ss:$8 sps:$4 sm:$0xff]  }
 0x2ce   :  { %3154 = vmatpush2.bf16.msra.mxu1 %v17986_v17  ;;  %v18027_v17 = vld [vmem:[#allocation8 + $0x4a0] ss:$8 sps:$4 sm:$0xff]  }
 0x2cf   :  { %3201 = vmatpush1.bf16.msra.mxu0 %v17989_v2  ;;  %3155 = vmatprep.subr.bf16.mxu1 %v17994_v22  ;;  %v18035_v2 = vld [vmem:[#allocation8 + $0x494] ss:$8 sps:$4 sm:$0xff]   ;;  %v18030_v22 = vld [vmem:[#allocation8 + $0x5a0] ss:$8 sps:$4 sm:$0xff]  }
 0x2d0   :  { %3628 = vmatprep.subr.bf16.mxu0 %v17998_v27  ;;  %v18033_v27 = vld [vmem:[#allocation8 + $0x490] ss:$8 sps:$4 sm:$0xff]  }
 0x2d2   :  { %3156 = vmatpush2.bf16.msra.mxu1 %v17992_v40  ;;  %3219 = vmatmul.mubr.bf16.vlgmr.msra.gmra.mxu0 %v2869_v50  ;;  %v18041_v40 = vld [vmem:[#allocation8 + $0x484] ss:$8 sps:$4 sm:$0xff]  }
 0x2d3   :  { %3629 = vmatpush1.bf16.msra.mxu0 %v17996_v62  ;;  %3689 = vmatprep.subr.bf16.mxu1 %v18002_v21  ;;  %v18036_v62 = vld [vmem:[#allocation8 + $0x590] ss:$8 sps:$4 sm:$0xff]   ;;  %v3341_v21 = vshrl.u32 %v20557_v8, 16  ;;  %v18044_v50 = vld [vmem:[#allocation8 + $0x584] ss:$8 sps:$4 sm:$0xff]   ;;  %v3371_v8 = vshrl.u32 %v20591_v26, 16 }
 0x2d4   :  { %3630 = vmatprep.subr.bf16.mxu0 %v18005_v0  ;;  %3228 = vmatprep.mubr.bf16.mxu0 %v22632_v9  ;;  %v18039_v0 = vld [vmem:[#allocation8 + $0x480] ss:$8 sps:$4 sm:$0xff]  }
 0x2d5   :  { %3158 = vmatmul.mubr.bf16.vlgmr.msra.gmra.mxu1 %v2863_v29  ;;  %v18045_v29 = vld [vmem:[#allocation8 + $0x570] ss:$8 sps:$4 sm:$0xff]   ;;  %v3373_v7 = vrot.slane %v3371_v8, 1 }
 0x2d6   :  { %3167 = vmatprep.mubr.bf16.mxu1 %v2873_v36  ;;  %3690 = vmatpush1.bf16.msra.mxu1 %v18000_v59  ;;  %v18042_v59 = vld [vmem:[#allocation8 + $0x580] ss:$8 sps:$4 sm:$0xff]   ;;  %v18053_v36 = vld [vmem:[#allocation8 + $0x564] ss:$8 sps:$4 sm:$0xff]  }
 0x2d7   :  { %3631 = vmatpush1.bf16.msra.mxu0 %v18003_v56  ;;  %3691 = vmatprep.subr.bf16.mxu1 %v18008_v52  ;;  %v3343_v56 = vrot.slane %v3341_v21, 1  ;;  %v3346_v52 = vrot.slane %v3344_v43, 2  ;;  %v18080_v43 = vld [vmem:[#allocation8 + $0x620] ss:$8 sps:$4 sm:$0xff]  }
 0x2d8   :  { %3632 = vmatprep.subr.bf16.mxu0 %v18011_v45  ;;  %v18050_v45 = vld [vmem:[#allocation8 + $0x674] ss:$8 sps:$4 sm:$0xff]  }
 0x2da   :  { %3692 = vmatpush1.bf16.msra.mxu1 %v18006_v60  ;;  %3229 = vmatmul.mubr.bf16.gmra.mxu0 %v2875_v55  ;;  %v3347_v60 = vor.u32 %v3346_v52, %v3343_v56  ;;  %v18054_v55 = vld [vmem:[#allocation8 + $0x660] ss:$8 sps:$4 sm:$0xff]   ;;  %v3317_v56 = vshrl.u32 %v20562_v30, 16  ;;  %v3320_v52 = vshll.u32 %v20562_v30, 16 }
 0x2db   :  { %3633 = vmatpush1.bf16.msra.mxu0 %v18009_v33  ;;  %3693 = vmatprep.subr.bf16.mxu1 %v18014_v53  ;;  %v18048_v33 = vld [vmem:[#allocation8 + $0x670] ss:$8 sps:$4 sm:$0xff]   ;;  %v18056_v53 = vld [vmem:[#allocation8 + $0x664] ss:$8 sps:$4 sm:$0xff]  }
 0x2dc   :  { %3634 = vmatprep.subr.bf16.mxu0 %v18017_v35  ;;  %3238 = vmatprep.mubr.bf16.mxu0 %v22632_v9  ;;  %v18059_v35 = vld [vmem:[#allocation8 + $0x554] ss:$8 sps:$4 sm:$0xff]  }
 0x2dd   :  { %3168 = vmatmul.mubr.bf16.gmra.mxu1 %v2871_v47  ;;  %v18064_v47 = vld [vmem:[#allocation8 + $0x540] ss:$8 sps:$4 sm:$0xff]  }
 0x2de   :  { %3177 = vmatprep.mubr.bf16.mxu1 %v2872_v4  ;;  %3694 = vmatpush1.bf16.msra.mxu1 %v18012_v34  ;;  %v18047_v4 = vld [vmem:[#allocation8 + $0x574] ss:$8 sps:$4 sm:$0xff]   ;;  %v18057_v34 = vld [vmem:[#allocation8 + $0x550] ss:$8 sps:$4 sm:$0xff]  }
 0x2df   :  { %3635 = vmatpush1.bf16.msra.mxu0 %v18015_v46  ;;  %3695 = vmatprep.subr.bf16.mxu1 %v18020_v44  ;;  %v18066_v46 = vld [vmem:[#allocation8 + $0x544] ss:$8 sps:$4 sm:$0xff]   ;;  %v18061_v44 = vld [vmem:[#allocation8 + $0x650] ss:$8 sps:$4 sm:$0xff]  }
 0x2e0   :  { %3636 = vmatprep.subr.bf16.mxu0 %v18023_v49  ;;  %v18069_v49 = vld [vmem:[#allocation8 + $0x644] ss:$8 sps:$4 sm:$0xff]  }
 0x2e2   :  { %3696 = vmatpush1.bf16.msra.mxu1 %v18018_v58  ;;  %3239 = vmatmul.mubr.bf16.gmra.mxu0 %v2874_v1  ;;  %v3374_v1 = vshll.u32 %v20591_v26, 16  ;;  %v18067_v58 = vld [vmem:[#allocation8 + $0x640] ss:$8 sps:$4 sm:$0xff]  }
 0x2e3   :  { %3637 = vmatpush1.bf16.msra.mxu0 %v18021_v25  ;;  %3660 = vmatprep.mubr.bf16.mxu0 %v3339_v11  ;;  %v20601_v25 = vld [vmem:[#allocation2] sm:$0xcc] }
 0x2e4   :  { %3697 = vmatprep.subr.bf16.mxu1 %v18026_v15  ;;  %3638 = vmatprep.subr.bf16.mxu0 %v18029_v24  ;;  %v3376_v6 = vrot.slane %v3374_v1, 2  ;;  %v18075_v15 = vld [vmem:[#allocation8 + $0x634] ss:$8 sps:$4 sm:$0xff]  }
 0x2e5   :  { %3178 = vmatmul.mubr.bf16.gmra.mxu1 %v2870_v42  ;;  %v3351_v42 = vsel %vm22637_vm10, %v3347_v60, %v20490_v5  ;;  %v20603_v24 = vld [vmem:[#allocation2 + $0xc] sm:$0xff]  ;;  %v18089_v60 = vld [vmem:[#allocation8 + $0x500] ss:$8 sps:$4 sm:$0xff]   ;;  %vm22641_vm10 = vmmov %vm22636_vm0 }
 0x2e6   :  { %3698 = vmatpush1.bf16.msra.mxu1 %v18024_v57  ;;  %3721 = vmatprep.mubr.bf16.mxu1 %v22632_v9  ;;  %v3377_v48 = vor.u32 %v3376_v6, %v3373_v7  ;;  %v20607_v11 = vcombine.high %v20601_v25, %v20603_v24  ;;  %v18079_v57 = vld [vmem:[#allocation8 + $0x524] ss:$8 sps:$4 sm:$0xff]   ;;  %v18092_v7 = vld [vmem:[#allocation8 + $0x600] ss:$8 sps:$4 sm:$0xff]  }
 0x2e7   :  { %3639 = vmatpush1.bf16.msra.mxu0 %v18027_v17  ;;  %3699 = vmatprep.subr.bf16.mxu1 %v18032_v10  ;;  %v20609_v17 = vld [vmem:[#allocation2 + $0x1c] ss:$12 sps:$4 sm:$0xff]  }
 0x2e8   :  { %3640 = vmatprep.subr.bf16.mxu0 %v18035_v2  ;;  %v3378_v12 = vsel %vm22638_vm15, %v20490_v5, %v3377_v48  ;;  %v3257_v5 = vld [vmem:[#allocation2 + $0x3c] sm:$0x33]  ;;  %v3823_v10 = vrot.slane %v20609_v17, 2  ;;  %v18073_v2 = vld [vmem:[#allocation8 + $0x630] ss:$8 sps:$4 sm:$0xff]   ;;  %vm22642_vm15 = vmmov %vm22639_vm11 }
 0x2ea   :  { %3700 = vmatpush1.bf16.msra.mxu1 %v18030_v22  ;;  %v20612_v22 = vld [vmem:[#allocation2 + $0x30] sm:$0xff] }
 0x2eb   :  { %3641 = vmatpush1.bf16.msra.mxu0 %v18033_v27  ;;  %3701 = vmatprep.subr.bf16.mxu1 %v18038_v39  ;;  %v20615_v27 = vcombine.high %v20612_v22, %v3257_v5  ;;  %v3822_v39 = vrot.slane %v20607_v11, 2 }
 0x2ec   :  { %3642 = vmatprep.subr.bf16.mxu0 %v18041_v40  ;;  %v18077_v40 = vld [vmem:[#allocation8 + $0x520] ss:$8 sps:$4 sm:$0xff]  }
 0x2ed   :  { %v3824_v21 = vsel %vm22639_vm11, %v3822_v39, %v3823_v10  ;;  %v18117_v39 = vld [vmem:[#allocation8 + $0x744] ss:$8 sps:$4 sm:$0xff]  }
 0x2ee   :  { %3702 = vmatpush1.bf16.msra.mxu1 %v18036_v62  ;;  %v18085_v62 = vld [vmem:[#allocation8 + $0x514] ss:$8 sps:$4 sm:$0xff]  }
 0x2ef   :  { %3643 = vmatpush1.bf16.msra.mxu0 %v18039_v0  ;;  %3703 = vmatprep.subr.bf16.mxu1 %v18044_v50  ;;  %v3362_v0 = vshrl.u32 %v20615_v27, 16  ;;  %v3365_v50 = vshll.u32 %v20615_v27, 16 }
 0x2f0   :  { %3644 = vmatprep.subr.bf16.mxu0 %v18047_v4  ;;  %v18083_v4 = vld [vmem:[#allocation8 + $0x510] ss:$8 sps:$4 sm:$0xff]  }
 0x2f1   :  { %v3364_v8 = vrot.slane %v3362_v0, 1  ;;  %v3367_v1 = vrot.slane %v3365_v50, 2  ;;  %v18121_v0 = vld [vmem:[#allocation8 + $0x730] ss:$8 sps:$4 sm:$0xff]   ;;  %v18126_v50 = vld [vmem:[#allocation8 + $0x6b4] ss:$8 sps:$4 sm:$0xff]  }
 0x2f2   :  { %3704 = vmatpush1.bf16.msra.mxu1 %v18042_v59  ;;  %v18088_v59 = vld [vmem:[#allocation8 + $0x614] ss:$8 sps:$4 sm:$0xff]  }
 0x2f3   :  { %3645 = vmatpush2.bf16.msra.mxu0 %v18045_v29  ;;  %4083 = vmatprep.subr.bf16.mxu1 %v18050_v45  ;;  %v18091_v29 = vld [vmem:[#allocation8 + $0x504] ss:$8 sps:$4 sm:$0xff]   ;;  %v20626_v45 = vcombine.low %v20612_v22, %v3257_v5  ;;  %v3368_v6 = vor.u32 %v3367_v1, %v3364_v8  ;;  %v18105_v5 = vld [vmem:[#allocation8 + $0x6e0] ss:$8 sps:$4 sm:$0xff]   ;;  %v18138_v8 = vld [vmem:[#allocation8 + $0x694] ss:$8 sps:$4 sm:$0xff]  }
 0x2f4   :  { %3646 = vmatprep.subr.bf16.mxu0 %v18053_v36  ;;  %v18086_v36 = vld [vmem:[#allocation8 + $0x610] ss:$8 sps:$4 sm:$0xff]   ;;  %v18141_v1 = vld [vmem:[#allocation8 + $0x704] ss:$8 sps:$4 sm:$0xff]  }
 0x2f5   :  { %3722 = vmatmul.mubr.bf16.vlgmr.msra.gmra.mxu1 %v3351_v42  ;;  %v18097_v42 = vld [vmem:[#allocation8 + $0x774] ss:$8 sps:$4 sm:$0xff]   ;;  %v3356_v30 = vshll.u32 %v20626_v45, 16 }
 0x2f6   :  { %4084 = vmatpush1.bf16.msra.mxu1 %v18048_v33  ;;  %3731 = vmatprep.mubr.bf16.mxu1 %v22632_v9  ;;  %v18094_v33 = vld [vmem:[#allocation8 + $0x604] ss:$8 sps:$4 sm:$0xff]  }
 0x2f7   :  { %3647 = vmatpush2.bf16.msra.mxu0 %v18051_v19  ;;  %4085 = vmatprep.subr.bf16.mxu1 %v18056_v53  ;;  %v3319_v19 = vrot.slane %v3317_v56, 1  ;;  %v3322_v53 = vrot.slane %v3320_v52, 2  ;;  %v18132_v56 = vld [vmem:[#allocation8 + $0x6a4] ss:$8 sps:$4 sm:$0xff]   ;;  %v18135_v52 = vld [vmem:[#allocation8 + $0x714] ss:$8 sps:$4 sm:$0xff]  }
 0x2f8   :  { %3648 = vmatprep.subr.bf16.mxu0 %v18059_v35  ;;  %v3353_v35 = vshrl.u32 %v20626_v45, 16 }
 0x2fa   :  { %4086 = vmatpush1.bf16.msra.mxu1 %v18054_v55  ;;  %v3323_v55 = vor.u32 %v3322_v53, %v3319_v19  ;;  %v18139_v19 = vld [vmem:[#allocation8 + $0x700] ss:$8 sps:$4 sm:$0xff]   ;;  %v18144_v53 = vld [vmem:[#allocation8 + $0x684] ss:$8 sps:$4 sm:$0xff]  }
 0x2fb   :  { %3649 = vmatpush2.bf16.msra.mxu0 %v18057_v34  ;;  %4087 = vmatprep.subr.bf16.mxu1 %v18063_v18  ;;  %v18095_v34 = vld [vmem:[#allocation8 + $0x770] ss:$8 sps:$4 sm:$0xff]   ;;  %v18101_v18 = vld [vmem:[#allocation8 + $0x6f4] ss:$8 sps:$4 sm:$0xff]  }
 0x2fc   :  { %3650 = vmatprep.subr.bf16.mxu0 %v18066_v46  ;;  %v3327_v46 = vsel %vm22640_vm13, %v3323_v55, %v20494_v14  ;;  %v18142_v55 = vld [vmem:[#allocation8 + $0x680] ss:$8 sps:$4 sm:$0xff]   ;;  %vm22643_vm13 = vmmov %vm22639_vm11 }
 0x2fd   :  { %3732 = vmatmul.mubr.bf16.gmra.mxu1 %v3378_v12  ;;  %v18099_v12 = vld [vmem:[#allocation8 + $0x6f0] ss:$8 sps:$4 sm:$0xff]  }
 0x2fe   :  { %4088 = vmatpush1.bf16.msra.mxu1 %v18061_v44  ;;  %3741 = vmatprep.mubr.bf16.mxu1 %v22632_v9  ;;  %v3355_v44 = vrot.slane %v3353_v35, 1 }
 0x2ff   :  { %3651 = vmatpush2.bf16.msra.mxu0 %v18064_v47  ;;  %4089 = vmatprep.subr.bf16.mxu1 %v18069_v49  ;;  %v3358_v47 = vrot.slane %v3356_v30, 2  ;;  %v3369_v49 = vsel %vm22636_vm0, %v20583_v63, %v3368_v6  ;;  %v18148_v30 = vld [vmem:[#allocation8 + $0x7f4] ss:$8 sps:$4 sm:$0xff]   ;;  %vm22644_vm0 = vmmov %vm22639_vm11 }
 0x300   :  { %3652 = vmatprep.subr.bf16.mxu0 %v18072_v51  ;;  %v18102_v51 = vld [vmem:[#allocation8 + $0x760] ss:$8 sps:$4 sm:$0xff]  }
 0x302   :  { %4090 = vmatpush1.bf16.msra.mxu1 %v18067_v58  ;;  %v18107_v58 = vld [vmem:[#allocation8 + $0x6e4] ss:$8 sps:$4 sm:$0xff]  }
 0x303   :  { %3653 = vmatpush2.bf16.msra.mxu0 %v18070_v37  ;;  %4091 = vmatprep.subr.bf16.mxu1 %v18075_v15  ;;  %v18111_v37 = vld [vmem:[#allocation8 + $0x754] ss:$8 sps:$4 sm:$0xff]   ;;  %v3359_v15 = vor.u32 %v3358_v47, %v3355_v44  ;;  %v20650_v44 = vld [vmem:[#allocation2 + $0x18] ss:$12 sps:$4 sm:$0xff]  }
 0x304   :  { %3654 = vmatprep.subr.bf16.mxu0 %v18079_v57  ;;  %v18109_v57 = vld [vmem:[#allocation8 + $0x750] ss:$8 sps:$4 sm:$0xff]   ;;  %v3820_v47 = vrot.slane %v20650_v44, 2 }
 0x305   :  { %3742 = vmatmul.mubr.bf16.gmra.mxu1 %v3377_v48  ;;  %v18104_v48 = vld [vmem:[#allocation8 + $0x764] ss:$8 sps:$4 sm:$0xff]   ;;  %v3360_v63 = vsel %vm22641_vm10, %v20494_v14, %v3359_v15  ;;  %v18124_v14 = vld [vmem:[#allocation8 + $0x6b0] ss:$8 sps:$4 sm:$0xff]   ;;  %vm22645_vm10 = vmmov %vm22644_vm0 }
 0x306   :  { %4092 = vmatpush1.bf16.msra.mxu1 %v18073_v2  ;;  %4115 = vmatprep.mubr.bf16.mxu1 %v3824_v21  ;;  %v18114_v2 = vld [vmem:[#allocation8 + $0x6d4] ss:$8 sps:$4 sm:$0xff]  }
 0x307   :  { %3655 = vmatpush2.bf16.msra.mxu0 %v18077_v40  ;;  %4093 = vmatprep.subr.bf16.mxu1 %v18082_v28  ;;  %v18112_v40 = vld [vmem:[#allocation8 + $0x6d0] ss:$8 sps:$4 sm:$0xff]   ;;  %v18115_v28 = vld [vmem:[#allocation8 + $0x740] ss:$8 sps:$4 sm:$0xff]   ;;  %v18123_v21 = vld [vmem:[#allocation8 + $0x734] ss:$8 sps:$4 sm:$0xff]  }
 0x308   :  { %3656 = vmatprep.subr.bf16.mxu0 %v18085_v62  ;;  %v18120_v62 = vld [vmem:[#allocation8 + $0x6c4] ss:$8 sps:$4 sm:$0xff]  }
 0x30a   :  { %4094 = vmatpush1.bf16.msra.mxu1 %v18080_v43  ;;  %v18118_v43 = vld [vmem:[#allocation8 + $0x6c0] ss:$8 sps:$4 sm:$0xff]  }
 0x30b   :  { %3657 = vmatpush2.bf16.msra.mxu0 %v18083_v4  ;;  %4095 = vmatprep.subr.bf16.mxu1 %v18088_v59  ;;  %v18129_v4 = vld [vmem:[#allocation8 + $0x724] ss:$8 sps:$4 sm:$0xff]   ;;  %v18127_v59 = vld [vmem:[#allocation8 + $0x720] ss:$8 sps:$4 sm:$0xff]  }
 0x30c   :  { %3658 = vmatprep.subr.bf16.mxu0 %v18091_v29  ;;  %v18130_v29 = vld [vmem:[#allocation8 + $0x6a0] ss:$8 sps:$4 sm:$0xff]  }
 0x30e   :  { %4096 = vmatpush1.bf16.msra.mxu1 %v18086_v36  ;;  %v18133_v36 = vld [vmem:[#allocation8 + $0x710] ss:$8 sps:$4 sm:$0xff]  }
 0x30f   :  { %3659 = vmatpush2.bf16.msra.mxu0 %v18089_v60  ;;  %4097 = vmatprep.subr.bf16.mxu1 %v18094_v33  ;;  %v18136_v60 = vld [vmem:[#allocation8 + $0x690] ss:$8 sps:$4 sm:$0xff]  }
 0x310   :  { %4144 = vmatprep.subr.bf16.mxu0 %v18097_v42  ;;  %v3761_v33 = vld [vmem:[#allocation2 + $0x8] sm:$0xc]  ;;  %v20637_v42 = vld [vmem:[#allocation2 + $0x14] sm:$0xf] }
 0x311   :  { %v20640_v35 = vcombine.low %v3761_v33, %v20637_v42  ;;  %v18165_v33 = vld [vmem:[#allocation8 + $0x7c0] ss:$8 sps:$4 sm:$0xff]  }
 0x312   :  { %4098 = vmatpush1.bf16.msra.mxu1 %v18092_v7  ;;  %3661 = vmatmul.mubr.bf16.vlgmr.msra.gmra.mxu0 %v3327_v46  ;;  %v20642_v7 = vld [vmem:[#allocation2 + $0x20] ss:$12 sps:$4 sm:$0xff]  }
 0x313   :  { %3670 = vmatprep.mubr.bf16.mxu0 %v3369_v49  ;;  %4145 = vmatpush1.bf16.msra.mxu0 %v18095_v34  ;;  %v20647_v34 = vcombine.low %v20601_v25, %v20603_v24  ;;  %v18152_v46 = vld [vmem:[#allocation8 + $0x8f4] ss:$8 sps:$4 sm:$0xff]   ;;  %v18155_v49 = vld [vmem:[#allocation8 + $0x7e4] ss:$8 sps:$4 sm:$0xff]  }
 0x314   :  { %4099 = vmatprep.subr.bf16.mxu1 %v18101_v18  ;;  %4146 = vmatprep.subr.bf16.mxu0 %v18104_v48  ;;  %v3825_v18 = vrot.slane %v20640_v35, 2  ;;  %v18146_v48 = vld [vmem:[#allocation8 + $0x7f0] ss:$8 sps:$4 sm:$0xff]  }
 0x316   :  { %4100 = vmatpush2.bf16.msra.mxu1 %v18099_v12 }
 0x317   :  { %4147 = vmatpush1.bf16.msra.mxu0 %v18102_v51  ;;  %4101 = vmatprep.subr.bf16.mxu1 %v18107_v58  ;;  %v3830_v51 = vrot.slane %v20615_v27, 2  ;;  %v3819_v58 = vrot.slane %v20647_v34, 2 }
 0x318   :  { %4148 = vmatprep.subr.bf16.mxu0 %v18111_v37  ;;  %v18150_v37 = vld [vmem:[#allocation8 + $0x8f0] ss:$8 sps:$4 sm:$0xff]  }
 0x319   :  { %v3831_v27 = vsel %vm22643_vm13, %v3823_v10, %v3830_v51  ;;  %v3828_v10 = vrot.slane %v20626_v45, 2  ;;  %v18170_v45 = vld [vmem:[#allocation8 + $0x8c4] ss:$8 sps:$4 sm:$0xff]  }
 0x31a   :  { %4102 = vmatpush2.bf16.msra.mxu1 %v18105_v5  ;;  %3671 = vmatmul.mubr.bf16.gmra.mxu0 %v3360_v63  ;;  %v18158_v5 = vld [vmem:[#allocation8 + $0x8e4] ss:$8 sps:$4 sm:$0xff]  }
 0x31b   :  { %3680 = vmatprep.mubr.bf16.mxu0 %v3368_v6  ;;  %4149 = vmatpush1.bf16.msra.mxu0 %v18109_v57  ;;  %v3826_v6 = vrot.slane %v20642_v7, 2  ;;  %v3821_v57 = vsel %vm22639_vm11, %v3819_v58, %v3820_v47 }
 0x31c   :  { %4103 = vmatprep.subr.bf16.mxu1 %v18114_v2  ;;  %4150 = vmatprep.subr.bf16.mxu0 %v18117_v39  ;;  %v18161_v39 = vld [vmem:[#allocation8 + $0x7d4] ss:$8 sps:$4 sm:$0xff]  }
 0x31d   :  { %v3827_v12 = vsel %vm22642_vm15, %v3825_v18, %v3826_v6  ;;  %vm22646_vm15 = vcmask 1044480  }
 0x31e   :  { %4104 = vmatpush2.bf16.msra.mxu1 %v18112_v40  ;;  %v3832_v40 = vrot.slane %v20591_v26, 2  ;;  %v4287_v26 = vshrl.u32 %v20607_v11, 16  ;;  %vm22649_vm11 = vmmov %vm22646_vm15 }
 0x31f   :  { %4151 = vmatpush1.bf16.msra.mxu0 %v18115_v28  ;;  %4105 = vmatprep.subr.bf16.mxu1 %v18120_v62  ;;  %vm22650_vm13 = vmmov %vm22649_vm11 }
 0x320   :  { %4152 = vmatprep.subr.bf16.mxu0 %v18123_v21  ;;  %v18156_v21 = vld [vmem:[#allocation8 + $0x8e0] ss:$8 sps:$4 sm:$0xff]  }
 0x322   :  { %4106 = vmatpush2.bf16.msra.mxu1 %v18118_v43  ;;  %3681 = vmatmul.mubr.bf16.gmra.mxu0 %v3359_v15  ;;  %v18153_v15 = vld [vmem:[#allocation8 + $0x7e0] ss:$8 sps:$4 sm:$0xff]  }
 0x323   :  { %4153 = vmatpush1.bf16.msra.mxu0 %v18121_v0  ;;  %4107 = vmatprep.subr.bf16.mxu1 %v18126_v50  ;;  %v18159_v0 = vld [vmem:[#allocation8 + $0x7d0] ss:$8 sps:$4 sm:$0xff]   ;;  %v18164_v50 = vld [vmem:[#allocation8 + $0x8d4] ss:$8 sps:$4 sm:$0xff]  }
 0x324   :  { %4154 = vmatprep.subr.bf16.mxu0 %v18129_v4  ;;  %4176 = vmatprep.mubr.bf16.mxu0 %v22632_v9 }
 0x326   :  { %4108 = vmatpush2.bf16.msra.mxu1 %v18124_v14 }
 0x327   :  { %4155 = vmatpush1.bf16.msra.mxu0 %v18127_v59  ;;  %4109 = vmatprep.subr.bf16.mxu1 %v18132_v56  ;;  %v18167_v59 = vld [vmem:[#allocation8 + $0x7c4] ss:$8 sps:$4 sm:$0xff]   ;;  %v4290_v56 = vshll.u32 %v20607_v11, 16  ;;  %v18173_v11 = vld [vmem:[#allocation8 + $0x7b4] ss:$8 sps:$4 sm:$0xff]  }
 0x328   :  { %4156 = vmatprep.subr.bf16.mxu0 %v18135_v52 }
 0x32a   :  { %4110 = vmatpush2.bf16.msra.mxu1 %v18130_v29  ;;  %v3833_v29 = vsel %vm22644_vm0, %v3826_v6, %v3832_v40  ;;  %v4292_v6 = vrot.slane %v4290_v56, 3  ;;  %v18183_v56 = vld [vmem:[#allocation8 + $0x790] ss:$8 sps:$4 sm:$0xff]   ;;  %vm22652_vm0 = vmmov %vm22649_vm11 }
 0x32b   :  { %4157 = vmatpush1.bf16.msra.mxu0 %v18133_v36  ;;  %4111 = vmatprep.subr.bf16.mxu1 %v18138_v8 }
 0x32c   :  { %4158 = vmatprep.subr.bf16.mxu0 %v18141_v1  ;;  %v18162_v1 = vld [vmem:[#allocation8 + $0x8d0] ss:$8 sps:$4 sm:$0xff]  }
 0x32e   :  { %4112 = vmatpush2.bf16.msra.mxu1 %v18136_v60 }
 0x32f   :  { %4159 = vmatpush1.bf16.msra.mxu0 %v18139_v19  ;;  %4113 = vmatprep.subr.bf16.mxu1 %v18144_v53  ;;  %v3829_v19 = vsel %vm22645_vm10, %v3820_v47, %v3828_v10  ;;  %vm22653_vm10 = vmmov %vm22652_vm0 }
 0x330   :  { %4586 = vmatprep.subr.bf16.mxu0 %v18148_v30  ;;  %v4289_v30 = vrot.slane %v4287_v26, 2 }
 0x331   :  { %v2215_v25 = vpop.f32.mrf.mxu0 }
 0x332   :  { %4114 = vmatpush2.bf16.msra.mxu1 %v18142_v55  ;;  %4177 = vmatmul.mubr.bf16.vlgmr.msra.gmra.mxu0 %v3827_v12  ;;  %v18171_v12 = vld [vmem:[#allocation8 + $0x7b0] ss:$8 sps:$4 sm:$0xff]   ;;  %v4293_v58 = vor.u32 %v4292_v6, %v4289_v30  ;;  %v18189_v30 = vld [vmem:[#allocation8 + $0x780] ss:$8 sps:$4 sm:$0xff]   ;;  %v18194_v6 = vld [vmem:[#allocation8 + $0x884] ss:$8 sps:$4 sm:$0xff]  }
 0x333   :  { %4587 = vmatpush1.bf16.msra.mxu0 %v18146_v48  ;;  %4647 = vmatprep.subr.bf16.mxu1 %v18152_v46  ;;  %v2217_v2 = vpop.f32.mrf.mxu0  ;;  %v18168_v46 = vld [vmem:[#allocation8 + $0x8c0] ss:$8 sps:$4 sm:$0xff]  }
 0x334   :  { %4588 = vmatprep.subr.bf16.mxu0 %v18155_v49  ;;  %4186 = vmatprep.mubr.bf16.mxu0 %v22632_v9 }
 0x335   :  { %4116 = vmatmul.mubr.bf16.vlgmr.msra.gmra.mxu1 %v3821_v57  ;;  %v2154_v63 = vpop.f32.mrf.mxu1  ;;  %v2219_v62 = vpop.f32.mrf.mxu0 }
 0x336   :  { %v20662_v28 = vadd.f32 %v2215_v25, %v2154_v63  ;;  %4125 = vmatprep.mubr.bf16.mxu1 %v3831_v27  ;;  %4648 = vmatpush1.bf16.msra.mxu1 %v18150_v37  ;;  %v18176_v37 = vld [vmem:[#allocation8 + $0x8b4] ss:$8 sps:$4 sm:$0xff]   ;;  %v18177_v27 = vld [vmem:[#allocation8 + $0x7a0] ss:$8 sps:$4 sm:$0xff]  }
 0x337   :  { %v2156_v43 = vpop.f32.mrf.mxu1  ;;  %4589 = vmatpush1.bf16.msra.mxu0 %v18153_v15  ;;  %4649 = vmatprep.subr.bf16.mxu1 %v18158_v5  ;;  %v20666_v14 = vpop.f32.mrf.mxu0  ;;  %v18179_v15 = vld [vmem:[#allocation8 + $0x7a4] ss:$8 sps:$4 sm:$0xff]  }
 0x338   :  { %v20664_v4 = vadd.f32 %v2217_v2, %v2156_v43  ;;  %4590 = vmatprep.subr.bf16.mxu0 %v18161_v39  ;;  %v4297_v2 = vsel %vm1201_vm8, %v4293_v58, %v20513_v61  ;;  %v18174_v39 = vld [vmem:[#allocation8 + $0x8b0] ss:$8 sps:$4 sm:$0xff]   ;;  %v18185_v43 = vld [vmem:[#allocation8 + $0x794] ss:$8 sps:$4 sm:$0xff]  }
 0x339   :  { %v2158_v52 = vpop.f32.mrf.mxu1  ;;  %v2225_v8 = vpop.f32.mrf.mxu0 }
 0x33a   :  { %v20672_v36 = vadd.f32 %v2219_v62, %v2158_v52  ;;  %4650 = vmatpush1.bf16.msra.mxu1 %v18156_v21  ;;  %4187 = vmatmul.mubr.bf16.gmra.mxu0 %v3833_v29  ;;  %v18182_v62 = vld [vmem:[#allocation8 + $0x8a4] ss:$8 sps:$4 sm:$0xff]   ;;  %v18188_v52 = vld [vmem:[#allocation8 + $0x894] ss:$8 sps:$4 sm:$0xff]  }
 0x33b   :  { %v20674_v60 = vpop.f32.mrf.mxu1  ;;  %4591 = vmatpush1.bf16.msra.mxu0 %v18159_v0  ;;  %4651 = vmatprep.subr.bf16.mxu1 %v18164_v50  ;;  %v2227_v53 = vpop.f32.mrf.mxu0 }
 0x33c   :  { %4592 = vmatprep.subr.bf16.mxu0 %v18167_v59  ;;  %4196 = vmatprep.mubr.bf16.mxu0 %v22632_v9  ;;  %v18180_v59 = vld [vmem:[#allocation8 + $0x8a0] ss:$8 sps:$4 sm:$0xff]  }
 0x33d   :  { %4126 = vmatmul.mubr.bf16.gmra.mxu1 %v3829_v19  ;;  %v2164_v55 = vpop.f32.mrf.mxu1  ;;  %v2229_v48 = vpop.f32.mrf.mxu0  ;;  %v4299_v19 = vshrl.u32 %v20640_v35, 16 }
 0x33e   :  { %v20678_v18 = vadd.f32 %v2225_v8, %v2164_v55  ;;  %4135 = vmatprep.mubr.bf16.mxu1 %v3830_v51  ;;  %4652 = vmatpush1.bf16.msra.mxu1 %v18162_v1  ;;  %v18191_v1 = vld [vmem:[#allocation8 + $0x784] ss:$8 sps:$4 sm:$0xff]   ;;  %v18197_v55 = vld [vmem:[#allocation8 + $0x874] ss:$8 sps:$4 sm:$0xff]  }
 0x33f   :  { %v2166_v49 = vpop.f32.mrf.mxu1  ;;  %4593 = vmatpush1.bf16.msra.mxu0 %v18165_v33  ;;  %4653 = vmatprep.subr.bf16.mxu1 %v18170_v45  ;;  %v20682_v25 = vpop.f32.mrf.mxu0  ;;  %v18186_v45 = vld [vmem:[#allocation8 + $0x890] ss:$8 sps:$4 sm:$0xff]  }
 0x340   :  { %v20680_v47 = vadd.f32 %v2227_v53, %v2166_v49  ;;  %4594 = vmatprep.subr.bf16.mxu0 %v18173_v11  ;;  %v4302_v53 = vshll.u32 %v20640_v35, 16  ;;  %v18192_v49 = vld [vmem:[#allocation8 + $0x880] ss:$8 sps:$4 sm:$0xff]   ;;  %v18203_v35 = vld [vmem:[#allocation8 + $0x864] ss:$8 sps:$4 sm:$0xff]  }
 0x341   :  { %v2168_v5 = vpop.f32.mrf.mxu1  ;;  %v2235_v51 = vpop.f32.mrf.mxu0 }
 0x342   :  { %v20684_v57 = vadd.f32 %v2229_v48, %v2168_v5  ;;  %4654 = vmatpush1.bf16.msra.mxu1 %v18168_v46  ;;  %4197 = vmatmul.mubr.bf16.gmra.mxu0 %v3832_v40  ;;  %v19905_v48 = vld [vmem:[#allocation2 + $0x38] sm:$0xf]  ;;  %v4304_v58 = vrot.slane %v4302_v53, 3 }
 0x343   :  { %v20688_v63 = vpop.f32.mrf.mxu1  ;;  %4595 = vmatpush1.bf16.msra.mxu0 %v18171_v12  ;;  %4618 = vmatprep.mubr.bf16.mxu0 %v4297_v2  ;;  %v2237_v21 = vpop.f32.mrf.mxu0  ;;  %v4301_v12 = vrot.slane %v4299_v19, 2  ;;  %v18214_v53 = vld [vmem:[#allocation8 + $0x840] ss:$8 sps:$4 sm:$0xff]  }
 0x344   :  { %4655 = vmatprep.subr.bf16.mxu1 %v18176_v37  ;;  %4596 = vmatprep.subr.bf16.mxu0 %v18179_v15  ;;  %v18195_v37 = vld [vmem:[#allocation8 + $0x870] ss:$8 sps:$4 sm:$0xff]   ;;  %v18200_v15 = vld [vmem:[#allocation8 + $0x974] ss:$8 sps:$4 sm:$0xff]  }
 0x345   :  { %4136 = vmatmul.mubr.bf16.gmra.mxu1 %v3828_v10  ;;  %v2174_v0 = vpop.f32.mrf.mxu1  ;;  %v2239_v40 = vpop.f32.mrf.mxu0  ;;  %v4216_v10 = vld [vmem:[#allocation2 + $0x44] sm:$0x7]  ;;  %v4305_v2 = vor.u32 %v4304_v58, %v4301_v12  ;;  %v18220_v58 = vld [vmem:[#allocation8 + $0x830] ss:$8 sps:$4 sm:$0xff]  }
 0x346   :  { %v20690_v50 = vadd.f32 %v2235_v51, %v2174_v0  ;;  %4656 = vmatpush1.bf16.msra.mxu1 %v18174_v39  ;;  %4679 = vmatprep.mubr.bf16.mxu1 %v22632_v9  ;;  %v20697_v46 = vcombine.low %v19905_v48, %v4216_v10  ;;  %v18198_v39 = vld [vmem:[#allocation8 + $0x970] ss:$8 sps:$4 sm:$0xff]   ;;  %v18217_v48 = vld [vmem:[#allocation8 + $0x940] ss:$8 sps:$4 sm:$0xff]  }
 0x347   :  { %v2176_v26 = vpop.f32.mrf.mxu1  ;;  %4597 = vmatpush1.bf16.msra.mxu0 %v18177_v27  ;;  %4657 = vmatprep.subr.bf16.mxu1 %v18182_v62  ;;  %v2240_v8 = vpop.f32.mrf.mxu0  ;;  %v18201_v27 = vld [vmem:[#allocation8 + $0x860] ss:$8 sps:$4 sm:$0xff]   ;;  %v18206_v62 = vld [vmem:[#allocation8 + $0x964] ss:$8 sps:$4 sm:$0xff]  }
 0x348   :  { %v20693_v29 = vadd.f32 %v2237_v21, %v2176_v26  ;;  %4598 = vmatprep.subr.bf16.mxu0 %v18185_v43  ;;  %v4329_v5 = vshrl.u32 %v20697_v46, 16  ;;  %v4332_v51 = vshll.u32 %v20697_v46, 16  ;;  %v4309_v21 = vsel %vm1201_vm8, %v4305_v2, %v20515_v23  ;;  %v18209_v43 = vld [vmem:[#allocation8 + $0x854] ss:$8 sps:$4 sm:$0xff]   ;;  %v18204_v26 = vld [vmem:[#allocation8 + $0x960] ss:$8 sps:$4 sm:$0xff]  }
 0x349   :  { %v2178_v33 = vpop.f32.mrf.mxu1  ;;  %v18213_v8 = vld [vmem:[#allocation8 + $0x954] ss:$8 sps:$4 sm:$0xff]   ;;  %v18223_v2 = vld [vmem:[#allocation8 + $0x930] ss:$8 sps:$4 sm:$0xff]  }
 0x34a   :  { %4658 = vmatpush1.bf16.msra.mxu1 %v18180_v59  ;;  %v4331_v0 = vrot.slane %v4329_v5, 2  ;;  %v4334_v40 = vrot.slane %v4332_v51, 3  ;;  %v18216_v33 = vld [vmem:[#allocation8 + $0x844] ss:$8 sps:$4 sm:$0xff]   ;;  %v22599_v51 = vrot.slane %v20609_v17, 3 }
 0x34b   :  { %v2179_v11 = vpop.f32.mrf.mxu1  ;;  %4599 = vmatpush1.bf16.msra.mxu0 %v18183_v56  ;;  %4659 = vmatprep.subr.bf16.mxu1 %v18188_v52  ;;  %v18207_v52 = vld [vmem:[#allocation8 + $0x850] ss:$8 sps:$4 sm:$0xff]  }
 0x34c   :  { %4600 = vmatprep.subr.bf16.mxu0 %v18191_v1  ;;  %v4335_v1 = vor.u32 %v4334_v40, %v4331_v0  ;;  %v18219_v11 = vld [vmem:[#allocation8 + $0x944] ss:$8 sps:$4 sm:$0xff]   ;;  %v18235_v0 = vld [vmem:[#allocation8 + $0x814] ss:$8 sps:$4 sm:$0xff]  }
 0x34e   :  { %4660 = vmatpush1.bf16.msra.mxu1 %v18186_v45  ;;  %v18211_v45 = vld [vmem:[#allocation8 + $0x950] ss:$8 sps:$4 sm:$0xff]  }
 0x34f   :  { %4601 = vmatpush1.bf16.msra.mxu0 %v18189_v30  ;;  %4661 = vmatprep.subr.bf16.mxu1 %v18194_v6  ;;  %v4336_v30 = vsel %vm1201_vm8, %v20515_v23, %v4335_v1  ;;  %v18222_v6 = vld [vmem:[#allocation8 + $0x834] ss:$8 sps:$4 sm:$0xff]  }
 0x350   :  { %4602 = vmatprep.subr.bf16.mxu0 %v18197_v55 }
 0x352   :  { %4662 = vmatpush1.bf16.msra.mxu1 %v18192_v49  ;;  %v20717_v49 = vld [vmem:[#allocation2] sm:$0x88] }
 0x353   :  { %4603 = vmatpush2.bf16.msra.mxu0 %v18195_v37  ;;  %5041 = vmatprep.subr.bf16.mxu1 %v18200_v15  ;;  %v18225_v37 = vld [vmem:[#allocation8 + $0x934] ss:$8 sps:$4 sm:$0xff]   ;;  %v16386_v23 = vcombine.high %v20717_v49, %v20603_v24  ;;  %v4215_v15 = vld [vmem:[#allocation2 + $0x3c] sm:$0x77] }
 0x354   :  { %4604 = vmatprep.subr.bf16.mxu0 %v18203_v35  ;;  %v18229_v35 = vld [vmem:[#allocation8 + $0x824] ss:$8 sps:$4 sm:$0xff]  }
 0x355   :  { %v20703_v59 = vpop.f32.mrf.mxu1  ;;  %4680 = vmatmul.mubr.bf16.vlgmr.msra.gmra.mxu1 %v4309_v21  ;;  %v18227_v21 = vld [vmem:[#allocation8 + $0x820] ss:$8 sps:$4 sm:$0xff]  }
 0x356   :  { %5042 = vmatpush1.bf16.msra.mxu1 %v18198_v39  ;;  %4689 = vmatprep.mubr.bf16.mxu1 %v22632_v9  ;;  %v20727_v39 = vcombine.high %v20612_v22, %v4215_v15 }
 0x357   :  { %v20706_v56 = vpop.f32.mrf.mxu1  ;;  %4605 = vmatpush2.bf16.msra.mxu0 %v18201_v27  ;;  %5043 = vmatprep.subr.bf16.mxu1 %v18206_v62  ;;  %v4780_v62 = vrot.slane %v16386_v23, 3 }
 0x358   :  { %4606 = vmatprep.subr.bf16.mxu0 %v18209_v43  ;;  %v18232_v43 = vld [vmem:[#allocation8 + $0x924] ss:$8 sps:$4 sm:$0xff]  }
 0x359   :  { %v20708_v10 = vpop.f32.mrf.mxu1 }
 0x35a   :  { %5044 = vmatpush1.bf16.msra.mxu1 %v18204_v26  ;;  %v4782_v26 = vsel %vm22646_vm15, %v4780_v62, %v22599_v51  ;;  %v18239_v62 = vld [vmem:[#allocation8 + $0x800] ss:$8 sps:$4 sm:$0xff]   ;;  %vm22654_vm15 = vmmov %vm22652_vm0 }
 0x35b   :  { %v20710_v19 = vpop.f32.mrf.mxu1  ;;  %4607 = vmatpush2.bf16.msra.mxu0 %v18207_v52  ;;  %5045 = vmatprep.subr.bf16.mxu1 %v18213_v8  ;;  %v18230_v52 = vld [vmem:[#allocation8 + $0x920] ss:$8 sps:$4 sm:$0xff]   ;;  %v4320_v8 = vshrl.u32 %v20727_v39, 16 }
 0x35c   :  { %4608 = vmatprep.subr.bf16.mxu0 %v18216_v33  ;;  %v4323_v33 = vshll.u32 %v20727_v39, 16  ;;  %v1767_v51 = vld [vmem:[#allocation9 + $0x1] ss:$8 sm:$0x3] }
 0x35d   :  { %v20714_v55 = vpop.f32.mrf.mxu1  ;;  %4690 = vmatmul.mubr.bf16.gmra.mxu1 %v4336_v30  ;;  %v4275_v30 = vshrl.u32 %v20647_v34, 16  ;;  %v4322_v23 = vrot.slane %v4320_v8, 2 }
 0x35e   :  { %5046 = vmatpush1.bf16.msra.mxu1 %v18211_v45  ;;  %4699 = vmatprep.mubr.bf16.mxu1 %v22632_v9 }
 0x35f   :  { %v20719_v12 = vpop.f32.mrf.mxu1  ;;  %4609 = vmatpush2.bf16.msra.mxu0 %v18214_v53  ;;  %5047 = vmatprep.subr.bf16.mxu1 %v18219_v11  ;;  %v18233_v53 = vld [vmem:[#allocation8 + $0x810] ss:$8 sps:$4 sm:$0xff]   ;;  %v18238_v11 = vld [vmem:[#allocation8 + $0x914] ss:$8 sps:$4 sm:$0xff]  }
 0x360   :  { %4610 = vmatprep.subr.bf16.mxu0 %v18222_v6  ;;  %v18241_v6 = vld [vmem:[#allocation8 + $0x804] ss:$8 sps:$4 sm:$0xff]  }
 0x361   :  { %v20723_v5 = vpop.f32.mrf.mxu1 }
 0x362   :  { %5048 = vmatpush1.bf16.msra.mxu1 %v18217_v48 }
 0x363   :  { %v20729_v27 = vpop.f32.mrf.mxu1  ;;  %4611 = vmatpush2.bf16.msra.mxu0 %v18220_v58  ;;  %5049 = vmatprep.subr.bf16.mxu1 %v18225_v37  ;;  %v20743_v58 = vcombine.low %v20612_v22, %v4215_v15  ;;  %v18236_v37 = vld [vmem:[#allocation8 + $0x910] ss:$8 sps:$4 sm:$0xff]   ;;  %v18242_v22 = vld [vmem:[#allocation8 + $0x900] ss:$8 sps:$4 sm:$0xff]  }
 0x364   :  { %4612 = vmatprep.subr.bf16.mxu0 %v18229_v35  ;;  %v4325_v35 = vrot.slane %v4323_v33, 3 }
 0x365   :  { %v20731_v40 = vpop.f32.mrf.mxu1  ;;  %4700 = vmatmul.mubr.bf16.gmra.mxu1 %v4335_v1  ;;  %v4278_v1 = vshll.u32 %v20647_v34, 16  ;;  %v18247_v34 = vld [vmem:[#allocation8 + $0xa74] ss:$8 sps:$4 sm:$0xff]  }
 0x366   :  { %5050 = vmatpush1.bf16.msra.mxu1 %v18223_v2  ;;  %5073 = vmatprep.mubr.bf16.mxu1 %v4782_v26  ;;  %v4326_v15 = vor.u32 %v4325_v35, %v4322_v23 }
 0x367   :  { %v20738_v45 = vpop.f32.mrf.mxu1  ;;  %4613 = vmatpush2.bf16.msra.mxu0 %v18227_v21  ;;  %5051 = vmatprep.subr.bf16.mxu1 %v18232_v43  ;;  %v18244_v21 = vld [vmem:[#allocation8 + $0x904] ss:$8 sps:$4 sm:$0xff]   ;;  %v4277_v43 = vrot.slane %v4275_v30, 2  ;;  %v4280_v26 = vrot.slane %v4278_v1, 3 }
 0x368   :  { %4614 = vmatprep.subr.bf16.mxu0 %v18235_v0  ;;  %v4311_v0 = vshrl.u32 %v20743_v58, 16  ;;  %v18254_v30 = vld [vmem:[#allocation8 + $0xa64] ss:$8 sps:$4 sm:$0xff]   ;;  %v4327_v35 = vsel %vm1201_vm8, %v20513_v61, %v4326_v15 }
 0x369   :  { %v2789_v48 = vpop.f32.mrf.mxu1  ;;  %v4281_v33 = vor.u32 %v4280_v26, %v4277_v43  ;;  %v22648_v1 = vld [vmem:[#allocation17_spill] sm:$0xff] }
 0x36a   :  { %5052 = vmatpush1.bf16.msra.mxu1 %v18230_v52  ;;  %v4314_v48 = vshll.u32 %v20743_v58, 16  ;;  %v22647_v52 = vld [vmem:[#allocation16_spill] sm:$0xff]  ;;  %v4313_v31 = vrot.slane %v4311_v0, 2  ;;  %v18261_v0 = vld [vmem:[#allocation8 + $0xa54] ss:$8 sps:$4 sm:$0xff]  }
 0x36b   :  { %v2790_v2 = vpop.f32.mrf.mxu1  ;;  %4615 = vmatpush2.bf16.msra.mxu0 %v18233_v53  ;;  %5053 = vmatprep.subr.bf16.mxu1 %v18238_v11  ;;  %v20748_v8 = vrot.slane %v1767_v51, %v22647_v52  ;;  %v18245_v53 = vld [vmem:[#allocation8 + $0xa70] ss:$8 sps:$4 sm:$0xff]   ;;  %v18251_v11 = vld [vmem:[#allocation8 + $0x9f4] ss:$8 sps:$4 sm:$0xff]   ;;  %v18257_v26 = vld [vmem:[#allocation8 + $0x9e4] ss:$8 sps:$4 sm:$0xff]  }
 0x36c   :  { %4616 = vmatprep.subr.bf16.mxu0 %v18241_v6  ;;  %v20751_v6 = vrot.slane %v1767_v51, %v22648_v1  ;;  %v4285_v2 = vsel %vm1201_vm8, %v4281_v33, %v20527_v38  ;;  %v18252_v51 = vld [vmem:[#allocation8 + $0xa60] ss:$8 sps:$4 sm:$0xff]  }
 0x36e   :  { %5054 = vmatpush1.bf16.msra.mxu1 %v18236_v37  ;;  %v4316_v37 = vrot.slane %v4314_v48, 3  ;;  %v2243_v48 = vadd.f32 %v20664_v4, %v20751_v6  ;;  %v18264_v4 = vld [vmem:[#allocation8 + $0x9d4] ss:$8 sps:$4 sm:$0xff]  }
 0x36f   :  { %4617 = vmatpush2.bf16.msra.mxu0 %v18239_v62  ;;  %5055 = vmatprep.subr.bf16.mxu1 %v18244_v21  ;;  %v18249_v62 = vld [vmem:[#allocation8 + $0x9f0] ss:$8 sps:$4 sm:$0xff]   ;;  %v2242_v21 = vadd.f32 %v20662_v28, %v20748_v8 }
 0x370   :  { %5102 = vmatprep.subr.bf16.mxu0 %v18247_v34  ;;  %v4317_v33 = vor.u32 %v4316_v37, %v4313_v31 }
 0x372   :  { %5056 = vmatpush1.bf16.msra.mxu1 %v18242_v22  ;;  %v2704_v23 = vpop.f32.mrf.mxu0  ;;  %4619 = vmatmul.mubr.bf16.vlgmr.msra.gmra.mxu0 %v4285_v2  ;;  %v18255_v2 = vld [vmem:[#allocation8 + $0x9e0] ss:$8 sps:$4 sm:$0xff]   ;;  %v4318_v31 = vsel %vm1201_vm8, %v20527_v38, %v4317_v33  ;;  %v2247_v38 = vadd.f32 %v20680_v47, %v20751_v6  ;;  %v18279_v47 = vld [vmem:[#allocation8 + $0xa24] ss:$8 sps:$4 sm:$0xff]  }
 0x373   :  { %v2766_v43 = vadd.f32 %v20703_v59, %v2704_v23  ;;  %4628 = vmatprep.mubr.bf16.mxu0 %v4327_v35  ;;  %5103 = vmatpush1.bf16.msra.mxu0 %v18245_v53  ;;  %v2244_v59 = vadd.f32 %v20672_v36, %v20748_v8  ;;  %v18267_v35 = vld [vmem:[#allocation8 + $0xa44] ss:$8 sps:$4 sm:$0xff]   ;;  %v18262_v36 = vld [vmem:[#allocation8 + $0x9d0] ss:$8 sps:$4 sm:$0xff]  }
 0x374   :  { %v2706_v34 = vpop.f32.mrf.mxu0  ;;  %5057 = vmatprep.subr.bf16.mxu1 %v18251_v11  ;;  %5104 = vmatprep.subr.bf16.mxu0 %v18254_v30  ;;  %v18259_v30 = vld [vmem:[#allocation8 + $0xa50] ss:$8 sps:$4 sm:$0xff]  }
 0x375   :  { %v20762_v22 = vadd.f32 %v2766_v43, %v2242_v21  ;;  %v2768_v61 = vadd.f32 %v20706_v56, %v2706_v34  ;;  %v18265_v21 = vld [vmem:[#allocation8 + $0xa40] ss:$8 sps:$4 sm:$0xff]   ;;  %v18270_v43 = vld [vmem:[#allocation8 + $0x9c4] ss:$8 sps:$4 sm:$0xff]  }
 0x376   :  { %5058 = vmatpush2.bf16.msra.mxu1 %v18249_v62  ;;  %v2708_v28 = vpop.f32.mrf.mxu0 }
 0x377   :  { %v20767_v53 = vadd.f32 %v2768_v61, %v2243_v48  ;;  %v2770_v11 = vadd.f32 %v20708_v10, %v2708_v28  ;;  %5105 = vmatpush1.bf16.msra.mxu0 %v18252_v51  ;;  %5059 = vmatprep.subr.bf16.mxu1 %v18257_v26  ;;  %v2246_v10 = vadd.f32 %v20678_v18, %v20748_v8  ;;  %v18273_v26 = vld [vmem:[#allocation8 + $0xa34] ss:$8 sps:$4 sm:$0xff]   ;;  %v18268_v18 = vld [vmem:[#allocation8 + $0x9c0] ss:$8 sps:$4 sm:$0xff]   ;;  %v18271_v28 = vld [vmem:[#allocation8 + $0xa30] ss:$8 sps:$4 sm:$0xff]  }
 0x378   :  { %v20770_v23 = vpop.f32.mrf.mxu0  ;;  %5106 = vmatprep.subr.bf16.mxu0 %v18261_v0 }
 0x379   :  { %v20772_v56 = vadd.f32 %v2770_v11, %v2244_v59 }
 0x37a   :  { %5060 = vmatpush2.bf16.msra.mxu1 %v18255_v2  ;;  %v2714_v37 = vpop.f32.mrf.mxu0  ;;  %4629 = vmatmul.mubr.bf16.gmra.mxu0 %v4318_v31  ;;  %v18276_v2 = vld [vmem:[#allocation8 + $0x9b4] ss:$8 sps:$4 sm:$0xff]  }
 0x37b   :  { %v2776_v62 = vadd.f32 %v20714_v55, %v2714_v37  ;;  %4638 = vmatprep.mubr.bf16.mxu0 %v4326_v15  ;;  %5107 = vmatpush1.bf16.msra.mxu0 %v18259_v30  ;;  %v2248_v55 = vadd.f32 %v20684_v57, %v20748_v8  ;;  %v18274_v30 = vld [vmem:[#allocation8 + $0x9b0] ss:$8 sps:$4 sm:$0xff]   ;;  %v2250_v57 = vadd.f32 %v20690_v50, %v20748_v8  ;;  %v18285_v37 = vld [vmem:[#allocation8 + $0xa14] ss:$8 sps:$4 sm:$0xff]   ;;  %v18280_v8 = vld [vmem:[#allocation8 + $0x9a0] ss:$8 sps:$4 sm:$0xff]  }
 0x37c   :  { %v2716_v51 = vpop.f32.mrf.mxu0  ;;  %5061 = vmatprep.subr.bf16.mxu1 %v18264_v4  ;;  %5108 = vmatprep.subr.bf16.mxu0 %v18267_v35  ;;  %v18282_v35 = vld [vmem:[#allocation8 + $0x9a4] ss:$8 sps:$4 sm:$0xff]  }
 0x37d   :  { %v20781_v34 = vadd.f32 %v2776_v62, %v2246_v10  ;;  %v2778_v0 = vadd.f32 %v20719_v12, %v2716_v51  ;;  %v18283_v62 = vld [vmem:[#allocation8 + $0xa10] ss:$8 sps:$4 sm:$0xff]   ;;  %v18291_v51 = vld [vmem:[#allocation8 + $0xa04] ss:$8 sps:$4 sm:$0xff]  }
 0x37e   :  { %5062 = vmatpush2.bf16.msra.mxu1 %v18262_v36  ;;  %v2718_v48 = vpop.f32.mrf.mxu0  ;;  %v2251_v36 = vadd.f32 %v20693_v29, %v20751_v6  ;;  %v18289_v29 = vld [vmem:[#allocation8 + $0xa00] ss:$8 sps:$4 sm:$0xff]  }
 0x37f   :  { %v20786_v15 = vadd.f32 %v2778_v0, %v2247_v38  ;;  %v2780_v61 = vadd.f32 %v20723_v5, %v2718_v48  ;;  %5109 = vmatpush1.bf16.msra.mxu0 %v18265_v21  ;;  %5063 = vmatprep.subr.bf16.mxu1 %v18270_v43  ;;  %v18277_v5 = vld [vmem:[#allocation8 + $0xa20] ss:$8 sps:$4 sm:$0xff]   ;;  %v18288_v21 = vld [vmem:[#allocation8 + $0x994] ss:$8 sps:$4 sm:$0xff]   ;;  %v4719_v38 = vld [vmem:[#allocation2 + $0x8] sm:$0x8] }
 0x380   :  { %v20789_v59 = vpop.f32.mrf.mxu0  ;;  %5110 = vmatprep.subr.bf16.mxu0 %v18273_v26  ;;  %v18286_v26 = vld [vmem:[#allocation8 + $0x990] ss:$8 sps:$4 sm:$0xff]   ;;  %v18294_v0 = vld [vmem:[#allocation8 + $0x984] ss:$8 sps:$4 sm:$0xff]   ;;  %v4784_v48 = vrot.slane %v20642_v7, 3 }
 0x381   :  { %v20791_v11 = vadd.f32 %v2780_v61, %v2248_v55  ;;  %v16385_v55 = vcombine.low %v20717_v49, %v20603_v24  ;;  %v22651_v24 = vrot.slane %v20609_v17, 3 }
 0x382   :  { %5064 = vmatpush2.bf16.msra.mxu1 %v18268_v18  ;;  %v2724_v12 = vpop.f32.mrf.mxu0  ;;  %4639 = vmatmul.mubr.bf16.gmra.mxu0 %v4317_v33  ;;  %v18292_v18 = vld [vmem:[#allocation8 + $0x980] ss:$8 sps:$4 sm:$0xff]  }
 0x383   :  { %v2786_v4 = vadd.f32 %v20731_v40, %v2724_v12  ;;  %5111 = vmatpush1.bf16.msra.mxu0 %v18271_v28  ;;  %5065 = vmatprep.subr.bf16.mxu1 %v18276_v2  ;;  %v4778_v28 = vrot.slane %v20650_v44, 3  ;;  %v4790_v44 = vrot.slane %v20697_v46, 3 }
 0x384   :  { %v2726_v31 = vpop.f32.mrf.mxu0  ;;  %5112 = vmatprep.subr.bf16.mxu0 %v18279_v47  ;;  %5134 = vmatprep.mubr.bf16.mxu0 %v22632_v9  ;;  %v4788_v47 = vrot.slane %v20727_v39, 3 }
 0x385   :  { %v20799_v10 = vadd.f32 %v2786_v4, %v2250_v57  ;;  %v2788_v33 = vadd.f32 %v20738_v45, %v2726_v31  ;;  %v16387_v45 = vcombine.low %v4719_v38, %v20637_v42  ;;  %v4777_v42 = vrot.slane %v16385_v55, 3 }
 0x386   :  { %5066 = vmatpush2.bf16.msra.mxu1 %v18274_v30  ;;  %v2728_v50 = vpop.f32.mrf.mxu0  ;;  %v4789_v49 = vsel %vm22652_vm0, %v22651_v24, %v4788_v47 }
 0x387   :  { %v20802_v40 = vadd.f32 %v2788_v33, %v2251_v36  ;;  %5113 = vmatpush1.bf16.msra.mxu0 %v18277_v5  ;;  %5067 = vmatprep.subr.bf16.mxu1 %v18282_v35  ;;  %v4783_v61 = vrot.slane %v16387_v45, 3  ;;  %v4779_v30 = vsel %vm22650_vm13, %v4777_v42, %v4778_v28  ;;  %v4786_v36 = vrot.slane %v20743_v58, 3 }
 0x388   :  { %v2729_v43 = vpop.f32.mrf.mxu0  ;;  %5114 = vmatprep.subr.bf16.mxu0 %v18285_v37  ;;  %v4791_v50 = vsel %vm22653_vm10, %v4784_v48, %v4790_v44 }
 0x389   :  { %v4785_v2 = vsel %vm22649_vm11, %v4783_v61, %v4784_v48  ;;  %v4787_v43 = vsel %vm22654_vm15, %v4778_v28, %v4786_v36 }
 0x38a   :  { %5068 = vmatpush2.bf16.msra.mxu1 %v18280_v8 }
 0x38b   :  { %5115 = vmatpush1.bf16.msra.mxu0 %v18283_v62  ;;  %5069 = vmatprep.subr.bf16.mxu1 %v18288_v21 }
 0x38c   :  { %5116 = vmatprep.subr.bf16.mxu0 %v18291_v51 }
 0x38e   :  { %5070 = vmatpush2.bf16.msra.mxu1 %v18286_v26 }
 0x38f   :  { %5117 = vmatpush1.bf16.msra.mxu0 %v18289_v29  ;;  %5071 = vmatprep.subr.bf16.mxu1 %v18294_v0 }
 0x392   :  { %5072 = vmatpush2.bf16.msra.mxu1 %v18292_v18  ;;  %v3220_v12 = vpop.f32.mrf.mxu0  ;;  %5135 = vmatmul.mubr.bf16.vlgmr.msra.gmra.mxu0 %v4785_v2 }
 0x393   :  { %5144 = vmatprep.mubr.bf16.mxu0 %v22632_v9 }
 0x394   :  { %v3222_v7 = vpop.f32.mrf.mxu0 }
 0x395   :  { %v3159_v57 = vpop.f32.mrf.mxu1  ;;  %5074 = vmatmul.mubr.bf16.vlgmr.msra.gmra.mxu1 %v4779_v30 }
 0x396   :  { %v3221_v4 = vadd.f32 %v3220_v12, %v3159_v57  ;;  %5083 = vmatprep.mubr.bf16.mxu1 %v4789_v49  ;;  %v3224_v39 = vpop.f32.mrf.mxu0 }
 0x397   :  { %v3161_v5 = vpop.f32.mrf.mxu1 }
 0x398   :  { %v3247_v35 = vadd.f32 %v3221_v4, %v20762_v22  ;;  %v3223_v31 = vadd.f32 %v3222_v7, %v3161_v5  ;;  %v20818_v37 = vpop.f32.mrf.mxu0 }
 0x399   :  { %v3163_v33 = vpop.f32.mrf.mxu1 }
 0x39a   :  { %v3248_v17 = vadd.f32 %v3223_v31, %v20767_v53  ;;  %v3225_v8 = vadd.f32 %v3224_v39, %v3163_v33  ;;  %v3230_v62 = vpop.f32.mrf.mxu0  ;;  %5145 = vmatmul.mubr.bf16.gmra.mxu0 %v4791_v50 }
 0x39b   :  { %v20823_v46 = vpop.f32.mrf.mxu1  ;;  %5154 = vmatprep.mubr.bf16.mxu0 %v22632_v9 }
 0x39c   :  { %v3249_v21 = vadd.f32 %v3225_v8, %v20772_v56  ;;  %v3232_v22 = vpop.f32.mrf.mxu0 }
 0x39d   :  { %v3169_v51 = vpop.f32.mrf.mxu1  ;;  %5084 = vmatmul.mubr.bf16.gmra.mxu1 %v4787_v43 }
 0x39e   :  { %v3231_v58 = vadd.f32 %v3230_v62, %v3169_v51  ;;  %5093 = vmatprep.mubr.bf16.mxu1 %v4788_v47  ;;  %v3234_v26 = vpop.f32.mrf.mxu0 }
 0x39f   :  { %v3171_v38 = vpop.f32.mrf.mxu1 }
 0x3a0   :  { %v3251_v53 = vadd.f32 %v3231_v58, %v20781_v34  ;;  %v3233_v29 = vadd.f32 %v3232_v22, %v3171_v38  ;;  %v20829_v0 = vpop.f32.mrf.mxu0 }
 0x3a1   :  { %v3173_v45 = vpop.f32.mrf.mxu1 }
 0x3a2   :  { %v3252_v48 = vadd.f32 %v3233_v29, %v20786_v15  ;;  %v3235_v18 = vadd.f32 %v3234_v26, %v3173_v45  ;;  %v3240_v55 = vpop.f32.mrf.mxu0  ;;  %5155 = vmatmul.mubr.bf16.gmra.mxu0 %v4790_v44 }
 0x3a3   :  { %v20832_v56 = vpop.f32.mrf.mxu1 }
 0x3a4   :  { %v3253_v61 = vadd.f32 %v3235_v18, %v20791_v11  ;;  %v3242_v28 = vpop.f32.mrf.mxu0 }
 0x3a5   :  { %v3179_v2 = vpop.f32.mrf.mxu1  ;;  %5094 = vmatmul.mubr.bf16.gmra.mxu1 %v4786_v36 }
 0x3a6   :  { %v3241_v47 = vadd.f32 %v3240_v55, %v3179_v2  ;;  %v3244_v12 = vpop.f32.mrf.mxu0  ;;  %5792 = vmatprep.mubr.bf16.mxu1 %v22632_v9 }
 0x3a7   :  { %v3181_v34 = vpop.f32.mrf.mxu1 }
 0x3a8   :  { %v3255_v42 = vadd.f32 %v3241_v47, %v20799_v10  ;;  %v3243_v7 = vadd.f32 %v3242_v28, %v3181_v34  ;;  %v3245_v30 = vpop.f32.mrf.mxu0 }
 0x3a9   :  { %v3183_v15 = vpop.f32.mrf.mxu1 }
 0x3aa   :  { %v3256_v57 = vadd.f32 %v3243_v7, %v20802_v40 }
 0x3ab   :  { %v3184_v24 = vpop.f32.mrf.mxu1 }
 0x3b5   :  { %v3723_v49 = vpop.f32.mrf.mxu1 }
 0x3b7   :  { %v3725_v44 = vpop.f32.mrf.mxu1 }
 0x3b9   :  { %v3727_v4 = vpop.f32.mrf.mxu1 }
 0x3bb   :  { %v20838_v11 = vpop.f32.mrf.mxu1 }
 0x3bd   :  { %v3733_v39 = vpop.f32.mrf.mxu1 }
 0x3bf   :  { %v3735_v5 = vpop.f32.mrf.mxu1 }
 0x3c1   :  { %v3737_v31 = vpop.f32.mrf.mxu1 }
 0x3c3   :  { %v20840_v36 = vpop.f32.mrf.mxu1 }
 0x3c5   :  { %v3743_v33 = vpop.f32.mrf.mxu1 }
 0x3c7   :  { %v3745_v50 = vpop.f32.mrf.mxu1 }
 0x3c9   :  { %v3747_v8 = vpop.f32.mrf.mxu1 }
 0x3cb   :  { %v3748_v10 = vpop.f32.mrf.mxu1 }
 0x3d2   :  { %v3662_v62 = vpop.f32.mrf.mxu0 }
 0x3d3   :  { %v3724_v22 = vadd.f32 %v3723_v49, %v3662_v62 }
 0x3d4   :  { %v3664_v43 = vpop.f32.mrf.mxu0 }
 0x3d5   :  { %v3750_v51 = vadd.f32 %v3724_v22, %v3247_v35  ;;  %v3726_v40 = vadd.f32 %v3725_v44, %v3664_v43 }
 0x3d6   :  { %v3666_v58 = vpop.f32.mrf.mxu0 }
 0x3d7   :  { %v3751_v26 = vadd.f32 %v3726_v40, %v3248_v17  ;;  %v3728_v38 = vadd.f32 %v3727_v4, %v3666_v58 }
 0x3d8   :  { %v20842_v29 = vpop.f32.mrf.mxu0 }
 0x3d9   :  { %v3752_v45 = vadd.f32 %v3728_v38, %v3249_v21  ;;  %v18297_v38 = vld [vmem:[#allocation8 + $0xaf0] ss:$8 sps:$4 sm:$0xff]  }
 0x3da   :  { %v3672_v18 = vpop.f32.mrf.mxu0 }
 0x3db   :  { %v3734_v55 = vadd.f32 %v3733_v39, %v3672_v18  ;;  %v18299_v18 = vld [vmem:[#allocation8 + $0xaf4] ss:$8 sps:$4 sm:$0xff]  }
 0x3dc   :  { %v3674_v28 = vpop.f32.mrf.mxu0  ;;  %5699 = vmatprep.subr.bf16.mxu0 %v18299_v18  ;;  %v18306_v18 = vld [vmem:[#allocation8 + $0xac0] ss:$8 sps:$4 sm:$0xff]  }
 0x3dd   :  { %v3754_v2 = vadd.f32 %v3734_v55, %v3251_v53  ;;  %v3736_v47 = vadd.f32 %v3735_v5, %v3674_v28  ;;  %v18302_v28 = vld [vmem:[#allocation8 + $0xae4] ss:$8 sps:$4 sm:$0xff]   ;;  %5700 = vmatpush1.bf16.msra.mxu0 %v18297_v38 }
 0x3de   :  { %v3676_v12 = vpop.f32.mrf.mxu0  ;;  %5701 = vmatprep.subr.bf16.mxu0 %v18302_v28 }
 0x3df   :  { %v3755_v34 = vadd.f32 %v3736_v47, %v3252_v48  ;;  %v3738_v7 = vadd.f32 %v3737_v31, %v3676_v12 }
 0x3e0   :  { %v20844_v30 = vpop.f32.mrf.mxu0 }
 0x3e1   :  { %v3756_v15 = vadd.f32 %v3738_v7, %v3253_v61  ;;  %v18300_v7 = vld [vmem:[#allocation8 + $0xae0] ss:$8 sps:$4 sm:$0xff]  }
 0x3e2   :  { %v3682_v24 = vpop.f32.mrf.mxu0  ;;  %5702 = vmatpush1.bf16.msra.mxu0 %v18300_v7  ;;  %v18341_v7 = vld [vmem:[#allocation8 + $0xbc4] ss:$8 sps:$4 sm:$0xff]  }
 0x3e3   :  { %v3744_v35 = vadd.f32 %v3743_v33, %v3682_v24 }
 0x3e4   :  { %v3684_v49 = vpop.f32.mrf.mxu0 }
 0x3e5   :  { %v3758_v44 = vadd.f32 %v3744_v35, %v3255_v42  ;;  %v3746_v17 = vadd.f32 %v3745_v50, %v3684_v49  ;;  %v18305_v49 = vld [vmem:[#allocation8 + $0xad4] ss:$8 sps:$4 sm:$0xff]  }
 0x3e6   :  { %v3686_v4 = vpop.f32.mrf.mxu0  ;;  %5703 = vmatprep.subr.bf16.mxu0 %v18305_v49 }
 0x3e7   :  { %v20846_v8 = vadd.f32 %v3746_v17, %v3256_v57  ;;  %v18321_v17 = vld [vmem:[#allocation8 + $0xbf0] ss:$8 sps:$4 sm:$0xff]   ;;  %v18323_v4 = vld [vmem:[#allocation8 + $0xbf4] ss:$8 sps:$4 sm:$0xff]  }
 0x3e8   :  { %v3687_v21 = vpop.f32.mrf.mxu0  ;;  %5760 = vmatprep.subr.bf16.mxu1 %v18323_v4  ;;  %v18312_v4 = vld [vmem:[#allocation8 + $0xaa0] ss:$8 sps:$4 sm:$0xff]  }
 0x3e9   :  { %5761 = vmatpush1.bf16.msra.mxu1 %v18321_v17  ;;  %v18314_v17 = vld [vmem:[#allocation8 + $0xaa4] ss:$8 sps:$4 sm:$0xff]  }
 0x3f2   :  { %v4178_v10 = vpop.f32.mrf.mxu0 }
 0x3f4   :  { %v4180_v39 = vpop.f32.mrf.mxu0 }
 0x3f5   :  { %v4117_v62 = vpop.f32.mrf.mxu1 }
 0x3f6   :  { %v4179_v53 = vadd.f32 %v4178_v10, %v4117_v62  ;;  %v4182_v5 = vpop.f32.mrf.mxu0 }
 0x3f7   :  { %v4119_v22 = vpop.f32.mrf.mxu1 }
 0x3f8   :  { %v20848_v48 = vadd.f32 %v4179_v53, %v3750_v51  ;;  %v4181_v31 = vadd.f32 %v4180_v39, %v4119_v22  ;;  %v20850_v43 = vpop.f32.mrf.mxu0  ;;  %v18303_v53 = vld [vmem:[#allocation8 + $0xad0] ss:$8 sps:$4 sm:$0xff]  }
 0x3f9   :  { %v4121_v61 = vpop.f32.mrf.mxu1  ;;  %5704 = vmatpush1.bf16.msra.mxu0 %v18303_v53  ;;  %v18320_v53 = vld [vmem:[#allocation8 + $0xa84] ss:$8 sps:$4 sm:$0xff]  }
 0x3fa   :  { %v20852_v33 = vadd.f32 %v4181_v31, %v3751_v26  ;;  %v4183_v42 = vadd.f32 %v4182_v5, %v4121_v61  ;;  %v4188_v50 = vpop.f32.mrf.mxu0  ;;  %v18329_v5 = vld [vmem:[#allocation8 + $0xbe4] ss:$8 sps:$4 sm:$0xff]   ;;  %v18327_v61 = vld [vmem:[#allocation8 + $0xbe0] ss:$8 sps:$4 sm:$0xff]  }
 0x3fb   :  { %v20854_v40 = vpop.f32.mrf.mxu1  ;;  %v18308_v31 = vld [vmem:[#allocation8 + $0xac4] ss:$8 sps:$4 sm:$0xff]   ;;  %5762 = vmatprep.subr.bf16.mxu1 %v18329_v5 }
 0x3fc   :  { %v20856_v57 = vadd.f32 %v4183_v42, %v3752_v45  ;;  %v4190_v58 = vpop.f32.mrf.mxu0  ;;  %5705 = vmatprep.subr.bf16.mxu0 %v18308_v31  ;;  %5763 = vmatpush1.bf16.msra.mxu1 %v18327_v61  ;;  %v18326_v31 = vld [vmem:[#allocation8 + $0xb74] ss:$8 sps:$4 sm:$0xff]  }
 0x3fd   :  { %v4127_v55 = vpop.f32.mrf.mxu1  ;;  %5706 = vmatpush1.bf16.msra.mxu0 %v18306_v18  ;;  %v18330_v18 = vld [vmem:[#allocation8 + $0xb60] ss:$8 sps:$4 sm:$0xff]  }
 0x3fe   :  { %v4189_v47 = vadd.f32 %v4188_v50, %v4127_v55  ;;  %v4192_v51 = vpop.f32.mrf.mxu0  ;;  %v18335_v50 = vld [vmem:[#allocation8 + $0xbd4] ss:$8 sps:$4 sm:$0xff]  }
 0x3ff   :  { %v4129_v12 = vpop.f32.mrf.mxu1  ;;  %5764 = vmatprep.subr.bf16.mxu1 %v18335_v50  ;;  %v18324_v50 = vld [vmem:[#allocation8 + $0xb70] ss:$8 sps:$4 sm:$0xff]  }
 0x400   :  { %v20858_v24 = vadd.f32 %v4189_v47, %v3754_v2  ;;  %v4191_v26 = vadd.f32 %v4190_v58, %v4129_v12  ;;  %v20860_v35 = vpop.f32.mrf.mxu0 }
 0x401   :  { %v4131_v45 = vpop.f32.mrf.mxu1 }
 0x402   :  { %v20862_v21 = vadd.f32 %v4191_v26, %v3755_v34  ;;  %v4193_v10 = vadd.f32 %v4192_v51, %v4131_v45  ;;  %v4198_v39 = vpop.f32.mrf.mxu0  ;;  %v18333_v51 = vld [vmem:[#allocation8 + $0xbd0] ss:$8 sps:$4 sm:$0xff]  }
 0x403   :  { %v20864_v62 = vpop.f32.mrf.mxu1  ;;  %v18309_v45 = vld [vmem:[#allocation8 + $0xab0] ss:$8 sps:$4 sm:$0xff]   ;;  %5765 = vmatpush1.bf16.msra.mxu1 %v18333_v51 }
 0x404   :  { %v20866_v2 = vadd.f32 %v4193_v10, %v3756_v15  ;;  %v4200_v22 = vpop.f32.mrf.mxu0  ;;  %v18311_v15 = vld [vmem:[#allocation8 + $0xab4] ss:$8 sps:$4 sm:$0xff]   ;;  %5766 = vmatprep.subr.bf16.mxu1 %v18341_v7  ;;  %v18336_v51 = vld [vmem:[#allocation8 + $0xb50] ss:$8 sps:$4 sm:$0xff]  }
 0x405   :  { %v4137_v42 = vpop.f32.mrf.mxu1  ;;  %5707 = vmatprep.subr.bf16.mxu0 %v18311_v15  ;;  %v18317_v10 = vld [vmem:[#allocation8 + $0xa94] ss:$8 sps:$4 sm:$0xff]  }
 0x406   :  { %v4199_v34 = vadd.f32 %v4198_v39, %v4137_v42  ;;  %v4202_v58 = vpop.f32.mrf.mxu0  ;;  %5708 = vmatpush1.bf16.msra.mxu0 %v18309_v45  ;;  %v18315_v39 = vld [vmem:[#allocation8 + $0xa90] ss:$8 sps:$4 sm:$0xff]   ;;  %v18342_v45 = vld [vmem:[#allocation8 + $0xb40] ss:$8 sps:$4 sm:$0xff]  }
 0x407   :  { %v4139_v38 = vpop.f32.mrf.mxu1  ;;  %5709 = vmatprep.subr.bf16.mxu0 %v18314_v17 }
 0x408   :  { %v20868_v55 = vadd.f32 %v4199_v34, %v3758_v44  ;;  %v4201_v28 = vadd.f32 %v4200_v22, %v4139_v38  ;;  %v4203_v47 = vpop.f32.mrf.mxu0  ;;  %v18339_v44 = vld [vmem:[#allocation8 + $0xbc0] ss:$8 sps:$4 sm:$0xff]   ;;  %v18332_v34 = vld [vmem:[#allocation8 + $0xb64] ss:$8 sps:$4 sm:$0xff]  }
 0x409   :  { %v4141_v12 = vpop.f32.mrf.mxu1  ;;  %5767 = vmatpush1.bf16.msra.mxu1 %v18339_v44  ;;  %v18318_v22 = vld [vmem:[#allocation8 + $0xa80] ss:$8 sps:$4 sm:$0xff]  }
 0x40a   :  { %v20871_v26 = vadd.f32 %v4201_v28, %v20846_v8  ;;  %5710 = vmatpush1.bf16.msra.mxu0 %v18312_v4  ;;  %v18338_v28 = vld [vmem:[#allocation8 + $0xb54] ss:$8 sps:$4 sm:$0xff]   ;;  %v18344_v12 = vld [vmem:[#allocation8 + $0xb44] ss:$8 sps:$4 sm:$0xff]  }
 0x40b   :  { %v4142_v49 = vpop.f32.mrf.mxu1  ;;  %5711 = vmatprep.subr.bf16.mxu0 %v18317_v10 }
 0x40e   :  { %5712 = vmatpush1.bf16.msra.mxu0 %v18315_v39 }
 0x40f   :  { %5713 = vmatprep.subr.bf16.mxu0 %v18320_v53 }
 0x412   :  { %5714 = vmatpush1.bf16.msra.mxu0 %v18318_v22 }
 0x413   :  { %5715 = vmatprep.subr.bf16.mxu0 %v18326_v31 }
 0x415   :  { %v4681_v5 = vpop.f32.mrf.mxu1 }
 0x416   :  { %5716 = vmatpush2.bf16.msra.mxu0 %v18324_v50 }
 0x417   :  { %v4683_v8 = vpop.f32.mrf.mxu1  ;;  %5717 = vmatprep.subr.bf16.mxu0 %v18332_v34 }
 0x419   :  { %v4685_v61 = vpop.f32.mrf.mxu1 }
 0x41a   :  { %5718 = vmatpush2.bf16.msra.mxu0 %v18330_v18 }
 0x41b   :  { %v20873_v42 = vpop.f32.mrf.mxu1  ;;  %5719 = vmatprep.subr.bf16.mxu0 %v18338_v28 }
 0x41d   :  { %v4691_v58 = vpop.f32.mrf.mxu1 }
 0x41e   :  { %5720 = vmatpush2.bf16.msra.mxu0 %v18336_v51 }
 0x41f   :  { %v4693_v38 = vpop.f32.mrf.mxu1  ;;  %5721 = vmatprep.subr.bf16.mxu0 %v18344_v12 }
 0x421   :  { %v4695_v47 = vpop.f32.mrf.mxu1 }
 0x422   :  { %5722 = vmatpush2.bf16.msra.mxu0 %v18342_v45 }
 0x423   :  { %v20875_v15 = vpop.f32.mrf.mxu1 }
 0x425   :  { %v4701_v7 = vpop.f32.mrf.mxu1 }
 0x427   :  { %v4703_v49 = vpop.f32.mrf.mxu1 }
 0x429   :  { %v4705_v17 = vpop.f32.mrf.mxu1 }
 0x42b   :  { %v4706_v44 = vpop.f32.mrf.mxu1 }
 0x432   :  { %v4620_v4 = vpop.f32.mrf.mxu0 }
 0x433   :  { %v4682_v10 = vadd.f32 %v4681_v5, %v4620_v4 }
 0x434   :  { %v4622_v39 = vpop.f32.mrf.mxu0 }
 0x435   :  { %v4708_v53 = vadd.f32 %v4682_v10, %v20848_v48  ;;  %v4684_v22 = vadd.f32 %v4683_v8, %v4622_v39 }
 0x436   :  { %v4624_v31 = vpop.f32.mrf.mxu0 }
 0x437   :  { %v4709_v50 = vadd.f32 %v4684_v22, %v20852_v33  ;;  %v4686_v34 = vadd.f32 %v4685_v61, %v4624_v31  ;;  %v2782_v22 = vadd.f32 %v20729_v27, %v20789_v59  ;;  %v3740_v27 = vadd.f32 %v20840_v36, %v20844_v30 }
 0x438   :  { %v4626_v18 = vpop.f32.mrf.mxu0 }
 0x439   :  { %v4710_v28 = vadd.f32 %v4686_v34, %v20856_v57 }
 0x43a   :  { %v4630_v1 = vpop.f32.mrf.mxu0 }
 0x43b   :  { %v4692_v51 = vadd.f32 %v4691_v58, %v4630_v1 }
 0x43c   :  { %v4632_v52 = vpop.f32.mrf.mxu0 }
 0x43d   :  { %v20881_v12 = vadd.f32 %v4692_v51, %v20858_v24  ;;  %v4694_v45 = vadd.f32 %v4693_v38, %v4632_v52  ;;  %v2772_v38 = vadd.f32 %v20710_v19, %v20770_v23 }
 0x43e   :  { %v4634_v17 = vpop.f32.mrf.mxu0 }
 0x43f   :  { %v20884_v5 = vadd.f32 %v4694_v45, %v20862_v21  ;;  %v4696_v48 = vadd.f32 %v4695_v47, %v4634_v17  ;;  %v2222_v21 = vadd.f32 %v20666_v14, %v20674_v60  ;;  %v3227_v47 = vadd.f32 %v20818_v37, %v20823_v46 }
 0x440   :  { %v4636_v8 = vpop.f32.mrf.mxu0  ;;  %v4185_v14 = vadd.f32 %v20850_v43, %v20854_v40  ;;  %v4688_v46 = vadd.f32 %v20873_v42, %v4626_v18 }
 0x441   :  { %v20887_v44 = vadd.f32 %v4696_v48, %v20866_v2  ;;  %v2245_v2 = vadd.f32 %v2222_v21, %v20751_v6  ;;  %v4698_v30 = vadd.f32 %v20875_v15, %v4636_v8  ;;  %v18345_v15 = vld [vmem:[#allocation8 + $0xbb0] ss:$8 sps:$4 sm:$0xff]  }
 0x442   :  { %v4640_v33 = vpop.f32.mrf.mxu0 }
 0x443   :  { %v4702_v61 = vadd.f32 %v4701_v7, %v4640_v33 }
 0x444   :  { %v4642_v4 = vpop.f32.mrf.mxu0 }
 0x445   :  { %v20890_v57 = vadd.f32 %v4702_v61, %v20868_v55  ;;  %v4704_v1 = vadd.f32 %v4703_v49, %v4642_v4  ;;  %v2795_v55 = vadd.f32 %v2772_v38, %v2245_v2  ;;  %v3730_v49 = vadd.f32 %v20838_v11, %v20842_v29 }
 0x446   :  { %v4644_v58 = vpop.f32.mrf.mxu0 }
 0x447   :  { %v20893_v24 = vadd.f32 %v4704_v1, %v20871_v26  ;;  %v2232_v26 = vadd.f32 %v20682_v25, %v20688_v63  ;;  %v3250_v39 = vadd.f32 %v3227_v47, %v2795_v55  ;;  %v3237_v25 = vadd.f32 %v20829_v0, %v20832_v56 }
 0x448   :  { %v4645_v52 = vpop.f32.mrf.mxu0  ;;  %v4195_v0 = vadd.f32 %v20860_v35, %v20864_v62 }
 0x449   :  { %v3753_v37 = vadd.f32 %v3730_v49, %v3250_v39  ;;  %v2249_v51 = vadd.f32 %v2232_v26, %v20751_v6 }
 0x44b   :  { %v4208_v63 = vadd.f32 %v4185_v14, %v3753_v37  ;;  %v2799_v48 = vadd.f32 %v2782_v22, %v2249_v51  ;;  %v18350_v51 = vld [vmem:[#allocation8 + $0xb34] ss:$8 sps:$4 sm:$0xff]  }
 0x44c   :  { %5723 = vmatprep.subr.bf16.mxu0 %v18350_v51 }
 0x44d   :  { %v4711_v59 = vadd.f32 %v4688_v46, %v4208_v63  ;;  %v3254_v4 = vadd.f32 %v3237_v25, %v2799_v48  ;;  %v18348_v46 = vld [vmem:[#allocation8 + $0xb30] ss:$8 sps:$4 sm:$0xff]   ;;  %v18353_v25 = vld [vmem:[#allocation8 + $0xba4] ss:$8 sps:$4 sm:$0xff]  }
 0x44e   :  { %5724 = vmatpush2.bf16.msra.mxu0 %v18348_v46 }
 0x44f   :  { %v3757_v36 = vadd.f32 %v3740_v27, %v3254_v4 }
 0x451   :  { %v4212_v35 = vadd.f32 %v4195_v0, %v3757_v36 }
 0x452   :  { %v5136_v7 = vpop.f32.mrf.mxu0 }
 0x454   :  { %v5138_v10 = vpop.f32.mrf.mxu0 }
 0x455   :  { %v5075_v60 = vpop.f32.mrf.mxu1 }
 0x456   :  { %v5137_v19 = vadd.f32 %v5136_v7, %v5075_v60  ;;  %v5140_v23 = vpop.f32.mrf.mxu0 }
 0x457   :  { %v5077_v31 = vpop.f32.mrf.mxu1 }
 0x458   :  { %v5163_v34 = vadd.f32 %v5137_v19, %v4708_v53  ;;  %v5139_v11 = vadd.f32 %v5138_v10, %v5077_v31  ;;  %v5142_v29 = vpop.f32.mrf.mxu0  ;;  %v4715_v31 = vadd.f32 %v4698_v30, %v4212_v35  ;;  %v18362_v35 = vld [vmem:[#allocation8 + $0xb14] ss:$8 sps:$4 sm:$0xff]  }
 0x459   :  { %v5079_v43 = vpop.f32.mrf.mxu1 }
 0x45a   :  { %v5164_v40 = vadd.f32 %v5139_v11, %v4709_v50  ;;  %v5141_v45 = vadd.f32 %v5140_v23, %v5079_v43  ;;  %v5146_v17 = vpop.f32.mrf.mxu0  ;;  %v5183_v42 = vmul.f32 0.01, %v5163_v34  ;;  %vm5173_vm13 = vcmp.ge.f32.partialorder %v5163_v34, 0.0 }
 0x45b   :  { %v5081_v18 = vpop.f32.mrf.mxu1 }
 0x45c   :  { %vm5174_vm11 = vcmp.ge.f32.partialorder %v5164_v40, 0.0  ;;  %v5184_v53 = vmul.f32 0.01, %v5164_v40  ;;  %v5165_v33 = vadd.f32 %v5141_v45, %v4710_v28  ;;  %v5143_v61 = vadd.f32 %v5142_v29, %v5081_v18  ;;  %v5148_v6 = vpop.f32.mrf.mxu0 }
 0x45d   :  { %v5085_v56 = vpop.f32.mrf.mxu1  ;;  %v5193_v7 = vsel %vm5173_vm13, %v5163_v34, %v5183_v42 }
 0x45e   :  { %vm5175_vm0 = vcmp.ge.f32.partialorder %v5165_v33, 0.0  ;;  %v5185_v50 = vmul.f32 0.01, %v5165_v33  ;;  %v5166_v1 = vadd.f32 %v5143_v61, %v4711_v59  ;;  %v5147_v58 = vadd.f32 %v5146_v17, %v5085_v56  ;;  %v5150_v52 = vpop.f32.mrf.mxu0 }
 0x45f   :  { %v5087_v21 = vpop.f32.mrf.mxu1  ;;  %v5194_v38 = vsel %vm5174_vm11, %v5164_v40, %v5184_v53 }
 0x460   :  { %vm5176_vm10 = vcmp.ge.f32.partialorder %v5166_v1, 0.0  ;;  %v5186_v28 = vmul.f32 0.01, %v5166_v1  ;;  %v5167_v2 = vadd.f32 %v5147_v58, %v20881_v12  ;;  %v5152_v47 = vpop.f32.mrf.mxu0  ;;  %v5195_v62 = vsel %vm5175_vm0, %v5165_v33, %v5185_v50  ;;  %v18347_v12 = vld [vmem:[#allocation8 + $0xbb4] ss:$8 sps:$4 sm:$0xff]  }
 0x461   :  { %v5149_v55 = vadd.f32 %v5148_v6, %v5087_v21  ;;  %v5089_v49 = vpop.f32.mrf.mxu1  ;;  %v17563_v10 = vpack.c.bf16 %v5194_v38, %v5193_v7  ;;  %5768 = vmatprep.subr.bf16.mxu1 %v18347_v12  ;;  %v18356_v6 = vld [vmem:[#allocation8 + $0xb24] ss:$8 sps:$4 sm:$0xff]   ;;  %vm22655_vm0 = vcmp.ge.s32.totalorder %v20324_v13, 22  ;;  %v18359_v21 = vld [vmem:[#allocation8 + $0xb94] ss:$8 sps:$4 sm:$0xff]  }
 0x462   :  { %v5196_v26 = vsel %vm5176_vm10, %v5166_v1, %v5186_v28  ;;  %vm5177_vm15 = vcmp.ge.f32.partialorder %v5167_v2, 0.0  ;;  %v5187_v39 = vmul.f32 0.01, %v5167_v2  ;;  %v5151_v14 = vadd.f32 %v5150_v52, %v5089_v49  ;;  %v5156_v60 = vpop.f32.mrf.mxu0  ;;  %5769 = vmatpush1.bf16.msra.mxu1 %v18345_v15  ;;  %vm22656_vm10 = vmmov %vm22655_vm0  ;;  %5725 = vmatprep.subr.bf16.mxu0 %v18356_v6  ;;  %v18357_v7 = vld [vmem:[#allocation8 + $0xb90] ss:$8 sps:$4 sm:$0xff]  }
 0x463   :  { %v17564_v8 = vpack.c.bf16 %v5196_v26, %v5195_v62  ;;  %v5168_v19 = vadd.f32 %v5149_v55, %v20884_v5  ;;  %v5091_v23 = vpop.f32.mrf.mxu1  ;;  %v5241_v22 = vshrl.u32 %v17563_v10, 16  ;;  %v5244_v37 = vshll.u32 %v17563_v10, 16  ;;  %v18351_v5 = vld [vmem:[#allocation8 + $0xba0] ss:$8 sps:$4 sm:$0xff]   ;;  %5770 = vmatprep.subr.bf16.mxu1 %v18353_v25  ;;  %v18360_v10 = vld [vmem:[#allocation8 + $0xb10] ss:$8 sps:$4 sm:$0xff]  }
 0x464   :  { %v5169_v34 = vadd.f32 %v5151_v14, %v20887_v44  ;;  %v5153_v11 = vadd.f32 %v5152_v47, %v5091_v23  ;;  %v5158_v29 = vpop.f32.mrf.mxu0  ;;  %v5197_v63 = vsel %vm5177_vm15, %v5167_v2, %v5187_v39  ;;  %v18354_v44 = vld [vmem:[#allocation8 + $0xb20] ss:$8 sps:$4 sm:$0xff]   ;;  %v18365_v15 = vld [vmem:[#allocation8 + $0xb84] ss:$8 sps:$4 sm:$0xff]  }
 0x465   :  { %vm5178_vm11 = vcmp.ge.f32.partialorder %v5168_v19, 0.0  ;;  %v5188_v43 = vmul.f32 0.01, %v5168_v19  ;;  %v5095_v40 = vpop.f32.mrf.mxu1  ;;  %v5243_v45 = vrot.slane %v5241_v22, 6  ;;  %v5246_v53 = vrot.slane %v5244_v37, 7  ;;  %5726 = vmatpush2.bf16.msra.mxu0 %v18354_v44 }
 0x466   :  { %vm5179_vm13 = vcmp.ge.f32.partialorder %v5169_v34, 0.0  ;;  %v5189_v17 = vmul.f32 0.01, %v5169_v34  ;;  %v5170_v48 = vadd.f32 %v5153_v11, %v4715_v31  ;;  %v5157_v27 = vadd.f32 %v5156_v60, %v5095_v40  ;;  %v5160_v59 = vpop.f32.mrf.mxu0  ;;  %5771 = vmatpush1.bf16.msra.mxu1 %v18351_v5  ;;  %5727 = vmatprep.subr.bf16.mxu0 %v18362_v35  ;;  %v18363_v37 = vld [vmem:[#allocation8 + $0xb80] ss:$8 sps:$4 sm:$0xff]  }
 0x467   :  { %v5198_v42 = vsel %vm5178_vm11, %v5168_v19, %v5188_v43  ;;  %v5097_v18 = vpop.f32.mrf.mxu1  ;;  %v5250_v33 = vshrl.u32 %v17564_v8, 16  ;;  %v5253_v61 = vshll.u32 %v17564_v8, 16  ;;  %v5207_v4 = vsel %vm22655_vm0, %v5197_v63, 0.0  ;;  %5772 = vmatprep.subr.bf16.mxu1 %v18359_v21  ;;  %v18368_v12 = vld [vmem:[#allocation8 + $0xb04] ss:$8 sps:$4 sm:$0xff]  }
 0x468   :  { %v5208_v0 = vsel %vm22656_vm10, %v5198_v42, 0.0  ;;  %vm5180_vm15 = vcmp.ge.f32.partialorder %v5170_v48, 0.0  ;;  %v5190_v56 = vmul.f32 0.01, %v5170_v48  ;;  %v5161_v50 = vpop.f32.mrf.mxu0  ;;  %v5171_v58 = vadd.f32 %v5157_v27, %v20890_v57  ;;  %v18371_v63 = vld [vmem:[#allocation8 + $0xc74] ss:$8 sps:$4 sm:$0xff]  }
 0x469   :  { %v17565_v1 = vpack.c.bf16 %v5208_v0, %v5207_v4  ;;  %v5159_v52 = vadd.f32 %v5158_v29, %v5097_v18  ;;  %v5247_v36 = vor.u32 %v5246_v53, %v5243_v45  ;;  %v5099_v30 = vpop.f32.mrf.mxu1  ;;  %v5199_v38 = vsel %vm5179_vm13, %v5169_v34, %v5189_v17  ;;  %5728 = vmatpush2.bf16.msra.mxu0 %v18360_v10  ;;  %v18366_v29 = vld [vmem:[#allocation8 + $0xb00] ss:$8 sps:$4 sm:$0xff]   ;;  %v18377_v17 = vld [vmem:[#allocation8 + $0xd74] ss:$8 sps:$4 sm:$0xff]   ;;  %v18380_v10 = vld [vmem:[#allocation8 + $0xc64] ss:$8 sps:$4 sm:$0xff]  }
 0x46a   :  { %v5200_v28 = vsel %vm5180_vm15, %v5170_v48, %v5190_v56  ;;  %v5252_v2 = vrot.slane %v5250_v33, 6  ;;  %v5255_v47 = vrot.slane %v5253_v61, 7  ;;  %vm5181_vm11 = vcmp.ge.f32.partialorder %v5171_v58, 0.0  ;;  %5773 = vmatpush1.bf16.msra.mxu1 %v18357_v7  ;;  %5729 = vmatprep.subr.bf16.mxu0 %v18368_v12  ;;  %v5341_v12 = vld [vmem:[#allocation2 + $0x44] sm:$0x3] }
 0x46b   :  { %v17566_v62 = vpack.c.bf16 %v5200_v28, %v5199_v38  ;;  %v5191_v55 = vmul.f32 0.01, %v5171_v58  ;;  %v5172_v49 = vadd.f32 %v5159_v52, %v20893_v24  ;;  %5289 = vrot.lane.b32.xlu0 %v5247_v36, %s20035_s25  ;;  %v5100_v57 = vpop.f32.mrf.mxu1  ;;  %v5248_v26 = vrot.slane %v5247_v36, 4  ;;  %5774 = vmatprep.subr.bf16.mxu1 %v18365_v15  ;;  %v19906_v36 = vld [vmem:[#allocation2] sm:$0xee] }
 0x46c   :  { %v5256_v39 = vor.u32 %v5255_v47, %v5252_v2  ;;  %v5260_v14 = vshrl.u32 %v17565_v1, 16  ;;  %v5263_v60 = vshll.u32 %v17565_v1, 16  ;;  %vm22657_vm0 = vcmp.lt.s32.totalorder %v20331_v20, 38  ;;  %v5327_v1 = vld [vmem:[#allocation2 + $0x8] sm:$0xe] }
 0x46d   :  { %v5201_v8 = vsel %vm5181_vm11, %v5171_v58, %v5191_v55  ;;  %vm5182_vm13 = vcmp.ge.f32.partialorder %v5172_v49, 0.0  ;;  %v5192_v19 = vmul.f32 0.01, %v5172_v49  ;;  %v5270_v23 = vshrl.u32 %v17566_v62, 16  ;;  %vm22658_vm10 = vmmov %vm22657_vm0  ;;  %5730 = vmatpush2.bf16.msra.mxu0 %v18366_v29  ;;  %v18369_v55 = vld [vmem:[#allocation8 + $0xc70] ss:$8 sps:$4 sm:$0xff]  }
 0x46e   :  { %v5257_v22 = vsel %vm20105_vm3, %v5248_v26, %v5256_v39  ;;  %v5262_v24 = vrot.slane %v5260_v14, 6  ;;  %v5265_v31 = vrot.slane %v5263_v60, 7  ;;  %v5273_v11 = vshll.u32 %v17566_v62, 16  ;;  %5775 = vmatpush1.bf16.msra.mxu1 %v18363_v37  ;;  %6310 = vmatprep.subr.bf16.mxu0 %v18377_v17  ;;  %v5338_v37 = vld [vmem:[#allocation2 + $0x3c] sm:$0x33] }
 0x46f   :  { %v5202_v46 = vsel %vm5182_vm13, %v5172_v49, %v5192_v19  ;;  %5291 = vrot.lane.b32.xlu1 %v5257_v22, %s20035_s25  ;;  %v5272_v34 = vrot.slane %v5270_v23, 6  ;;  %v5211_v51 = vsel %vm22657_vm0, %v5201_v8, 0.0  ;;  %v5258_v40 = vrot.slane %v5256_v39, 4  ;;  %6249 = vmatprep.subr.bf16.mxu1 %v18371_v63  ;;  %v18375_v8 = vld [vmem:[#allocation8 + $0xd70] ss:$8 sps:$4 sm:$0xff]  }
 0x470   :  { %v5212_v25 = vsel %vm22658_vm10, %v5202_v46, 0.0  ;;  %v5266_v45 = vor.u32 %v5265_v31, %v5262_v24  ;;  %v5275_v5 = vrot.slane %v5273_v11, 7  ;;  %v18378_v22 = vld [vmem:[#allocation8 + $0xc60] ss:$8 sps:$4 sm:$0xff]   ;;  %v18383_v24 = vld [vmem:[#allocation8 + $0xd64] ss:$8 sps:$4 sm:$0xff]  }
 0x471   :  { %v17567_v43 = vpack.c.bf16 %v5212_v25, %v5211_v51  ;;  %v18386_v31 = vld [vmem:[#allocation8 + $0xc54] ss:$8 sps:$4 sm:$0xff]   ;;  %v18381_v11 = vld [vmem:[#allocation8 + $0xd60] ss:$8 sps:$4 sm:$0xff]   ;;  %v18384_v25 = vld [vmem:[#allocation8 + $0xc50] ss:$8 sps:$4 sm:$0xff]  }
 0x472   :  { %v5267_v48 = vsel %vm20105_vm3, %v5258_v40, %v5266_v45  ;;  %v5268_v27 = vrot.slane %v5266_v45, 4  ;;  %v5276_v59 = vor.u32 %v5275_v5, %v5272_v34  ;;  %v18392_v63 = vld [vmem:[#allocation8 + $0xd54] ss:$8 sps:$4 sm:$0xff]   ;;  %v18396_v17 = vld [vmem:[#allocation8 + $0xc44] ss:$8 sps:$4 sm:$0xff]   ;;  %vm22663_vm0 = vcmask 1045504  }
 0x473   :  { %v5280_v44 = vshrl.u32 %v17567_v43, 16  ;;  %5293 = vrot.lane.b32.xlu0 %v5267_v48, %s20035_s25  ;;  %v5283_v42 = vshll.u32 %v17567_v43, 16  ;;  %vm22660_vm15 = vsmask.f32 6400 }
 0x474   :  { %v5277_v18 = vsel %vm20105_vm3, %v5268_v27, %v5276_v59  ;;  %v5278_v61 = vrot.slane %v5276_v59, 4  ;;  %v18390_v27 = vld [vmem:[#allocation8 + $0xd50] ss:$8 sps:$4 sm:$0xff]   ;;  %vm22661_vm11 = vmmov %vm22660_vm15 }
 0x475   :  { %v5282_v53 = vrot.slane %v5280_v44, 6  ;;  %5295 = vrot.lane.b32.xlu1 %v5277_v18, %s20035_s25  ;;  %v5285_v33 = vrot.slane %v5283_v42, 7  ;;  %v18394_v42 = vld [vmem:[#allocation8 + $0xc40] ss:$8 sps:$4 sm:$0xff]   ;;  %v18399_v18 = vld [vmem:[#allocation8 + $0xd44] ss:$8 sps:$4 sm:$0xff]   ;;  %vm22662_vm13 = vmmov %vm22661_vm11 }
 0x476   :  { %vm22664_vm10 = vmmov %vm22661_vm11 }
 0x477   :  { %v5286_v6 = vor.u32 %v5285_v33, %v5282_v53  ;;  %v18403_v53 = vld [vmem:[#allocation8 + $0xc34] ss:$8 sps:$4 sm:$0xff]  }
 0x479   :  { %v5287_v4 = vsel %vm20105_vm3, %v5278_v61, %v5286_v6  ;;  %v5288_v0 = vrot.slane %v5286_v6, 4  ;;  %v18397_v6 = vld [vmem:[#allocation8 + $0xd40] ss:$8 sps:$4 sm:$0xff]  }
 0x47a   :  { %5297 = vrot.lane.b32.xlu0 %v5287_v4, %s20035_s25 }
 0x47b   :  { %5299 = vrot.lane.b32.xlu1 %v5288_v0, %s20035_s25 }
 0x4dd   :  { %v5290_v56 = vpop.permute.xlu0 %5289 }
 0x4de   :  { %v5301_v50 = vrot.slane %v5290_v56, 4 }
 0x4e0   :  { %v5307_v58 = vsel %vm1709_vm6, %v5301_v50, %v5290_v56  ;;  %v5328_v52 = vsel %vm20379_vm12, %v5301_v50, %v5327_v1  ;;  %v18401_v50 = vld [vmem:[#allocation8 + $0xc30] ss:$8 sps:$4 sm:$0xff]   ;;  %v18407_v1 = vld [vmem:[#allocation8 + $0xd34] ss:$8 sps:$4 sm:$0xff]  }
 0x4e1   :  { %v5325_v30 = vsel %vm20383_vm5, %v5307_v58, %v19906_v36  ;;  %5329 = vst [vmem:[#allocation2 + $0x8] sm:$0xe] %v5328_v52  ;;  %v5292_v21 = vpop.permute.xlu1 %5291  ;;  %v18411_v36 = vld [vmem:[#allocation8 + $0xc24] ss:$8 sps:$4 sm:$0xff]  }
 0x4e2   :  { %5326 = vst [vmem:[#allocation2] sm:$0xee] %v5325_v30  ;;  %v5302_v38 = vrot.slane %v5292_v21, 4 }
 0x4e4   :  { %v5308_v28 = vsel %vm1709_vm6, %v5302_v38, %v5292_v21  ;;  %5331 = vst.msk [vmem:[#allocation2 + $0x14] sm:$0xf] %vm1608_vm1, %v5302_v38  ;;  %v18405_v38 = vld [vmem:[#allocation8 + $0xd30] ss:$8 sps:$4 sm:$0xff]  }
 0x4e5   :  { %5330 = vst.msk [vmem:[#allocation2 + $0xc] sm:$0xff] %vm20392_vm14, %v5308_v28  ;;  %v5294_v2 = vpop.permute.xlu0 %5293 }
 0x4e6   :  { %v5303_v47 = vrot.slane %v5294_v2, 4 }
 0x4e7   :  { %v5296_v7 = vpop.permute.xlu1 %5295 }
 0x4e8   :  { %v5309_v35 = vsel %vm1709_vm6, %v5303_v47, %v5294_v2  ;;  %5333 = vst.msk [vmem:[#allocation2 + $0x20] sm:$0xf] %vm1608_vm1, %v5303_v47  ;;  %v5304_v62 = vrot.slane %v5296_v7, 4  ;;  %v18409_v2 = vld [vmem:[#allocation8 + $0xc20] ss:$8 sps:$4 sm:$0xff]  }
 0x4e9   :  { %5332 = vst.msk [vmem:[#allocation2 + $0x18] sm:$0xff] %vm20392_vm14, %v5309_v35  ;;  %v5357_v26 = vld [vmem:[#allocation2] sm:$0xff]  ;;  %v18417_v35 = vld [vmem:[#allocation8 + $0xc14] ss:$8 sps:$4 sm:$0xff]  }
 0x4ea   :  { %v5310_v49 = vsel %vm1709_vm6, %v5304_v62, %v5296_v7  ;;  %5335 = vst.msk [vmem:[#allocation2 + $0x2c] sm:$0xf] %vm1608_vm1, %v5304_v62  ;;  %v18414_v47 = vld [vmem:[#allocation8 + $0xd24] ss:$8 sps:$4 sm:$0xff]  }
 0x4eb   :  { %v18372_v57 = vld [vmem:[#allocation2 + $0x8] ss:$12 sps:$4 sm:$0xff]   ;;  %5334 = vst.msk [vmem:[#allocation2 + $0x24] sm:$0xff] %vm20392_vm14, %v5310_v49 }
 0x4ec   :  { %v20966_v39 = vld [vmem:[#allocation2 + $0xc] sm:$0xff]  ;;  %v5298_v14 = vpop.permute.xlu0 %5297  ;;  %5793 = vmatmul.mubr.bf16.vlgmr.msra.gmra.mxu1 %v18372_v57  ;;  %v21010_v7 = vld [vmem:[#allocation2 + $0x14] sm:$0xf]  ;;  %v5832_v49 = vld [vmem:[#allocation2 + $0x8] sm:$0xf] }
 0x4ed   :  { %v20969_v60 = vcombine.low %v5357_v26, %v20966_v39  ;;  %v20972_v15 = vcombine.high %v5357_v26, %v20966_v39  ;;  %v5305_v19 = vrot.slane %v5298_v14, 4  ;;  %6250 = vmatpush1.bf16.msra.mxu1 %v18369_v55  ;;  %v5300_v23 = vpop.permute.xlu1 %5299  ;;  %5802 = vmatprep.mubr.bf16.mxu1 %v22632_v9  ;;  %v18412_v57 = vld [vmem:[#allocation8 + $0xd20] ss:$8 sps:$4 sm:$0xff]   ;;  %v18415_v26 = vld [vmem:[#allocation8 + $0xc10] ss:$8 sps:$4 sm:$0xff]  }
 0x4ee   :  { %v5306_v46 = vrot.slane %v5300_v23, 4  ;;  %6251 = vmatprep.subr.bf16.mxu1 %v18380_v10  ;;  %v16500_v10 = vcombine.low %v5832_v49, %v21010_v7 }
 0x4ef   :  { %5731 = vmatprep.mubr.bf16.mxu0 %v20972_v15  ;;  %v5311_v34 = vsel %vm1709_vm6, %v5305_v19, %v5298_v14  ;;  %5337 = vst.msk [vmem:[#allocation2 + $0x38] sm:$0xf] %vm1608_vm1, %v5305_v19  ;;  %v5946_v48 = vshll.u32 %v20972_v15, 16  ;;  %v5944_v0 = vshrl.u32 %v20972_v15, 16  ;;  %v18420_v14 = vld [vmem:[#allocation8 + $0xd14] ss:$8 sps:$4 sm:$0xff]  }
 0x4f0   :  { %5732 = vmatmul.mubr.bf16.vlgmr.msra.gmra.mxu0 %v20969_v60  ;;  %5336 = vst.msk [vmem:[#allocation2 + $0x30] sm:$0xff] %vm20392_vm14, %v5311_v34  ;;  %v5312_v29 = vsel %vm1709_vm6, %v5306_v46, %v5300_v23  ;;  %v5342_v51 = vsel %vm20426_vm7, %v5306_v46, %v5341_v12  ;;  %v18423_v15 = vld [vmem:[#allocation8 + $0xc04] ss:$8 sps:$4 sm:$0xff]   ;;  %v18421_v46 = vld [vmem:[#allocation8 + $0xc00] ss:$8 sps:$4 sm:$0xff]  }
 0x4f1   :  { %6311 = vmatpush1.bf16.msra.mxu0 %v18375_v8  ;;  %v5339_v40 = vsel %vm20434_vm9, %v5312_v29, %v5338_v37  ;;  %5343 = vst [vmem:[#allocation2 + $0x44] sm:$0x3] %v5342_v51  ;;  %6252 = vmatpush1.bf16.msra.mxu1 %v18378_v22  ;;  %v18387_v45 = vld [vmem:[#allocation2 + $0x20] ss:$12 sps:$4 sm:$0xff]   ;;  %v5948_v33 = vrot.slane %v5946_v48, 1  ;;  %v5958_v37 = vshll.u32 %v16500_v10, 16 }
 0x4f2   :  { %6312 = vmatprep.subr.bf16.mxu0 %v18383_v24  ;;  %5340 = vst [vmem:[#allocation2 + $0x3c] sm:$0x33] %v5339_v40  ;;  %6253 = vmatprep.subr.bf16.mxu1 %v18386_v31  ;;  %v20986_v5 = vld [vmem:[#allocation2 + $0x1c] ss:$12 sps:$4 sm:$0xff]   ;;  %v20993_v44 = vld [vmem:[#allocation2 + $0x18] ss:$12 sps:$4 sm:$0xff]  }
 0x4f3   :  { %v20990_v59 = vshll.u32 %v20986_v5, 16  ;;  %5741 = vmatprep.mubr.bf16.mxu0 %v20986_v5  ;;  %v5949_v52 = vor.u32 %v5948_v33, %v5944_v0  ;;  %v21003_v30 = vld [vmem:[#allocation2 + $0x20] ss:$12 sps:$4 sm:$0xff]   ;;  %v21023_v23 = vshll.u32 %v20993_v44, 16  ;;  %v21026_v22 = vshrl.u32 %v20993_v44, 16 }
 0x4f4   :  { %5803 = vmatmul.mubr.bf16.gmra.mxu1 %v18387_v45  ;;  %v21013_v62 = vshll.u32 %v21003_v30, 16  ;;  %v21016_v55 = vshrl.u32 %v21003_v30, 16  ;;  %v18418_v24 = vld [vmem:[#allocation8 + $0xd10] ss:$8 sps:$4 sm:$0xff]   ;;  %v18426_v31 = vld [vmem:[#allocation8 + $0xd04] ss:$8 sps:$4 sm:$0xff]  }
 0x4f5   :  { %6313 = vmatpush1.bf16.msra.mxu0 %v18381_v11  ;;  %6254 = vmatpush1.bf16.msra.mxu1 %v18384_v25  ;;  %v5953_v56 = vrot.slane %v20990_v59, 1  ;;  %v18429_v34 = vld [vmem:[#allocation8 + $0xcf4] ss:$8 sps:$4 sm:$0xff]   ;;  %v6903_v29 = vrot.slane %v21026_v22, 1  ;;  %v6904_v51 = vrot.slane %v21023_v23, 2 }
 0x4f6   :  { %6314 = vmatprep.subr.bf16.mxu0 %v18392_v63  ;;  %6255 = vmatprep.subr.bf16.mxu1 %v18396_v17  ;;  %v18404_v58 = vld [vmem:[#allocation2 + $0x38] ss:$0 sps:$4 sm:$0xff]   ;;  %v6927_v8 = vrot.slane %v21016_v55, 1  ;;  %v6928_v19 = vrot.slane %v21013_v62, 2  ;;  %v5960_v63 = vrot.slane %v5958_v37, 1  ;;  %v7885_v49 = vrot.slane %v21016_v55, 2 }
 0x4f7   :  { %v20996_v61 = vld [vmem:[#allocation2 + $0x30] sm:$0xff]  ;;  %5812 = vmatprep.mubr.bf16.mxu1 %v22632_v9  ;;  %v5954_v21 = vsel %vm443_vm2, %v5949_v52, %v5953_v56  ;;  %v18424_v25 = vld [vmem:[#allocation8 + $0xd00] ss:$8 sps:$4 sm:$0xff]   ;;  %v21034_v48 = vor.u32 %v6904_v51, %v6903_v29  ;;  %v18463_v51 = vld [vmem:[#allocation8 + $0xca4] ss:$8 sps:$4 sm:$0xff]  }
 0x4f8   :  { %5742 = vmatmul.mubr.bf16.gmra.mxu0 %v20993_v44  ;;  %v16448_v4 = vcombine.high %v20996_v61, %v20996_v61  ;;  %v16447_v28 = vcombine.low %v20996_v61, %v20996_v61  ;;  %v21028_v12 = vor.u32 %v6928_v19, %v6927_v8  ;;  %v5842_v11 = vld [vmem:[#allocation2 + $0x44] sm:$0x1]  ;;  %v18427_v40 = vld [vmem:[#allocation8 + $0xcf0] ss:$8 sps:$4 sm:$0xff]   ;;  %v18434_v45 = vld [vmem:[#allocation8 + $0xdf4] ss:$8 sps:$4 sm:$0xff]  }
 0x4f9   :  { %6315 = vmatpush1.bf16.msra.mxu0 %v18390_v27  ;;  %6256 = vmatpush1.bf16.msra.mxu1 %v18394_v42  ;;  %v21032_v17 = vld [vmem:[#allocation2 + $0x38] sm:$0xf]  ;;  %v5956_v27 = vshrl.u32 %v16500_v10, 16  ;;  %v5965_v42 = vrot.slane %v21013_v62, 1  ;;  %v18453_v8 = vld [vmem:[#allocation8 + $0xdc4] ss:$8 sps:$4 sm:$0xff]  }
 0x4fa   :  { %6316 = vmatprep.subr.bf16.mxu0 %v18399_v18  ;;  %5751 = vmatprep.mubr.bf16.mxu0 %v16448_v4  ;;  %v18437_v18 = vld [vmem:[#allocation8 + $0xce4] ss:$8 sps:$4 sm:$0xff]   ;;  %v21041_v4 = vshrl.u32 %v20986_v5, 16  ;;  %v18435_v0 = vld [vmem:[#allocation8 + $0xce0] ss:$8 sps:$4 sm:$0xff]  }
 0x4fb   :  { %6257 = vmatprep.subr.bf16.mxu1 %v18403_v53  ;;  %v21038_v53 = vcombine.low %v21032_v17, %v5842_v11  ;;  %v5961_v33 = vor.u32 %v5960_v63, %v5956_v27  ;;  %v5985_v10 = vor.u32 %v21016_v55, %v5965_v42  ;;  %v18456_v37 = vld [vmem:[#allocation8 + $0xcb4] ss:$8 sps:$4 sm:$0xff]   ;;  %v21058_v55 = vld [vmem:[#allocation2] sm:$0xee] }
 0x4fc   :  { %5813 = vmatmul.mubr.bf16.gmra.mxu1 %v18404_v58  ;;  %v18443_v58 = vld [vmem:[#allocation8 + $0xcd4] ss:$8 sps:$4 sm:$0xff]   ;;  %v21063_v29 = vcombine.high %v21058_v55, %v20966_v39  ;;  %v18461_v27 = vld [vmem:[#allocation8 + $0xca0] ss:$8 sps:$4 sm:$0xff]  }
 0x4fd   :  { %6317 = vmatpush1.bf16.msra.mxu0 %v18397_v6  ;;  %6258 = vmatpush1.bf16.msra.mxu1 %v18401_v50  ;;  %v18432_v6 = vld [vmem:[#allocation8 + $0xdf0] ss:$8 sps:$4 sm:$0xff]   ;;  %v18440_v50 = vld [vmem:[#allocation8 + $0xde4] ss:$8 sps:$4 sm:$0xff]   ;;  %v5987_v52 = vshll.u32 %v21038_v53, 16  ;;  %v5997_v63 = vshrl.u32 %v21038_v53, 16 }
 0x4fe   :  { %6281 = vmatprep.mubr.bf16.mxu1 %v5954_v21  ;;  %6318 = vmatprep.subr.bf16.mxu0 %v18407_v1  ;;  %v5966_v1 = vsel %vm443_vm2, %v5961_v33, %v5965_v42  ;;  %v7873_v21 = vrot.slane %v21041_v4, 2  ;;  %v18459_v11 = vld [vmem:[#allocation8 + $0xdb4] ss:$8 sps:$4 sm:$0xff]   ;;  %v18466_v33 = vld [vmem:[#allocation8 + $0xda4] ss:$8 sps:$4 sm:$0xff]  }
 0x4ff   :  { %6259 = vmatprep.subr.bf16.mxu1 %v18411_v36  ;;  %v18438_v36 = vld [vmem:[#allocation8 + $0xde0] ss:$8 sps:$4 sm:$0xff]  }
 0x500   :  { %5752 = vmatmul.mubr.bf16.gmra.mxu0 %v16447_v28  ;;  %v18447_v28 = vld [vmem:[#allocation8 + $0xdd4] ss:$8 sps:$4 sm:$0xff]  }
 0x501   :  { %6319 = vmatpush1.bf16.msra.mxu0 %v18405_v38  ;;  %6342 = vmatprep.mubr.bf16.mxu0 %v22632_v9  ;;  %v18441_v38 = vld [vmem:[#allocation8 + $0xcd0] ss:$8 sps:$4 sm:$0xff]  }
 0x502   :  { %6260 = vmatpush1.bf16.msra.mxu1 %v18409_v2  ;;  %6320 = vmatprep.subr.bf16.mxu0 %v18414_v47  ;;  %v5989_v2 = vrot.slane %v5987_v52, 1  ;;  %v18450_v47 = vld [vmem:[#allocation8 + $0xcc4] ss:$8 sps:$4 sm:$0xff]   ;;  %v18467_v52 = vld [vmem:[#allocation8 + $0xc90] ss:$8 sps:$4 sm:$0xff]  }
 0x503   :  { %6261 = vmatprep.subr.bf16.mxu1 %v18417_v35  ;;  %v7874_v35 = vrot.slane %v20990_v59, 3 }
 0x504   :  { %v5999_v42 = vor.u32 %v5997_v63, %v5989_v2  ;;  %v18486_v63 = vld [vmem:[#allocation8 + $0xee0] ss:$8 sps:$4 sm:$0xff]  }
 0x505   :  { %6321 = vmatpush1.bf16.msra.mxu0 %v18412_v57  ;;  %v7886_v57 = vrot.slane %v21013_v62, 3  ;;  %v18451_v62 = vld [vmem:[#allocation8 + $0xdc0] ss:$8 sps:$4 sm:$0xff]  }
 0x506   :  { %6262 = vmatpush1.bf16.msra.mxu1 %v18415_v26  ;;  %6322 = vmatprep.subr.bf16.mxu0 %v18420_v14  ;;  %v18445_v26 = vld [vmem:[#allocation8 + $0xdd0] ss:$8 sps:$4 sm:$0xff]   ;;  %v21051_v14 = vor.u32 %v7874_v35, %v7873_v21  ;;  %v5934_v21 = vshll.u32 %v20969_v60, 16  ;;  %v18478_v35 = vld [vmem:[#allocation8 + $0xd84] ss:$8 sps:$4 sm:$0xff]  }
 0x507   :  { %6263 = vmatprep.subr.bf16.mxu1 %v18423_v15  ;;  %v18448_v15 = vld [vmem:[#allocation8 + $0xcc0] ss:$8 sps:$4 sm:$0xff]   ;;  %v21053_v19 = vor.u32 %v7886_v57, %v7885_v49  ;;  %v18481_v57 = vld [vmem:[#allocation8 + $0xef4] ss:$8 sps:$4 sm:$0xff]  }
 0x508   :  { %v5936_v49 = vrot.slane %v5934_v21, 1  ;;  %v18499_v21 = vld [vmem:[#allocation8 + $0xec0] ss:$8 sps:$4 sm:$0xff]  }
 0x509   :  { %6323 = vmatpush1.bf16.msra.mxu0 %v18418_v24  ;;  %v5990_v24 = vsel %vm443_vm2, %v5985_v10, %v5989_v2  ;;  %v5932_v10 = vshrl.u32 %v20969_v60, 16 }
 0x50a   :  { %6264 = vmatpush1.bf16.msra.mxu1 %v18421_v46  ;;  %6324 = vmatprep.subr.bf16.mxu0 %v18426_v31  ;;  %v7861_v46 = vrot.slane %v21026_v22, 2  ;;  %v7862_v31 = vrot.slane %v21023_v23, 3 }
 0x50b   :  { %6265 = vmatprep.subr.bf16.mxu1 %v18429_v34  ;;  %v18454_v34 = vld [vmem:[#allocation8 + $0xcb0] ss:$8 sps:$4 sm:$0xff]  }
 0x50d   :  { %6325 = vmatpush1.bf16.msra.mxu0 %v18424_v25  ;;  %v21065_v25 = vor.u32 %v7862_v31, %v7861_v46  ;;  %v18479_v46 = vld [vmem:[#allocation8 + $0xef0] ss:$8 sps:$4 sm:$0xff]   ;;  %v18485_v31 = vld [vmem:[#allocation8 + $0xe74] ss:$8 sps:$4 sm:$0xff]  }
 0x50e   :  { %6266 = vmatpush2.bf16.msra.mxu1 %v18427_v40  ;;  %6704 = vmatprep.subr.bf16.mxu0 %v18434_v45  ;;  %v6444_v40 = vrot.slane %v20986_v5, 1  ;;  %v18457_v45 = vld [vmem:[#allocation8 + $0xdb0] ss:$8 sps:$4 sm:$0xff]  }
 0x50f   :  { %6267 = vmatprep.subr.bf16.mxu1 %v18437_v18  ;;  %v6443_v18 = vrot.slane %v21063_v29, 1 }
 0x510   :  { %6343 = vmatmul.mubr.bf16.vlgmr.msra.gmra.mxu0 %v5966_v1  ;;  %v18464_v1 = vld [vmem:[#allocation8 + $0xda0] ss:$8 sps:$4 sm:$0xff]  }
 0x511   :  { %6705 = vmatpush1.bf16.msra.mxu0 %v18432_v6  ;;  %6352 = vmatprep.mubr.bf16.mxu0 %v22632_v9  ;;  %v5841_v6 = vld [vmem:[#allocation2 + $0x3c] sm:$0x11] }
 0x512   :  { %6268 = vmatpush2.bf16.msra.mxu1 %v18435_v0  ;;  %6706 = vmatprep.subr.bf16.mxu0 %v18440_v50  ;;  %v18469_v0 = vld [vmem:[#allocation8 + $0xc94] ss:$8 sps:$4 sm:$0xff]   ;;  %v6445_v50 = vsel %vm642_vm4, %v6443_v18, %v6444_v40 }
 0x513   :  { %6269 = vmatprep.subr.bf16.mxu1 %v18443_v58  ;;  %v21074_v58 = vcombine.high %v20996_v61, %v5841_v6 }
 0x515   :  { %6707 = vmatpush1.bf16.msra.mxu0 %v18438_v36  ;;  %v18472_v36 = vld [vmem:[#allocation8 + $0xd94] ss:$8 sps:$4 sm:$0xff]   ;;  %v5979_v2 = vshll.u32 %v21074_v58, 16 }
 0x516   :  { %6270 = vmatpush2.bf16.msra.mxu1 %v18441_v38  ;;  %6708 = vmatprep.subr.bf16.mxu0 %v18447_v28  ;;  %v18475_v38 = vld [vmem:[#allocation8 + $0xc84] ss:$8 sps:$4 sm:$0xff]   ;;  %v18470_v28 = vld [vmem:[#allocation8 + $0xd90] ss:$8 sps:$4 sm:$0xff]  }
 0x517   :  { %6271 = vmatprep.subr.bf16.mxu1 %v18450_v47  ;;  %v18473_v47 = vld [vmem:[#allocation8 + $0xc80] ss:$8 sps:$4 sm:$0xff]  }
 0x518   :  { %6353 = vmatmul.mubr.bf16.gmra.mxu0 %v5990_v24  ;;  %v5981_v24 = vrot.slane %v5979_v2, 1 }
 0x519   :  { %6709 = vmatpush1.bf16.msra.mxu0 %v18445_v26  ;;  %6362 = vmatprep.mubr.bf16.mxu0 %v22632_v9  ;;  %v5941_v26 = vrot.slane %v21023_v23, 1 }
 0x51a   :  { %6272 = vmatpush2.bf16.msra.mxu1 %v18448_v15  ;;  %6710 = vmatprep.subr.bf16.mxu0 %v18453_v8  ;;  %v21081_v15 = vcombine.low %v20996_v61, %v5841_v6  ;;  %v18476_v8 = vld [vmem:[#allocation8 + $0xd80] ss:$8 sps:$4 sm:$0xff]   ;;  %v5994_v6 = vshrl.u32 %v21074_v58, 16 }
 0x51b   :  { %6273 = vmatprep.subr.bf16.mxu1 %v18456_v37  ;;  %v5937_v37 = vor.u32 %v5936_v49, %v5932_v10  ;;  %v5969_v18 = vor.u32 %v21026_v22, %v5941_v26  ;;  %v18502_v22 = vld [vmem:[#allocation8 + $0xe40] ss:$8 sps:$4 sm:$0xff]   ;;  %v18508_v10 = vld [vmem:[#allocation8 + $0xe30] ss:$8 sps:$4 sm:$0xff]  }
 0x51c   :  { %v5971_v23 = vshll.u32 %v21081_v15, 16  ;;  %v5991_v2 = vshrl.u32 %v21081_v15, 16 }
 0x51d   :  { %6711 = vmatpush1.bf16.msra.mxu0 %v18451_v62  ;;  %v5977_v62 = vor.u32 %v21041_v4, %v5953_v56  ;;  %v5942_v60 = vsel %vm443_vm2, %v5937_v37, %v5941_v26  ;;  %v18489_v56 = vld [vmem:[#allocation8 + $0xe60] ss:$8 sps:$4 sm:$0xff]  }
 0x51e   :  { %6274 = vmatpush2.bf16.msra.mxu1 %v18454_v34  ;;  %6712 = vmatprep.subr.bf16.mxu0 %v18459_v11  ;;  %v18488_v34 = vld [vmem:[#allocation8 + $0xee4] ss:$8 sps:$4 sm:$0xff]   ;;  %v18511_v26 = vld [vmem:[#allocation8 + $0xea0] ss:$8 sps:$4 sm:$0xff]  }
 0x51f   :  { %6275 = vmatprep.subr.bf16.mxu1 %v18463_v51  ;;  %v5982_v11 = vsel %vm443_vm2, %v5977_v62, %v5981_v24  ;;  %v18483_v51 = vld [vmem:[#allocation8 + $0xe70] ss:$8 sps:$4 sm:$0xff]   ;;  %v18514_v37 = vld [vmem:[#allocation8 + $0xe20] ss:$8 sps:$4 sm:$0xff]   ;;  %v18522_v62 = vld [vmem:[#allocation8 + $0xe14] ss:$8 sps:$4 sm:$0xff]  }
 0x520   :  { %6363 = vmatmul.mubr.bf16.gmra.mxu0 %v5999_v42  ;;  %v5973_v42 = vrot.slane %v5971_v23, 1  ;;  %v18523_v23 = vld [vmem:[#allocation8 + $0xe80] ss:$8 sps:$4 sm:$0xff]  }
 0x521   :  { %6713 = vmatpush1.bf16.msra.mxu0 %v18457_v45  ;;  %6736 = vmatprep.mubr.bf16.mxu0 %v6445_v50  ;;  %v18491_v45 = vld [vmem:[#allocation8 + $0xe64] ss:$8 sps:$4 sm:$0xff]  }
 0x522   :  { %6276 = vmatpush2.bf16.msra.mxu1 %v18461_v27  ;;  %6714 = vmatprep.subr.bf16.mxu0 %v18466_v33  ;;  %v18495_v27 = vld [vmem:[#allocation8 + $0xed4] ss:$8 sps:$4 sm:$0xff]   ;;  %v18493_v33 = vld [vmem:[#allocation8 + $0xed0] ss:$8 sps:$4 sm:$0xff]   ;;  %v18501_v50 = vld [vmem:[#allocation8 + $0xec4] ss:$8 sps:$4 sm:$0xff]   ;;  %v5993_v49 = vor.u32 %v5991_v2, %v5973_v42 }
 0x523   :  { %6277 = vmatprep.subr.bf16.mxu1 %v18469_v0  ;;  %v18498_v0 = vld [vmem:[#allocation8 + $0xe54] ss:$8 sps:$4 sm:$0xff]  }
 0x524   :  { %v18548_v2 = vld [vmem:[#allocation8 + $0x1054] ss:$8 sps:$4 sm:$0xff]  }
 0x525   :  { %6715 = vmatpush1.bf16.msra.mxu0 %v18464_v1  ;;  %v5974_v1 = vsel %vm443_vm2, %v5969_v18, %v5973_v42  ;;  %v21100_v42 = vcombine.low %v21058_v55, %v20966_v39  ;;  %v18530_v18 = vld [vmem:[#allocation8 + $0xf70] ss:$8 sps:$4 sm:$0xff]  }
 0x526   :  { %6278 = vmatpush2.bf16.msra.mxu1 %v18467_v52  ;;  %6716 = vmatprep.subr.bf16.mxu0 %v18472_v36  ;;  %v5996_v52 = vor.u32 %v5994_v6, %v5981_v24  ;;  %v18496_v36 = vld [vmem:[#allocation8 + $0xe50] ss:$8 sps:$4 sm:$0xff]   ;;  %v18519_v24 = vld [vmem:[#allocation8 + $0xe94] ss:$8 sps:$4 sm:$0xff]   ;;  %v6441_v6 = vrot.slane %v20993_v44, 1 }
 0x527   :  { %6279 = vmatprep.subr.bf16.mxu1 %v18475_v38  ;;  %v18504_v38 = vld [vmem:[#allocation8 + $0xe44] ss:$8 sps:$4 sm:$0xff]   ;;  %v18534_v55 = vld [vmem:[#allocation8 + $0x1070] ss:$8 sps:$4 sm:$0xff]   ;;  %v18545_v44 = vld [vmem:[#allocation8 + $0xf54] ss:$8 sps:$4 sm:$0xff]  }
 0x529   :  { %6717 = vmatpush1.bf16.msra.mxu0 %v18470_v28  ;;  %v18507_v28 = vld [vmem:[#allocation8 + $0xeb4] ss:$8 sps:$4 sm:$0xff]  }
 0x52a   :  { %6280 = vmatpush2.bf16.msra.mxu1 %v18473_v47  ;;  %6718 = vmatprep.subr.bf16.mxu0 %v18478_v35  ;;  %v18505_v47 = vld [vmem:[#allocation8 + $0xeb0] ss:$8 sps:$4 sm:$0xff]   ;;  %v18510_v35 = vld [vmem:[#allocation8 + $0xe34] ss:$8 sps:$4 sm:$0xff]  }
 0x52b   :  { %6765 = vmatprep.subr.bf16.mxu1 %v18481_v57  ;;  %v18513_v57 = vld [vmem:[#allocation8 + $0xea4] ss:$8 sps:$4 sm:$0xff]  }
 0x52d   :  { %6719 = vmatpush1.bf16.msra.mxu0 %v18476_v8  ;;  %6282 = vmatmul.mubr.bf16.vlgmr.msra.gmra.mxu1 %v5942_v60  ;;  %v18516_v8 = vld [vmem:[#allocation8 + $0xe24] ss:$8 sps:$4 sm:$0xff]   ;;  %v6382_v60 = vld [vmem:[#allocation2 + $0x8] sm:$0xe] }
 0x52e   :  { %6291 = vmatprep.mubr.bf16.mxu1 %v5982_v11  ;;  %6766 = vmatpush1.bf16.msra.mxu1 %v18479_v46  ;;  %v18517_v46 = vld [vmem:[#allocation8 + $0xe90] ss:$8 sps:$4 sm:$0xff]   ;;  %v18528_v11 = vld [vmem:[#allocation8 + $0xe04] ss:$8 sps:$4 sm:$0xff]  }
 0x52f   :  { %6720 = vmatprep.subr.bf16.mxu0 %v18485_v31  ;;  %6767 = vmatprep.subr.bf16.mxu1 %v18488_v34  ;;  %v18525_v31 = vld [vmem:[#allocation8 + $0xe84] ss:$8 sps:$4 sm:$0xff]   ;;  %v18520_v34 = vld [vmem:[#allocation8 + $0xe10] ss:$8 sps:$4 sm:$0xff]  }
 0x531   :  { %6721 = vmatpush2.bf16.msra.mxu0 %v18483_v51  ;;  %v21095_v51 = vcombine.low %v6382_v60, %v21010_v7  ;;  %v18563_v60 = vld [vmem:[#allocation8 + $0xf24] ss:$8 sps:$4 sm:$0xff]  }
 0x532   :  { %6768 = vmatpush1.bf16.msra.mxu1 %v18486_v63  ;;  %6722 = vmatprep.subr.bf16.mxu0 %v18491_v45  ;;  %v18532_v63 = vld [vmem:[#allocation8 + $0xf74] ss:$8 sps:$4 sm:$0xff]   ;;  %v6447_v45 = vrot.slane %v21003_v30, 1  ;;  %v6451_v30 = vrot.slane %v21074_v58, 1 }
 0x533   :  { %6769 = vmatprep.subr.bf16.mxu1 %v18495_v27  ;;  %v18526_v27 = vld [vmem:[#allocation8 + $0xe00] ss:$8 sps:$4 sm:$0xff]  }
 0x534   :  { %v6452_v58 = vsel %vm642_vm4, %v6444_v40, %v6451_v30  ;;  %v6915_v40 = vrot.slane %v21041_v4, 1 }
 0x535   :  { %6723 = vmatpush2.bf16.msra.mxu0 %v18489_v56  ;;  %6292 = vmatmul.mubr.bf16.gmra.mxu1 %v5974_v1  ;;  %v6446_v56 = vrot.slane %v21095_v51, 1  ;;  %v6440_v1 = vrot.slane %v21100_v42, 1 }
 0x536   :  { %6301 = vmatprep.mubr.bf16.mxu1 %v5996_v52  ;;  %6770 = vmatpush1.bf16.msra.mxu1 %v18493_v33  ;;  %v18536_v33 = vld [vmem:[#allocation8 + $0x1074] ss:$8 sps:$4 sm:$0xff]   ;;  %v18537_v52 = vld [vmem:[#allocation8 + $0xf60] ss:$8 sps:$4 sm:$0xff]  }
 0x537   :  { %6724 = vmatprep.subr.bf16.mxu0 %v18498_v0  ;;  %6771 = vmatprep.subr.bf16.mxu1 %v18501_v50  ;;  %v18539_v0 = vld [vmem:[#allocation8 + $0xf64] ss:$8 sps:$4 sm:$0xff]   ;;  %v6448_v50 = vsel %vm642_vm4, %v6446_v56, %v6447_v45  ;;  %v18564_v56 = vld [vmem:[#allocation8 + $0x1020] ss:$8 sps:$4 sm:$0xff]  }
 0x539   :  { %6725 = vmatpush2.bf16.msra.mxu0 %v18496_v36  ;;  %v18542_v36 = vld [vmem:[#allocation8 + $0x1064] ss:$8 sps:$4 sm:$0xff]  }
 0x53a   :  { %6772 = vmatpush1.bf16.msra.mxu1 %v18499_v21  ;;  %6726 = vmatprep.subr.bf16.mxu0 %v18504_v38  ;;  %v6442_v21 = vsel %vm642_vm4, %v6440_v1, %v6441_v6  ;;  %v6453_v38 = vrot.slane %v21038_v53, 1  ;;  %v18546_v53 = vld [vmem:[#allocation8 + $0x1050] ss:$8 sps:$4 sm:$0xff]   ;;  %v6923_v1 = vshll.u32 %v21095_v51, 16 }
 0x53b   :  { %6773 = vmatprep.subr.bf16.mxu1 %v18507_v28  ;;  %v18540_v28 = vld [vmem:[#allocation8 + $0x1060] ss:$8 sps:$4 sm:$0xff]  }
 0x53d   :  { %6727 = vmatpush2.bf16.msra.mxu0 %v18502_v22  ;;  %6302 = vmatmul.mubr.bf16.gmra.mxu1 %v5993_v49  ;;  %v18543_v22 = vld [vmem:[#allocation8 + $0xf50] ss:$8 sps:$4 sm:$0xff]   ;;  %v6908_v49 = vshrl.u32 %v21063_v29, 16 }
 0x53e   :  { %6774 = vmatpush1.bf16.msra.mxu1 %v18505_v47  ;;  %6728 = vmatprep.subr.bf16.mxu0 %v18510_v35  ;;  %v6449_v47 = vrot.slane %v21081_v15, 1  ;;  %v18551_v35 = vld [vmem:[#allocation8 + $0xf44] ss:$8 sps:$4 sm:$0xff]  }
 0x53f   :  { %6775 = vmatprep.subr.bf16.mxu1 %v18513_v57  ;;  %6797 = vmatprep.mubr.bf16.mxu1 %v22632_v9  ;;  %v6911_v57 = vshll.u32 %v21063_v29, 16  ;;  %v6910_v29 = vrot.slane %v6908_v49, 1  ;;  %v18582_v49 = vld [vmem:[#allocation8 + $0x10f0] ss:$8 sps:$4 sm:$0xff]  }
 0x540   :  { %v6450_v15 = vsel %vm642_vm4, %v6441_v6, %v6449_v47  ;;  %v18575_v6 = vld [vmem:[#allocation8 + $0xf04] ss:$8 sps:$4 sm:$0xff]  }
 0x541   :  { %6729 = vmatpush2.bf16.msra.mxu0 %v18508_v10  ;;  %v6454_v10 = vsel %vm642_vm4, %v6447_v45, %v6453_v38  ;;  %v18566_v45 = vld [vmem:[#allocation8 + $0x1024] ss:$8 sps:$4 sm:$0xff]  }
 0x542   :  { %6776 = vmatpush1.bf16.msra.mxu1 %v18511_v26  ;;  %6730 = vmatprep.subr.bf16.mxu0 %v18516_v8  ;;  %v6916_v26 = vrot.slane %v20990_v59, 2  ;;  %v18549_v8 = vld [vmem:[#allocation8 + $0xf40] ss:$8 sps:$4 sm:$0xff]   ;;  %v18555_v59 = vld [vmem:[#allocation8 + $0xf30] ss:$8 sps:$4 sm:$0xff]  }
 0x543   :  { %6777 = vmatprep.subr.bf16.mxu1 %v18519_v24  ;;  %v18554_v24 = vld [vmem:[#allocation8 + $0x1044] ss:$8 sps:$4 sm:$0xff]  }
 0x545   :  { %6731 = vmatpush2.bf16.msra.mxu0 %v18514_v37  ;;  %v18557_v37 = vld [vmem:[#allocation8 + $0xf34] ss:$8 sps:$4 sm:$0xff]  }
 0x546   :  { %6778 = vmatpush1.bf16.msra.mxu1 %v18517_v46  ;;  %6732 = vmatprep.subr.bf16.mxu0 %v18522_v62  ;;  %v6913_v46 = vrot.slane %v6911_v57, 2  ;;  %v18552_v62 = vld [vmem:[#allocation8 + $0x1040] ss:$8 sps:$4 sm:$0xff]   ;;  %v18590_v57 = vld [vmem:[#allocation8 + $0x10e4] ss:$8 sps:$4 sm:$0xff]  }
 0x547   :  { %6779 = vmatprep.subr.bf16.mxu1 %v18525_v31  ;;  %v21121_v31 = vor.u32 %v6916_v26, %v6915_v40 }
 0x548   :  { %v6914_v4 = vor.u32 %v6913_v46, %v6910_v29  ;;  %v18600_v29 = vld [vmem:[#allocation8 + $0xfc4] ss:$8 sps:$4 sm:$0xff]   ;;  %v18595_v46 = vld [vmem:[#allocation8 + $0x10d0] ss:$8 sps:$4 sm:$0xff]  }
 0x549   :  { %6733 = vmatpush2.bf16.msra.mxu0 %v18520_v34  ;;  %v18560_v34 = vld [vmem:[#allocation8 + $0x1034] ss:$8 sps:$4 sm:$0xff]  }
 0x54a   :  { %6780 = vmatpush1.bf16.msra.mxu1 %v18523_v23  ;;  %6734 = vmatprep.subr.bf16.mxu0 %v18528_v11  ;;  %v6918_v23 = vsel %vm22660_vm15, %v6914_v4, %v21121_v31  ;;  %v18558_v11 = vld [vmem:[#allocation8 + $0x1030] ss:$8 sps:$4 sm:$0xff]   ;;  %vm22665_vm15 = vmmov %vm22664_vm10 }
 0x54b   :  { %7207 = vmatprep.subr.bf16.mxu1 %v18532_v63  ;;  %v18561_v63 = vld [vmem:[#allocation8 + $0xf20] ss:$8 sps:$4 sm:$0xff]  }
 0x54d   :  { %6735 = vmatpush2.bf16.msra.mxu0 %v18526_v27  ;;  %6798 = vmatmul.mubr.bf16.vlgmr.msra.gmra.mxu1 %v6448_v50  ;;  %v18569_v27 = vld [vmem:[#allocation8 + $0xf14] ss:$8 sps:$4 sm:$0xff]   ;;  %v18570_v50 = vld [vmem:[#allocation8 + $0x1010] ss:$8 sps:$4 sm:$0xff]  }
 0x54e   :  { %7208 = vmatpush1.bf16.msra.mxu1 %v18530_v18  ;;  %7268 = vmatprep.subr.bf16.mxu0 %v18536_v33  ;;  %v18567_v18 = vld [vmem:[#allocation8 + $0xf10] ss:$8 sps:$4 sm:$0xff]   ;;  %v18572_v33 = vld [vmem:[#allocation8 + $0x1014] ss:$8 sps:$4 sm:$0xff]  }
 0x54f   :  { %7209 = vmatprep.subr.bf16.mxu1 %v18539_v0  ;;  %6807 = vmatprep.mubr.bf16.mxu1 %v22632_v9  ;;  %v6837_v0 = vld [vmem:[#allocation2 + $0x44] sm:$0x3] }
 0x550   :  { %6737 = vmatmul.mubr.bf16.vlgmr.msra.gmra.mxu0 %v6442_v21  ;;  %v21129_v21 = vcombine.low %v21032_v17, %v6837_v0  ;;  %v18585_v17 = vld [vmem:[#allocation8 + $0xfe0] ss:$8 sps:$4 sm:$0xff]  }
 0x551   :  { %6746 = vmatprep.mubr.bf16.mxu0 %v6452_v58  ;;  %7269 = vmatpush1.bf16.msra.mxu0 %v18534_v55  ;;  %v18573_v55 = vld [vmem:[#allocation8 + $0xf00] ss:$8 sps:$4 sm:$0xff]  }
 0x552   :  { %7210 = vmatpush1.bf16.msra.mxu1 %v18537_v52  ;;  %7270 = vmatprep.subr.bf16.mxu0 %v18542_v36  ;;  %v18578_v52 = vld [vmem:[#allocation8 + $0x1004] ss:$8 sps:$4 sm:$0xff]   ;;  %v18581_v36 = vld [vmem:[#allocation8 + $0xff4] ss:$8 sps:$4 sm:$0xff]   ;;  %v18611_v0 = vld [vmem:[#allocation8 + $0xfa0] ss:$8 sps:$4 sm:$0xff]  }
 0x553   :  { %7211 = vmatprep.subr.bf16.mxu1 %v18545_v44  ;;  %v18576_v44 = vld [vmem:[#allocation8 + $0x1000] ss:$8 sps:$4 sm:$0xff]  }
 0x555   :  { %7271 = vmatpush1.bf16.msra.mxu0 %v18540_v28  ;;  %6808 = vmatmul.mubr.bf16.gmra.mxu1 %v6454_v10  ;;  %v18579_v28 = vld [vmem:[#allocation8 + $0xff0] ss:$8 sps:$4 sm:$0xff]  }
 0x556   :  { %7212 = vmatpush1.bf16.msra.mxu1 %v18543_v22  ;;  %7272 = vmatprep.subr.bf16.mxu0 %v18548_v2  ;;  %v18584_v22 = vld [vmem:[#allocation8 + $0x10f4] ss:$8 sps:$4 sm:$0xff]   ;;  %v18587_v2 = vld [vmem:[#allocation8 + $0xfe4] ss:$8 sps:$4 sm:$0xff]  }
 0x557   :  { %7213 = vmatprep.subr.bf16.mxu1 %v18551_v35  ;;  %6817 = vmatprep.mubr.bf16.mxu1 %v22632_v9 }
 0x558   :  { %6747 = vmatmul.mubr.bf16.gmra.mxu0 %v6450_v15  ;;  %v18597_v15 = vld [vmem:[#allocation8 + $0x10d4] ss:$8 sps:$4 sm:$0xff]  }
 0x559   :  { %6756 = vmatprep.mubr.bf16.mxu0 %v6451_v30  ;;  %7273 = vmatpush1.bf16.msra.mxu0 %v18546_v53  ;;  %v6920_v30 = vshrl.u32 %v21095_v51, 16  ;;  %v6950_v51 = vshrl.u32 %v21129_v21, 16  ;;  %v18593_v53 = vld [vmem:[#allocation8 + $0xfd4] ss:$8 sps:$4 sm:$0xff]  }
 0x55a   :  { %7214 = vmatpush1.bf16.msra.mxu1 %v18549_v8  ;;  %7274 = vmatprep.subr.bf16.mxu0 %v18554_v24  ;;  %v18588_v8 = vld [vmem:[#allocation8 + $0x10e0] ss:$8 sps:$4 sm:$0xff]   ;;  %v18591_v24 = vld [vmem:[#allocation8 + $0xfd0] ss:$8 sps:$4 sm:$0xff]  }
 0x55b   :  { %7215 = vmatprep.subr.bf16.mxu1 %v18557_v37  ;;  %v6922_v58 = vrot.slane %v6920_v30, 1  ;;  %v6952_v40 = vrot.slane %v6950_v51, 1  ;;  %v18619_v30 = vld [vmem:[#allocation8 + $0xf94] ss:$8 sps:$4 sm:$0xff]  }
 0x55d   :  { %7275 = vmatpush1.bf16.msra.mxu0 %v18552_v62  ;;  %6818 = vmatmul.mubr.bf16.gmra.mxu1 %v6453_v38  ;;  %v6925_v38 = vrot.slane %v6923_v1, 2  ;;  %v18598_v62 = vld [vmem:[#allocation8 + $0xfc0] ss:$8 sps:$4 sm:$0xff]  }
 0x55e   :  { %7216 = vmatpush1.bf16.msra.mxu1 %v18555_v59  ;;  %7239 = vmatprep.mubr.bf16.mxu1 %v6918_v23  ;;  %v18603_v59 = vld [vmem:[#allocation8 + $0x10c4] ss:$8 sps:$4 sm:$0xff]   ;;  %v18614_v1 = vld [vmem:[#allocation8 + $0x10a0] ss:$8 sps:$4 sm:$0xff]  }
 0x55f   :  { %7276 = vmatprep.subr.bf16.mxu0 %v18560_v34  ;;  %7217 = vmatprep.subr.bf16.mxu1 %v18563_v60  ;;  %v6926_v35 = vor.u32 %v6925_v38, %v6922_v58  ;;  %v18606_v34 = vld [vmem:[#allocation8 + $0xfb4] ss:$8 sps:$4 sm:$0xff]   ;;  %v18601_v60 = vld [vmem:[#allocation8 + $0x10c0] ss:$8 sps:$4 sm:$0xff]   ;;  %v6896_v58 = vshrl.u32 %v21100_v42, 16  ;;  %v6899_v38 = vshll.u32 %v21100_v42, 16 }
 0x560   :  { %6757 = vmatmul.mubr.bf16.gmra.mxu0 %v6449_v47  ;;  %v6953_v47 = vshll.u32 %v21129_v21, 16  ;;  %v21139_v23 = vld [vmem:[#allocation2] sm:$0xcc] }
 0x561   :  { %7277 = vmatpush1.bf16.msra.mxu0 %v18558_v11  ;;  %7300 = vmatprep.mubr.bf16.mxu0 %v22632_v9  ;;  %v6930_v10 = vsel %vm22661_vm11, %v6926_v35, %v21028_v12  ;;  %v18604_v11 = vld [vmem:[#allocation8 + $0xfb0] ss:$8 sps:$4 sm:$0xff]   ;;  %v18623_v35 = vld [vmem:[#allocation8 + $0xf80] ss:$8 sps:$4 sm:$0xff]   ;;  %vm22666_vm11 = vmmov %vm22664_vm10 }
 0x562   :  { %7218 = vmatpush1.bf16.msra.mxu1 %v18561_v63  ;;  %7278 = vmatprep.subr.bf16.mxu0 %v18566_v45  ;;  %v6955_v26 = vrot.slane %v6953_v47, 2  ;;  %v18609_v63 = vld [vmem:[#allocation8 + $0x10b4] ss:$8 sps:$4 sm:$0xff]   ;;  %v21143_v45 = vcombine.high %v21139_v23, %v20966_v39 }
 0x563   :  { %7219 = vmatprep.subr.bf16.mxu1 %v18569_v27  ;;  %v6836_v27 = vld [vmem:[#allocation2 + $0x3c] sm:$0x33] }
 0x564   :  { %v6956_v37 = vor.u32 %v6955_v26, %v6952_v40  ;;  %v18626_v40 = vld [vmem:[#allocation8 + $0x1080] ss:$8 sps:$4 sm:$0xff]  }
 0x565   :  { %7279 = vmatpush1.bf16.msra.mxu0 %v18564_v56  ;;  %v7402_v56 = vrot.slane %v20986_v5, 2 }
 0x566   :  { %7220 = vmatpush1.bf16.msra.mxu1 %v18567_v18  ;;  %7280 = vmatprep.subr.bf16.mxu0 %v18572_v33  ;;  %v6957_v4 = vsel %vm22662_vm13, %v21028_v12, %v6956_v37  ;;  %v18613_v12 = vld [vmem:[#allocation8 + $0xfa4] ss:$8 sps:$4 sm:$0xff]   ;;  %v18607_v18 = vld [vmem:[#allocation8 + $0x10b0] ss:$8 sps:$4 sm:$0xff]   ;;  %v21147_v33 = vcombine.high %v20996_v61, %v6836_v27  ;;  %vm22667_vm13 = vmmov %vm22663_vm0 }
 0x567   :  { %7221 = vmatprep.subr.bf16.mxu1 %v18575_v6  ;;  %v7401_v6 = vrot.slane %v21143_v45, 2 }
 0x569   :  { %7281 = vmatpush1.bf16.msra.mxu0 %v18570_v50  ;;  %v18616_v50 = vld [vmem:[#allocation8 + $0x10a4] ss:$8 sps:$4 sm:$0xff]   ;;  %v7403_v39 = vsel %vm22663_vm0, %v7401_v6, %v7402_v56  ;;  %v18646_v6 = vld [vmem:[#allocation8 + $0x1150] ss:$8 sps:$4 sm:$0xff]  }
 0x56a   :  { %7222 = vmatpush1.bf16.msra.mxu1 %v18573_v55  ;;  %7282 = vmatprep.subr.bf16.mxu0 %v18578_v52  ;;  %v6941_v55 = vshrl.u32 %v21147_v33, 16  ;;  %v6944_v52 = vshll.u32 %v21147_v33, 16 }
 0x56b   :  { %7223 = vmatprep.subr.bf16.mxu1 %v18581_v36  ;;  %v18617_v36 = vld [vmem:[#allocation8 + $0xf90] ss:$8 sps:$4 sm:$0xff]  }
 0x56c   :  { %v6943_v51 = vrot.slane %v6941_v55, 1  ;;  %v6946_v47 = vrot.slane %v6944_v52, 2  ;;  %v18660_v55 = vld [vmem:[#allocation8 + $0x1134] ss:$8 sps:$4 sm:$0xff]   ;;  %v18663_v52 = vld [vmem:[#allocation8 + $0x11a4] ss:$8 sps:$4 sm:$0xff]  }
 0x56d   :  { %7283 = vmatpush1.bf16.msra.mxu0 %v18576_v44  ;;  %v18622_v44 = vld [vmem:[#allocation8 + $0x1094] ss:$8 sps:$4 sm:$0xff]  }
 0x56e   :  { %7224 = vmatpush2.bf16.msra.mxu1 %v18579_v28  ;;  %7662 = vmatprep.subr.bf16.mxu0 %v18584_v22  ;;  %v18625_v28 = vld [vmem:[#allocation8 + $0xf84] ss:$8 sps:$4 sm:$0xff]   ;;  %v21158_v22 = vcombine.low %v20996_v61, %v6836_v27  ;;  %v6947_v61 = vor.u32 %v6946_v47, %v6943_v51  ;;  %v18643_v27 = vld [vmem:[#allocation8 + $0x11d0] ss:$8 sps:$4 sm:$0xff]  }
 0x56f   :  { %7225 = vmatprep.subr.bf16.mxu1 %v18587_v2  ;;  %v18620_v2 = vld [vmem:[#allocation8 + $0x1090] ss:$8 sps:$4 sm:$0xff]   ;;  %v18675_v51 = vld [vmem:[#allocation8 + $0x1184] ss:$8 sps:$4 sm:$0xff]  }
 0x570   :  { %7301 = vmatmul.mubr.bf16.vlgmr.msra.gmra.mxu0 %v6930_v10  ;;  %v18631_v10 = vld [vmem:[#allocation8 + $0x11f4] ss:$8 sps:$4 sm:$0xff]   ;;  %v6935_v42 = vshll.u32 %v21158_v22, 16  ;;  %v18670_v47 = vld [vmem:[#allocation8 + $0x1110] ss:$8 sps:$4 sm:$0xff]   ;;  %v7407_v5 = vrot.slane %v21158_v22, 2 }
 0x571   :  { %7663 = vmatpush1.bf16.msra.mxu0 %v18582_v49  ;;  %7310 = vmatprep.mubr.bf16.mxu0 %v22632_v9  ;;  %v18628_v49 = vld [vmem:[#allocation8 + $0x1084] ss:$8 sps:$4 sm:$0xff]  }
 0x572   :  { %7226 = vmatpush2.bf16.msra.mxu1 %v18585_v17  ;;  %7664 = vmatprep.subr.bf16.mxu0 %v18590_v57  ;;  %v6898_v17 = vrot.slane %v6896_v58, 1  ;;  %v6901_v57 = vrot.slane %v6899_v38, 2  ;;  %v18669_v58 = vld [vmem:[#allocation8 + $0x1194] ss:$8 sps:$4 sm:$0xff]   ;;  %v18664_v38 = vld [vmem:[#allocation8 + $0x1120] ss:$8 sps:$4 sm:$0xff]  }
 0x573   :  { %7227 = vmatprep.subr.bf16.mxu1 %v18593_v53  ;;  %v6932_v53 = vshrl.u32 %v21158_v22, 16  ;;  %v18704_v22 = vld [vmem:[#allocation8 + $0x1344] ss:$8 sps:$4 sm:$0xff]  }
 0x574   :  { %v6902_v26 = vor.u32 %v6901_v57, %v6898_v17  ;;  %v18678_v17 = vld [vmem:[#allocation8 + $0x1104] ss:$8 sps:$4 sm:$0xff]  }
 0x575   :  { %7665 = vmatpush1.bf16.msra.mxu0 %v18588_v8  ;;  %v18629_v8 = vld [vmem:[#allocation8 + $0x11f0] ss:$8 sps:$4 sm:$0xff]  }
 0x576   :  { %7228 = vmatpush2.bf16.msra.mxu1 %v18591_v24  ;;  %7666 = vmatprep.subr.bf16.mxu0 %v18597_v15  ;;  %v18635_v24 = vld [vmem:[#allocation8 + $0x1174] ss:$8 sps:$4 sm:$0xff]   ;;  %v18638_v15 = vld [vmem:[#allocation8 + $0x11e4] ss:$8 sps:$4 sm:$0xff]  }
 0x577   :  { %7229 = vmatprep.subr.bf16.mxu1 %v18600_v29  ;;  %v6934_v29 = vrot.slane %v6932_v53, 1  ;;  %v21172_v53 = vld [vmem:[#allocation2 + $0x20] ss:$12 sps:$4 sm:$0xff]  }
 0x578   :  { %7311 = vmatmul.mubr.bf16.gmra.mxu0 %v6957_v4  ;;  %v18636_v4 = vld [vmem:[#allocation8 + $0x11e0] ss:$8 sps:$4 sm:$0xff]  }
 0x579   :  { %7667 = vmatpush1.bf16.msra.mxu0 %v18595_v46  ;;  %7320 = vmatprep.mubr.bf16.mxu0 %v22632_v9  ;;  %v6937_v46 = vrot.slane %v6935_v42, 2  ;;  %v7405_v42 = vrot.slane %v21172_v53, 2 }
 0x57a   :  { %7230 = vmatpush2.bf16.msra.mxu1 %v18598_v62  ;;  %7668 = vmatprep.subr.bf16.mxu0 %v18603_v59  ;;  %v6948_v62 = vsel %vm22665_vm15, %v21121_v31, %v6947_v61  ;;  %v18633_v59 = vld [vmem:[#allocation8 + $0x1170] ss:$8 sps:$4 sm:$0xff]   ;;  %vm22669_vm15 = vmmov %vm22663_vm0 }
 0x57b   :  { %7231 = vmatprep.subr.bf16.mxu1 %v18606_v34  ;;  %v18641_v34 = vld [vmem:[#allocation8 + $0x1164] ss:$8 sps:$4 sm:$0xff]  }
 0x57d   :  { %7669 = vmatpush1.bf16.msra.mxu0 %v18601_v60  ;;  %v18645_v60 = vld [vmem:[#allocation8 + $0x11d4] ss:$8 sps:$4 sm:$0xff]  }
 0x57e   :  { %7232 = vmatpush2.bf16.msra.mxu1 %v18604_v11  ;;  %7670 = vmatprep.subr.bf16.mxu0 %v18609_v63  ;;  %v6938_v11 = vor.u32 %v6937_v46, %v6934_v29  ;;  %v18639_v63 = vld [vmem:[#allocation8 + $0x1160] ss:$8 sps:$4 sm:$0xff]   ;;  %v18689_v29 = vld [vmem:[#allocation8 + $0x1264] ss:$8 sps:$4 sm:$0xff]  }
 0x57f   :  { %7233 = vmatprep.subr.bf16.mxu1 %v18613_v12  ;;  %v18648_v12 = vld [vmem:[#allocation8 + $0x1154] ss:$8 sps:$4 sm:$0xff]  }
 0x580   :  { %7321 = vmatmul.mubr.bf16.gmra.mxu0 %v6956_v37  ;;  %v6906_v37 = vsel %vm22664_vm10, %v6902_v26, %v21034_v48  ;;  %v6939_v31 = vsel %vm22666_vm11, %v21034_v48, %v6938_v11  ;;  %v18658_v48 = vld [vmem:[#allocation8 + $0x1130] ss:$8 sps:$4 sm:$0xff]   ;;  %vm22668_vm10 = vmmov %vm22663_vm0 }
 0x581   :  { %7671 = vmatpush1.bf16.msra.mxu0 %v18607_v18  ;;  %7694 = vmatprep.mubr.bf16.mxu0 %v7403_v39  ;;  %v18651_v18 = vld [vmem:[#allocation8 + $0x11c4] ss:$8 sps:$4 sm:$0xff]   ;;  %v18652_v39 = vld [vmem:[#allocation8 + $0x1140] ss:$8 sps:$4 sm:$0xff]   ;;  %vm22670_vm11 = vmmov %vm22663_vm0 }
 0x582   :  { %7234 = vmatpush2.bf16.msra.mxu1 %v18611_v0  ;;  %7672 = vmatprep.subr.bf16.mxu0 %v18616_v50  ;;  %v18649_v0 = vld [vmem:[#allocation8 + $0x11c0] ss:$8 sps:$4 sm:$0xff]   ;;  %v18654_v50 = vld [vmem:[#allocation8 + $0x1144] ss:$8 sps:$4 sm:$0xff]  }
 0x583   :  { %7235 = vmatprep.subr.bf16.mxu1 %v18619_v30  ;;  %v18657_v30 = vld [vmem:[#allocation8 + $0x11b4] ss:$8 sps:$4 sm:$0xff]  }
 0x585   :  { %7673 = vmatpush1.bf16.msra.mxu0 %v18614_v1  ;;  %v18655_v1 = vld [vmem:[#allocation8 + $0x11b0] ss:$8 sps:$4 sm:$0xff]  }
 0x586   :  { %7236 = vmatpush2.bf16.msra.mxu1 %v18617_v36  ;;  %7674 = vmatprep.subr.bf16.mxu0 %v18622_v44  ;;  %v18661_v36 = vld [vmem:[#allocation8 + $0x11a0] ss:$8 sps:$4 sm:$0xff]   ;;  %v18666_v44 = vld [vmem:[#allocation8 + $0x1124] ss:$8 sps:$4 sm:$0xff]  }
 0x587   :  { %7237 = vmatprep.subr.bf16.mxu1 %v18625_v28  ;;  %v18667_v28 = vld [vmem:[#allocation8 + $0x1190] ss:$8 sps:$4 sm:$0xff]  }
 0x589   :  { %7675 = vmatpush1.bf16.msra.mxu0 %v18620_v2  ;;  %v18672_v2 = vld [vmem:[#allocation8 + $0x1114] ss:$8 sps:$4 sm:$0xff]  }
 0x58a   :  { %7238 = vmatpush2.bf16.msra.mxu1 %v18623_v35  ;;  %7676 = vmatprep.subr.bf16.mxu0 %v18628_v49  ;;  %v7340_v35 = vld [vmem:[#allocation2 + $0x8] sm:$0xc]  ;;  %v18673_v49 = vld [vmem:[#allocation8 + $0x1180] ss:$8 sps:$4 sm:$0xff]  }
 0x58b   :  { %7723 = vmatprep.subr.bf16.mxu1 %v18631_v10  ;;  %v21170_v57 = vcombine.low %v7340_v35, %v21010_v7  ;;  %v18682_v10 = vld [vmem:[#allocation8 + $0x1274] ss:$8 sps:$4 sm:$0xff]   ;;  %v18680_v7 = vld [vmem:[#allocation8 + $0x1270] ss:$8 sps:$4 sm:$0xff]  }
 0x58d   :  { %7677 = vmatpush1.bf16.msra.mxu0 %v18626_v40  ;;  %7240 = vmatmul.mubr.bf16.vlgmr.msra.gmra.mxu1 %v6906_v37  ;;  %v18676_v40 = vld [vmem:[#allocation8 + $0x1100] ss:$8 sps:$4 sm:$0xff]  }
 0x58e   :  { %7249 = vmatprep.mubr.bf16.mxu1 %v6948_v62  ;;  %7724 = vmatpush1.bf16.msra.mxu1 %v18629_v8  ;;  %v7404_v8 = vrot.slane %v21170_v57, 2  ;;  %v7409_v62 = vrot.slane %v21147_v33, 2 }
 0x58f   :  { %7678 = vmatprep.subr.bf16.mxu0 %v18635_v24  ;;  %7725 = vmatprep.subr.bf16.mxu1 %v18638_v15  ;;  %v18686_v24 = vld [vmem:[#allocation8 + $0x1374] ss:$8 sps:$4 sm:$0xff]   ;;  %v21182_v15 = vld [vmem:[#allocation2 + $0x18] ss:$12 sps:$4 sm:$0xff]  }
 0x590   :  { %v7399_v37 = vrot.slane %v21182_v15, 2  ;;  %v7406_v46 = vsel %vm22667_vm13, %v7404_v8, %v7405_v42  ;;  %v7410_v33 = vsel %vm22668_vm10, %v7402_v56, %v7409_v62  ;;  %v18701_v56 = vld [vmem:[#allocation8 + $0x1244] ss:$8 sps:$4 sm:$0xff]   ;;  %vm22671_vm13 = vcmask 1044480  }
 0x591   :  { %7679 = vmatpush2.bf16.msra.mxu0 %v18633_v59 }
 0x592   :  { %7726 = vmatpush1.bf16.msra.mxu1 %v18636_v4  ;;  %7680 = vmatprep.subr.bf16.mxu0 %v18641_v34  ;;  %v18684_v4 = vld [vmem:[#allocation8 + $0x1370] ss:$8 sps:$4 sm:$0xff]   ;;  %v18687_v34 = vld [vmem:[#allocation8 + $0x1260] ss:$8 sps:$4 sm:$0xff]  }
 0x593   :  { %7727 = vmatprep.subr.bf16.mxu1 %v18645_v60  ;;  %v18692_v60 = vld [vmem:[#allocation8 + $0x1364] ss:$8 sps:$4 sm:$0xff]  }
 0x595   :  { %7681 = vmatpush2.bf16.msra.mxu0 %v18639_v63  ;;  %7250 = vmatmul.mubr.bf16.gmra.mxu1 %v6939_v31 }
 0x596   :  { %7259 = vmatprep.mubr.bf16.mxu1 %v6947_v61  ;;  %7728 = vmatpush1.bf16.msra.mxu1 %v18643_v27  ;;  %v21175_v61 = vld [vmem:[#allocation2 + $0xc] sm:$0xff] }
 0x597   :  { %7682 = vmatprep.subr.bf16.mxu0 %v18648_v12  ;;  %7729 = vmatprep.subr.bf16.mxu1 %v18651_v18  ;;  %v21179_v26 = vcombine.low %v21139_v23, %v21175_v61  ;;  %v18695_v27 = vld [vmem:[#allocation8 + $0x1254] ss:$8 sps:$4 sm:$0xff]   ;;  %v7411_v18 = vrot.slane %v21129_v21, 2  ;;  %v7866_v21 = vshrl.u32 %v21143_v45, 16 }
 0x599   :  { %7683 = vmatpush2.bf16.msra.mxu0 %v18646_v6  ;;  %v7398_v59 = vrot.slane %v21179_v26, 2  ;;  %v7868_v35 = vrot.slane %v7866_v21, 2 }
 0x59a   :  { %7730 = vmatpush1.bf16.msra.mxu1 %v18649_v0  ;;  %7684 = vmatprep.subr.bf16.mxu0 %v18654_v50  ;;  %v18690_v0 = vld [vmem:[#allocation8 + $0x1360] ss:$8 sps:$4 sm:$0xff]  }
 0x59b   :  { %7731 = vmatprep.subr.bf16.mxu1 %v18657_v30  ;;  %v18693_v30 = vld [vmem:[#allocation8 + $0x1250] ss:$8 sps:$4 sm:$0xff]  }
 0x59d   :  { %7685 = vmatpush2.bf16.msra.mxu0 %v18652_v39  ;;  %7260 = vmatmul.mubr.bf16.gmra.mxu1 %v6938_v11  ;;  %v7400_v11 = vsel %vm22663_vm0, %v7398_v59, %v7399_v37  ;;  %v18698_v39 = vld [vmem:[#allocation8 + $0x1354] ss:$8 sps:$4 sm:$0xff]   ;;  %vm22674_vm0 = vmmov %vm22671_vm13 }
 0x59e   :  { %7732 = vmatpush1.bf16.msra.mxu1 %v18655_v1  ;;  %7686 = vmatprep.subr.bf16.mxu0 %v18660_v55  ;;  %vm22675_vm10 = vmmov %vm22674_vm0 }
 0x59f   :  { %7733 = vmatprep.subr.bf16.mxu1 %v18663_v52  ;;  %7755 = vmatprep.mubr.bf16.mxu1 %v22632_v9  ;;  %v7869_v52 = vshll.u32 %v21143_v45, 16  ;;  %v18707_v45 = vld [vmem:[#allocation8 + $0x1234] ss:$8 sps:$4 sm:$0xff]  }
 0x5a1   :  { %7687 = vmatpush2.bf16.msra.mxu0 %v18658_v48 }
 0x5a2   :  { %7734 = vmatpush1.bf16.msra.mxu1 %v18661_v36  ;;  %7688 = vmatprep.subr.bf16.mxu0 %v18666_v44  ;;  %v7412_v36 = vsel %vm22669_vm15, %v7405_v42, %v7411_v18  ;;  %vm22677_vm15 = vmmov %vm22674_vm0 }
 0x5a3   :  { %7735 = vmatprep.subr.bf16.mxu1 %v18669_v58 }
 0x5a5   :  { %7689 = vmatpush2.bf16.msra.mxu0 %v18664_v38  ;;  %v18696_v38 = vld [vmem:[#allocation8 + $0x1350] ss:$8 sps:$4 sm:$0xff]  }
 0x5a6   :  { %7736 = vmatpush1.bf16.msra.mxu1 %v18667_v28  ;;  %7690 = vmatprep.subr.bf16.mxu0 %v18672_v2  ;;  %v18699_v2 = vld [vmem:[#allocation8 + $0x1240] ss:$8 sps:$4 sm:$0xff]  }
 0x5a7   :  { %7737 = vmatprep.subr.bf16.mxu1 %v18675_v51  ;;  %v7408_v51 = vsel %vm22670_vm11, %v7399_v37, %v7407_v5  ;;  %vm22678_vm11 = vmmov %vm22674_vm0 }
 0x5a9   :  { %7691 = vmatpush2.bf16.msra.mxu0 %v18670_v47 }
 0x5aa   :  { %7738 = vmatpush1.bf16.msra.mxu1 %v18673_v49  ;;  %7692 = vmatprep.subr.bf16.mxu0 %v18678_v17  ;;  %v7871_v49 = vrot.slane %v7869_v52, 3 }
 0x5ab   :  { %8165 = vmatprep.subr.bf16.mxu1 %v18682_v10 }
 0x5ac   :  { %v5794_v23 = vpop.f32.mrf.mxu1 }
 0x5ad   :  { %7693 = vmatpush2.bf16.msra.mxu0 %v18676_v40  ;;  %7756 = vmatmul.mubr.bf16.vlgmr.msra.gmra.mxu1 %v7406_v46  ;;  %v18702_v40 = vld [vmem:[#allocation8 + $0x1340] ss:$8 sps:$4 sm:$0xff]   ;;  %v18710_v46 = vld [vmem:[#allocation8 + $0x1334] ss:$8 sps:$4 sm:$0xff]  }
 0x5ae   :  { %8166 = vmatpush1.bf16.msra.mxu1 %v18680_v7  ;;  %8226 = vmatprep.subr.bf16.mxu0 %v18686_v24  ;;  %v5796_v63 = vpop.f32.mrf.mxu1  ;;  %v18705_v7 = vld [vmem:[#allocation8 + $0x1230] ss:$8 sps:$4 sm:$0xff]  }
 0x5af   :  { %8167 = vmatprep.subr.bf16.mxu1 %v18689_v29  ;;  %7765 = vmatprep.mubr.bf16.mxu1 %v22632_v9  ;;  %v7872_v29 = vor.u32 %v7871_v49, %v7868_v35  ;;  %v19910_v35 = vld [vmem:[#allocation2 + $0x38] sm:$0xf] }
 0x5b0   :  { %7695 = vmatmul.mubr.bf16.vlgmr.msra.gmra.mxu0 %v7400_v11  ;;  %v5733_v12 = vpop.f32.mrf.mxu0  ;;  %v5798_v6 = vpop.f32.mrf.mxu1 }
 0x5b1   :  { %v21194_v31 = vadd.f32 %v5794_v23, %v5733_v12  ;;  %7704 = vmatprep.mubr.bf16.mxu0 %v7410_v33  ;;  %8227 = vmatpush1.bf16.msra.mxu0 %v18684_v4  ;;  %v18713_v23 = vld [vmem:[#allocation8 + $0x1224] ss:$8 sps:$4 sm:$0xff]   ;;  %v18719_v33 = vld [vmem:[#allocation8 + $0x1214] ss:$8 sps:$4 sm:$0xff]  }
 0x5b2   :  { %v5735_v50 = vpop.f32.mrf.mxu0  ;;  %8168 = vmatpush1.bf16.msra.mxu1 %v18687_v34  ;;  %8228 = vmatprep.subr.bf16.mxu0 %v18692_v60  ;;  %v21198_v55 = vpop.f32.mrf.mxu1  ;;  %v7876_v34 = vsel %vm1201_vm8, %v7872_v29, %v21051_v14  ;;  %v18708_v60 = vld [vmem:[#allocation8 + $0x1330] ss:$8 sps:$4 sm:$0xff]  }
 0x5b3   :  { %v21196_v1 = vadd.f32 %v5796_v63, %v5735_v50  ;;  %8169 = vmatprep.subr.bf16.mxu1 %v18695_v27  ;;  %v18711_v63 = vld [vmem:[#allocation8 + $0x1220] ss:$8 sps:$4 sm:$0xff]   ;;  %v18716_v27 = vld [vmem:[#allocation8 + $0x1324] ss:$8 sps:$4 sm:$0xff]  }
 0x5b4   :  { %v5737_v48 = vpop.f32.mrf.mxu0  ;;  %v5804_v58 = vpop.f32.mrf.mxu1  ;;  %v18714_v50 = vld [vmem:[#allocation8 + $0x1320] ss:$8 sps:$4 sm:$0xff]  }
 0x5b5   :  { %v21204_v44 = vadd.f32 %v5798_v6, %v5737_v48  ;;  %8229 = vmatpush1.bf16.msra.mxu0 %v18690_v0  ;;  %7766 = vmatmul.mubr.bf16.gmra.mxu1 %v7412_v36  ;;  %v18725_v48 = vld [vmem:[#allocation8 + $0x1204] ss:$8 sps:$4 sm:$0xff]  }
 0x5b6   :  { %v21206_v28 = vpop.f32.mrf.mxu0  ;;  %8170 = vmatpush1.bf16.msra.mxu1 %v18693_v30  ;;  %8230 = vmatprep.subr.bf16.mxu0 %v18698_v39  ;;  %v5806_v47 = vpop.f32.mrf.mxu1  ;;  %v18717_v39 = vld [vmem:[#allocation8 + $0x1210] ss:$8 sps:$4 sm:$0xff]  }
 0x5b7   :  { %8171 = vmatprep.subr.bf16.mxu1 %v18701_v56  ;;  %7775 = vmatprep.mubr.bf16.mxu1 %v22632_v9  ;;  %v18722_v56 = vld [vmem:[#allocation8 + $0x1314] ss:$8 sps:$4 sm:$0xff]  }
 0x5b8   :  { %7705 = vmatmul.mubr.bf16.gmra.mxu0 %v7408_v51  ;;  %v5743_v17 = vpop.f32.mrf.mxu0  ;;  %v5808_v42 = vpop.f32.mrf.mxu1  ;;  %v18723_v51 = vld [vmem:[#allocation8 + $0x1200] ss:$8 sps:$4 sm:$0xff]  }
 0x5b9   :  { %v21210_v10 = vadd.f32 %v5804_v58, %v5743_v17  ;;  %7714 = vmatprep.mubr.bf16.mxu0 %v7409_v62  ;;  %8231 = vmatpush1.bf16.msra.mxu0 %v18696_v38  ;;  %v18720_v58 = vld [vmem:[#allocation8 + $0x1310] ss:$8 sps:$4 sm:$0xff]   ;;  %v7878_v38 = vshrl.u32 %v21170_v57, 16  ;;  %v18726_v17 = vld [vmem:[#allocation8 + $0x1300] ss:$8 sps:$4 sm:$0xff]  }
 0x5ba   :  { %v5745_v8 = vpop.f32.mrf.mxu0  ;;  %8172 = vmatpush1.bf16.msra.mxu1 %v18699_v2  ;;  %8232 = vmatprep.subr.bf16.mxu0 %v18704_v22  ;;  %v21214_v37 = vpop.f32.mrf.mxu1  ;;  %v7881_v2 = vshll.u32 %v21170_v57, 16  ;;  %v18737_v57 = vld [vmem:[#allocation8 + $0x12e4] ss:$8 sps:$4 sm:$0xff]  }
 0x5bb   :  { %v21212_v24 = vadd.f32 %v5806_v47, %v5745_v8  ;;  %8173 = vmatprep.subr.bf16.mxu1 %v18707_v45  ;;  %v18728_v47 = vld [vmem:[#allocation8 + $0x1304] ss:$8 sps:$4 sm:$0xff]   ;;  %v18731_v45 = vld [vmem:[#allocation8 + $0x12f4] ss:$8 sps:$4 sm:$0xff]   ;;  %v18729_v8 = vld [vmem:[#allocation8 + $0x12f0] ss:$8 sps:$4 sm:$0xff]  }
 0x5bc   :  { %v5747_v59 = vpop.f32.mrf.mxu0  ;;  %v5814_v62 = vpop.f32.mrf.mxu1 }
 0x5bd   :  { %v21216_v4 = vadd.f32 %v5808_v42, %v5747_v59  ;;  %8233 = vmatpush1.bf16.msra.mxu0 %v18702_v40  ;;  %7776 = vmatmul.mubr.bf16.gmra.mxu1 %v7411_v18  ;;  %v7880_v42 = vrot.slane %v7878_v38, 2  ;;  %v7883_v40 = vrot.slane %v7881_v2, 3  ;;  %v18732_v59 = vld [vmem:[#allocation8 + $0x13f0] ss:$8 sps:$4 sm:$0xff]   ;;  %v18756_v2 = vld [vmem:[#allocation8 + $0x12b4] ss:$8 sps:$4 sm:$0xff]  }
 0x5be   :  { %v21220_v11 = vpop.f32.mrf.mxu0  ;;  %8174 = vmatpush1.bf16.msra.mxu1 %v18705_v7  ;;  %8197 = vmatprep.mubr.bf16.mxu1 %v7876_v34  ;;  %v5816_v12 = vpop.f32.mrf.mxu1  ;;  %v18734_v7 = vld [vmem:[#allocation8 + $0x13f4] ss:$8 sps:$4 sm:$0xff]   ;;  %v18740_v34 = vld [vmem:[#allocation8 + $0x13e4] ss:$8 sps:$4 sm:$0xff]  }
 0x5bf   :  { %8234 = vmatprep.subr.bf16.mxu0 %v18710_v46  ;;  %8175 = vmatprep.subr.bf16.mxu1 %v18713_v23  ;;  %v7884_v23 = vor.u32 %v7883_v40, %v7880_v42  ;;  %v7794_v42 = vld [vmem:[#allocation2 + $0x3c] sm:$0x77] }
 0x5c0   :  { %7715 = vmatmul.mubr.bf16.gmra.mxu0 %v7407_v5  ;;  %v5753_v6 = vpop.f32.mrf.mxu0  ;;  %v5818_v18 = vpop.f32.mrf.mxu1  ;;  %v7795_v5 = vld [vmem:[#allocation2 + $0x44] sm:$0x7] }
 0x5c1   :  { %v21222_v0 = vadd.f32 %v5814_v62, %v5753_v6  ;;  %8235 = vmatpush1.bf16.msra.mxu0 %v18708_v60  ;;  %8258 = vmatprep.mubr.bf16.mxu0 %v22632_v9  ;;  %v21229_v49 = vcombine.low %v19910_v35, %v7795_v5  ;;  %v18735_v62 = vld [vmem:[#allocation8 + $0x12e0] ss:$8 sps:$4 sm:$0xff]   ;;  %v7888_v60 = vsel %vm1201_vm8, %v7884_v23, %v21053_v19  ;;  %v18754_v35 = vld [vmem:[#allocation8 + $0x12b0] ss:$8 sps:$4 sm:$0xff]   ;;  %v18763_v40 = vld [vmem:[#allocation8 + $0x12a4] ss:$8 sps:$4 sm:$0xff]  }
 0x5c2   :  { %v5755_v30 = vpop.f32.mrf.mxu0  ;;  %8176 = vmatpush1.bf16.msra.mxu1 %v18711_v63  ;;  %8236 = vmatprep.subr.bf16.mxu0 %v18716_v27  ;;  %v5819_v52 = vpop.f32.mrf.mxu1  ;;  %v18743_v63 = vld [vmem:[#allocation8 + $0x12d4] ss:$8 sps:$4 sm:$0xff]   ;;  %v18738_v6 = vld [vmem:[#allocation8 + $0x13e0] ss:$8 sps:$4 sm:$0xff]  }
 0x5c3   :  { %v21225_v21 = vadd.f32 %v5816_v12, %v5755_v30  ;;  %8177 = vmatprep.subr.bf16.mxu1 %v18719_v33  ;;  %v7908_v29 = vshrl.u32 %v21229_v49, 16  ;;  %v7911_v46 = vshll.u32 %v21229_v49, 16  ;;  %v18747_v30 = vld [vmem:[#allocation8 + $0x13d4] ss:$8 sps:$4 sm:$0xff]   ;;  %v18748_v5 = vld [vmem:[#allocation8 + $0x12c0] ss:$8 sps:$4 sm:$0xff]  }
 0x5c4   :  { %v5757_v36 = vpop.f32.mrf.mxu0 }
 0x5c5   :  { %8237 = vmatpush1.bf16.msra.mxu0 %v18714_v50  ;;  %v7910_v27 = vrot.slane %v7908_v29, 2  ;;  %v7913_v12 = vrot.slane %v7911_v46, 3  ;;  %v18741_v50 = vld [vmem:[#allocation8 + $0x12d0] ss:$8 sps:$4 sm:$0xff]  }
 0x5c6   :  { %v5758_v22 = vpop.f32.mrf.mxu0  ;;  %8178 = vmatpush1.bf16.msra.mxu1 %v18717_v39  ;;  %8238 = vmatprep.subr.bf16.mxu0 %v18722_v56  ;;  %v18750_v56 = vld [vmem:[#allocation8 + $0x12c4] ss:$8 sps:$4 sm:$0xff]   ;;  %v18757_v29 = vld [vmem:[#allocation8 + $0x13b0] ss:$8 sps:$4 sm:$0xff]  }
 0x5c7   :  { %8179 = vmatprep.subr.bf16.mxu1 %v18725_v48  ;;  %v7914_v39 = vor.u32 %v7913_v12, %v7910_v27  ;;  %v18745_v48 = vld [vmem:[#allocation8 + $0x13d0] ss:$8 sps:$4 sm:$0xff]  }
 0x5c8   :  { %v19912_v46 = vld [vmem:[#allocation2 + $0x30] sm:$0xff] }
 0x5c9   :  { %8239 = vmatpush1.bf16.msra.mxu0 %v18720_v58  ;;  %v18753_v58 = vld [vmem:[#allocation8 + $0x13c4] ss:$8 sps:$4 sm:$0xff]   ;;  %v7915_v38 = vsel %vm1201_vm8, %v21053_v19, %v7914_v39  ;;  %v21260_v23 = vcombine.high %v19912_v46, %v7794_v42 }
 0x5ca   :  { %8180 = vmatpush1.bf16.msra.mxu1 %v18723_v51  ;;  %8240 = vmatprep.subr.bf16.mxu0 %v18728_v47  ;;  %v18751_v51 = vld [vmem:[#allocation8 + $0x13c0] ss:$8 sps:$4 sm:$0xff]  }
 0x5cb   :  { %8181 = vmatprep.subr.bf16.mxu1 %v18731_v45  ;;  %v21249_v47 = vld [vmem:[#allocation2] sm:$0x88] }
 0x5cc   :  { %v16760_v19 = vcombine.high %v21249_v47, %v21175_v61 }
 0x5cd   :  { %8241 = vmatpush1.bf16.msra.mxu0 %v18726_v17  ;;  %v18759_v17 = vld [vmem:[#allocation8 + $0x13b4] ss:$8 sps:$4 sm:$0xff]  }
 0x5ce   :  { %8182 = vmatpush2.bf16.msra.mxu1 %v18729_v8  ;;  %8620 = vmatprep.subr.bf16.mxu0 %v18734_v7  ;;  %v21257_v7 = vld [vmem:[#allocation2 + $0x1c] ss:$12 sps:$4 sm:$0xff]  }
 0x5cf   :  { %8183 = vmatprep.subr.bf16.mxu1 %v18737_v57  ;;  %v22602_v57 = vrot.slane %v21257_v7, 3 }
 0x5d0   :  { %v21235_v33 = vpop.f32.mrf.mxu0  ;;  %8259 = vmatmul.mubr.bf16.vlgmr.msra.gmra.mxu0 %v7888_v60  ;;  %v18766_v60 = vld [vmem:[#allocation8 + $0x13a4] ss:$8 sps:$4 sm:$0xff]  }
 0x5d1   :  { %8621 = vmatpush1.bf16.msra.mxu0 %v18732_v59  ;;  %8268 = vmatprep.mubr.bf16.mxu0 %v22632_v9 }
 0x5d2   :  { %v21238_v18 = vpop.f32.mrf.mxu0  ;;  %8184 = vmatpush2.bf16.msra.mxu1 %v18735_v62  ;;  %8622 = vmatprep.subr.bf16.mxu0 %v18740_v34  ;;  %v8359_v62 = vrot.slane %v16760_v19, 3  ;;  %v18761_v34 = vld [vmem:[#allocation8 + $0x12a0] ss:$8 sps:$4 sm:$0xff]  }
 0x5d3   :  { %8185 = vmatprep.subr.bf16.mxu1 %v18743_v63  ;;  %v18769_v63 = vld [vmem:[#allocation8 + $0x1294] ss:$8 sps:$4 sm:$0xff]  }
 0x5d4   :  { %v21240_v52 = vpop.f32.mrf.mxu0  ;;  %v8361_v12 = vsel %vm22671_vm13, %v8359_v62, %v22602_v57  ;;  %v18778_v62 = vld [vmem:[#allocation8 + $0x1384] ss:$8 sps:$4 sm:$0xff]   ;;  %v18781_v57 = vld [vmem:[#allocation8 + $0x14f4] ss:$8 sps:$4 sm:$0xff]   ;;  %vm22679_vm13 = vmmov %vm22674_vm0 }
 0x5d5   :  { %8623 = vmatpush1.bf16.msra.mxu0 %v18738_v6  ;;  %v18764_v6 = vld [vmem:[#allocation8 + $0x13a0] ss:$8 sps:$4 sm:$0xff]  }
 0x5d6   :  { %v21242_v36 = vpop.f32.mrf.mxu0  ;;  %8186 = vmatpush2.bf16.msra.mxu1 %v18741_v50  ;;  %8624 = vmatprep.subr.bf16.mxu0 %v18747_v30  ;;  %v7899_v50 = vshrl.u32 %v21260_v23, 16  ;;  %v7902_v30 = vshll.u32 %v21260_v23, 16 }
 0x5d7   :  { %8187 = vmatprep.subr.bf16.mxu1 %v18750_v56 }
 0x5d8   :  { %v21246_v22 = vpop.f32.mrf.mxu0  ;;  %8269 = vmatmul.mubr.bf16.gmra.mxu0 %v7915_v38  ;;  %v18775_v38 = vld [vmem:[#allocation8 + $0x1284] ss:$8 sps:$4 sm:$0xff]   ;;  %v7904_v19 = vrot.slane %v7902_v30, 3 }
 0x5d9   :  { %8625 = vmatpush1.bf16.msra.mxu0 %v18745_v48  ;;  %8278 = vmatprep.mubr.bf16.mxu0 %v22632_v9  ;;  %v18767_v48 = vld [vmem:[#allocation8 + $0x1290] ss:$8 sps:$4 sm:$0xff]  }
 0x5da   :  { %v21251_v45 = vpop.f32.mrf.mxu0  ;;  %8188 = vmatpush2.bf16.msra.mxu1 %v18748_v5  ;;  %8626 = vmatprep.subr.bf16.mxu0 %v18753_v58  ;;  %v18772_v5 = vld [vmem:[#allocation8 + $0x1394] ss:$8 sps:$4 sm:$0xff]   ;;  %v7854_v58 = vshrl.u32 %v21179_v26, 16 }
 0x5db   :  { %8189 = vmatprep.subr.bf16.mxu1 %v18756_v2 }
 0x5dc   :  { %v21255_v8 = vpop.f32.mrf.mxu0 }
 0x5dd   :  { %8627 = vmatpush1.bf16.msra.mxu0 %v18751_v51  ;;  %v21275_v51 = vcombine.low %v19912_v46, %v7794_v42  ;;  %v18776_v42 = vld [vmem:[#allocation8 + $0x1380] ss:$8 sps:$4 sm:$0xff]  }
 0x5de   :  { %v21262_v59 = vpop.f32.mrf.mxu0  ;;  %8190 = vmatpush2.bf16.msra.mxu1 %v18754_v35  ;;  %8628 = vmatprep.subr.bf16.mxu0 %v18759_v17  ;;  %v18770_v35 = vld [vmem:[#allocation8 + $0x1390] ss:$8 sps:$4 sm:$0xff]   ;;  %v7901_v17 = vrot.slane %v7899_v50, 2 }
 0x5df   :  { %8191 = vmatprep.subr.bf16.mxu1 %v18763_v40 }
 0x5e0   :  { %v21264_v27 = vpop.f32.mrf.mxu0  ;;  %8279 = vmatmul.mubr.bf16.gmra.mxu0 %v7914_v39  ;;  %v7857_v39 = vshll.u32 %v21179_v26, 16  ;;  %v7890_v26 = vshrl.u32 %v21275_v51, 16  ;;  %v7905_v46 = vor.u32 %v7904_v19, %v7901_v17 }
 0x5e1   :  { %8629 = vmatpush1.bf16.msra.mxu0 %v18757_v29  ;;  %8652 = vmatprep.mubr.bf16.mxu0 %v8361_v12  ;;  %v18773_v29 = vld [vmem:[#allocation8 + $0x1280] ss:$8 sps:$4 sm:$0xff]  }
 0x5e2   :  { %v21271_v56 = vpop.f32.mrf.mxu0  ;;  %8192 = vmatpush2.bf16.msra.mxu1 %v18761_v34  ;;  %8630 = vmatprep.subr.bf16.mxu0 %v18766_v60  ;;  %v7856_v34 = vrot.slane %v7854_v58, 2  ;;  %v7859_v60 = vrot.slane %v7857_v39, 3  ;;  %v5345_v12 = vld [vmem:[#allocation9 + $0x2] ss:$8 sm:$0x3]  ;;  %v7906_v19 = vsel %vm1201_vm8, %v21051_v14, %v7905_v46 }
 0x5e3   :  { %8193 = vmatprep.subr.bf16.mxu1 %v18769_v63  ;;  %v7893_v63 = vshll.u32 %v21275_v51, 16  ;;  %v18788_v58 = vld [vmem:[#allocation8 + $0x14e4] ss:$8 sps:$4 sm:$0xff]  }
 0x5e4   :  { %v6368_v2 = vpop.f32.mrf.mxu0  ;;  %v7860_v30 = vor.u32 %v7859_v60, %v7856_v34  ;;  %v22673_v39 = vld [vmem:[#allocation17_spill] sm:$0xff] }
 0x5e5   :  { %8631 = vmatpush1.bf16.msra.mxu0 %v18764_v6  ;;  %v22672_v6 = vld [vmem:[#allocation16_spill] sm:$0xff] }
 0x5e6   :  { %v6369_v40 = vpop.f32.mrf.mxu0  ;;  %8194 = vmatpush2.bf16.msra.mxu1 %v18767_v48  ;;  %8632 = vmatprep.subr.bf16.mxu0 %v18772_v5  ;;  %v21280_v50 = vrot.slane %v5345_v12, %v22672_v6  ;;  %v18779_v48 = vld [vmem:[#allocation8 + $0x14f0] ss:$8 sps:$4 sm:$0xff]   ;;  %v18785_v5 = vld [vmem:[#allocation8 + $0x1474] ss:$8 sps:$4 sm:$0xff]   ;;  %v7864_v2 = vsel %vm1201_vm8, %v7860_v30, %v21065_v25  ;;  %v18786_v34 = vld [vmem:[#allocation8 + $0x14e0] ss:$8 sps:$4 sm:$0xff]  }
 0x5e7   :  { %8195 = vmatprep.subr.bf16.mxu1 %v18775_v38  ;;  %v21283_v38 = vrot.slane %v5345_v12, %v22673_v39  ;;  %v7892_v40 = vrot.slane %v7890_v26, 2  ;;  %v18791_v60 = vld [vmem:[#allocation8 + $0x1464] ss:$8 sps:$4 sm:$0xff]   ;;  %v18795_v26 = vld [vmem:[#allocation8 + $0x14d4] ss:$8 sps:$4 sm:$0xff]  }
 0x5e9   :  { %8633 = vmatpush1.bf16.msra.mxu0 %v18770_v35  ;;  %v7895_v35 = vrot.slane %v7893_v63, 3  ;;  %v5822_v63 = vadd.f32 %v21196_v1, %v21283_v38  ;;  %v18798_v1 = vld [vmem:[#allocation8 + $0x1454] ss:$8 sps:$4 sm:$0xff]  }
 0x5ea   :  { %8196 = vmatpush2.bf16.msra.mxu1 %v18773_v29  ;;  %8634 = vmatprep.subr.bf16.mxu0 %v18778_v62  ;;  %v18783_v29 = vld [vmem:[#allocation8 + $0x1470] ss:$8 sps:$4 sm:$0xff]  }
 0x5eb   :  { %8681 = vmatprep.subr.bf16.mxu1 %v18781_v57  ;;  %v5821_v57 = vadd.f32 %v21194_v31, %v21280_v50  ;;  %v7896_v30 = vor.u32 %v7895_v35, %v7892_v40 }
 0x5ed   :  { %8635 = vmatpush1.bf16.msra.mxu0 %v18776_v42  ;;  %v6283_v17 = vpop.f32.mrf.mxu1  ;;  %8198 = vmatmul.mubr.bf16.vlgmr.msra.gmra.mxu1 %v7864_v2  ;;  %v18789_v2 = vld [vmem:[#allocation8 + $0x1460] ss:$8 sps:$4 sm:$0xff]   ;;  %v7897_v40 = vsel %vm1201_vm8, %v21065_v25, %v7896_v30  ;;  %v5826_v25 = vadd.f32 %v21212_v24, %v21283_v38  ;;  %v18813_v24 = vld [vmem:[#allocation8 + $0x14a4] ss:$8 sps:$4 sm:$0xff]  }
 0x5ee   :  { %v6345_v62 = vadd.f32 %v21235_v33, %v6283_v17  ;;  %8207 = vmatprep.mubr.bf16.mxu1 %v7906_v19  ;;  %8682 = vmatpush1.bf16.msra.mxu1 %v18779_v48  ;;  %v5823_v33 = vadd.f32 %v21204_v44, %v21280_v50  ;;  %v18801_v19 = vld [vmem:[#allocation8 + $0x14c4] ss:$8 sps:$4 sm:$0xff]   ;;  %v18796_v44 = vld [vmem:[#allocation8 + $0x1450] ss:$8 sps:$4 sm:$0xff]  }
 0x5ef   :  { %v6285_v12 = vpop.f32.mrf.mxu1  ;;  %8636 = vmatprep.subr.bf16.mxu0 %v18785_v5  ;;  %8683 = vmatprep.subr.bf16.mxu1 %v18788_v58  ;;  %v18793_v58 = vld [vmem:[#allocation8 + $0x14d0] ss:$8 sps:$4 sm:$0xff]  }
 0x5f0   :  { %v21294_v42 = vadd.f32 %v6345_v62, %v5821_v57  ;;  %v6347_v14 = vadd.f32 %v21238_v18, %v6285_v12  ;;  %v18799_v57 = vld [vmem:[#allocation8 + $0x14c0] ss:$8 sps:$4 sm:$0xff]   ;;  %v18804_v62 = vld [vmem:[#allocation8 + $0x1444] ss:$8 sps:$4 sm:$0xff]  }
 0x5f1   :  { %8637 = vmatpush2.bf16.msra.mxu0 %v18783_v29  ;;  %v6287_v31 = vpop.f32.mrf.mxu1 }
 0x5f2   :  { %v21299_v48 = vadd.f32 %v6347_v14, %v5822_v63  ;;  %v6349_v5 = vadd.f32 %v21240_v52, %v6287_v31  ;;  %8684 = vmatpush1.bf16.msra.mxu1 %v18786_v34  ;;  %8638 = vmatprep.subr.bf16.mxu0 %v18791_v60  ;;  %v5825_v52 = vadd.f32 %v21210_v10, %v21280_v50  ;;  %v18807_v60 = vld [vmem:[#allocation8 + $0x14b4] ss:$8 sps:$4 sm:$0xff]   ;;  %v18802_v10 = vld [vmem:[#allocation8 + $0x1440] ss:$8 sps:$4 sm:$0xff]   ;;  %v18805_v31 = vld [vmem:[#allocation8 + $0x14b0] ss:$8 sps:$4 sm:$0xff]  }
 0x5f3   :  { %v21302_v17 = vpop.f32.mrf.mxu1  ;;  %8685 = vmatprep.subr.bf16.mxu1 %v18795_v26 }
 0x5f4   :  { %v21304_v18 = vadd.f32 %v6349_v5, %v5823_v33 }
 0x5f5   :  { %8639 = vmatpush2.bf16.msra.mxu0 %v18789_v2  ;;  %v6293_v35 = vpop.f32.mrf.mxu1  ;;  %8208 = vmatmul.mubr.bf16.gmra.mxu1 %v7897_v40  ;;  %v18810_v2 = vld [vmem:[#allocation8 + $0x1434] ss:$8 sps:$4 sm:$0xff]  }
 0x5f6   :  { %v6355_v29 = vadd.f32 %v21246_v22, %v6293_v35  ;;  %8217 = vmatprep.mubr.bf16.mxu1 %v7905_v46  ;;  %8686 = vmatpush1.bf16.msra.mxu1 %v18793_v58  ;;  %v5827_v22 = vadd.f32 %v21216_v4, %v21280_v50  ;;  %v18808_v58 = vld [vmem:[#allocation8 + $0x1430] ss:$8 sps:$4 sm:$0xff]   ;;  %v5829_v4 = vadd.f32 %v21222_v0, %v21280_v50  ;;  %v18819_v35 = vld [vmem:[#allocation8 + $0x1494] ss:$8 sps:$4 sm:$0xff]   ;;  %v18814_v50 = vld [vmem:[#allocation8 + $0x1420] ss:$8 sps:$4 sm:$0xff]  }
 0x5f7   :  { %v6295_v34 = vpop.f32.mrf.mxu1  ;;  %8640 = vmatprep.subr.bf16.mxu0 %v18798_v1  ;;  %8687 = vmatprep.subr.bf16.mxu1 %v18801_v19  ;;  %v18816_v19 = vld [vmem:[#allocation8 + $0x1424] ss:$8 sps:$4 sm:$0xff]  }
 0x5f8   :  { %v21313_v12 = vadd.f32 %v6355_v29, %v5825_v52  ;;  %v6357_v26 = vadd.f32 %v21251_v45, %v6295_v34  ;;  %v18817_v29 = vld [vmem:[#allocation8 + $0x1490] ss:$8 sps:$4 sm:$0xff]   ;;  %v18825_v34 = vld [vmem:[#allocation8 + $0x1484] ss:$8 sps:$4 sm:$0xff]  }
 0x5f9   :  { %8641 = vmatpush2.bf16.msra.mxu0 %v18796_v44  ;;  %v6297_v63 = vpop.f32.mrf.mxu1  ;;  %v5830_v44 = vadd.f32 %v21225_v21, %v21283_v38  ;;  %v18823_v21 = vld [vmem:[#allocation8 + $0x1480] ss:$8 sps:$4 sm:$0xff]  }
 0x5fa   :  { %v21318_v46 = vadd.f32 %v6357_v26, %v5826_v25  ;;  %v6359_v14 = vadd.f32 %v21255_v8, %v6297_v63  ;;  %8688 = vmatpush1.bf16.msra.mxu1 %v18799_v57  ;;  %8642 = vmatprep.subr.bf16.mxu0 %v18804_v62  ;;  %v18811_v8 = vld [vmem:[#allocation8 + $0x14a0] ss:$8 sps:$4 sm:$0xff]   ;;  %v18822_v57 = vld [vmem:[#allocation8 + $0x1414] ss:$8 sps:$4 sm:$0xff]   ;;  %v8298_v25 = vld [vmem:[#allocation2 + $0x8] sm:$0x8] }
 0x5fb   :  { %v21321_v33 = vpop.f32.mrf.mxu1  ;;  %8689 = vmatprep.subr.bf16.mxu1 %v18807_v60  ;;  %v18820_v60 = vld [vmem:[#allocation8 + $0x1410] ss:$8 sps:$4 sm:$0xff]   ;;  %v18828_v26 = vld [vmem:[#allocation8 + $0x1404] ss:$8 sps:$4 sm:$0xff]  }
 0x5fc   :  { %v21323_v5 = vadd.f32 %v6359_v14, %v5827_v22  ;;  %v18826_v22 = vld [vmem:[#allocation8 + $0x1400] ss:$8 sps:$4 sm:$0xff]   ;;  %v16759_v14 = vcombine.low %v21249_v47, %v21175_v61  ;;  %v22676_v61 = vrot.slane %v21257_v7, 3 }
 0x5fd   :  { %8643 = vmatpush2.bf16.msra.mxu0 %v18802_v10  ;;  %v6303_v45 = vpop.f32.mrf.mxu1  ;;  %8218 = vmatmul.mubr.bf16.gmra.mxu1 %v7896_v30  ;;  %v8363_v10 = vrot.slane %v21172_v53, 3 }
 0x5fe   :  { %v6365_v1 = vadd.f32 %v21264_v27, %v6303_v45  ;;  %8690 = vmatpush1.bf16.msra.mxu1 %v18805_v31  ;;  %8644 = vmatprep.subr.bf16.mxu0 %v18810_v2  ;;  %v8357_v2 = vrot.slane %v21182_v15, 3  ;;  %v8367_v45 = vrot.slane %v21260_v23, 3  ;;  %v8369_v15 = vrot.slane %v21229_v49, 3 }
 0x5ff   :  { %v6305_v40 = vpop.f32.mrf.mxu1  ;;  %8691 = vmatprep.subr.bf16.mxu1 %v18813_v24  ;;  %8713 = vmatprep.mubr.bf16.mxu1 %v22632_v9 }
 0x600   :  { %v21331_v52 = vadd.f32 %v6365_v1, %v5829_v4  ;;  %v6367_v30 = vadd.f32 %v21271_v56, %v6305_v40  ;;  %v19913_v56 = vld [vmem:[#allocation2 + $0x14] sm:$0xf]  ;;  %v8356_v4 = vrot.slane %v16759_v14, 3  ;;  %v8368_v47 = vsel %vm22677_vm15, %v22676_v61, %v8367_v45 }
 0x601   :  { %8645 = vmatpush2.bf16.msra.mxu0 %v18808_v58  ;;  %v6307_v0 = vpop.f32.mrf.mxu1  ;;  %v16761_v63 = vcombine.low %v8298_v25, %v19913_v56 }
 0x602   :  { %v21334_v27 = vadd.f32 %v6367_v30, %v5830_v44  ;;  %8692 = vmatpush1.bf16.msra.mxu1 %v18811_v8  ;;  %8646 = vmatprep.subr.bf16.mxu0 %v18816_v19  ;;  %v8358_v1 = vsel %vm22675_vm10, %v8356_v4, %v8357_v2  ;;  %v8365_v0 = vrot.slane %v21275_v51, 3 }
 0x603   :  { %v6308_v62 = vpop.f32.mrf.mxu1  ;;  %8693 = vmatprep.subr.bf16.mxu1 %v18819_v35  ;;  %v8362_v31 = vrot.slane %v16761_v63, 3 }
 0x605   :  { %8647 = vmatpush2.bf16.msra.mxu0 %v18814_v50  ;;  %v8364_v24 = vsel %vm22674_vm0, %v8362_v31, %v8363_v10 }
 0x606   :  { %8694 = vmatpush1.bf16.msra.mxu1 %v18817_v29  ;;  %8648 = vmatprep.subr.bf16.mxu0 %v18822_v57  ;;  %v8370_v29 = vsel %vm22678_vm11, %v8363_v10, %v8369_v15 }
 0x607   :  { %8695 = vmatprep.subr.bf16.mxu1 %v18825_v34 }
 0x609   :  { %8649 = vmatpush2.bf16.msra.mxu0 %v18820_v60  ;;  %v8366_v60 = vsel %vm22679_vm13, %v8357_v2, %v8365_v0 }
 0x60a   :  { %8696 = vmatpush1.bf16.msra.mxu1 %v18823_v21  ;;  %8650 = vmatprep.subr.bf16.mxu0 %v18828_v26 }
 0x60d   :  { %8651 = vmatpush2.bf16.msra.mxu0 %v18826_v22  ;;  %v6799_v58 = vpop.f32.mrf.mxu1  ;;  %8714 = vmatmul.mubr.bf16.vlgmr.msra.gmra.mxu1 %v8364_v24 }
 0x60e   :  { %8723 = vmatprep.mubr.bf16.mxu1 %v22632_v9 }
 0x60f   :  { %v6801_v53 = vpop.f32.mrf.mxu1 }
 0x610   :  { %v6738_v8 = vpop.f32.mrf.mxu0  ;;  %8653 = vmatmul.mubr.bf16.vlgmr.msra.gmra.mxu0 %v8358_v1 }
 0x611   :  { %v6800_v19 = vadd.f32 %v6799_v58, %v6738_v8  ;;  %8662 = vmatprep.mubr.bf16.mxu0 %v8368_v47  ;;  %v6803_v23 = vpop.f32.mrf.mxu1 }
 0x612   :  { %v6740_v40 = vpop.f32.mrf.mxu0 }
 0x613   :  { %v6826_v35 = vadd.f32 %v6800_v19, %v21294_v42  ;;  %v6802_v44 = vadd.f32 %v6801_v53, %v6740_v40  ;;  %v21349_v30 = vpop.f32.mrf.mxu1 }
 0x614   :  { %v6742_v50 = vpop.f32.mrf.mxu0 }
 0x615   :  { %v6827_v7 = vadd.f32 %v6802_v44, %v21299_v48  ;;  %v6804_v57 = vadd.f32 %v6803_v23, %v6742_v50  ;;  %v6809_v62 = vpop.f32.mrf.mxu1  ;;  %8724 = vmatmul.mubr.bf16.gmra.mxu1 %v8370_v29 }
 0x616   :  { %v21354_v49 = vpop.f32.mrf.mxu0  ;;  %8733 = vmatprep.mubr.bf16.mxu1 %v22632_v9 }
 0x617   :  { %v6828_v34 = vadd.f32 %v6804_v57, %v21304_v18  ;;  %v6811_v42 = vpop.f32.mrf.mxu1 }
 0x618   :  { %v6748_v25 = vpop.f32.mrf.mxu0  ;;  %8663 = vmatmul.mubr.bf16.gmra.mxu0 %v8366_v60 }
 0x619   :  { %v6810_v51 = vadd.f32 %v6809_v62, %v6748_v25  ;;  %8672 = vmatprep.mubr.bf16.mxu0 %v8367_v45  ;;  %v6813_v21 = vpop.f32.mrf.mxu1 }
 0x61a   :  { %v6750_v26 = vpop.f32.mrf.mxu0 }
 0x61b   :  { %v6830_v48 = vadd.f32 %v6810_v51, %v21313_v12  ;;  %v6812_v56 = vadd.f32 %v6811_v42, %v6750_v26  ;;  %v21360_v63 = vpop.f32.mrf.mxu1 }
 0x61c   :  { %v6752_v10 = vpop.f32.mrf.mxu0 }
 0x61d   :  { %v6831_v22 = vadd.f32 %v6812_v56, %v21318_v46  ;;  %v6814_v14 = vadd.f32 %v6813_v21, %v6752_v10  ;;  %v6819_v31 = vpop.f32.mrf.mxu1  ;;  %8734 = vmatmul.mubr.bf16.gmra.mxu1 %v8369_v15 }
 0x61e   :  { %v21363_v18 = vpop.f32.mrf.mxu0 }
 0x61f   :  { %v6832_v2 = vadd.f32 %v6814_v14, %v21323_v5  ;;  %v6821_v24 = vpop.f32.mrf.mxu1 }
 0x620   :  { %v6758_v58 = vpop.f32.mrf.mxu0  ;;  %8673 = vmatmul.mubr.bf16.gmra.mxu0 %v8365_v0 }
 0x621   :  { %v6820_v45 = vadd.f32 %v6819_v31, %v6758_v58  ;;  %v6823_v4 = vpop.f32.mrf.mxu1  ;;  %9371 = vmatprep.mubr.bf16.mxu0 %v22632_v9 }
 0x622   :  { %v6760_v12 = vpop.f32.mrf.mxu0 }
 0x623   :  { %v6834_v53 = vadd.f32 %v6820_v45, %v21331_v52  ;;  %v6822_v1 = vadd.f32 %v6821_v24, %v6760_v12  ;;  %v6824_v8 = vpop.f32.mrf.mxu1 }
 0x624   :  { %v6762_v46 = vpop.f32.mrf.mxu0 }
 0x625   :  { %v6835_v61 = vadd.f32 %v6822_v1, %v21334_v27 }
 0x626   :  { %v6763_v47 = vpop.f32.mrf.mxu0 }
 0x630   :  { %v7302_v15 = vpop.f32.mrf.mxu0 }
 0x632   :  { %v7304_v19 = vpop.f32.mrf.mxu0 }
 0x634   :  { %v7306_v23 = vpop.f32.mrf.mxu0 }
 0x636   :  { %v21369_v5 = vpop.f32.mrf.mxu0 }
 0x638   :  { %v7312_v40 = vpop.f32.mrf.mxu0 }
 0x63a   :  { %v7314_v44 = vpop.f32.mrf.mxu0 }
 0x63c   :  { %v7316_v0 = vpop.f32.mrf.mxu0 }
 0x63e   :  { %v21371_v50 = vpop.f32.mrf.mxu0 }
 0x640   :  { %v7322_v29 = vpop.f32.mrf.mxu0 }
 0x642   :  { %v7324_v57 = vpop.f32.mrf.mxu0 }
 0x644   :  { %v7326_v62 = vpop.f32.mrf.mxu0 }
 0x646   :  { %v7327_v52 = vpop.f32.mrf.mxu0 }
 0x64d   :  { %v7241_v42 = vpop.f32.mrf.mxu1 }
 0x64e   :  { %v7303_v60 = vadd.f32 %v7302_v15, %v7241_v42 }
 0x64f   :  { %v7243_v25 = vpop.f32.mrf.mxu1 }
 0x650   :  { %v7329_v51 = vadd.f32 %v7303_v60, %v6826_v35  ;;  %v7305_v27 = vadd.f32 %v7304_v19, %v7243_v25 }
 0x651   :  { %v7245_v21 = vpop.f32.mrf.mxu1 }
 0x652   :  { %v7330_v26 = vadd.f32 %v7305_v27, %v6827_v7  ;;  %v7307_v56 = vadd.f32 %v7306_v23, %v7245_v21 }
 0x653   :  { %v21373_v10 = vpop.f32.mrf.mxu1 }
 0x654   :  { %v7331_v14 = vadd.f32 %v7307_v56, %v6828_v34 }
 0x655   :  { %v7251_v31 = vpop.f32.mrf.mxu1 }
 0x656   :  { %v7313_v24 = vadd.f32 %v7312_v40, %v7251_v31  ;;  %v18831_v31 = vld [vmem:[#allocation8 + $0x1570] ss:$8 sps:$4 sm:$0xff]  }
 0x657   :  { %v7253_v58 = vpop.f32.mrf.mxu1 }
 0x658   :  { %v7333_v45 = vadd.f32 %v7313_v24, %v6830_v48  ;;  %v7315_v4 = vadd.f32 %v7314_v44, %v7253_v58  ;;  %v18833_v24 = vld [vmem:[#allocation8 + $0x1574] ss:$8 sps:$4 sm:$0xff]  }
 0x659   :  { %v7255_v12 = vpop.f32.mrf.mxu1  ;;  %9278 = vmatprep.subr.bf16.mxu1 %v18833_v24 }
 0x65a   :  { %v7334_v1 = vadd.f32 %v7315_v4, %v6831_v22  ;;  %v7317_v8 = vadd.f32 %v7316_v0, %v7255_v12  ;;  %v18836_v4 = vld [vmem:[#allocation8 + $0x1564] ss:$8 sps:$4 sm:$0xff]   ;;  %9279 = vmatpush1.bf16.msra.mxu1 %v18831_v31 }
 0x65b   :  { %v21375_v46 = vpop.f32.mrf.mxu1  ;;  %9280 = vmatprep.subr.bf16.mxu1 %v18836_v4 }
 0x65c   :  { %v7335_v47 = vadd.f32 %v7317_v8, %v6832_v2 }
 0x65d   :  { %v7261_v15 = vpop.f32.mrf.mxu1 }
 0x65e   :  { %v7323_v35 = vadd.f32 %v7322_v29, %v7261_v15  ;;  %v18834_v15 = vld [vmem:[#allocation8 + $0x1560] ss:$8 sps:$4 sm:$0xff]  }
 0x65f   :  { %v7263_v19 = vpop.f32.mrf.mxu1  ;;  %9281 = vmatpush1.bf16.msra.mxu1 %v18834_v15 }
 0x660   :  { %v7337_v62 = vadd.f32 %v7323_v35, %v6834_v53  ;;  %v7325_v7 = vadd.f32 %v7324_v57, %v7263_v19 }
 0x661   :  { %v7265_v23 = vpop.f32.mrf.mxu1 }
 0x662   :  { %v21377_v52 = vadd.f32 %v7325_v7, %v6835_v61  ;;  %v18839_v7 = vld [vmem:[#allocation8 + $0x1554] ss:$8 sps:$4 sm:$0xff]   ;;  %v18855_v23 = vld [vmem:[#allocation8 + $0x1670] ss:$8 sps:$4 sm:$0xff]  }
 0x663   :  { %v7266_v34 = vpop.f32.mrf.mxu1  ;;  %9282 = vmatprep.subr.bf16.mxu1 %v18839_v7 }
 0x664   :  { %v18857_v34 = vld [vmem:[#allocation8 + $0x1674] ss:$8 sps:$4 sm:$0xff]  }
 0x665   :  { %9339 = vmatprep.subr.bf16.mxu0 %v18857_v34  ;;  %v18848_v34 = vld [vmem:[#allocation8 + $0x1524] ss:$8 sps:$4 sm:$0xff]  }
 0x666   :  { %9340 = vmatpush1.bf16.msra.mxu0 %v18855_v23  ;;  %v18843_v23 = vld [vmem:[#allocation8 + $0x1530] ss:$8 sps:$4 sm:$0xff]  }
 0x66d   :  { %v7757_v42 = vpop.f32.mrf.mxu1 }
 0x66f   :  { %v7759_v40 = vpop.f32.mrf.mxu1 }
 0x670   :  { %v7696_v60 = vpop.f32.mrf.mxu0 }
 0x671   :  { %v7758_v48 = vadd.f32 %v7757_v42, %v7696_v60  ;;  %v7761_v44 = vpop.f32.mrf.mxu1 }
 0x672   :  { %v7698_v25 = vpop.f32.mrf.mxu0 }
 0x673   :  { %v21379_v22 = vadd.f32 %v7758_v48, %v7329_v51  ;;  %v7760_v0 = vadd.f32 %v7759_v40, %v7698_v25  ;;  %v21381_v27 = vpop.f32.mrf.mxu1  ;;  %v18863_v25 = vld [vmem:[#allocation8 + $0x1664] ss:$8 sps:$4 sm:$0xff]  }
 0x674   :  { %v7700_v2 = vpop.f32.mrf.mxu0  ;;  %9341 = vmatprep.subr.bf16.mxu0 %v18863_v25  ;;  %v18854_v25 = vld [vmem:[#allocation8 + $0x1504] ss:$8 sps:$4 sm:$0xff]  }
 0x675   :  { %v21383_v29 = vadd.f32 %v7760_v0, %v7330_v26  ;;  %v7762_v53 = vadd.f32 %v7761_v44, %v7700_v2  ;;  %v7767_v57 = vpop.f32.mrf.mxu1  ;;  %v18837_v44 = vld [vmem:[#allocation8 + $0x1550] ss:$8 sps:$4 sm:$0xff]   ;;  %v18842_v2 = vld [vmem:[#allocation8 + $0x1544] ss:$8 sps:$4 sm:$0xff]  }
 0x676   :  { %v21385_v21 = vpop.f32.mrf.mxu0  ;;  %9283 = vmatpush1.bf16.msra.mxu1 %v18837_v44  ;;  %v18849_v44 = vld [vmem:[#allocation8 + $0x1510] ss:$8 sps:$4 sm:$0xff]  }
 0x677   :  { %v21387_v61 = vadd.f32 %v7762_v53, %v7331_v14  ;;  %v7769_v56 = vpop.f32.mrf.mxu1  ;;  %v18861_v53 = vld [vmem:[#allocation8 + $0x1660] ss:$8 sps:$4 sm:$0xff]   ;;  %9284 = vmatprep.subr.bf16.mxu1 %v18842_v2 }
 0x678   :  { %v7706_v58 = vpop.f32.mrf.mxu0  ;;  %9342 = vmatpush1.bf16.msra.mxu0 %v18861_v53  ;;  %v18852_v2 = vld [vmem:[#allocation8 + $0x1500] ss:$8 sps:$4 sm:$0xff]   ;;  %v18860_v53 = vld [vmem:[#allocation8 + $0x15f4] ss:$8 sps:$4 sm:$0xff]  }
 0x679   :  { %v7768_v12 = vadd.f32 %v7767_v57, %v7706_v58  ;;  %v7771_v51 = vpop.f32.mrf.mxu1  ;;  %v18840_v58 = vld [vmem:[#allocation8 + $0x1540] ss:$8 sps:$4 sm:$0xff]  }
 0x67a   :  { %v7708_v8 = vpop.f32.mrf.mxu0  ;;  %9285 = vmatpush1.bf16.msra.mxu1 %v18840_v58 }
 0x67b   :  { %v21389_v35 = vadd.f32 %v7768_v12, %v7333_v45  ;;  %v7770_v26 = vadd.f32 %v7769_v56, %v7708_v8  ;;  %v21391_v19 = vpop.f32.mrf.mxu1  ;;  %v18869_v56 = vld [vmem:[#allocation8 + $0x1654] ss:$8 sps:$4 sm:$0xff]   ;;  %v18867_v8 = vld [vmem:[#allocation8 + $0x1650] ss:$8 sps:$4 sm:$0xff]  }
 0x67c   :  { %v7710_v14 = vpop.f32.mrf.mxu0  ;;  %9343 = vmatprep.subr.bf16.mxu0 %v18869_v56 }
 0x67d   :  { %v21393_v42 = vadd.f32 %v7770_v26, %v7334_v1  ;;  %v7772_v40 = vadd.f32 %v7771_v51, %v7710_v14  ;;  %v7777_v60 = vpop.f32.mrf.mxu1  ;;  %v18875_v26 = vld [vmem:[#allocation8 + $0x1644] ss:$8 sps:$4 sm:$0xff]   ;;  %9344 = vmatpush1.bf16.msra.mxu0 %v18867_v8 }
 0x67e   :  { %v21395_v48 = vpop.f32.mrf.mxu0  ;;  %9345 = vmatprep.subr.bf16.mxu0 %v18875_v26  ;;  %v18878_v26 = vld [vmem:[#allocation8 + $0x15c4] ss:$8 sps:$4 sm:$0xff]  }
 0x67f   :  { %v21397_v45 = vadd.f32 %v7772_v40, %v7335_v47  ;;  %v7779_v0 = vpop.f32.mrf.mxu1  ;;  %v18845_v47 = vld [vmem:[#allocation8 + $0x1534] ss:$8 sps:$4 sm:$0xff]   ;;  %v18846_v40 = vld [vmem:[#allocation8 + $0x1520] ss:$8 sps:$4 sm:$0xff]  }
 0x680   :  { %v7716_v57 = vpop.f32.mrf.mxu0  ;;  %9286 = vmatprep.subr.bf16.mxu1 %v18845_v47 }
 0x681   :  { %v7778_v1 = vadd.f32 %v7777_v60, %v7716_v57  ;;  %v7781_v31 = vpop.f32.mrf.mxu1  ;;  %9287 = vmatpush1.bf16.msra.mxu1 %v18843_v23  ;;  %v18851_v60 = vld [vmem:[#allocation8 + $0x1514] ss:$8 sps:$4 sm:$0xff]  }
 0x682   :  { %v7718_v24 = vpop.f32.mrf.mxu0  ;;  %9288 = vmatprep.subr.bf16.mxu1 %v18848_v34  ;;  %v18866_v31 = vld [vmem:[#allocation8 + $0x15e4] ss:$8 sps:$4 sm:$0xff]   ;;  %v18876_v34 = vld [vmem:[#allocation8 + $0x15c0] ss:$8 sps:$4 sm:$0xff]  }
 0x683   :  { %v21399_v4 = vadd.f32 %v7778_v1, %v7337_v62  ;;  %v7780_v12 = vadd.f32 %v7779_v0, %v7718_v24  ;;  %v7782_v51 = vpop.f32.mrf.mxu1  ;;  %v18873_v62 = vld [vmem:[#allocation8 + $0x1640] ss:$8 sps:$4 sm:$0xff]   ;;  %v18858_v1 = vld [vmem:[#allocation8 + $0x15f0] ss:$8 sps:$4 sm:$0xff]  }
 0x684   :  { %v7720_v15 = vpop.f32.mrf.mxu0  ;;  %9346 = vmatpush1.bf16.msra.mxu0 %v18873_v62  ;;  %v18872_v51 = vld [vmem:[#allocation8 + $0x15d4] ss:$8 sps:$4 sm:$0xff]  }
 0x685   :  { %v21402_v7 = vadd.f32 %v7780_v12, %v21377_v52  ;;  %9289 = vmatpush1.bf16.msra.mxu1 %v18846_v40  ;;  %v18864_v12 = vld [vmem:[#allocation8 + $0x15e0] ss:$8 sps:$4 sm:$0xff]   ;;  %v18870_v15 = vld [vmem:[#allocation8 + $0x15d0] ss:$8 sps:$4 sm:$0xff]  }
 0x686   :  { %v7721_v14 = vpop.f32.mrf.mxu0  ;;  %9290 = vmatprep.subr.bf16.mxu1 %v18851_v60 }
 0x689   :  { %9291 = vmatpush1.bf16.msra.mxu1 %v18849_v44 }
 0x68a   :  { %9292 = vmatprep.subr.bf16.mxu1 %v18854_v25 }
 0x68d   :  { %9293 = vmatpush1.bf16.msra.mxu1 %v18852_v2 }
 0x68e   :  { %9294 = vmatprep.subr.bf16.mxu1 %v18860_v53 }
 0x690   :  { %v8260_v0 = vpop.f32.mrf.mxu0 }
 0x691   :  { %9295 = vmatpush2.bf16.msra.mxu1 %v18858_v1 }
 0x692   :  { %v8262_v52 = vpop.f32.mrf.mxu0  ;;  %9296 = vmatprep.subr.bf16.mxu1 %v18866_v31 }
 0x694   :  { %v8264_v57 = vpop.f32.mrf.mxu0 }
 0x695   :  { %9297 = vmatpush2.bf16.msra.mxu1 %v18864_v12 }
 0x696   :  { %v21404_v56 = vpop.f32.mrf.mxu0  ;;  %9298 = vmatprep.subr.bf16.mxu1 %v18872_v51 }
 0x698   :  { %v8270_v24 = vpop.f32.mrf.mxu0 }
 0x699   :  { %9299 = vmatpush2.bf16.msra.mxu1 %v18870_v15 }
 0x69a   :  { %v8272_v58 = vpop.f32.mrf.mxu0  ;;  %9300 = vmatprep.subr.bf16.mxu1 %v18878_v26 }
 0x69c   :  { %v8274_v47 = vpop.f32.mrf.mxu0 }
 0x69d   :  { %9301 = vmatpush2.bf16.msra.mxu1 %v18876_v34 }
 0x69e   :  { %v21406_v8 = vpop.f32.mrf.mxu0 }
 0x6a0   :  { %v8280_v14 = vpop.f32.mrf.mxu0 }
 0x6a2   :  { %v8282_v23 = vpop.f32.mrf.mxu0 }
 0x6a4   :  { %v8284_v62 = vpop.f32.mrf.mxu0 }
 0x6a6   :  { %v8285_v40 = vpop.f32.mrf.mxu0 }
 0x6ad   :  { %v8199_v60 = vpop.f32.mrf.mxu1 }
 0x6ae   :  { %v8261_v44 = vadd.f32 %v8260_v0, %v8199_v60 }
 0x6af   :  { %v8201_v25 = vpop.f32.mrf.mxu1 }
 0x6b0   :  { %v8287_v2 = vadd.f32 %v8261_v44, %v21379_v22  ;;  %v8263_v53 = vadd.f32 %v8262_v52, %v8201_v25 }
 0x6b1   :  { %v8203_v1 = vpop.f32.mrf.mxu1 }
 0x6b2   :  { %v8288_v31 = vadd.f32 %v8263_v53, %v21383_v29  ;;  %v8265_v12 = vadd.f32 %v8264_v57, %v8203_v1  ;;  %v6361_v53 = vadd.f32 %v21262_v59, %v21321_v33  ;;  %v7319_v59 = vadd.f32 %v21371_v50, %v21375_v46 }
 0x6b3   :  { %v8205_v51 = vpop.f32.mrf.mxu1 }
 0x6b4   :  { %v8289_v39 = vadd.f32 %v8265_v12, %v21387_v61 }
 0x6b5   :  { %v8209_v6 = vpop.f32.mrf.mxu1 }
 0x6b6   :  { %v8271_v15 = vadd.f32 %v8270_v24, %v8209_v6 }
 0x6b7   :  { %v8211_v43 = vpop.f32.mrf.mxu1 }
 0x6b8   :  { %v21412_v26 = vadd.f32 %v8271_v15, %v21389_v35  ;;  %v8273_v34 = vadd.f32 %v8272_v58, %v8211_v43  ;;  %v6351_v58 = vadd.f32 %v21242_v36, %v21302_v17 }
 0x6b9   :  { %v8213_v62 = vpop.f32.mrf.mxu1 }
 0x6ba   :  { %v21415_v0 = vadd.f32 %v8273_v34, %v21393_v42  ;;  %v8275_v22 = vadd.f32 %v8274_v47, %v8213_v62  ;;  %v5801_v42 = vadd.f32 %v21198_v55, %v21206_v28  ;;  %v6806_v47 = vadd.f32 %v21349_v30, %v21354_v49 }
 0x6bb   :  { %v8215_v52 = vpop.f32.mrf.mxu1  ;;  %v7764_v55 = vadd.f32 %v21381_v27, %v21385_v21  ;;  %v8267_v49 = vadd.f32 %v21404_v56, %v8205_v51 }
 0x6bc   :  { %v21418_v40 = vadd.f32 %v8275_v22, %v21397_v45  ;;  %v5824_v45 = vadd.f32 %v5801_v42, %v21283_v38  ;;  %v8277_v46 = vadd.f32 %v21406_v8, %v8215_v52  ;;  %v18879_v8 = vld [vmem:[#allocation8 + $0x1630] ss:$8 sps:$4 sm:$0xff]  }
 0x6bd   :  { %v8219_v29 = vpop.f32.mrf.mxu1 }
 0x6be   :  { %v8281_v57 = vadd.f32 %v8280_v14, %v8219_v29 }
 0x6bf   :  { %v8221_v60 = vpop.f32.mrf.mxu1 }
 0x6c0   :  { %v21421_v61 = vadd.f32 %v8281_v57, %v21399_v4  ;;  %v8283_v6 = vadd.f32 %v8282_v23, %v8221_v60  ;;  %v6374_v4 = vadd.f32 %v6351_v58, %v5824_v45  ;;  %v7309_v23 = vadd.f32 %v21369_v5, %v21373_v10 }
 0x6c1   :  { %v8223_v24 = vpop.f32.mrf.mxu1 }
 0x6c2   :  { %v21424_v35 = vadd.f32 %v8283_v6, %v21402_v7  ;;  %v5811_v7 = vadd.f32 %v21214_v37, %v21220_v11  ;;  %v6829_v25 = vadd.f32 %v6806_v47, %v6374_v4  ;;  %v6816_v37 = vadd.f32 %v21360_v63, %v21363_v18 }
 0x6c3   :  { %v8224_v43 = vpop.f32.mrf.mxu1  ;;  %v7774_v63 = vadd.f32 %v21391_v19, %v21395_v48 }
 0x6c4   :  { %v7332_v30 = vadd.f32 %v7309_v23, %v6829_v25  ;;  %v5828_v15 = vadd.f32 %v5811_v7, %v21283_v38 }
 0x6c6   :  { %v7787_v11 = vadd.f32 %v7764_v55, %v7332_v30  ;;  %v6378_v22 = vadd.f32 %v6361_v53, %v5828_v15  ;;  %v18884_v15 = vld [vmem:[#allocation8 + $0x15b4] ss:$8 sps:$4 sm:$0xff]  }
 0x6c7   :  { %9302 = vmatprep.subr.bf16.mxu1 %v18884_v15 }
 0x6c8   :  { %v8290_v33 = vadd.f32 %v8267_v49, %v7787_v11  ;;  %v6833_v60 = vadd.f32 %v6816_v37, %v6378_v22  ;;  %v18882_v49 = vld [vmem:[#allocation8 + $0x15b0] ss:$8 sps:$4 sm:$0xff]   ;;  %v18887_v37 = vld [vmem:[#allocation8 + $0x1624] ss:$8 sps:$4 sm:$0xff]  }
 0x6c9   :  { %9303 = vmatpush2.bf16.msra.mxu1 %v18882_v49 }
 0x6ca   :  { %v7336_v50 = vadd.f32 %v7319_v59, %v6833_v60 }
 0x6cc   :  { %v7791_v19 = vadd.f32 %v7774_v63, %v7336_v50 }
 0x6cd   :  { %v8715_v14 = vpop.f32.mrf.mxu1 }
 0x6cf   :  { %v8717_v44 = vpop.f32.mrf.mxu1 }
 0x6d0   :  { %v8654_v28 = vpop.f32.mrf.mxu0 }
 0x6d1   :  { %v8716_v36 = vadd.f32 %v8715_v14, %v8654_v28  ;;  %v8719_v17 = vpop.f32.mrf.mxu1 }
 0x6d2   :  { %v8656_v1 = vpop.f32.mrf.mxu0 }
 0x6d3   :  { %v8742_v12 = vadd.f32 %v8716_v36, %v8287_v2  ;;  %v8718_v5 = vadd.f32 %v8717_v44, %v8656_v1  ;;  %v8721_v10 = vpop.f32.mrf.mxu1  ;;  %v8294_v1 = vadd.f32 %v8277_v46, %v7791_v19  ;;  %v18896_v19 = vld [vmem:[#allocation8 + $0x1594] ss:$8 sps:$4 sm:$0xff]  }
 0x6d4   :  { %v8658_v27 = vpop.f32.mrf.mxu0 }
 0x6d5   :  { %v8743_v21 = vadd.f32 %v8718_v5, %v8288_v31  ;;  %v8720_v34 = vadd.f32 %v8719_v17, %v8658_v27  ;;  %v8725_v62 = vpop.f32.mrf.mxu1  ;;  %v8762_v56 = vmul.f32 0.01, %v8742_v12  ;;  %vm8752_vm10 = vcmp.ge.f32.partialorder %v8742_v12, 0.0 }
 0x6d6   :  { %v8660_v51 = vpop.f32.mrf.mxu0 }
 0x6d7   :  { %vm8753_vm0 = vcmp.ge.f32.partialorder %v8743_v21, 0.0  ;;  %v8763_v2 = vmul.f32 0.01, %v8743_v21  ;;  %v8744_v29 = vadd.f32 %v8720_v34, %v8289_v39  ;;  %v8722_v57 = vadd.f32 %v8721_v10, %v8660_v51  ;;  %v8727_v38 = vpop.f32.mrf.mxu1 }
 0x6d8   :  { %v8664_v18 = vpop.f32.mrf.mxu0  ;;  %v8772_v14 = vsel %vm8752_vm10, %v8742_v12, %v8762_v56 }
 0x6d9   :  { %vm8754_vm15 = vcmp.ge.f32.partialorder %v8744_v29, 0.0  ;;  %v8764_v31 = vmul.f32 0.01, %v8744_v29  ;;  %v8745_v6 = vadd.f32 %v8722_v57, %v8290_v33  ;;  %v8726_v24 = vadd.f32 %v8725_v62, %v8664_v18  ;;  %v8729_v43 = vpop.f32.mrf.mxu1 }
 0x6da   :  { %v8666_v42 = vpop.f32.mrf.mxu0  ;;  %v8773_v58 = vsel %vm8753_vm0, %v8743_v21, %v8763_v2 }
 0x6db   :  { %vm8755_vm11 = vcmp.ge.f32.partialorder %v8745_v6, 0.0  ;;  %v8765_v39 = vmul.f32 0.01, %v8745_v6  ;;  %v8746_v45 = vadd.f32 %v8726_v24, %v21412_v26  ;;  %v8731_v47 = vpop.f32.mrf.mxu1  ;;  %v8774_v48 = vsel %vm8754_vm15, %v8744_v29, %v8764_v31  ;;  %v18881_v26 = vld [vmem:[#allocation8 + $0x1634] ss:$8 sps:$4 sm:$0xff]  }
 0x6dc   :  { %v8728_v4 = vadd.f32 %v8727_v38, %v8666_v42  ;;  %v8668_v23 = vpop.f32.mrf.mxu0  ;;  %v17568_v44 = vpack.c.bf16 %v8773_v58, %v8772_v14  ;;  %9347 = vmatprep.subr.bf16.mxu0 %v18881_v26  ;;  %v18890_v38 = vld [vmem:[#allocation8 + $0x15a4] ss:$8 sps:$4 sm:$0xff]   ;;  %vm22680_vm15 = vcmp.ge.s32.totalorder %v20324_v13, 22  ;;  %v18893_v42 = vld [vmem:[#allocation8 + $0x1614] ss:$8 sps:$4 sm:$0xff]  }
 0x6dd   :  { %v8775_v7 = vsel %vm8755_vm11, %v8745_v6, %v8765_v39  ;;  %vm8756_vm13 = vcmp.ge.f32.partialorder %v8746_v45, 0.0  ;;  %v8766_v25 = vmul.f32 0.01, %v8746_v45  ;;  %v8730_v55 = vadd.f32 %v8729_v43, %v8668_v23  ;;  %v8735_v28 = vpop.f32.mrf.mxu1  ;;  %9348 = vmatpush1.bf16.msra.mxu0 %v18879_v8  ;;  %vm22681_vm11 = vmmov %vm22680_vm15  ;;  %9304 = vmatprep.subr.bf16.mxu1 %v18890_v38  ;;  %v18891_v14 = vld [vmem:[#allocation8 + $0x1610] ss:$8 sps:$4 sm:$0xff]  }
 0x6de   :  { %v17569_v52 = vpack.c.bf16 %v8775_v7, %v8774_v48  ;;  %v8747_v36 = vadd.f32 %v8728_v4, %v21415_v0  ;;  %v8670_v17 = vpop.f32.mrf.mxu0  ;;  %v8820_v53 = vshrl.u32 %v17568_v44, 16  ;;  %v8823_v30 = vshll.u32 %v17568_v44, 16  ;;  %v18885_v0 = vld [vmem:[#allocation8 + $0x1620] ss:$8 sps:$4 sm:$0xff]   ;;  %9349 = vmatprep.subr.bf16.mxu0 %v18887_v37  ;;  %v18894_v44 = vld [vmem:[#allocation8 + $0x1590] ss:$8 sps:$4 sm:$0xff]  }
 0x6df   :  { %v8748_v12 = vadd.f32 %v8730_v55, %v21418_v40  ;;  %v8732_v5 = vadd.f32 %v8731_v47, %v8670_v17  ;;  %v8737_v10 = vpop.f32.mrf.mxu1  ;;  %v8776_v11 = vsel %vm8756_vm13, %v8746_v45, %v8766_v25  ;;  %v18888_v40 = vld [vmem:[#allocation8 + $0x15a0] ss:$8 sps:$4 sm:$0xff]   ;;  %v18899_v8 = vld [vmem:[#allocation8 + $0x1604] ss:$8 sps:$4 sm:$0xff]  }
 0x6e0   :  { %vm8757_vm0 = vcmp.ge.f32.partialorder %v8747_v36, 0.0  ;;  %v8767_v27 = vmul.f32 0.01, %v8747_v36  ;;  %v8674_v21 = vpop.f32.mrf.mxu0  ;;  %v8822_v34 = vrot.slane %v8820_v53, 6  ;;  %v8825_v2 = vrot.slane %v8823_v30, 7  ;;  %9305 = vmatpush2.bf16.msra.mxu1 %v18888_v40 }
 0x6e1   :  { %vm8758_vm10 = vcmp.ge.f32.partialorder %v8748_v12, 0.0  ;;  %v8768_v62 = vmul.f32 0.01, %v8748_v12  ;;  %v8749_v22 = vadd.f32 %v8732_v5, %v8294_v1  ;;  %v8736_v59 = vadd.f32 %v8735_v28, %v8674_v21  ;;  %v8739_v33 = vpop.f32.mrf.mxu1  ;;  %9350 = vmatpush1.bf16.msra.mxu0 %v18885_v0  ;;  %9306 = vmatprep.subr.bf16.mxu1 %v18896_v19  ;;  %v18897_v30 = vld [vmem:[#allocation8 + $0x1600] ss:$8 sps:$4 sm:$0xff]  }
 0x6e2   :  { %v8777_v56 = vsel %vm8757_vm0, %v8747_v36, %v8767_v27  ;;  %v8676_v51 = vpop.f32.mrf.mxu0  ;;  %v8829_v29 = vshrl.u32 %v17569_v52, 16  ;;  %v8832_v57 = vshll.u32 %v17569_v52, 16  ;;  %v8786_v60 = vsel %vm22680_vm15, %v8776_v11, 0.0  ;;  %9351 = vmatprep.subr.bf16.mxu0 %v18893_v42  ;;  %v18902_v26 = vld [vmem:[#allocation8 + $0x1584] ss:$8 sps:$4 sm:$0xff]  }
 0x6e3   :  { %v8787_v63 = vsel %vm22681_vm11, %v8777_v56, 0.0  ;;  %vm8759_vm13 = vcmp.ge.f32.partialorder %v8749_v22, 0.0  ;;  %v8769_v18 = vmul.f32 0.01, %v8749_v22  ;;  %v8740_v31 = vpop.f32.mrf.mxu1  ;;  %v8750_v24 = vadd.f32 %v8736_v59, %v21421_v61  ;;  %v18905_v11 = vld [vmem:[#allocation8 + $0x16f4] ss:$8 sps:$4 sm:$0xff]  }
 0x6e4   :  { %v17570_v6 = vpack.c.bf16 %v8787_v63, %v8786_v60  ;;  %v8738_v43 = vadd.f32 %v8737_v10, %v8676_v51  ;;  %v8826_v50 = vor.u32 %v8825_v2, %v8822_v34  ;;  %v8678_v46 = vpop.f32.mrf.mxu0  ;;  %v8778_v58 = vsel %vm8758_vm10, %v8748_v12, %v8768_v62  ;;  %9307 = vmatpush2.bf16.msra.mxu1 %v18894_v44  ;;  %v18900_v10 = vld [vmem:[#allocation8 + $0x1580] ss:$8 sps:$4 sm:$0xff]   ;;  %v18911_v62 = vld [vmem:[#allocation8 + $0x17f4] ss:$8 sps:$4 sm:$0xff]   ;;  %v18914_v44 = vld [vmem:[#allocation8 + $0x16e4] ss:$8 sps:$4 sm:$0xff]  }
 0x6e5   :  { %v8779_v39 = vsel %vm8759_vm13, %v8749_v22, %v8769_v18  ;;  %v8831_v45 = vrot.slane %v8829_v29, 6  ;;  %v8834_v47 = vrot.slane %v8832_v57, 7  ;;  %vm8760_vm0 = vcmp.ge.f32.partialorder %v8750_v24, 0.0  ;;  %9352 = vmatpush1.bf16.msra.mxu0 %v18891_v14  ;;  %9308 = vmatprep.subr.bf16.mxu1 %v18902_v26  ;;  %v8920_v26 = vld [vmem:[#allocation2 + $0x44] sm:$0x3] }
 0x6e6   :  { %v17571_v48 = vpack.c.bf16 %v8779_v39, %v8778_v58  ;;  %v8770_v4 = vmul.f32 0.01, %v8750_v24  ;;  %v8751_v23 = vadd.f32 %v8738_v43, %v21424_v35  ;;  %8868 = vrot.lane.b32.xlu0 %v8826_v50, %s20035_s25  ;;  %v8679_v61 = vpop.f32.mrf.mxu0  ;;  %v8827_v7 = vrot.slane %v8826_v50, 4  ;;  %9353 = vmatprep.subr.bf16.mxu0 %v18899_v8  ;;  %v19914_v50 = vld [vmem:[#allocation2] sm:$0xee] }
 0x6e7   :  { %v8835_v25 = vor.u32 %v8834_v47, %v8831_v45  ;;  %v8839_v55 = vshrl.u32 %v17570_v6, 16  ;;  %v8842_v28 = vshll.u32 %v17570_v6, 16  ;;  %vm22682_vm15 = vcmp.lt.s32.totalorder %v20331_v20, 38  ;;  %v8906_v6 = vld [vmem:[#allocation2 + $0x8] sm:$0xe] }
 0x6e8   :  { %v8780_v52 = vsel %vm8760_vm0, %v8750_v24, %v8770_v4  ;;  %vm8761_vm10 = vcmp.ge.f32.partialorder %v8751_v23, 0.0  ;;  %v8771_v36 = vmul.f32 0.01, %v8751_v23  ;;  %v8849_v17 = vshrl.u32 %v17571_v48, 16  ;;  %vm22683_vm11 = vmmov %vm22682_vm15  ;;  %9309 = vmatpush2.bf16.msra.mxu1 %v18900_v10  ;;  %v18903_v4 = vld [vmem:[#allocation8 + $0x16f0] ss:$8 sps:$4 sm:$0xff]  }
 0x6e9   :  { %v8836_v53 = vsel %vm20105_vm3, %v8827_v7, %v8835_v25  ;;  %v8841_v35 = vrot.slane %v8839_v55, 6  ;;  %v8844_v1 = vrot.slane %v8842_v28, 7  ;;  %v8852_v5 = vshll.u32 %v17571_v48, 16  ;;  %9354 = vmatpush1.bf16.msra.mxu0 %v18897_v30  ;;  %9889 = vmatprep.subr.bf16.mxu1 %v18911_v62  ;;  %v8917_v30 = vld [vmem:[#allocation2 + $0x3c] sm:$0x33] }
 0x6ea   :  { %v8781_v49 = vsel %vm8761_vm10, %v8751_v23, %v8771_v36  ;;  %8870 = vrot.lane.b32.xlu1 %v8836_v53, %s20035_s25  ;;  %v8851_v12 = vrot.slane %v8849_v17, 6  ;;  %v8790_v15 = vsel %vm22682_vm15, %v8780_v52, 0.0  ;;  %v8837_v21 = vrot.slane %v8835_v25, 4  ;;  %9828 = vmatprep.subr.bf16.mxu0 %v18905_v11  ;;  %v18909_v52 = vld [vmem:[#allocation8 + $0x17f0] ss:$8 sps:$4 sm:$0xff]  }
 0x6eb   :  { %v8791_v37 = vsel %vm22683_vm11, %v8781_v49, 0.0  ;;  %v8845_v34 = vor.u32 %v8844_v1, %v8841_v35  ;;  %v8854_v0 = vrot.slane %v8852_v5, 7  ;;  %v18912_v53 = vld [vmem:[#allocation8 + $0x16e0] ss:$8 sps:$4 sm:$0xff]   ;;  %v18917_v35 = vld [vmem:[#allocation8 + $0x17e4] ss:$8 sps:$4 sm:$0xff]  }
 0x6ec   :  { %v17572_v27 = vpack.c.bf16 %v8791_v37, %v8790_v15  ;;  %v18920_v1 = vld [vmem:[#allocation8 + $0x16d4] ss:$8 sps:$4 sm:$0xff]   ;;  %v18915_v5 = vld [vmem:[#allocation8 + $0x17e0] ss:$8 sps:$4 sm:$0xff]   ;;  %v18918_v37 = vld [vmem:[#allocation8 + $0x16d0] ss:$8 sps:$4 sm:$0xff]  }
 0x6ed   :  { %v8846_v22 = vsel %vm20105_vm3, %v8837_v21, %v8845_v34  ;;  %v8847_v59 = vrot.slane %v8845_v34, 4  ;;  %v8855_v33 = vor.u32 %v8854_v0, %v8851_v12  ;;  %v18926_v11 = vld [vmem:[#allocation8 + $0x17d4] ss:$8 sps:$4 sm:$0xff]   ;;  %v18930_v62 = vld [vmem:[#allocation8 + $0x16c4] ss:$8 sps:$4 sm:$0xff]   ;;  %vm22688_vm15 = vcmask 1045504  }
 0x6ee   :  { %v8859_v40 = vshrl.u32 %v17572_v27, 16  ;;  %8872 = vrot.lane.b32.xlu0 %v8846_v22, %s20035_s25  ;;  %v8862_v56 = vshll.u32 %v17572_v27, 16  ;;  %vm22685_vm13 = vsmask.f32 6400 }
 0x6ef   :  { %v8856_v51 = vsel %vm20105_vm3, %v8847_v59, %v8855_v33  ;;  %v8857_v57 = vrot.slane %v8855_v33, 4  ;;  %v18924_v59 = vld [vmem:[#allocation8 + $0x17d0] ss:$8 sps:$4 sm:$0xff]   ;;  %vm22686_vm0 = vmmov %vm22685_vm13 }
 0x6f0   :  { %v8861_v2 = vrot.slane %v8859_v40, 6  ;;  %8874 = vrot.lane.b32.xlu1 %v8856_v51, %s20035_s25  ;;  %v8864_v29 = vrot.slane %v8862_v56, 7  ;;  %v18928_v56 = vld [vmem:[#allocation8 + $0x16c0] ss:$8 sps:$4 sm:$0xff]   ;;  %v18933_v51 = vld [vmem:[#allocation8 + $0x17c4] ss:$8 sps:$4 sm:$0xff]   ;;  %vm22687_vm10 = vmmov %vm22686_vm0 }
 0x6f1   :  { %vm22689_vm11 = vmmov %vm22686_vm0 }
 0x6f2   :  { %v8865_v38 = vor.u32 %v8864_v29, %v8861_v2  ;;  %v18937_v2 = vld [vmem:[#allocation8 + $0x16b4] ss:$8 sps:$4 sm:$0xff]  }
 0x6f4   :  { %v8866_v60 = vsel %vm20105_vm3, %v8857_v57, %v8865_v38  ;;  %v8867_v63 = vrot.slane %v8865_v38, 4  ;;  %v18931_v38 = vld [vmem:[#allocation8 + $0x17c0] ss:$8 sps:$4 sm:$0xff]  }
 0x6f5   :  { %8876 = vrot.lane.b32.xlu0 %v8866_v60, %s20035_s25 }
 0x6f6   :  { %8878 = vrot.lane.b32.xlu1 %v8867_v63, %s20035_s25 }
 0x758   :  { %v8869_v18 = vpop.permute.xlu0 %8868 }
 0x759   :  { %v8880_v31 = vrot.slane %v8869_v18, 4 }
 0x75b   :  { %v8886_v24 = vsel %vm1709_vm6, %v8880_v31, %v8869_v18  ;;  %v8907_v43 = vsel %vm20379_vm12, %v8880_v31, %v8906_v6  ;;  %v18935_v31 = vld [vmem:[#allocation8 + $0x16b0] ss:$8 sps:$4 sm:$0xff]   ;;  %v18941_v6 = vld [vmem:[#allocation8 + $0x17b4] ss:$8 sps:$4 sm:$0xff]  }
 0x75c   :  { %v8904_v46 = vsel %vm20383_vm5, %v8886_v24, %v19914_v50  ;;  %8908 = vst [vmem:[#allocation2 + $0x8] sm:$0xe] %v8907_v43  ;;  %v8871_v42 = vpop.permute.xlu1 %8870  ;;  %v18945_v50 = vld [vmem:[#allocation8 + $0x16a4] ss:$8 sps:$4 sm:$0xff]  }
 0x75d   :  { %8905 = vst [vmem:[#allocation2] sm:$0xee] %v8904_v46  ;;  %v8881_v58 = vrot.slane %v8871_v42, 4 }
 0x75f   :  { %v8887_v39 = vsel %vm1709_vm6, %v8881_v58, %v8871_v42  ;;  %8910 = vst.msk [vmem:[#allocation2 + $0x14] sm:$0xf] %vm1608_vm1, %v8881_v58  ;;  %v18939_v58 = vld [vmem:[#allocation8 + $0x17b0] ss:$8 sps:$4 sm:$0xff]  }
 0x760   :  { %8909 = vst.msk [vmem:[#allocation2 + $0xc] sm:$0xff] %vm20392_vm14, %v8887_v39  ;;  %v8873_v45 = vpop.permute.xlu0 %8872 }
 0x761   :  { %v8882_v47 = vrot.slane %v8873_v45, 4 }
 0x762   :  { %v8875_v14 = vpop.permute.xlu1 %8874 }
 0x763   :  { %v8888_v19 = vsel %vm1709_vm6, %v8882_v47, %v8873_v45  ;;  %8912 = vst.msk [vmem:[#allocation2 + $0x20] sm:$0xf] %vm1608_vm1, %v8882_v47  ;;  %v8883_v48 = vrot.slane %v8875_v14, 4  ;;  %v18943_v45 = vld [vmem:[#allocation8 + $0x16a0] ss:$8 sps:$4 sm:$0xff]  }
 0x764   :  { %8911 = vst.msk [vmem:[#allocation2 + $0x18] sm:$0xff] %vm20392_vm14, %v8888_v19  ;;  %v8936_v7 = vld [vmem:[#allocation2] sm:$0xff]  ;;  %v18951_v19 = vld [vmem:[#allocation8 + $0x1694] ss:$8 sps:$4 sm:$0xff]  }
 0x765   :  { %v8889_v23 = vsel %vm1709_vm6, %v8883_v48, %v8875_v14  ;;  %8914 = vst.msk [vmem:[#allocation2 + $0x2c] sm:$0xf] %vm1608_vm1, %v8883_v48  ;;  %v18948_v47 = vld [vmem:[#allocation8 + $0x17a4] ss:$8 sps:$4 sm:$0xff]  }
 0x766   :  { %v18906_v61 = vld [vmem:[#allocation2 + $0x8] ss:$12 sps:$4 sm:$0xff]   ;;  %8913 = vst.msk [vmem:[#allocation2 + $0x24] sm:$0xff] %vm20392_vm14, %v8889_v23 }
 0x767   :  { %v21497_v25 = vld [vmem:[#allocation2 + $0xc] sm:$0xff]  ;;  %v8877_v55 = vpop.permute.xlu0 %8876  ;;  %9372 = vmatmul.mubr.bf16.vlgmr.msra.gmra.mxu0 %v18906_v61  ;;  %v21541_v14 = vld [vmem:[#allocation2 + $0x14] sm:$0xf]  ;;  %v9411_v23 = vld [vmem:[#allocation2 + $0x8] sm:$0xf] }
 0x768   :  { %v21500_v28 = vcombine.low %v8936_v7, %v21497_v25  ;;  %v21503_v8 = vcombine.high %v8936_v7, %v21497_v25  ;;  %v8884_v36 = vrot.slane %v8877_v55, 4  ;;  %9829 = vmatpush1.bf16.msra.mxu0 %v18903_v4  ;;  %v8879_v17 = vpop.permute.xlu1 %8878  ;;  %9381 = vmatprep.mubr.bf16.mxu0 %v22632_v9  ;;  %v18946_v61 = vld [vmem:[#allocation8 + $0x17a0] ss:$8 sps:$4 sm:$0xff]   ;;  %v18949_v7 = vld [vmem:[#allocation8 + $0x1690] ss:$8 sps:$4 sm:$0xff]  }
 0x769   :  { %v8885_v49 = vrot.slane %v8879_v17, 4  ;;  %9830 = vmatprep.subr.bf16.mxu0 %v18914_v44  ;;  %v16874_v44 = vcombine.low %v9411_v23, %v21541_v14 }
 0x76a   :  { %9310 = vmatprep.mubr.bf16.mxu1 %v21503_v8  ;;  %v8890_v12 = vsel %vm1709_vm6, %v8884_v36, %v8877_v55  ;;  %8916 = vst.msk [vmem:[#allocation2 + $0x38] sm:$0xf] %vm1608_vm1, %v8884_v36  ;;  %v9525_v22 = vshll.u32 %v21503_v8, 16  ;;  %v9523_v63 = vshrl.u32 %v21503_v8, 16  ;;  %v18954_v55 = vld [vmem:[#allocation8 + $0x1794] ss:$8 sps:$4 sm:$0xff]  }
 0x76b   :  { %9311 = vmatmul.mubr.bf16.vlgmr.msra.gmra.mxu1 %v21500_v28  ;;  %8915 = vst.msk [vmem:[#allocation2 + $0x30] sm:$0xff] %vm20392_vm14, %v8890_v12  ;;  %v8891_v10 = vsel %vm1709_vm6, %v8885_v49, %v8879_v17  ;;  %v8921_v15 = vsel %vm20426_vm7, %v8885_v49, %v8920_v26  ;;  %v18957_v8 = vld [vmem:[#allocation8 + $0x1684] ss:$8 sps:$4 sm:$0xff]   ;;  %v18955_v49 = vld [vmem:[#allocation8 + $0x1680] ss:$8 sps:$4 sm:$0xff]  }
 0x76c   :  { %9890 = vmatpush1.bf16.msra.mxu1 %v18909_v52  ;;  %v8918_v21 = vsel %vm20434_vm9, %v8891_v10, %v8917_v30  ;;  %8922 = vst [vmem:[#allocation2 + $0x44] sm:$0x3] %v8921_v15  ;;  %9831 = vmatpush1.bf16.msra.mxu0 %v18912_v53  ;;  %v18921_v34 = vld [vmem:[#allocation2 + $0x20] ss:$12 sps:$4 sm:$0xff]   ;;  %v9527_v29 = vrot.slane %v9525_v22, 1  ;;  %v9537_v30 = vshll.u32 %v16874_v44, 16 }
 0x76d   :  { %9891 = vmatprep.subr.bf16.mxu1 %v18917_v35  ;;  %8919 = vst [vmem:[#allocation2 + $0x3c] sm:$0x33] %v8918_v21  ;;  %9832 = vmatprep.subr.bf16.mxu0 %v18920_v1  ;;  %v21517_v0 = vld [vmem:[#allocation2 + $0x1c] ss:$12 sps:$4 sm:$0xff]   ;;  %v21524_v40 = vld [vmem:[#allocation2 + $0x18] ss:$12 sps:$4 sm:$0xff]  }
 0x76e   :  { %v21521_v33 = vshll.u32 %v21517_v0, 16  ;;  %9320 = vmatprep.mubr.bf16.mxu1 %v21517_v0  ;;  %v9528_v43 = vor.u32 %v9527_v29, %v9523_v63  ;;  %v21534_v46 = vld [vmem:[#allocation2 + $0x20] ss:$12 sps:$4 sm:$0xff]   ;;  %v21554_v17 = vshll.u32 %v21524_v40, 16  ;;  %v21557_v53 = vshrl.u32 %v21524_v40, 16 }
 0x76f   :  { %9382 = vmatmul.mubr.bf16.gmra.mxu0 %v18921_v34  ;;  %v21544_v48 = vshll.u32 %v21534_v46, 16  ;;  %v21547_v4 = vshrl.u32 %v21534_v46, 16  ;;  %v18952_v35 = vld [vmem:[#allocation8 + $0x1790] ss:$8 sps:$4 sm:$0xff]   ;;  %v18960_v1 = vld [vmem:[#allocation8 + $0x1784] ss:$8 sps:$4 sm:$0xff]  }
 0x770   :  { %9892 = vmatpush1.bf16.msra.mxu1 %v18915_v5  ;;  %9833 = vmatpush1.bf16.msra.mxu0 %v18918_v37  ;;  %v9532_v18 = vrot.slane %v21521_v33, 1  ;;  %v18963_v12 = vld [vmem:[#allocation8 + $0x1774] ss:$8 sps:$4 sm:$0xff]   ;;  %v10482_v10 = vrot.slane %v21557_v53, 1  ;;  %v10483_v15 = vrot.slane %v21554_v17, 2 }
 0x771   :  { %9893 = vmatprep.subr.bf16.mxu1 %v18926_v11  ;;  %9834 = vmatprep.subr.bf16.mxu0 %v18930_v62  ;;  %v18938_v24 = vld [vmem:[#allocation2 + $0x38] ss:$0 sps:$4 sm:$0xff]   ;;  %v10506_v52 = vrot.slane %v21547_v4, 1  ;;  %v10507_v36 = vrot.slane %v21544_v48, 2  ;;  %v9539_v11 = vrot.slane %v9537_v30, 1  ;;  %v11464_v23 = vrot.slane %v21547_v4, 2 }
 0x772   :  { %v21527_v57 = vld [vmem:[#allocation2 + $0x30] sm:$0xff]  ;;  %9391 = vmatprep.mubr.bf16.mxu0 %v22632_v9  ;;  %v9533_v42 = vsel %vm443_vm2, %v9528_v43, %v9532_v18  ;;  %v18958_v37 = vld [vmem:[#allocation8 + $0x1780] ss:$8 sps:$4 sm:$0xff]   ;;  %v21565_v22 = vor.u32 %v10483_v15, %v10482_v10  ;;  %v18997_v15 = vld [vmem:[#allocation8 + $0x1724] ss:$8 sps:$4 sm:$0xff]  }
 0x773   :  { %9321 = vmatmul.mubr.bf16.gmra.mxu1 %v21524_v40  ;;  %v16822_v60 = vcombine.high %v21527_v57, %v21527_v57  ;;  %v16821_v39 = vcombine.low %v21527_v57, %v21527_v57  ;;  %v21559_v26 = vor.u32 %v10507_v36, %v10506_v52  ;;  %v9421_v5 = vld [vmem:[#allocation2 + $0x44] sm:$0x1]  ;;  %v18961_v21 = vld [vmem:[#allocation8 + $0x1770] ss:$8 sps:$4 sm:$0xff]   ;;  %v18968_v34 = vld [vmem:[#allocation8 + $0x1874] ss:$8 sps:$4 sm:$0xff]  }
 0x774   :  { %9894 = vmatpush1.bf16.msra.mxu1 %v18924_v59  ;;  %9835 = vmatpush1.bf16.msra.mxu0 %v18928_v56  ;;  %v21563_v62 = vld [vmem:[#allocation2 + $0x38] sm:$0xf]  ;;  %v9535_v59 = vshrl.u32 %v16874_v44, 16  ;;  %v9544_v56 = vrot.slane %v21544_v48, 1  ;;  %v18987_v52 = vld [vmem:[#allocation8 + $0x1844] ss:$8 sps:$4 sm:$0xff]  }
 0x775   :  { %9895 = vmatprep.subr.bf16.mxu1 %v18933_v51  ;;  %9330 = vmatprep.mubr.bf16.mxu1 %v16822_v60  ;;  %v18971_v51 = vld [vmem:[#allocation8 + $0x1764] ss:$8 sps:$4 sm:$0xff]   ;;  %v21572_v60 = vshrl.u32 %v21517_v0, 16  ;;  %v18969_v63 = vld [vmem:[#allocation8 + $0x1760] ss:$8 sps:$4 sm:$0xff]  }
 0x776   :  { %9836 = vmatprep.subr.bf16.mxu0 %v18937_v2  ;;  %v21569_v2 = vcombine.low %v21563_v62, %v9421_v5  ;;  %v9540_v29 = vor.u32 %v9539_v11, %v9535_v59  ;;  %v9564_v44 = vor.u32 %v21547_v4, %v9544_v56  ;;  %v18990_v30 = vld [vmem:[#allocation8 + $0x1734] ss:$8 sps:$4 sm:$0xff]   ;;  %v11440_v4 = vrot.slane %v21557_v53, 2  ;;  %v18995_v59 = vld [vmem:[#allocation8 + $0x1720] ss:$8 sps:$4 sm:$0xff]  }
 0x777   :  { %9392 = vmatmul.mubr.bf16.gmra.mxu0 %v18938_v24  ;;  %v18977_v24 = vld [vmem:[#allocation8 + $0x1754] ss:$8 sps:$4 sm:$0xff]  }
 0x778   :  { %9896 = vmatpush1.bf16.msra.mxu1 %v18931_v38  ;;  %9837 = vmatpush1.bf16.msra.mxu0 %v18935_v31  ;;  %v18966_v38 = vld [vmem:[#allocation8 + $0x1870] ss:$8 sps:$4 sm:$0xff]   ;;  %v18974_v31 = vld [vmem:[#allocation8 + $0x1864] ss:$8 sps:$4 sm:$0xff]   ;;  %v9566_v43 = vshll.u32 %v21569_v2, 16  ;;  %v9576_v11 = vshrl.u32 %v21569_v2, 16 }
 0x779   :  { %9860 = vmatprep.mubr.bf16.mxu0 %v9533_v42  ;;  %9897 = vmatprep.subr.bf16.mxu1 %v18941_v6  ;;  %v9545_v6 = vsel %vm443_vm2, %v9540_v29, %v9544_v56  ;;  %v11452_v42 = vrot.slane %v21572_v60, 2  ;;  %v18993_v5 = vld [vmem:[#allocation8 + $0x1834] ss:$8 sps:$4 sm:$0xff]   ;;  %v19000_v29 = vld [vmem:[#allocation8 + $0x1824] ss:$8 sps:$4 sm:$0xff]  }
 0x77a   :  { %9838 = vmatprep.subr.bf16.mxu0 %v18945_v50  ;;  %v18972_v50 = vld [vmem:[#allocation8 + $0x1860] ss:$8 sps:$4 sm:$0xff]  }
 0x77b   :  { %9331 = vmatmul.mubr.bf16.gmra.mxu1 %v16821_v39  ;;  %v18981_v39 = vld [vmem:[#allocation8 + $0x1854] ss:$8 sps:$4 sm:$0xff]  }
 0x77c   :  { %9898 = vmatpush1.bf16.msra.mxu1 %v18939_v58  ;;  %9921 = vmatprep.mubr.bf16.mxu1 %v22632_v9  ;;  %v18975_v58 = vld [vmem:[#allocation8 + $0x1750] ss:$8 sps:$4 sm:$0xff]  }
 0x77d   :  { %9839 = vmatpush1.bf16.msra.mxu0 %v18943_v45  ;;  %9899 = vmatprep.subr.bf16.mxu1 %v18948_v47  ;;  %v9568_v45 = vrot.slane %v9566_v43, 1  ;;  %v18984_v47 = vld [vmem:[#allocation8 + $0x1744] ss:$8 sps:$4 sm:$0xff]   ;;  %v19001_v43 = vld [vmem:[#allocation8 + $0x1710] ss:$8 sps:$4 sm:$0xff]  }
 0x77e   :  { %9840 = vmatprep.subr.bf16.mxu0 %v18951_v19  ;;  %v11453_v19 = vrot.slane %v21521_v33, 3 }
 0x77f   :  { %v9578_v56 = vor.u32 %v9576_v11, %v9568_v45  ;;  %v19020_v11 = vld [vmem:[#allocation8 + $0x1960] ss:$8 sps:$4 sm:$0xff]  }
 0x780   :  { %9900 = vmatpush1.bf16.msra.mxu1 %v18946_v61  ;;  %v11465_v61 = vrot.slane %v21544_v48, 3  ;;  %v21588_v48 = vld [vmem:[#allocation2] sm:$0xee] }
 0x781   :  { %9841 = vmatpush1.bf16.msra.mxu0 %v18949_v7  ;;  %9901 = vmatprep.subr.bf16.mxu1 %v18954_v55  ;;  %v18979_v7 = vld [vmem:[#allocation8 + $0x1850] ss:$8 sps:$4 sm:$0xff]   ;;  %v21582_v55 = vor.u32 %v11453_v19, %v11452_v42  ;;  %v21594_v10 = vcombine.high %v21588_v48, %v21497_v25  ;;  %v9513_v42 = vshll.u32 %v21500_v28, 16  ;;  %v19012_v19 = vld [vmem:[#allocation8 + $0x1804] ss:$8 sps:$4 sm:$0xff]  }
 0x782   :  { %9842 = vmatprep.subr.bf16.mxu0 %v18957_v8  ;;  %v18982_v8 = vld [vmem:[#allocation8 + $0x1740] ss:$8 sps:$4 sm:$0xff]   ;;  %v21584_v36 = vor.u32 %v11465_v61, %v11464_v23  ;;  %v19015_v61 = vld [vmem:[#allocation8 + $0x1974] ss:$8 sps:$4 sm:$0xff]  }
 0x783   :  { %v9515_v23 = vrot.slane %v9513_v42, 1  ;;  %v19033_v42 = vld [vmem:[#allocation8 + $0x1940] ss:$8 sps:$4 sm:$0xff]  }
 0x784   :  { %9902 = vmatpush1.bf16.msra.mxu1 %v18952_v35  ;;  %v9569_v35 = vsel %vm443_vm2, %v9564_v44, %v9568_v45  ;;  %v9511_v44 = vshrl.u32 %v21500_v28, 16 }
 0x785   :  { %9843 = vmatpush1.bf16.msra.mxu0 %v18955_v49  ;;  %9903 = vmatprep.subr.bf16.mxu1 %v18960_v1  ;;  %v18985_v49 = vld [vmem:[#allocation8 + $0x1840] ss:$8 sps:$4 sm:$0xff]   ;;  %v11441_v1 = vrot.slane %v21554_v17, 3 }
 0x786   :  { %9844 = vmatprep.subr.bf16.mxu0 %v18963_v12  ;;  %v18988_v12 = vld [vmem:[#allocation8 + $0x1730] ss:$8 sps:$4 sm:$0xff]  }
 0x788   :  { %9904 = vmatpush1.bf16.msra.mxu1 %v18958_v37  ;;  %v21596_v37 = vor.u32 %v11441_v1, %v11440_v4  ;;  %v9556_v4 = vor.u32 %v21572_v60, %v9532_v18  ;;  %v19019_v1 = vld [vmem:[#allocation8 + $0x18f4] ss:$8 sps:$4 sm:$0xff]   ;;  %v19023_v18 = vld [vmem:[#allocation8 + $0x18e0] ss:$8 sps:$4 sm:$0xff]  }
 0x789   :  { %9845 = vmatpush2.bf16.msra.mxu0 %v18961_v21  ;;  %10283 = vmatprep.subr.bf16.mxu1 %v18968_v34  ;;  %v10023_v21 = vrot.slane %v21517_v0, 1  ;;  %v18991_v34 = vld [vmem:[#allocation8 + $0x1830] ss:$8 sps:$4 sm:$0xff]  }
 0x78a   :  { %9846 = vmatprep.subr.bf16.mxu0 %v18971_v51  ;;  %v10022_v51 = vrot.slane %v21594_v10, 1 }
 0x78b   :  { %9922 = vmatmul.mubr.bf16.vlgmr.msra.gmra.mxu1 %v9545_v6  ;;  %v18998_v6 = vld [vmem:[#allocation8 + $0x1820] ss:$8 sps:$4 sm:$0xff]  }
 0x78c   :  { %10284 = vmatpush1.bf16.msra.mxu1 %v18966_v38  ;;  %9931 = vmatprep.mubr.bf16.mxu1 %v22632_v9  ;;  %v9420_v38 = vld [vmem:[#allocation2 + $0x3c] sm:$0x11] }
 0x78d   :  { %9847 = vmatpush2.bf16.msra.mxu0 %v18969_v63  ;;  %10285 = vmatprep.subr.bf16.mxu1 %v18974_v31  ;;  %v19003_v63 = vld [vmem:[#allocation8 + $0x1714] ss:$8 sps:$4 sm:$0xff]   ;;  %v10024_v31 = vsel %vm642_vm4, %v10022_v51, %v10023_v21 }
 0x78e   :  { %9848 = vmatprep.subr.bf16.mxu0 %v18977_v24  ;;  %v21605_v24 = vcombine.high %v21527_v57, %v9420_v38 }
 0x790   :  { %10286 = vmatpush1.bf16.msra.mxu1 %v18972_v50  ;;  %v19006_v50 = vld [vmem:[#allocation8 + $0x1814] ss:$8 sps:$4 sm:$0xff]   ;;  %v9558_v45 = vshll.u32 %v21605_v24, 16 }
 0x791   :  { %9849 = vmatpush2.bf16.msra.mxu0 %v18975_v58  ;;  %10287 = vmatprep.subr.bf16.mxu1 %v18981_v39  ;;  %v19009_v58 = vld [vmem:[#allocation8 + $0x1704] ss:$8 sps:$4 sm:$0xff]   ;;  %v19004_v39 = vld [vmem:[#allocation8 + $0x1810] ss:$8 sps:$4 sm:$0xff]  }
 0x792   :  { %9850 = vmatprep.subr.bf16.mxu0 %v18984_v47  ;;  %v19007_v47 = vld [vmem:[#allocation8 + $0x1700] ss:$8 sps:$4 sm:$0xff]  }
 0x793   :  { %9932 = vmatmul.mubr.bf16.gmra.mxu1 %v9569_v35  ;;  %v9560_v35 = vrot.slane %v9558_v45, 1 }
 0x794   :  { %10288 = vmatpush1.bf16.msra.mxu1 %v18979_v7  ;;  %9941 = vmatprep.mubr.bf16.mxu1 %v22632_v9  ;;  %v9520_v7 = vrot.slane %v21554_v17, 1 }
 0x795   :  { %9851 = vmatpush2.bf16.msra.mxu0 %v18982_v8  ;;  %10289 = vmatprep.subr.bf16.mxu1 %v18987_v52  ;;  %v21612_v8 = vcombine.low %v21527_v57, %v9420_v38  ;;  %v19010_v52 = vld [vmem:[#allocation8 + $0x1800] ss:$8 sps:$4 sm:$0xff]   ;;  %v9573_v38 = vshrl.u32 %v21605_v24, 16 }
 0x796   :  { %9852 = vmatprep.subr.bf16.mxu0 %v18990_v30  ;;  %v9516_v30 = vor.u32 %v9515_v23, %v9511_v44  ;;  %v9548_v51 = vor.u32 %v21557_v53, %v9520_v7  ;;  %v19036_v53 = vld [vmem:[#allocation8 + $0x18c0] ss:$8 sps:$4 sm:$0xff]   ;;  %v19042_v44 = vld [vmem:[#allocation8 + $0x18b0] ss:$8 sps:$4 sm:$0xff]  }
 0x797   :  { %v9550_v17 = vshll.u32 %v21612_v8, 16  ;;  %v9570_v45 = vshrl.u32 %v21612_v8, 16 }
 0x798   :  { %10290 = vmatpush1.bf16.msra.mxu1 %v18985_v49  ;;  %v19013_v49 = vld [vmem:[#allocation8 + $0x1970] ss:$8 sps:$4 sm:$0xff]   ;;  %v9521_v28 = vsel %vm443_vm2, %v9516_v30, %v9520_v7  ;;  %v19045_v7 = vld [vmem:[#allocation8 + $0x1920] ss:$8 sps:$4 sm:$0xff]  }
 0x799   :  { %9853 = vmatpush2.bf16.msra.mxu0 %v18988_v12  ;;  %10291 = vmatprep.subr.bf16.mxu1 %v18993_v5  ;;  %v19022_v12 = vld [vmem:[#allocation8 + $0x1964] ss:$8 sps:$4 sm:$0xff]   ;;  %v9561_v5 = vsel %vm443_vm2, %v9556_v4, %v9560_v35  ;;  %v19048_v30 = vld [vmem:[#allocation8 + $0x18a0] ss:$8 sps:$4 sm:$0xff]   ;;  %v19056_v4 = vld [vmem:[#allocation8 + $0x1894] ss:$8 sps:$4 sm:$0xff]  }
 0x79a   :  { %9854 = vmatprep.subr.bf16.mxu0 %v18997_v15  ;;  %v19017_v15 = vld [vmem:[#allocation8 + $0x18f0] ss:$8 sps:$4 sm:$0xff]  }
 0x79b   :  { %9942 = vmatmul.mubr.bf16.gmra.mxu1 %v9578_v56  ;;  %v9552_v56 = vrot.slane %v9550_v17, 1  ;;  %v19057_v17 = vld [vmem:[#allocation8 + $0x1900] ss:$8 sps:$4 sm:$0xff]  }
 0x79c   :  { %10292 = vmatpush1.bf16.msra.mxu1 %v18991_v34  ;;  %10315 = vmatprep.mubr.bf16.mxu1 %v10024_v31  ;;  %v19025_v34 = vld [vmem:[#allocation8 + $0x18e4] ss:$8 sps:$4 sm:$0xff]  }
 0x79d   :  { %9855 = vmatpush2.bf16.msra.mxu0 %v18995_v59  ;;  %10293 = vmatprep.subr.bf16.mxu1 %v19000_v29  ;;  %v19029_v59 = vld [vmem:[#allocation8 + $0x1954] ss:$8 sps:$4 sm:$0xff]   ;;  %v19027_v29 = vld [vmem:[#allocation8 + $0x1950] ss:$8 sps:$4 sm:$0xff]   ;;  %v19035_v31 = vld [vmem:[#allocation8 + $0x1944] ss:$8 sps:$4 sm:$0xff]   ;;  %v9572_v23 = vor.u32 %v9570_v45, %v9552_v56 }
 0x79e   :  { %9856 = vmatprep.subr.bf16.mxu0 %v19003_v63  ;;  %v19032_v63 = vld [vmem:[#allocation8 + $0x18d4] ss:$8 sps:$4 sm:$0xff]  }
 0x79f   :  { %v19082_v45 = vld [vmem:[#allocation8 + $0x1ad4] ss:$8 sps:$4 sm:$0xff]  }
 0x7a0   :  { %10294 = vmatpush1.bf16.msra.mxu1 %v18998_v6  ;;  %v9553_v6 = vsel %vm443_vm2, %v9548_v51, %v9552_v56  ;;  %v21631_v56 = vcombine.low %v21588_v48, %v21497_v25  ;;  %v19064_v51 = vld [vmem:[#allocation8 + $0x19f0] ss:$8 sps:$4 sm:$0xff]  }
 0x7a1   :  { %9857 = vmatpush2.bf16.msra.mxu0 %v19001_v43  ;;  %10295 = vmatprep.subr.bf16.mxu1 %v19006_v50  ;;  %v9575_v43 = vor.u32 %v9573_v38, %v9560_v35  ;;  %v19030_v50 = vld [vmem:[#allocation8 + $0x18d0] ss:$8 sps:$4 sm:$0xff]   ;;  %v19053_v35 = vld [vmem:[#allocation8 + $0x1914] ss:$8 sps:$4 sm:$0xff]   ;;  %v10020_v38 = vrot.slane %v21524_v40, 1 }
 0x7a2   :  { %9858 = vmatprep.subr.bf16.mxu0 %v19009_v58  ;;  %v19038_v58 = vld [vmem:[#allocation8 + $0x18c4] ss:$8 sps:$4 sm:$0xff]   ;;  %v19068_v48 = vld [vmem:[#allocation8 + $0x1af0] ss:$8 sps:$4 sm:$0xff]   ;;  %v19079_v40 = vld [vmem:[#allocation8 + $0x19d4] ss:$8 sps:$4 sm:$0xff]  }
 0x7a4   :  { %10296 = vmatpush1.bf16.msra.mxu1 %v19004_v39  ;;  %v19041_v39 = vld [vmem:[#allocation8 + $0x1934] ss:$8 sps:$4 sm:$0xff]  }
 0x7a5   :  { %9859 = vmatpush2.bf16.msra.mxu0 %v19007_v47  ;;  %10297 = vmatprep.subr.bf16.mxu1 %v19012_v19  ;;  %v19039_v47 = vld [vmem:[#allocation8 + $0x1930] ss:$8 sps:$4 sm:$0xff]   ;;  %v19044_v19 = vld [vmem:[#allocation8 + $0x18b4] ss:$8 sps:$4 sm:$0xff]  }
 0x7a6   :  { %10344 = vmatprep.subr.bf16.mxu0 %v19015_v61  ;;  %v19047_v61 = vld [vmem:[#allocation8 + $0x1924] ss:$8 sps:$4 sm:$0xff]  }
 0x7a8   :  { %10298 = vmatpush1.bf16.msra.mxu1 %v19010_v52  ;;  %9861 = vmatmul.mubr.bf16.vlgmr.msra.gmra.mxu0 %v9521_v28  ;;  %v19050_v52 = vld [vmem:[#allocation8 + $0x18a4] ss:$8 sps:$4 sm:$0xff]   ;;  %v9961_v28 = vld [vmem:[#allocation2 + $0x8] sm:$0xe] }
 0x7a9   :  { %9870 = vmatprep.mubr.bf16.mxu0 %v9561_v5  ;;  %10345 = vmatpush1.bf16.msra.mxu0 %v19013_v49  ;;  %v19051_v49 = vld [vmem:[#allocation8 + $0x1910] ss:$8 sps:$4 sm:$0xff]   ;;  %v19062_v5 = vld [vmem:[#allocation8 + $0x1884] ss:$8 sps:$4 sm:$0xff]  }
 0x7aa   :  { %10299 = vmatprep.subr.bf16.mxu1 %v19019_v1  ;;  %10346 = vmatprep.subr.bf16.mxu0 %v19022_v12  ;;  %v19059_v1 = vld [vmem:[#allocation8 + $0x1904] ss:$8 sps:$4 sm:$0xff]   ;;  %v19054_v12 = vld [vmem:[#allocation8 + $0x1890] ss:$8 sps:$4 sm:$0xff]  }
 0x7ac   :  { %10300 = vmatpush2.bf16.msra.mxu1 %v19017_v15  ;;  %v21626_v15 = vcombine.low %v9961_v28, %v21541_v14  ;;  %v19097_v28 = vld [vmem:[#allocation8 + $0x19a4] ss:$8 sps:$4 sm:$0xff]  }
 0x7ad   :  { %10347 = vmatpush1.bf16.msra.mxu0 %v19020_v11  ;;  %10301 = vmatprep.subr.bf16.mxu1 %v19025_v34  ;;  %v19066_v11 = vld [vmem:[#allocation8 + $0x19f4] ss:$8 sps:$4 sm:$0xff]   ;;  %v10026_v34 = vrot.slane %v21534_v46, 1  ;;  %v10030_v46 = vrot.slane %v21605_v24, 1 }
 0x7ae   :  { %10348 = vmatprep.subr.bf16.mxu0 %v19029_v59  ;;  %v19060_v59 = vld [vmem:[#allocation8 + $0x1880] ss:$8 sps:$4 sm:$0xff]  }
 0x7af   :  { %v10031_v24 = vsel %vm642_vm4, %v10023_v21, %v10030_v46  ;;  %v10494_v21 = vrot.slane %v21572_v60, 1 }
 0x7b0   :  { %10302 = vmatpush2.bf16.msra.mxu1 %v19023_v18  ;;  %9871 = vmatmul.mubr.bf16.gmra.mxu0 %v9553_v6  ;;  %v10025_v18 = vrot.slane %v21626_v15, 1  ;;  %v10019_v6 = vrot.slane %v21631_v56, 1 }
 0x7b1   :  { %9880 = vmatprep.mubr.bf16.mxu0 %v9575_v43  ;;  %10349 = vmatpush1.bf16.msra.mxu0 %v19027_v29  ;;  %v19070_v29 = vld [vmem:[#allocation8 + $0x1af4] ss:$8 sps:$4 sm:$0xff]   ;;  %v19071_v43 = vld [vmem:[#allocation8 + $0x19e0] ss:$8 sps:$4 sm:$0xff]  }
 0x7b2   :  { %10303 = vmatprep.subr.bf16.mxu1 %v19032_v63  ;;  %10350 = vmatprep.subr.bf16.mxu0 %v19035_v31  ;;  %v19073_v63 = vld [vmem:[#allocation8 + $0x19e4] ss:$8 sps:$4 sm:$0xff]   ;;  %v10027_v31 = vsel %vm642_vm4, %v10025_v18, %v10026_v34  ;;  %v19098_v18 = vld [vmem:[#allocation8 + $0x1aa0] ss:$8 sps:$4 sm:$0xff]  }
 0x7b4   :  { %10304 = vmatpush2.bf16.msra.mxu1 %v19030_v50  ;;  %v19076_v50 = vld [vmem:[#allocation8 + $0x1ae4] ss:$8 sps:$4 sm:$0xff]  }
 0x7b5   :  { %10351 = vmatpush1.bf16.msra.mxu0 %v19033_v42  ;;  %10305 = vmatprep.subr.bf16.mxu1 %v19038_v58  ;;  %v10021_v42 = vsel %vm642_vm4, %v10019_v6, %v10020_v38  ;;  %v10032_v58 = vrot.slane %v21569_v2, 1  ;;  %v19080_v2 = vld [vmem:[#allocation8 + $0x1ad0] ss:$8 sps:$4 sm:$0xff]   ;;  %v10502_v6 = vshll.u32 %v21626_v15, 16 }
 0x7b6   :  { %10352 = vmatprep.subr.bf16.mxu0 %v19041_v39  ;;  %v19074_v39 = vld [vmem:[#allocation8 + $0x1ae0] ss:$8 sps:$4 sm:$0xff]  }
 0x7b8   :  { %10306 = vmatpush2.bf16.msra.mxu1 %v19036_v53  ;;  %9881 = vmatmul.mubr.bf16.gmra.mxu0 %v9572_v23  ;;  %v19077_v53 = vld [vmem:[#allocation8 + $0x19d0] ss:$8 sps:$4 sm:$0xff]   ;;  %v10487_v23 = vshrl.u32 %v21594_v10, 16 }
 0x7b9   :  { %10353 = vmatpush1.bf16.msra.mxu0 %v19039_v47  ;;  %10307 = vmatprep.subr.bf16.mxu1 %v19044_v19  ;;  %v10028_v47 = vrot.slane %v21612_v8, 1  ;;  %v19085_v19 = vld [vmem:[#allocation8 + $0x19c4] ss:$8 sps:$4 sm:$0xff]  }
 0x7ba   :  { %10354 = vmatprep.subr.bf16.mxu0 %v19047_v61  ;;  %10376 = vmatprep.mubr.bf16.mxu0 %v22632_v9  ;;  %v10490_v61 = vshll.u32 %v21594_v10, 16  ;;  %v10489_v10 = vrot.slane %v10487_v23, 1  ;;  %v19116_v23 = vld [vmem:[#allocation8 + $0x1b70] ss:$8 sps:$4 sm:$0xff]  }
 0x7bb   :  { %v10029_v8 = vsel %vm642_vm4, %v10020_v38, %v10028_v47  ;;  %v19109_v38 = vld [vmem:[#allocation8 + $0x1984] ss:$8 sps:$4 sm:$0xff]  }
 0x7bc   :  { %10308 = vmatpush2.bf16.msra.mxu1 %v19042_v44  ;;  %v10033_v44 = vsel %vm642_vm4, %v10026_v34, %v10032_v58  ;;  %v19100_v34 = vld [vmem:[#allocation8 + $0x1aa4] ss:$8 sps:$4 sm:$0xff]  }
 0x7bd   :  { %10355 = vmatpush1.bf16.msra.mxu0 %v19045_v7  ;;  %10309 = vmatprep.subr.bf16.mxu1 %v19050_v52  ;;  %v10495_v7 = vrot.slane %v21521_v33, 2  ;;  %v19083_v52 = vld [vmem:[#allocation8 + $0x19c0] ss:$8 sps:$4 sm:$0xff]   ;;  %v19089_v33 = vld [vmem:[#allocation8 + $0x19b0] ss:$8 sps:$4 sm:$0xff]  }
 0x7be   :  { %10356 = vmatprep.subr.bf16.mxu0 %v19053_v35  ;;  %v19088_v35 = vld [vmem:[#allocation8 + $0x1ac4] ss:$8 sps:$4 sm:$0xff]  }
 0x7c0   :  { %10310 = vmatpush2.bf16.msra.mxu1 %v19048_v30  ;;  %v19091_v30 = vld [vmem:[#allocation8 + $0x19b4] ss:$8 sps:$4 sm:$0xff]  }
 0x7c1   :  { %10357 = vmatpush1.bf16.msra.mxu0 %v19051_v49  ;;  %10311 = vmatprep.subr.bf16.mxu1 %v19056_v4  ;;  %v10492_v49 = vrot.slane %v10490_v61, 2  ;;  %v19086_v4 = vld [vmem:[#allocation8 + $0x1ac0] ss:$8 sps:$4 sm:$0xff]   ;;  %v19124_v61 = vld [vmem:[#allocation8 + $0x1b64] ss:$8 sps:$4 sm:$0xff]  }
 0x7c2   :  { %10358 = vmatprep.subr.bf16.mxu0 %v19059_v1  ;;  %v21652_v1 = vor.u32 %v10495_v7, %v10494_v21 }
 0x7c3   :  { %v10493_v60 = vor.u32 %v10492_v49, %v10489_v10  ;;  %v19134_v10 = vld [vmem:[#allocation8 + $0x1a44] ss:$8 sps:$4 sm:$0xff]   ;;  %v19129_v49 = vld [vmem:[#allocation8 + $0x1b50] ss:$8 sps:$4 sm:$0xff]  }
 0x7c4   :  { %10312 = vmatpush2.bf16.msra.mxu1 %v19054_v12  ;;  %v19094_v12 = vld [vmem:[#allocation8 + $0x1ab4] ss:$8 sps:$4 sm:$0xff]  }
 0x7c5   :  { %10359 = vmatpush1.bf16.msra.mxu0 %v19057_v17  ;;  %10313 = vmatprep.subr.bf16.mxu1 %v19062_v5  ;;  %v10497_v17 = vsel %vm22685_vm13, %v10493_v60, %v21652_v1  ;;  %v19092_v5 = vld [vmem:[#allocation8 + $0x1ab0] ss:$8 sps:$4 sm:$0xff]   ;;  %vm22690_vm13 = vmmov %vm22686_vm0 }
 0x7c6   :  { %10786 = vmatprep.subr.bf16.mxu0 %v19066_v11  ;;  %v19095_v11 = vld [vmem:[#allocation8 + $0x19a0] ss:$8 sps:$4 sm:$0xff]  }
 0x7c8   :  { %10314 = vmatpush2.bf16.msra.mxu1 %v19060_v59  ;;  %10377 = vmatmul.mubr.bf16.vlgmr.msra.gmra.mxu0 %v10027_v31  ;;  %v19103_v59 = vld [vmem:[#allocation8 + $0x1994] ss:$8 sps:$4 sm:$0xff]   ;;  %v19104_v31 = vld [vmem:[#allocation8 + $0x1a90] ss:$8 sps:$4 sm:$0xff]  }
 0x7c9   :  { %10787 = vmatpush1.bf16.msra.mxu0 %v19064_v51  ;;  %10847 = vmatprep.subr.bf16.mxu1 %v19070_v29  ;;  %v19101_v51 = vld [vmem:[#allocation8 + $0x1990] ss:$8 sps:$4 sm:$0xff]   ;;  %v19106_v29 = vld [vmem:[#allocation8 + $0x1a94] ss:$8 sps:$4 sm:$0xff]  }
 0x7ca   :  { %10788 = vmatprep.subr.bf16.mxu0 %v19073_v63  ;;  %10386 = vmatprep.mubr.bf16.mxu0 %v22632_v9  ;;  %v10416_v63 = vld [vmem:[#allocation2 + $0x44] sm:$0x3] }
 0x7cb   :  { %10316 = vmatmul.mubr.bf16.vlgmr.msra.gmra.mxu1 %v10021_v42  ;;  %v21660_v42 = vcombine.low %v21563_v62, %v10416_v63  ;;  %v19119_v62 = vld [vmem:[#allocation8 + $0x1a60] ss:$8 sps:$4 sm:$0xff]  }
 0x7cc   :  { %10325 = vmatprep.mubr.bf16.mxu1 %v10031_v24  ;;  %10848 = vmatpush1.bf16.msra.mxu1 %v19068_v48  ;;  %v19107_v48 = vld [vmem:[#allocation8 + $0x1980] ss:$8 sps:$4 sm:$0xff]  }
 0x7cd   :  { %10789 = vmatpush1.bf16.msra.mxu0 %v19071_v43  ;;  %10849 = vmatprep.subr.bf16.mxu1 %v19076_v50  ;;  %v19112_v43 = vld [vmem:[#allocation8 + $0x1a84] ss:$8 sps:$4 sm:$0xff]   ;;  %v19115_v50 = vld [vmem:[#allocation8 + $0x1a74] ss:$8 sps:$4 sm:$0xff]   ;;  %v19146_v63 = vld [vmem:[#allocation8 + $0x1a20] ss:$8 sps:$4 sm:$0xff]  }
 0x7ce   :  { %10790 = vmatprep.subr.bf16.mxu0 %v19079_v40  ;;  %v19110_v40 = vld [vmem:[#allocation8 + $0x1a80] ss:$8 sps:$4 sm:$0xff]  }
 0x7d0   :  { %10850 = vmatpush1.bf16.msra.mxu1 %v19074_v39  ;;  %10387 = vmatmul.mubr.bf16.gmra.mxu0 %v10033_v44  ;;  %v19113_v39 = vld [vmem:[#allocation8 + $0x1a70] ss:$8 sps:$4 sm:$0xff]  }
 0x7d1   :  { %10791 = vmatpush1.bf16.msra.mxu0 %v19077_v53  ;;  %10851 = vmatprep.subr.bf16.mxu1 %v19082_v45  ;;  %v19118_v53 = vld [vmem:[#allocation8 + $0x1b74] ss:$8 sps:$4 sm:$0xff]   ;;  %v19121_v45 = vld [vmem:[#allocation8 + $0x1a64] ss:$8 sps:$4 sm:$0xff]  }
 0x7d2   :  { %10792 = vmatprep.subr.bf16.mxu0 %v19085_v19  ;;  %10396 = vmatprep.mubr.bf16.mxu0 %v22632_v9 }
 0x7d3   :  { %10326 = vmatmul.mubr.bf16.gmra.mxu1 %v10029_v8  ;;  %v19131_v8 = vld [vmem:[#allocation8 + $0x1b54] ss:$8 sps:$4 sm:$0xff]  }
 0x7d4   :  { %10335 = vmatprep.mubr.bf16.mxu1 %v10030_v46  ;;  %10852 = vmatpush1.bf16.msra.mxu1 %v19080_v2  ;;  %v10499_v46 = vshrl.u32 %v21626_v15, 16  ;;  %v10529_v15 = vshrl.u32 %v21660_v42, 16  ;;  %v19127_v2 = vld [vmem:[#allocation8 + $0x1a54] ss:$8 sps:$4 sm:$0xff]  }
 0x7d5   :  { %10793 = vmatpush1.bf16.msra.mxu0 %v19083_v52  ;;  %10853 = vmatprep.subr.bf16.mxu1 %v19088_v35  ;;  %v19122_v52 = vld [vmem:[#allocation8 + $0x1b60] ss:$8 sps:$4 sm:$0xff]   ;;  %v19125_v35 = vld [vmem:[#allocation8 + $0x1a50] ss:$8 sps:$4 sm:$0xff]  }
 0x7d6   :  { %10794 = vmatprep.subr.bf16.mxu0 %v19091_v30  ;;  %v10501_v24 = vrot.slane %v10499_v46, 1  ;;  %v10531_v21 = vrot.slane %v10529_v15, 1  ;;  %v19154_v46 = vld [vmem:[#allocation8 + $0x1a14] ss:$8 sps:$4 sm:$0xff]  }
 0x7d8   :  { %10854 = vmatpush1.bf16.msra.mxu1 %v19086_v4  ;;  %10397 = vmatmul.mubr.bf16.gmra.mxu0 %v10032_v58  ;;  %v10504_v58 = vrot.slane %v10502_v6, 2  ;;  %v19132_v4 = vld [vmem:[#allocation8 + $0x1a40] ss:$8 sps:$4 sm:$0xff]  }
 0x7d9   :  { %10795 = vmatpush1.bf16.msra.mxu0 %v19089_v33  ;;  %10818 = vmatprep.mubr.bf16.mxu0 %v10497_v17  ;;  %v19137_v33 = vld [vmem:[#allocation8 + $0x1b44] ss:$8 sps:$4 sm:$0xff]   ;;  %v19149_v6 = vld [vmem:[#allocation8 + $0x1b20] ss:$8 sps:$4 sm:$0xff]  }
 0x7da   :  { %10855 = vmatprep.subr.bf16.mxu1 %v19094_v12  ;;  %10796 = vmatprep.subr.bf16.mxu0 %v19097_v28  ;;  %v10505_v19 = vor.u32 %v10504_v58, %v10501_v24  ;;  %v19140_v12 = vld [vmem:[#allocation8 + $0x1a34] ss:$8 sps:$4 sm:$0xff]   ;;  %v19135_v28 = vld [vmem:[#allocation8 + $0x1b40] ss:$8 sps:$4 sm:$0xff]   ;;  %v10475_v24 = vshrl.u32 %v21631_v56, 16  ;;  %v10478_v58 = vshll.u32 %v21631_v56, 16 }
 0x7db   :  { %10336 = vmatmul.mubr.bf16.gmra.mxu1 %v10028_v47  ;;  %v10532_v47 = vshll.u32 %v21660_v42, 16  ;;  %v21670_v17 = vld [vmem:[#allocation2] sm:$0xcc] }
 0x7dc   :  { %10856 = vmatpush1.bf16.msra.mxu1 %v19092_v5  ;;  %10879 = vmatprep.mubr.bf16.mxu1 %v22632_v9  ;;  %v10509_v44 = vsel %vm22686_vm0, %v10505_v19, %v21559_v26  ;;  %v19138_v5 = vld [vmem:[#allocation8 + $0x1a30] ss:$8 sps:$4 sm:$0xff]   ;;  %v19158_v19 = vld [vmem:[#allocation8 + $0x1a00] ss:$8 sps:$4 sm:$0xff]  }
 0x7dd   :  { %10797 = vmatpush1.bf16.msra.mxu0 %v19095_v11  ;;  %10857 = vmatprep.subr.bf16.mxu1 %v19100_v34  ;;  %v10534_v7 = vrot.slane %v10532_v47, 2  ;;  %v19143_v11 = vld [vmem:[#allocation8 + $0x1b34] ss:$8 sps:$4 sm:$0xff]   ;;  %v21674_v34 = vcombine.high %v21670_v17, %v21497_v25 }
 0x7de   :  { %10798 = vmatprep.subr.bf16.mxu0 %v19103_v59  ;;  %v10415_v59 = vld [vmem:[#allocation2 + $0x3c] sm:$0x33] }
 0x7df   :  { %v10535_v30 = vor.u32 %v10534_v7, %v10531_v21  ;;  %v19161_v21 = vld [vmem:[#allocation8 + $0x1b00] ss:$8 sps:$4 sm:$0xff]  }
 0x7e0   :  { %10858 = vmatpush1.bf16.msra.mxu1 %v19098_v18  ;;  %v10981_v18 = vrot.slane %v21517_v0, 2 }
 0x7e1   :  { %10799 = vmatpush1.bf16.msra.mxu0 %v19101_v51  ;;  %10859 = vmatprep.subr.bf16.mxu1 %v19106_v29  ;;  %v10536_v60 = vsel %vm22687_vm10, %v21559_v26, %v10535_v30  ;;  %v19148_v26 = vld [vmem:[#allocation8 + $0x1a24] ss:$8 sps:$4 sm:$0xff]   ;;  %v19141_v51 = vld [vmem:[#allocation8 + $0x1b30] ss:$8 sps:$4 sm:$0xff]   ;;  %v21678_v29 = vcombine.high %v21527_v57, %v10415_v59  ;;  %vm22691_vm10 = vmmov %vm22688_vm15 }
 0x7e2   :  { %10800 = vmatprep.subr.bf16.mxu0 %v19109_v38  ;;  %v10980_v38 = vrot.slane %v21674_v34, 2 }
 0x7e4   :  { %10860 = vmatpush1.bf16.msra.mxu1 %v19104_v31  ;;  %v19151_v31 = vld [vmem:[#allocation8 + $0x1b24] ss:$8 sps:$4 sm:$0xff]   ;;  %v10982_v25 = vsel %vm22688_vm15, %v10980_v38, %v10981_v18  ;;  %v19181_v38 = vld [vmem:[#allocation8 + $0x1bd0] ss:$8 sps:$4 sm:$0xff]   ;;  %vm22692_vm15 = vmmov %vm22691_vm10 }
 0x7e5   :  { %10801 = vmatpush1.bf16.msra.mxu0 %v19107_v48  ;;  %10861 = vmatprep.subr.bf16.mxu1 %v19112_v43  ;;  %v10520_v48 = vshrl.u32 %v21678_v29, 16  ;;  %v10523_v43 = vshll.u32 %v21678_v29, 16 }
 0x7e6   :  { %10802 = vmatprep.subr.bf16.mxu0 %v19115_v50  ;;  %v19152_v50 = vld [vmem:[#allocation8 + $0x1a10] ss:$8 sps:$4 sm:$0xff]  }
 0x7e7   :  { %v10522_v15 = vrot.slane %v10520_v48, 1  ;;  %v10525_v47 = vrot.slane %v10523_v43, 2  ;;  %v19195_v48 = vld [vmem:[#allocation8 + $0x1bb4] ss:$8 sps:$4 sm:$0xff]   ;;  %v19198_v43 = vld [vmem:[#allocation8 + $0x1c24] ss:$8 sps:$4 sm:$0xff]  }
 0x7e8   :  { %10862 = vmatpush1.bf16.msra.mxu1 %v19110_v40  ;;  %v19157_v40 = vld [vmem:[#allocation8 + $0x1b14] ss:$8 sps:$4 sm:$0xff]  }
 0x7e9   :  { %10803 = vmatpush2.bf16.msra.mxu0 %v19113_v39  ;;  %11241 = vmatprep.subr.bf16.mxu1 %v19118_v53  ;;  %v19160_v39 = vld [vmem:[#allocation8 + $0x1a04] ss:$8 sps:$4 sm:$0xff]   ;;  %v21689_v53 = vcombine.low %v21527_v57, %v10415_v59  ;;  %v10526_v57 = vor.u32 %v10525_v47, %v10522_v15  ;;  %v19178_v59 = vld [vmem:[#allocation8 + $0x1c50] ss:$8 sps:$4 sm:$0xff]  }
 0x7ea   :  { %10804 = vmatprep.subr.bf16.mxu0 %v19121_v45  ;;  %v19155_v45 = vld [vmem:[#allocation8 + $0x1b10] ss:$8 sps:$4 sm:$0xff]   ;;  %v19210_v15 = vld [vmem:[#allocation8 + $0x1c04] ss:$8 sps:$4 sm:$0xff]  }
 0x7eb   :  { %10880 = vmatmul.mubr.bf16.vlgmr.msra.gmra.mxu1 %v10509_v44  ;;  %v19166_v44 = vld [vmem:[#allocation8 + $0x1c74] ss:$8 sps:$4 sm:$0xff]   ;;  %v10514_v56 = vshll.u32 %v21689_v53, 16  ;;  %v19205_v47 = vld [vmem:[#allocation8 + $0x1b90] ss:$8 sps:$4 sm:$0xff]   ;;  %v10986_v0 = vrot.slane %v21689_v53, 2 }
 0x7ec   :  { %11242 = vmatpush1.bf16.msra.mxu1 %v19116_v23  ;;  %10889 = vmatprep.mubr.bf16.mxu1 %v22632_v9  ;;  %v19163_v23 = vld [vmem:[#allocation8 + $0x1b04] ss:$8 sps:$4 sm:$0xff]  }
 0x7ed   :  { %10805 = vmatpush2.bf16.msra.mxu0 %v19119_v62  ;;  %11243 = vmatprep.subr.bf16.mxu1 %v19124_v61  ;;  %v10477_v62 = vrot.slane %v10475_v24, 1  ;;  %v10480_v61 = vrot.slane %v10478_v58, 2  ;;  %v19204_v24 = vld [vmem:[#allocation8 + $0x1c14] ss:$8 sps:$4 sm:$0xff]   ;;  %v19199_v58 = vld [vmem:[#allocation8 + $0x1ba0] ss:$8 sps:$4 sm:$0xff]  }
 0x7ee   :  { %10806 = vmatprep.subr.bf16.mxu0 %v19127_v2  ;;  %v10511_v2 = vshrl.u32 %v21689_v53, 16  ;;  %v19238_v53 = vld [vmem:[#allocation8 + $0x1dc4] ss:$8 sps:$4 sm:$0xff]  }
 0x7ef   :  { %v10481_v7 = vor.u32 %v10480_v61, %v10477_v62  ;;  %v19213_v62 = vld [vmem:[#allocation8 + $0x1b84] ss:$8 sps:$4 sm:$0xff]  }
 0x7f0   :  { %11244 = vmatpush1.bf16.msra.mxu1 %v19122_v52  ;;  %v19164_v52 = vld [vmem:[#allocation8 + $0x1c70] ss:$8 sps:$4 sm:$0xff]  }
 0x7f1   :  { %10807 = vmatpush2.bf16.msra.mxu0 %v19125_v35  ;;  %11245 = vmatprep.subr.bf16.mxu1 %v19131_v8  ;;  %v19170_v35 = vld [vmem:[#allocation8 + $0x1bf4] ss:$8 sps:$4 sm:$0xff]   ;;  %v19173_v8 = vld [vmem:[#allocation8 + $0x1c64] ss:$8 sps:$4 sm:$0xff]  }
 0x7f2   :  { %10808 = vmatprep.subr.bf16.mxu0 %v19134_v10  ;;  %v10513_v10 = vrot.slane %v10511_v2, 1  ;;  %v21703_v2 = vld [vmem:[#allocation2 + $0x20] ss:$12 sps:$4 sm:$0xff]  }
 0x7f3   :  { %10890 = vmatmul.mubr.bf16.gmra.mxu1 %v10536_v60  ;;  %v19171_v60 = vld [vmem:[#allocation8 + $0x1c60] ss:$8 sps:$4 sm:$0xff]  }
 0x7f4   :  { %11246 = vmatpush1.bf16.msra.mxu1 %v19129_v49  ;;  %10899 = vmatprep.mubr.bf16.mxu1 %v22632_v9  ;;  %v10516_v49 = vrot.slane %v10514_v56, 2  ;;  %v10984_v56 = vrot.slane %v21703_v2, 2 }
 0x7f5   :  { %10809 = vmatpush2.bf16.msra.mxu0 %v19132_v4  ;;  %11247 = vmatprep.subr.bf16.mxu1 %v19137_v33  ;;  %v10527_v4 = vsel %vm22690_vm13, %v21652_v1, %v10526_v57  ;;  %v19168_v33 = vld [vmem:[#allocation8 + $0x1bf0] ss:$8 sps:$4 sm:$0xff]   ;;  %vm22694_vm13 = vmmov %vm22691_vm10 }
 0x7f6   :  { %10810 = vmatprep.subr.bf16.mxu0 %v19140_v12  ;;  %v19176_v12 = vld [vmem:[#allocation8 + $0x1be4] ss:$8 sps:$4 sm:$0xff]  }
 0x7f8   :  { %11248 = vmatpush1.bf16.msra.mxu1 %v19135_v28  ;;  %v19180_v28 = vld [vmem:[#allocation8 + $0x1c54] ss:$8 sps:$4 sm:$0xff]  }
 0x7f9   :  { %10811 = vmatpush2.bf16.msra.mxu0 %v19138_v5  ;;  %11249 = vmatprep.subr.bf16.mxu1 %v19143_v11  ;;  %v10517_v5 = vor.u32 %v10516_v49, %v10513_v10  ;;  %v19174_v11 = vld [vmem:[#allocation8 + $0x1be0] ss:$8 sps:$4 sm:$0xff]   ;;  %v19223_v10 = vld [vmem:[#allocation8 + $0x1ce4] ss:$8 sps:$4 sm:$0xff]  }
 0x7fa   :  { %10812 = vmatprep.subr.bf16.mxu0 %v19148_v26  ;;  %v19183_v26 = vld [vmem:[#allocation8 + $0x1bd4] ss:$8 sps:$4 sm:$0xff]  }
 0x7fb   :  { %10900 = vmatmul.mubr.bf16.gmra.mxu1 %v10535_v30  ;;  %v10485_v30 = vsel %vm22689_vm11, %v10481_v7, %v21565_v22  ;;  %v10518_v1 = vsel %vm22686_vm0, %v21565_v22, %v10517_v5  ;;  %v19193_v22 = vld [vmem:[#allocation8 + $0x1bb0] ss:$8 sps:$4 sm:$0xff]   ;;  %v19211_v7 = vld [vmem:[#allocation8 + $0x1b80] ss:$8 sps:$4 sm:$0xff]   ;;  %vm22693_vm11 = vmmov %vm22691_vm10 }
 0x7fc   :  { %11250 = vmatpush1.bf16.msra.mxu1 %v19141_v51  ;;  %11273 = vmatprep.mubr.bf16.mxu1 %v10982_v25  ;;  %v19186_v51 = vld [vmem:[#allocation8 + $0x1c44] ss:$8 sps:$4 sm:$0xff]   ;;  %v19187_v25 = vld [vmem:[#allocation8 + $0x1bc0] ss:$8 sps:$4 sm:$0xff]   ;;  %vm22695_vm0 = vmmov %vm22691_vm10 }
 0x7fd   :  { %10813 = vmatpush2.bf16.msra.mxu0 %v19146_v63  ;;  %11251 = vmatprep.subr.bf16.mxu1 %v19151_v31  ;;  %v19184_v63 = vld [vmem:[#allocation8 + $0x1c40] ss:$8 sps:$4 sm:$0xff]   ;;  %v19189_v31 = vld [vmem:[#allocation8 + $0x1bc4] ss:$8 sps:$4 sm:$0xff]  }
 0x7fe   :  { %10814 = vmatprep.subr.bf16.mxu0 %v19154_v46  ;;  %v19192_v46 = vld [vmem:[#allocation8 + $0x1c34] ss:$8 sps:$4 sm:$0xff]  }
 0x800   :  { %11252 = vmatpush1.bf16.msra.mxu1 %v19149_v6  ;;  %v19190_v6 = vld [vmem:[#allocation8 + $0x1c30] ss:$8 sps:$4 sm:$0xff]  }
 0x801   :  { %10815 = vmatpush2.bf16.msra.mxu0 %v19152_v50  ;;  %11253 = vmatprep.subr.bf16.mxu1 %v19157_v40  ;;  %v19196_v50 = vld [vmem:[#allocation8 + $0x1c20] ss:$8 sps:$4 sm:$0xff]   ;;  %v19201_v40 = vld [vmem:[#allocation8 + $0x1ba4] ss:$8 sps:$4 sm:$0xff]  }
 0x802   :  { %10816 = vmatprep.subr.bf16.mxu0 %v19160_v39  ;;  %v19202_v39 = vld [vmem:[#allocation8 + $0x1c10] ss:$8 sps:$4 sm:$0xff]  }
 0x804   :  { %11254 = vmatpush1.bf16.msra.mxu1 %v19155_v45  ;;  %v19207_v45 = vld [vmem:[#allocation8 + $0x1b94] ss:$8 sps:$4 sm:$0xff]  }
 0x805   :  { %10817 = vmatpush2.bf16.msra.mxu0 %v19158_v19  ;;  %11255 = vmatprep.subr.bf16.mxu1 %v19163_v23  ;;  %v10919_v19 = vld [vmem:[#allocation2 + $0x8] sm:$0xc]  ;;  %v19208_v23 = vld [vmem:[#allocation8 + $0x1c00] ss:$8 sps:$4 sm:$0xff]  }
 0x806   :  { %11302 = vmatprep.subr.bf16.mxu0 %v19166_v44  ;;  %v21701_v61 = vcombine.low %v10919_v19, %v21541_v14  ;;  %v19217_v44 = vld [vmem:[#allocation8 + $0x1cf4] ss:$8 sps:$4 sm:$0xff]   ;;  %v19215_v14 = vld [vmem:[#allocation8 + $0x1cf0] ss:$8 sps:$4 sm:$0xff]  }
 0x808   :  { %11256 = vmatpush1.bf16.msra.mxu1 %v19161_v21  ;;  %10819 = vmatmul.mubr.bf16.vlgmr.msra.gmra.mxu0 %v10485_v30  ;;  %v21706_v21 = vld [vmem:[#allocation2 + $0xc] sm:$0xff] }
 0x809   :  { %10828 = vmatprep.mubr.bf16.mxu0 %v10527_v4  ;;  %11303 = vmatpush1.bf16.msra.mxu0 %v19164_v52  ;;  %v10983_v52 = vrot.slane %v21701_v61, 2  ;;  %v10988_v4 = vrot.slane %v21678_v29, 2 }
 0x80a   :  { %11257 = vmatprep.subr.bf16.mxu1 %v19170_v35  ;;  %11304 = vmatprep.subr.bf16.mxu0 %v19173_v8  ;;  %v19220_v35 = vld [vmem:[#allocation8 + $0x1df4] ss:$8 sps:$4 sm:$0xff]   ;;  %v21713_v8 = vld [vmem:[#allocation2 + $0x18] ss:$12 sps:$4 sm:$0xff]  }
 0x80b   :  { %v10978_v30 = vrot.slane %v21713_v8, 2  ;;  %v10985_v49 = vsel %vm22691_vm10, %v10983_v52, %v10984_v56  ;;  %v10989_v29 = vsel %vm22693_vm11, %v10981_v18, %v10988_v4  ;;  %v19235_v18 = vld [vmem:[#allocation8 + $0x1cc4] ss:$8 sps:$4 sm:$0xff]   ;;  %vm22696_vm10 = vcmask 1044480  }
 0x80c   :  { %11258 = vmatpush2.bf16.msra.mxu1 %v19168_v33  ;;  %vm22700_vm11 = vmmov %vm22696_vm10 }
 0x80d   :  { %11305 = vmatpush1.bf16.msra.mxu0 %v19171_v60  ;;  %11259 = vmatprep.subr.bf16.mxu1 %v19176_v12  ;;  %v19218_v60 = vld [vmem:[#allocation8 + $0x1df0] ss:$8 sps:$4 sm:$0xff]   ;;  %v19221_v12 = vld [vmem:[#allocation8 + $0x1ce0] ss:$8 sps:$4 sm:$0xff]  }
 0x80e   :  { %11306 = vmatprep.subr.bf16.mxu0 %v19180_v28  ;;  %v19226_v28 = vld [vmem:[#allocation8 + $0x1de4] ss:$8 sps:$4 sm:$0xff]  }
 0x810   :  { %11260 = vmatpush2.bf16.msra.mxu1 %v19174_v11  ;;  %10829 = vmatmul.mubr.bf16.gmra.mxu0 %v10518_v1 }
 0x811   :  { %10838 = vmatprep.mubr.bf16.mxu0 %v10526_v57  ;;  %11307 = vmatpush1.bf16.msra.mxu0 %v19178_v59  ;;  %v21710_v57 = vcombine.low %v21670_v17, %v21706_v21  ;;  %v19229_v59 = vld [vmem:[#allocation8 + $0x1cd4] ss:$8 sps:$4 sm:$0xff]  }
 0x812   :  { %11261 = vmatprep.subr.bf16.mxu1 %v19183_v26  ;;  %11308 = vmatprep.subr.bf16.mxu0 %v19186_v51  ;;  %v10990_v51 = vrot.slane %v21660_v42, 2  ;;  %v11445_v42 = vshrl.u32 %v21674_v34, 16 }
 0x813   :  { %v10977_v33 = vrot.slane %v21710_v57, 2 }
 0x814   :  { %11262 = vmatpush2.bf16.msra.mxu1 %v19181_v38  ;;  %v11447_v19 = vrot.slane %v11445_v42, 2 }
 0x815   :  { %11309 = vmatpush1.bf16.msra.mxu0 %v19184_v63  ;;  %11263 = vmatprep.subr.bf16.mxu1 %v19189_v31  ;;  %v19224_v63 = vld [vmem:[#allocation8 + $0x1de0] ss:$8 sps:$4 sm:$0xff]  }
 0x816   :  { %11310 = vmatprep.subr.bf16.mxu0 %v19192_v46  ;;  %v19227_v46 = vld [vmem:[#allocation8 + $0x1cd0] ss:$8 sps:$4 sm:$0xff]  }
 0x818   :  { %11264 = vmatpush2.bf16.msra.mxu1 %v19187_v25  ;;  %10839 = vmatmul.mubr.bf16.gmra.mxu0 %v10517_v5  ;;  %v10979_v5 = vsel %vm22692_vm15, %v10977_v33, %v10978_v30  ;;  %v19232_v25 = vld [vmem:[#allocation8 + $0x1dd4] ss:$8 sps:$4 sm:$0xff]   ;;  %vm22699_vm15 = vmmov %vm22696_vm10 }
 0x819   :  { %11311 = vmatpush1.bf16.msra.mxu0 %v19190_v6  ;;  %11265 = vmatprep.subr.bf16.mxu1 %v19195_v48 }
 0x81a   :  { %11312 = vmatprep.subr.bf16.mxu0 %v19198_v43  ;;  %11334 = vmatprep.mubr.bf16.mxu0 %v22632_v9  ;;  %v11448_v43 = vshll.u32 %v21674_v34, 16  ;;  %v19241_v34 = vld [vmem:[#allocation8 + $0x1cb4] ss:$8 sps:$4 sm:$0xff]  }
 0x81c   :  { %11266 = vmatpush2.bf16.msra.mxu1 %v19193_v22 }
 0x81d   :  { %11313 = vmatpush1.bf16.msra.mxu0 %v19196_v50  ;;  %11267 = vmatprep.subr.bf16.mxu1 %v19201_v40  ;;  %v10991_v50 = vsel %vm22694_vm13, %v10984_v56, %v10990_v51  ;;  %vm22702_vm13 = vmmov %vm22696_vm10 }
 0x81e   :  { %11314 = vmatprep.subr.bf16.mxu0 %v19204_v24 }
 0x820   :  { %11268 = vmatpush2.bf16.msra.mxu1 %v19199_v58  ;;  %v19230_v58 = vld [vmem:[#allocation8 + $0x1dd0] ss:$8 sps:$4 sm:$0xff]  }
 0x821   :  { %11315 = vmatpush1.bf16.msra.mxu0 %v19202_v39  ;;  %11269 = vmatprep.subr.bf16.mxu1 %v19207_v45  ;;  %v19233_v45 = vld [vmem:[#allocation8 + $0x1cc0] ss:$8 sps:$4 sm:$0xff]  }
 0x822   :  { %11316 = vmatprep.subr.bf16.mxu0 %v19210_v15  ;;  %v10987_v15 = vsel %vm22695_vm0, %v10978_v30, %v10986_v0  ;;  %vm22703_vm0 = vmmov %vm22696_vm10 }
 0x824   :  { %11270 = vmatpush2.bf16.msra.mxu1 %v19205_v47 }
 0x825   :  { %11317 = vmatpush1.bf16.msra.mxu0 %v19208_v23  ;;  %11271 = vmatprep.subr.bf16.mxu1 %v19213_v62  ;;  %v11450_v23 = vrot.slane %v11448_v43, 3 }
 0x826   :  { %11744 = vmatprep.subr.bf16.mxu0 %v19217_v44 }
 0x827   :  { %v9373_v17 = vpop.f32.mrf.mxu0 }
 0x828   :  { %11272 = vmatpush2.bf16.msra.mxu1 %v19211_v7  ;;  %11335 = vmatmul.mubr.bf16.vlgmr.msra.gmra.mxu0 %v10985_v49  ;;  %v19236_v7 = vld [vmem:[#allocation8 + $0x1dc0] ss:$8 sps:$4 sm:$0xff]   ;;  %v19244_v49 = vld [vmem:[#allocation8 + $0x1db4] ss:$8 sps:$4 sm:$0xff]  }
 0x829   :  { %11745 = vmatpush1.bf16.msra.mxu0 %v19215_v14  ;;  %11805 = vmatprep.subr.bf16.mxu1 %v19220_v35  ;;  %v9375_v11 = vpop.f32.mrf.mxu0  ;;  %v19239_v14 = vld [vmem:[#allocation8 + $0x1cb0] ss:$8 sps:$4 sm:$0xff]  }
 0x82a   :  { %11746 = vmatprep.subr.bf16.mxu0 %v19223_v10  ;;  %11344 = vmatprep.mubr.bf16.mxu0 %v22632_v9  ;;  %v11451_v10 = vor.u32 %v11450_v23, %v11447_v19  ;;  %v19918_v19 = vld [vmem:[#allocation2 + $0x38] sm:$0xf] }
 0x82b   :  { %11274 = vmatmul.mubr.bf16.vlgmr.msra.gmra.mxu1 %v10979_v5  ;;  %v9312_v26 = vpop.f32.mrf.mxu1  ;;  %v9377_v38 = vpop.f32.mrf.mxu0 }
 0x82c   :  { %v21725_v1 = vadd.f32 %v9373_v17, %v9312_v26  ;;  %11283 = vmatprep.mubr.bf16.mxu1 %v10989_v29  ;;  %11806 = vmatpush1.bf16.msra.mxu1 %v19218_v60  ;;  %v19247_v17 = vld [vmem:[#allocation8 + $0x1ca4] ss:$8 sps:$4 sm:$0xff]   ;;  %v19253_v29 = vld [vmem:[#allocation8 + $0x1c94] ss:$8 sps:$4 sm:$0xff]  }
 0x82d   :  { %v9314_v31 = vpop.f32.mrf.mxu1  ;;  %11747 = vmatpush1.bf16.msra.mxu0 %v19221_v12  ;;  %11807 = vmatprep.subr.bf16.mxu1 %v19226_v28  ;;  %v21729_v48 = vpop.f32.mrf.mxu0  ;;  %v11455_v12 = vsel %vm1201_vm8, %v11451_v10, %v21582_v55  ;;  %v19242_v28 = vld [vmem:[#allocation8 + $0x1db0] ss:$8 sps:$4 sm:$0xff]  }
 0x82e   :  { %v21727_v6 = vadd.f32 %v9375_v11, %v9314_v31  ;;  %11748 = vmatprep.subr.bf16.mxu0 %v19229_v59  ;;  %v19245_v11 = vld [vmem:[#allocation8 + $0x1ca0] ss:$8 sps:$4 sm:$0xff]   ;;  %v19250_v59 = vld [vmem:[#allocation8 + $0x1da4] ss:$8 sps:$4 sm:$0xff]  }
 0x82f   :  { %v9316_v22 = vpop.f32.mrf.mxu1  ;;  %v9383_v24 = vpop.f32.mrf.mxu0  ;;  %v19248_v31 = vld [vmem:[#allocation8 + $0x1da0] ss:$8 sps:$4 sm:$0xff]  }
 0x830   :  { %v21735_v40 = vadd.f32 %v9377_v38, %v9316_v22  ;;  %11808 = vmatpush1.bf16.msra.mxu1 %v19224_v63  ;;  %11345 = vmatmul.mubr.bf16.gmra.mxu0 %v10991_v50  ;;  %v19259_v22 = vld [vmem:[#allocation8 + $0x1c84] ss:$8 sps:$4 sm:$0xff]  }
 0x831   :  { %v21737_v39 = vpop.f32.mrf.mxu1  ;;  %11749 = vmatpush1.bf16.msra.mxu0 %v19227_v46  ;;  %11809 = vmatprep.subr.bf16.mxu1 %v19232_v25  ;;  %v9385_v47 = vpop.f32.mrf.mxu0  ;;  %v19251_v25 = vld [vmem:[#allocation8 + $0x1c90] ss:$8 sps:$4 sm:$0xff]  }
 0x832   :  { %11750 = vmatprep.subr.bf16.mxu0 %v19235_v18  ;;  %11354 = vmatprep.mubr.bf16.mxu0 %v22632_v9  ;;  %v19256_v18 = vld [vmem:[#allocation8 + $0x1d94] ss:$8 sps:$4 sm:$0xff]  }
 0x833   :  { %11284 = vmatmul.mubr.bf16.gmra.mxu1 %v10987_v15  ;;  %v9322_v62 = vpop.f32.mrf.mxu1  ;;  %v9387_v56 = vpop.f32.mrf.mxu0  ;;  %v19257_v15 = vld [vmem:[#allocation8 + $0x1c80] ss:$8 sps:$4 sm:$0xff]  }
 0x834   :  { %v21741_v44 = vadd.f32 %v9383_v24, %v9322_v62  ;;  %11293 = vmatprep.mubr.bf16.mxu1 %v10988_v4  ;;  %11810 = vmatpush1.bf16.msra.mxu1 %v19230_v58  ;;  %v19254_v24 = vld [vmem:[#allocation8 + $0x1d90] ss:$8 sps:$4 sm:$0xff]   ;;  %v11457_v58 = vshrl.u32 %v21701_v61, 16  ;;  %v19260_v62 = vld [vmem:[#allocation8 + $0x1d80] ss:$8 sps:$4 sm:$0xff]  }
 0x835   :  { %v9324_v52 = vpop.f32.mrf.mxu1  ;;  %11751 = vmatpush1.bf16.msra.mxu0 %v19233_v45  ;;  %11811 = vmatprep.subr.bf16.mxu1 %v19238_v53  ;;  %v21745_v30 = vpop.f32.mrf.mxu0  ;;  %v11460_v45 = vshll.u32 %v21701_v61, 16  ;;  %v19271_v61 = vld [vmem:[#allocation8 + $0x1d64] ss:$8 sps:$4 sm:$0xff]  }
 0x836   :  { %v21743_v35 = vadd.f32 %v9385_v47, %v9324_v52  ;;  %11752 = vmatprep.subr.bf16.mxu0 %v19241_v34  ;;  %v19262_v47 = vld [vmem:[#allocation8 + $0x1d84] ss:$8 sps:$4 sm:$0xff]   ;;  %v19265_v34 = vld [vmem:[#allocation8 + $0x1d74] ss:$8 sps:$4 sm:$0xff]   ;;  %v19263_v52 = vld [vmem:[#allocation8 + $0x1d70] ss:$8 sps:$4 sm:$0xff]  }
 0x837   :  { %v9326_v33 = vpop.f32.mrf.mxu1  ;;  %v9393_v4 = vpop.f32.mrf.mxu0 }
 0x838   :  { %v21747_v60 = vadd.f32 %v9387_v56, %v9326_v33  ;;  %11812 = vmatpush1.bf16.msra.mxu1 %v19236_v7  ;;  %11355 = vmatmul.mubr.bf16.gmra.mxu0 %v10990_v51  ;;  %v11459_v56 = vrot.slane %v11457_v58, 2  ;;  %v11462_v7 = vrot.slane %v11460_v45, 3  ;;  %v19266_v33 = vld [vmem:[#allocation8 + $0x1e70] ss:$8 sps:$4 sm:$0xff]   ;;  %v19290_v45 = vld [vmem:[#allocation8 + $0x1d34] ss:$8 sps:$4 sm:$0xff]  }
 0x839   :  { %v21751_v5 = vpop.f32.mrf.mxu1  ;;  %11753 = vmatpush1.bf16.msra.mxu0 %v19239_v14  ;;  %11776 = vmatprep.mubr.bf16.mxu0 %v11455_v12  ;;  %v9395_v26 = vpop.f32.mrf.mxu0  ;;  %v19268_v14 = vld [vmem:[#allocation8 + $0x1e74] ss:$8 sps:$4 sm:$0xff]   ;;  %v19274_v12 = vld [vmem:[#allocation8 + $0x1e64] ss:$8 sps:$4 sm:$0xff]  }
 0x83a   :  { %11813 = vmatprep.subr.bf16.mxu1 %v19244_v49  ;;  %11754 = vmatprep.subr.bf16.mxu0 %v19247_v17  ;;  %v11463_v17 = vor.u32 %v11462_v7, %v11459_v56  ;;  %v11373_v56 = vld [vmem:[#allocation2 + $0x3c] sm:$0x77] }
 0x83b   :  { %11294 = vmatmul.mubr.bf16.gmra.mxu1 %v10986_v0  ;;  %v9332_v38 = vpop.f32.mrf.mxu1  ;;  %v9397_v51 = vpop.f32.mrf.mxu0  ;;  %v11374_v0 = vld [vmem:[#allocation2 + $0x44] sm:$0x7] }
 0x83c   :  { %v21753_v63 = vadd.f32 %v9393_v4, %v9332_v38  ;;  %11814 = vmatpush1.bf16.msra.mxu1 %v19242_v28  ;;  %11837 = vmatprep.mubr.bf16.mxu1 %v22632_v9  ;;  %v21760_v23 = vcombine.low %v19918_v19, %v11374_v0  ;;  %v19269_v4 = vld [vmem:[#allocation8 + $0x1d60] ss:$8 sps:$4 sm:$0xff]   ;;  %v11467_v28 = vsel %vm1201_vm8, %v11463_v17, %v21584_v36  ;;  %v19288_v19 = vld [vmem:[#allocation8 + $0x1d30] ss:$8 sps:$4 sm:$0xff]   ;;  %v19298_v7 = vld [vmem:[#allocation8 + $0x1d24] ss:$8 sps:$4 sm:$0xff]  }
 0x83d   :  { %v9334_v46 = vpop.f32.mrf.mxu1  ;;  %11755 = vmatpush1.bf16.msra.mxu0 %v19245_v11  ;;  %11815 = vmatprep.subr.bf16.mxu1 %v19250_v59  ;;  %v9398_v43 = vpop.f32.mrf.mxu0  ;;  %v19277_v11 = vld [vmem:[#allocation8 + $0x1d54] ss:$8 sps:$4 sm:$0xff]   ;;  %v19272_v38 = vld [vmem:[#allocation8 + $0x1e60] ss:$8 sps:$4 sm:$0xff]  }
 0x83e   :  { %v21756_v42 = vadd.f32 %v9395_v26, %v9334_v46  ;;  %11756 = vmatprep.subr.bf16.mxu0 %v19253_v29  ;;  %v11487_v10 = vshrl.u32 %v21760_v23, 16  ;;  %v11490_v49 = vshll.u32 %v21760_v23, 16  ;;  %v19281_v46 = vld [vmem:[#allocation8 + $0x1e54] ss:$8 sps:$4 sm:$0xff]   ;;  %v19282_v0 = vld [vmem:[#allocation8 + $0x1d40] ss:$8 sps:$4 sm:$0xff]  }
 0x83f   :  { %v9336_v50 = vpop.f32.mrf.mxu1 }
 0x840   :  { %11816 = vmatpush1.bf16.msra.mxu1 %v19248_v31  ;;  %v11489_v59 = vrot.slane %v11487_v10, 2  ;;  %v11492_v26 = vrot.slane %v11490_v49, 3  ;;  %v19275_v31 = vld [vmem:[#allocation8 + $0x1d50] ss:$8 sps:$4 sm:$0xff]  }
 0x841   :  { %v9337_v53 = vpop.f32.mrf.mxu1  ;;  %11757 = vmatpush1.bf16.msra.mxu0 %v19251_v25  ;;  %11817 = vmatprep.subr.bf16.mxu1 %v19256_v18  ;;  %v19284_v18 = vld [vmem:[#allocation8 + $0x1d44] ss:$8 sps:$4 sm:$0xff]   ;;  %v19291_v10 = vld [vmem:[#allocation8 + $0x1e30] ss:$8 sps:$4 sm:$0xff]  }
 0x842   :  { %11758 = vmatprep.subr.bf16.mxu0 %v19259_v22  ;;  %v11493_v25 = vor.u32 %v11492_v26, %v11489_v59  ;;  %v19279_v22 = vld [vmem:[#allocation8 + $0x1e50] ss:$8 sps:$4 sm:$0xff]  }
 0x843   :  { %v19920_v49 = vld [vmem:[#allocation2 + $0x30] sm:$0xff] }
 0x844   :  { %11818 = vmatpush1.bf16.msra.mxu1 %v19254_v24  ;;  %v19287_v24 = vld [vmem:[#allocation8 + $0x1e44] ss:$8 sps:$4 sm:$0xff]   ;;  %v11494_v58 = vsel %vm1201_vm8, %v21584_v36, %v11493_v25  ;;  %v21791_v17 = vcombine.high %v19920_v49, %v11373_v56 }
 0x845   :  { %11759 = vmatpush1.bf16.msra.mxu0 %v19257_v15  ;;  %11819 = vmatprep.subr.bf16.mxu1 %v19262_v47  ;;  %v19285_v15 = vld [vmem:[#allocation8 + $0x1e40] ss:$8 sps:$4 sm:$0xff]  }
 0x846   :  { %11760 = vmatprep.subr.bf16.mxu0 %v19265_v34  ;;  %v21780_v47 = vld [vmem:[#allocation2] sm:$0x88] }
 0x847   :  { %v17134_v36 = vcombine.high %v21780_v47, %v21706_v21 }
 0x848   :  { %11820 = vmatpush1.bf16.msra.mxu1 %v19260_v62  ;;  %v19293_v62 = vld [vmem:[#allocation8 + $0x1e34] ss:$8 sps:$4 sm:$0xff]  }
 0x849   :  { %11761 = vmatpush2.bf16.msra.mxu0 %v19263_v52  ;;  %12199 = vmatprep.subr.bf16.mxu1 %v19268_v14  ;;  %v21788_v14 = vld [vmem:[#allocation2 + $0x1c] ss:$12 sps:$4 sm:$0xff]  }
 0x84a   :  { %11762 = vmatprep.subr.bf16.mxu0 %v19271_v61  ;;  %v22603_v61 = vrot.slane %v21788_v14, 3 }
 0x84b   :  { %v21766_v29 = vpop.f32.mrf.mxu1  ;;  %11838 = vmatmul.mubr.bf16.vlgmr.msra.gmra.mxu1 %v11467_v28  ;;  %v19301_v28 = vld [vmem:[#allocation8 + $0x1e24] ss:$8 sps:$4 sm:$0xff]  }
 0x84c   :  { %12200 = vmatpush1.bf16.msra.mxu1 %v19266_v33  ;;  %11847 = vmatprep.mubr.bf16.mxu1 %v22632_v9 }
 0x84d   :  { %v21769_v51 = vpop.f32.mrf.mxu1  ;;  %11763 = vmatpush2.bf16.msra.mxu0 %v19269_v4  ;;  %12201 = vmatprep.subr.bf16.mxu1 %v19274_v12  ;;  %v11938_v4 = vrot.slane %v17134_v36, 3  ;;  %v19296_v12 = vld [vmem:[#allocation8 + $0x1d20] ss:$8 sps:$4 sm:$0xff]  }
 0x84e   :  { %11764 = vmatprep.subr.bf16.mxu0 %v19277_v11  ;;  %v19304_v11 = vld [vmem:[#allocation8 + $0x1d14] ss:$8 sps:$4 sm:$0xff]  }
 0x84f   :  { %v21771_v43 = vpop.f32.mrf.mxu1  ;;  %v11940_v26 = vsel %vm22696_vm10, %v11938_v4, %v22603_v61  ;;  %v19313_v4 = vld [vmem:[#allocation8 + $0x1e04] ss:$8 sps:$4 sm:$0xff]   ;;  %v19316_v61 = vld [vmem:[#allocation8 + $0x1f74] ss:$8 sps:$4 sm:$0xff]   ;;  %vm22704_vm10 = vmmov %vm22703_vm0 }
 0x850   :  { %12202 = vmatpush1.bf16.msra.mxu1 %v19272_v38  ;;  %v19299_v38 = vld [vmem:[#allocation8 + $0x1e20] ss:$8 sps:$4 sm:$0xff]  }
 0x851   :  { %v21773_v50 = vpop.f32.mrf.mxu1  ;;  %11765 = vmatpush2.bf16.msra.mxu0 %v19275_v31  ;;  %12203 = vmatprep.subr.bf16.mxu1 %v19281_v46  ;;  %v11478_v31 = vshrl.u32 %v21791_v17, 16  ;;  %v11481_v46 = vshll.u32 %v21791_v17, 16 }
 0x852   :  { %11766 = vmatprep.subr.bf16.mxu0 %v19284_v18 }
 0x853   :  { %v21777_v53 = vpop.f32.mrf.mxu1  ;;  %11848 = vmatmul.mubr.bf16.gmra.mxu1 %v11494_v58  ;;  %v19310_v58 = vld [vmem:[#allocation8 + $0x1d04] ss:$8 sps:$4 sm:$0xff]   ;;  %v11483_v36 = vrot.slane %v11481_v46, 3 }
 0x854   :  { %12204 = vmatpush1.bf16.msra.mxu1 %v19279_v22  ;;  %11857 = vmatprep.mubr.bf16.mxu1 %v22632_v9  ;;  %v19302_v22 = vld [vmem:[#allocation8 + $0x1d10] ss:$8 sps:$4 sm:$0xff]  }
 0x855   :  { %v21782_v34 = vpop.f32.mrf.mxu1  ;;  %11767 = vmatpush2.bf16.msra.mxu0 %v19282_v0  ;;  %12205 = vmatprep.subr.bf16.mxu1 %v19287_v24  ;;  %v19307_v0 = vld [vmem:[#allocation8 + $0x1e14] ss:$8 sps:$4 sm:$0xff]   ;;  %v11433_v24 = vshrl.u32 %v21710_v57, 16 }
 0x856   :  { %11768 = vmatprep.subr.bf16.mxu0 %v19290_v45 }
 0x857   :  { %v21786_v52 = vpop.f32.mrf.mxu1 }
 0x858   :  { %12206 = vmatpush1.bf16.msra.mxu1 %v19285_v15  ;;  %v21806_v15 = vcombine.low %v19920_v49, %v11373_v56  ;;  %v19311_v56 = vld [vmem:[#allocation8 + $0x1e00] ss:$8 sps:$4 sm:$0xff]  }
 0x859   :  { %v21793_v33 = vpop.f32.mrf.mxu1  ;;  %11769 = vmatpush2.bf16.msra.mxu0 %v19288_v19  ;;  %12207 = vmatprep.subr.bf16.mxu1 %v19293_v62  ;;  %v19305_v19 = vld [vmem:[#allocation8 + $0x1e10] ss:$8 sps:$4 sm:$0xff]   ;;  %v11480_v62 = vrot.slane %v11478_v31, 2 }
 0x85a   :  { %11770 = vmatprep.subr.bf16.mxu0 %v19298_v7 }
 0x85b   :  { %v21795_v59 = vpop.f32.mrf.mxu1  ;;  %11858 = vmatmul.mubr.bf16.gmra.mxu1 %v11493_v25  ;;  %v11436_v25 = vshll.u32 %v21710_v57, 16  ;;  %v11469_v57 = vshrl.u32 %v21806_v15, 16  ;;  %v11484_v49 = vor.u32 %v11483_v36, %v11480_v62 }
 0x85c   :  { %12208 = vmatpush1.bf16.msra.mxu1 %v19291_v10  ;;  %12231 = vmatprep.mubr.bf16.mxu1 %v11940_v26  ;;  %v19308_v10 = vld [vmem:[#allocation8 + $0x1d00] ss:$8 sps:$4 sm:$0xff]  }
 0x85d   :  { %v21802_v18 = vpop.f32.mrf.mxu1  ;;  %11771 = vmatpush2.bf16.msra.mxu0 %v19296_v12  ;;  %12209 = vmatprep.subr.bf16.mxu1 %v19301_v28  ;;  %v11435_v12 = vrot.slane %v11433_v24, 2  ;;  %v11438_v28 = vrot.slane %v11436_v25, 3  ;;  %v8924_v26 = vld [vmem:[#allocation9 + $0x3] ss:$8 sm:$0x3]  ;;  %v11485_v36 = vsel %vm1201_vm8, %v21582_v55, %v11484_v49 }
 0x85e   :  { %11772 = vmatprep.subr.bf16.mxu0 %v19304_v11  ;;  %v11472_v11 = vshll.u32 %v21806_v15, 16  ;;  %v19323_v24 = vld [vmem:[#allocation8 + $0x1f64] ss:$8 sps:$4 sm:$0xff]  }
 0x85f   :  { %v9947_v45 = vpop.f32.mrf.mxu1  ;;  %v11439_v46 = vor.u32 %v11438_v28, %v11435_v12  ;;  %v22698_v25 = vld [vmem:[#allocation17_spill] sm:$0xff] }
 0x860   :  { %12210 = vmatpush1.bf16.msra.mxu1 %v19299_v38  ;;  %v22697_v38 = vld [vmem:[#allocation16_spill] sm:$0xff] }
 0x861   :  { %v9948_v7 = vpop.f32.mrf.mxu1  ;;  %11773 = vmatpush2.bf16.msra.mxu0 %v19302_v22  ;;  %12211 = vmatprep.subr.bf16.mxu1 %v19307_v0  ;;  %v21811_v31 = vrot.slane %v8924_v26, %v22697_v38  ;;  %v19314_v22 = vld [vmem:[#allocation8 + $0x1f70] ss:$8 sps:$4 sm:$0xff]   ;;  %v19320_v0 = vld [vmem:[#allocation8 + $0x1ef4] ss:$8 sps:$4 sm:$0xff]   ;;  %v11443_v45 = vsel %vm1201_vm8, %v11439_v46, %v21596_v37  ;;  %v19321_v12 = vld [vmem:[#allocation8 + $0x1f60] ss:$8 sps:$4 sm:$0xff]  }
 0x862   :  { %11774 = vmatprep.subr.bf16.mxu0 %v19310_v58  ;;  %v21814_v58 = vrot.slane %v8924_v26, %v22698_v25  ;;  %v11471_v7 = vrot.slane %v11469_v57, 2  ;;  %v19326_v28 = vld [vmem:[#allocation8 + $0x1ee4] ss:$8 sps:$4 sm:$0xff]   ;;  %v19330_v57 = vld [vmem:[#allocation8 + $0x1f54] ss:$8 sps:$4 sm:$0xff]  }
 0x864   :  { %12212 = vmatpush1.bf16.msra.mxu1 %v19305_v19  ;;  %v11474_v19 = vrot.slane %v11472_v11, 3  ;;  %v9401_v11 = vadd.f32 %v21727_v6, %v21814_v58  ;;  %v19333_v6 = vld [vmem:[#allocation8 + $0x1ed4] ss:$8 sps:$4 sm:$0xff]  }
 0x865   :  { %11775 = vmatpush2.bf16.msra.mxu0 %v19308_v10  ;;  %12213 = vmatprep.subr.bf16.mxu1 %v19313_v4  ;;  %v19318_v10 = vld [vmem:[#allocation8 + $0x1ef0] ss:$8 sps:$4 sm:$0xff]  }
 0x866   :  { %12260 = vmatprep.subr.bf16.mxu0 %v19316_v61  ;;  %v9400_v61 = vadd.f32 %v21725_v1, %v21811_v31  ;;  %v11475_v46 = vor.u32 %v11474_v19, %v11471_v7 }
 0x868   :  { %12214 = vmatpush1.bf16.msra.mxu1 %v19311_v56  ;;  %v9862_v62 = vpop.f32.mrf.mxu0  ;;  %11777 = vmatmul.mubr.bf16.vlgmr.msra.gmra.mxu0 %v11443_v45  ;;  %v19324_v45 = vld [vmem:[#allocation8 + $0x1ee0] ss:$8 sps:$4 sm:$0xff]   ;;  %v11476_v7 = vsel %vm1201_vm8, %v21596_v37, %v11475_v46  ;;  %v9405_v37 = vadd.f32 %v21743_v35, %v21814_v58  ;;  %v19348_v35 = vld [vmem:[#allocation8 + $0x1f24] ss:$8 sps:$4 sm:$0xff]  }
 0x869   :  { %v9924_v4 = vadd.f32 %v21766_v29, %v9862_v62  ;;  %11786 = vmatprep.mubr.bf16.mxu0 %v11485_v36  ;;  %12261 = vmatpush1.bf16.msra.mxu0 %v19314_v22  ;;  %v9402_v29 = vadd.f32 %v21735_v40, %v21811_v31  ;;  %v19336_v36 = vld [vmem:[#allocation8 + $0x1f44] ss:$8 sps:$4 sm:$0xff]   ;;  %v19331_v40 = vld [vmem:[#allocation8 + $0x1ed0] ss:$8 sps:$4 sm:$0xff]  }
 0x86a   :  { %v9864_v26 = vpop.f32.mrf.mxu0  ;;  %12215 = vmatprep.subr.bf16.mxu1 %v19320_v0  ;;  %12262 = vmatprep.subr.bf16.mxu0 %v19323_v24  ;;  %v19328_v24 = vld [vmem:[#allocation8 + $0x1f50] ss:$8 sps:$4 sm:$0xff]  }
 0x86b   :  { %v21825_v56 = vadd.f32 %v9924_v4, %v9400_v61  ;;  %v9926_v55 = vadd.f32 %v21769_v51, %v9864_v26  ;;  %v19334_v61 = vld [vmem:[#allocation8 + $0x1f40] ss:$8 sps:$4 sm:$0xff]   ;;  %v19339_v4 = vld [vmem:[#allocation8 + $0x1ec4] ss:$8 sps:$4 sm:$0xff]  }
 0x86c   :  { %12216 = vmatpush2.bf16.msra.mxu1 %v19318_v10  ;;  %v9866_v1 = vpop.f32.mrf.mxu0 }
 0x86d   :  { %v21830_v22 = vadd.f32 %v9926_v55, %v9401_v11  ;;  %v9928_v0 = vadd.f32 %v21771_v43, %v9866_v1  ;;  %12263 = vmatpush1.bf16.msra.mxu0 %v19321_v12  ;;  %12217 = vmatprep.subr.bf16.mxu1 %v19326_v28  ;;  %v9404_v43 = vadd.f32 %v21741_v44, %v21811_v31  ;;  %v19342_v28 = vld [vmem:[#allocation8 + $0x1f34] ss:$8 sps:$4 sm:$0xff]   ;;  %v19337_v44 = vld [vmem:[#allocation8 + $0x1ec0] ss:$8 sps:$4 sm:$0xff]   ;;  %v19340_v1 = vld [vmem:[#allocation8 + $0x1f30] ss:$8 sps:$4 sm:$0xff]  }
 0x86e   :  { %v21833_v62 = vpop.f32.mrf.mxu0  ;;  %12264 = vmatprep.subr.bf16.mxu0 %v19330_v57 }
 0x86f   :  { %v21835_v51 = vadd.f32 %v9928_v0, %v9402_v29 }
 0x870   :  { %12218 = vmatpush2.bf16.msra.mxu1 %v19324_v45  ;;  %v9872_v19 = vpop.f32.mrf.mxu0  ;;  %11787 = vmatmul.mubr.bf16.gmra.mxu0 %v11476_v7  ;;  %v19345_v45 = vld [vmem:[#allocation8 + $0x1eb4] ss:$8 sps:$4 sm:$0xff]  }
 0x871   :  { %v9934_v10 = vadd.f32 %v21777_v53, %v9872_v19  ;;  %11796 = vmatprep.mubr.bf16.mxu0 %v11484_v49  ;;  %12265 = vmatpush1.bf16.msra.mxu0 %v19328_v24  ;;  %v9406_v53 = vadd.f32 %v21747_v60, %v21811_v31  ;;  %v19343_v24 = vld [vmem:[#allocation8 + $0x1eb0] ss:$8 sps:$4 sm:$0xff]   ;;  %v9408_v60 = vadd.f32 %v21753_v63, %v21811_v31  ;;  %v19354_v19 = vld [vmem:[#allocation8 + $0x1f14] ss:$8 sps:$4 sm:$0xff]   ;;  %v19349_v31 = vld [vmem:[#allocation8 + $0x1ea0] ss:$8 sps:$4 sm:$0xff]  }
 0x872   :  { %v9874_v12 = vpop.f32.mrf.mxu0  ;;  %12219 = vmatprep.subr.bf16.mxu1 %v19333_v6  ;;  %12266 = vmatprep.subr.bf16.mxu0 %v19336_v36  ;;  %v19351_v36 = vld [vmem:[#allocation8 + $0x1ea4] ss:$8 sps:$4 sm:$0xff]  }
 0x873   :  { %v21844_v26 = vadd.f32 %v9934_v10, %v9404_v43  ;;  %v9936_v57 = vadd.f32 %v21782_v34, %v9874_v12  ;;  %v19352_v10 = vld [vmem:[#allocation8 + $0x1f10] ss:$8 sps:$4 sm:$0xff]   ;;  %v19360_v12 = vld [vmem:[#allocation8 + $0x1f04] ss:$8 sps:$4 sm:$0xff]  }
 0x874   :  { %12220 = vmatpush2.bf16.msra.mxu1 %v19331_v40  ;;  %v9876_v11 = vpop.f32.mrf.mxu0  ;;  %v9409_v40 = vadd.f32 %v21756_v42, %v21814_v58  ;;  %v19358_v42 = vld [vmem:[#allocation8 + $0x1f00] ss:$8 sps:$4 sm:$0xff]  }
 0x875   :  { %v21849_v49 = vadd.f32 %v9936_v57, %v9405_v37  ;;  %v9938_v55 = vadd.f32 %v21786_v52, %v9876_v11  ;;  %12267 = vmatpush1.bf16.msra.mxu0 %v19334_v61  ;;  %12221 = vmatprep.subr.bf16.mxu1 %v19339_v4  ;;  %v19346_v52 = vld [vmem:[#allocation8 + $0x1f20] ss:$8 sps:$4 sm:$0xff]   ;;  %v19357_v61 = vld [vmem:[#allocation8 + $0x1e94] ss:$8 sps:$4 sm:$0xff]   ;;  %v11877_v37 = vld [vmem:[#allocation2 + $0x8] sm:$0x8] }
 0x876   :  { %v21852_v29 = vpop.f32.mrf.mxu0  ;;  %12268 = vmatprep.subr.bf16.mxu0 %v19342_v28  ;;  %v19355_v28 = vld [vmem:[#allocation8 + $0x1e90] ss:$8 sps:$4 sm:$0xff]   ;;  %v19363_v57 = vld [vmem:[#allocation8 + $0x1e84] ss:$8 sps:$4 sm:$0xff]  }
 0x877   :  { %v21854_v0 = vadd.f32 %v9938_v55, %v9406_v53  ;;  %v17133_v53 = vcombine.low %v21780_v47, %v21706_v21  ;;  %v19361_v55 = vld [vmem:[#allocation8 + $0x1e80] ss:$8 sps:$4 sm:$0xff]  }
 0x878   :  { %12222 = vmatpush2.bf16.msra.mxu1 %v19337_v44  ;;  %v9882_v34 = vpop.f32.mrf.mxu0  ;;  %11797 = vmatmul.mubr.bf16.gmra.mxu0 %v11475_v46  ;;  %v11942_v44 = vrot.slane %v21703_v2, 3 }
 0x879   :  { %v9944_v6 = vadd.f32 %v21795_v59, %v9882_v34  ;;  %12269 = vmatpush1.bf16.msra.mxu0 %v19340_v1  ;;  %12223 = vmatprep.subr.bf16.mxu1 %v19345_v45  ;;  %v11936_v45 = vrot.slane %v21713_v8, 3  ;;  %v11946_v34 = vrot.slane %v21791_v17, 3  ;;  %v11948_v8 = vrot.slane %v21760_v23, 3 }
 0x87a   :  { %v9884_v7 = vpop.f32.mrf.mxu0  ;;  %12270 = vmatprep.subr.bf16.mxu0 %v19348_v35  ;;  %12292 = vmatprep.mubr.bf16.mxu0 %v22632_v9 }
 0x87b   :  { %v21862_v43 = vadd.f32 %v9944_v6, %v9408_v60  ;;  %v9946_v46 = vadd.f32 %v21802_v18, %v9884_v7  ;;  %v19921_v18 = vld [vmem:[#allocation2 + $0x14] sm:$0xf]  ;;  %v22701_v6 = vrot.slane %v21788_v14, 3 }
 0x87c   :  { %12224 = vmatpush2.bf16.msra.mxu1 %v19343_v24  ;;  %v9886_v63 = vpop.f32.mrf.mxu0  ;;  %v17135_v11 = vcombine.low %v11877_v37, %v19921_v18  ;;  %v11935_v24 = vrot.slane %v17133_v53, 3 }
 0x87d   :  { %v21865_v59 = vadd.f32 %v9946_v46, %v9409_v40  ;;  %12271 = vmatpush1.bf16.msra.mxu0 %v19346_v52  ;;  %12225 = vmatprep.subr.bf16.mxu1 %v19351_v36  ;;  %v11947_v52 = vsel %vm22702_vm13, %v22701_v6, %v11946_v34  ;;  %v11944_v63 = vrot.slane %v21806_v15, 3 }
 0x87e   :  { %v9887_v4 = vpop.f32.mrf.mxu0  ;;  %12272 = vmatprep.subr.bf16.mxu0 %v19354_v19  ;;  %v11941_v1 = vrot.slane %v17135_v11, 3  ;;  %v11937_v21 = vsel %vm22700_vm11, %v11935_v24, %v11936_v45 }
 0x880   :  { %12226 = vmatpush2.bf16.msra.mxu1 %v19349_v31  ;;  %v11943_v35 = vsel %vm22699_vm15, %v11941_v1, %v11942_v44 }
 0x881   :  { %12273 = vmatpush1.bf16.msra.mxu0 %v19352_v10  ;;  %12227 = vmatprep.subr.bf16.mxu1 %v19357_v61  ;;  %v11949_v10 = vsel %vm22703_vm0, %v11942_v44, %v11948_v8 }
 0x882   :  { %12274 = vmatprep.subr.bf16.mxu0 %v19360_v12 }
 0x884   :  { %12228 = vmatpush2.bf16.msra.mxu1 %v19355_v28  ;;  %v11945_v28 = vsel %vm22704_vm10, %v11936_v45, %v11944_v63 }
 0x885   :  { %12275 = vmatpush1.bf16.msra.mxu0 %v19358_v42  ;;  %12229 = vmatprep.subr.bf16.mxu1 %v19363_v57 }
 0x888   :  { %12230 = vmatpush2.bf16.msra.mxu1 %v19361_v55  ;;  %v10378_v60 = vpop.f32.mrf.mxu0  ;;  %12293 = vmatmul.mubr.bf16.vlgmr.msra.gmra.mxu0 %v11943_v35 }
 0x889   :  { %12302 = vmatprep.mubr.bf16.mxu0 %v22632_v9 }
 0x88a   :  { %v10380_v2 = vpop.f32.mrf.mxu0 }
 0x88b   :  { %v10317_v47 = vpop.f32.mrf.mxu1  ;;  %12232 = vmatmul.mubr.bf16.vlgmr.msra.gmra.mxu1 %v11937_v21 }
 0x88c   :  { %v10379_v36 = vadd.f32 %v10378_v60, %v10317_v47  ;;  %12241 = vmatprep.mubr.bf16.mxu1 %v11947_v52  ;;  %v10382_v17 = vpop.f32.mrf.mxu0 }
 0x88d   :  { %v10319_v7 = vpop.f32.mrf.mxu1 }
 0x88e   :  { %v10405_v19 = vadd.f32 %v10379_v36, %v21825_v56  ;;  %v10381_v40 = vadd.f32 %v10380_v2, %v10319_v7  ;;  %v21880_v46 = vpop.f32.mrf.mxu0 }
 0x88f   :  { %v10321_v31 = vpop.f32.mrf.mxu1 }
 0x890   :  { %v10406_v14 = vadd.f32 %v10381_v40, %v21830_v22  ;;  %v10383_v61 = vadd.f32 %v10382_v17, %v10321_v31  ;;  %v10388_v4 = vpop.f32.mrf.mxu0  ;;  %12303 = vmatmul.mubr.bf16.gmra.mxu0 %v11949_v10 }
 0x891   :  { %v21885_v23 = vpop.f32.mrf.mxu1  ;;  %12312 = vmatprep.mubr.bf16.mxu0 %v22632_v9 }
 0x892   :  { %v10407_v12 = vadd.f32 %v10383_v61, %v21835_v51  ;;  %v10390_v56 = vpop.f32.mrf.mxu0 }
 0x893   :  { %v10327_v37 = vpop.f32.mrf.mxu1  ;;  %12242 = vmatmul.mubr.bf16.gmra.mxu1 %v11945_v28 }
 0x894   :  { %v10389_v15 = vadd.f32 %v10388_v4, %v10327_v37  ;;  %12251 = vmatprep.mubr.bf16.mxu1 %v11946_v34  ;;  %v10392_v42 = vpop.f32.mrf.mxu0 }
 0x895   :  { %v10329_v57 = vpop.f32.mrf.mxu1 }
 0x896   :  { %v10409_v22 = vadd.f32 %v10389_v15, %v21844_v26  ;;  %v10391_v18 = vadd.f32 %v10390_v56, %v10329_v57  ;;  %v21891_v11 = vpop.f32.mrf.mxu0 }
 0x897   :  { %v10331_v44 = vpop.f32.mrf.mxu1 }
 0x898   :  { %v10410_v53 = vadd.f32 %v10391_v18, %v21849_v49  ;;  %v10393_v55 = vadd.f32 %v10392_v42, %v10331_v44  ;;  %v10398_v1 = vpop.f32.mrf.mxu0  ;;  %12313 = vmatmul.mubr.bf16.gmra.mxu0 %v11948_v8 }
 0x899   :  { %v21894_v51 = vpop.f32.mrf.mxu1 }
 0x89a   :  { %v10411_v45 = vadd.f32 %v10393_v55, %v21854_v0  ;;  %v10400_v35 = vpop.f32.mrf.mxu0 }
 0x89b   :  { %v10337_v24 = vpop.f32.mrf.mxu1  ;;  %12252 = vmatmul.mubr.bf16.gmra.mxu1 %v11944_v63 }
 0x89c   :  { %v10399_v34 = vadd.f32 %v10398_v1, %v10337_v24  ;;  %v10402_v60 = vpop.f32.mrf.mxu0  ;;  %12950 = vmatprep.mubr.bf16.mxu1 %v22632_v9 }
 0x89d   :  { %v10339_v26 = vpop.f32.mrf.mxu1 }
 0x89e   :  { %v10413_v2 = vadd.f32 %v10399_v34, %v21862_v43  ;;  %v10401_v21 = vadd.f32 %v10400_v35, %v10339_v26  ;;  %v10403_v47 = vpop.f32.mrf.mxu0 }
 0x89f   :  { %v10341_v49 = vpop.f32.mrf.mxu1 }
 0x8a0   :  { %v10414_v6 = vadd.f32 %v10401_v21, %v21865_v59 }
 0x8a1   :  { %v10342_v52 = vpop.f32.mrf.mxu1 }
 0x8ab   :  { %v10881_v8 = vpop.f32.mrf.mxu1 }
 0x8ad   :  { %v10883_v36 = vpop.f32.mrf.mxu1 }
 0x8af   :  { %v10885_v17 = vpop.f32.mrf.mxu1 }
 0x8b1   :  { %v21900_v0 = vpop.f32.mrf.mxu1 }
 0x8b3   :  { %v10891_v7 = vpop.f32.mrf.mxu1 }
 0x8b5   :  { %v10893_v40 = vpop.f32.mrf.mxu1 }
 0x8b7   :  { %v10895_v63 = vpop.f32.mrf.mxu1 }
 0x8b9   :  { %v21902_v31 = vpop.f32.mrf.mxu1 }
 0x8bb   :  { %v10901_v10 = vpop.f32.mrf.mxu1 }
 0x8bd   :  { %v10903_v61 = vpop.f32.mrf.mxu1 }
 0x8bf   :  { %v10905_v4 = vpop.f32.mrf.mxu1 }
 0x8c1   :  { %v10906_v43 = vpop.f32.mrf.mxu1 }
 0x8c8   :  { %v10820_v56 = vpop.f32.mrf.mxu0 }
 0x8c9   :  { %v10882_v28 = vadd.f32 %v10881_v8, %v10820_v56 }
 0x8ca   :  { %v10822_v37 = vpop.f32.mrf.mxu0 }
 0x8cb   :  { %v10908_v15 = vadd.f32 %v10882_v28, %v10405_v19  ;;  %v10884_v59 = vadd.f32 %v10883_v36, %v10822_v37 }
 0x8cc   :  { %v10824_v42 = vpop.f32.mrf.mxu0 }
 0x8cd   :  { %v10909_v57 = vadd.f32 %v10884_v59, %v10406_v14  ;;  %v10886_v18 = vadd.f32 %v10885_v17, %v10824_v42 }
 0x8ce   :  { %v21904_v44 = vpop.f32.mrf.mxu0 }
 0x8cf   :  { %v10910_v55 = vadd.f32 %v10886_v18, %v10407_v12 }
 0x8d0   :  { %v10830_v1 = vpop.f32.mrf.mxu0 }
 0x8d1   :  { %v10892_v35 = vadd.f32 %v10891_v7, %v10830_v1  ;;  %v19365_v1 = vld [vmem:[#allocation8 + $0x1ff0] ss:$8 sps:$4 sm:$0xff]  }
 0x8d2   :  { %v10832_v24 = vpop.f32.mrf.mxu0 }
 0x8d3   :  { %v10912_v34 = vadd.f32 %v10892_v35, %v10409_v22  ;;  %v10894_v60 = vadd.f32 %v10893_v40, %v10832_v24  ;;  %v19367_v35 = vld [vmem:[#allocation8 + $0x1ff4] ss:$8 sps:$4 sm:$0xff]  }
 0x8d4   :  { %v10834_v26 = vpop.f32.mrf.mxu0  ;;  %12857 = vmatprep.subr.bf16.mxu0 %v19367_v35 }
 0x8d5   :  { %v10913_v21 = vadd.f32 %v10894_v60, %v10410_v53  ;;  %v10896_v47 = vadd.f32 %v10895_v63, %v10834_v26  ;;  %v19370_v60 = vld [vmem:[#allocation8 + $0x1fe4] ss:$8 sps:$4 sm:$0xff]   ;;  %12858 = vmatpush1.bf16.msra.mxu0 %v19365_v1 }
 0x8d6   :  { %v21906_v49 = vpop.f32.mrf.mxu0  ;;  %12859 = vmatprep.subr.bf16.mxu0 %v19370_v60 }
 0x8d7   :  { %v10914_v52 = vadd.f32 %v10896_v47, %v10411_v45 }
 0x8d8   :  { %v10840_v8 = vpop.f32.mrf.mxu0 }
 0x8d9   :  { %v10902_v19 = vadd.f32 %v10901_v10, %v10840_v8  ;;  %v19368_v8 = vld [vmem:[#allocation8 + $0x1fe0] ss:$8 sps:$4 sm:$0xff]  }
 0x8da   :  { %v10842_v36 = vpop.f32.mrf.mxu0  ;;  %12860 = vmatpush1.bf16.msra.mxu0 %v19368_v8 }
 0x8db   :  { %v10916_v4 = vadd.f32 %v10902_v19, %v10413_v2  ;;  %v10904_v14 = vadd.f32 %v10903_v61, %v10842_v36 }
 0x8dc   :  { %v10844_v17 = vpop.f32.mrf.mxu0 }
 0x8dd   :  { %v21908_v43 = vadd.f32 %v10904_v14, %v10414_v6  ;;  %v19373_v14 = vld [vmem:[#allocation8 + $0x1fd4] ss:$8 sps:$4 sm:$0xff]   ;;  %v19389_v17 = vld [vmem:[#allocation8 + $0x20f0] ss:$8 sps:$4 sm:$0xff]  }
 0x8de   :  { %v10845_v12 = vpop.f32.mrf.mxu0  ;;  %12861 = vmatprep.subr.bf16.mxu0 %v19373_v14 }
 0x8df   :  { %v19391_v12 = vld [vmem:[#allocation8 + $0x20f4] ss:$8 sps:$4 sm:$0xff]  }
 0x8e0   :  { %12918 = vmatprep.subr.bf16.mxu1 %v19391_v12  ;;  %v19382_v12 = vld [vmem:[#allocation8 + $0x1fa4] ss:$8 sps:$4 sm:$0xff]  }
 0x8e1   :  { %12919 = vmatpush1.bf16.msra.mxu1 %v19389_v17  ;;  %v19377_v17 = vld [vmem:[#allocation8 + $0x1fb0] ss:$8 sps:$4 sm:$0xff]  }
 0x8e8   :  { %v11336_v56 = vpop.f32.mrf.mxu0 }
 0x8ea   :  { %v11338_v7 = vpop.f32.mrf.mxu0 }
 0x8eb   :  { %v11275_v28 = vpop.f32.mrf.mxu1 }
 0x8ec   :  { %v11337_v22 = vadd.f32 %v11336_v56, %v11275_v28  ;;  %v11340_v40 = vpop.f32.mrf.mxu0 }
 0x8ed   :  { %v11277_v37 = vpop.f32.mrf.mxu1 }
 0x8ee   :  { %v21910_v53 = vadd.f32 %v11337_v22, %v10908_v15  ;;  %v11339_v63 = vadd.f32 %v11338_v7, %v11277_v37  ;;  %v21912_v59 = vpop.f32.mrf.mxu0  ;;  %v19397_v37 = vld [vmem:[#allocation8 + $0x20e4] ss:$8 sps:$4 sm:$0xff]  }
 0x8ef   :  { %v11279_v45 = vpop.f32.mrf.mxu1  ;;  %12920 = vmatprep.subr.bf16.mxu1 %v19397_v37  ;;  %v19388_v37 = vld [vmem:[#allocation8 + $0x1f84] ss:$8 sps:$4 sm:$0xff]  }
 0x8f0   :  { %v21914_v10 = vadd.f32 %v11339_v63, %v10909_v57  ;;  %v11341_v2 = vadd.f32 %v11340_v40, %v11279_v45  ;;  %v11346_v61 = vpop.f32.mrf.mxu0  ;;  %v19371_v40 = vld [vmem:[#allocation8 + $0x1fd0] ss:$8 sps:$4 sm:$0xff]   ;;  %v19376_v45 = vld [vmem:[#allocation8 + $0x1fc4] ss:$8 sps:$4 sm:$0xff]  }
 0x8f1   :  { %v21916_v42 = vpop.f32.mrf.mxu1  ;;  %12862 = vmatpush1.bf16.msra.mxu0 %v19371_v40  ;;  %v19383_v40 = vld [vmem:[#allocation8 + $0x1f90] ss:$8 sps:$4 sm:$0xff]  }
 0x8f2   :  { %v21918_v6 = vadd.f32 %v11341_v2, %v10910_v55  ;;  %v11348_v18 = vpop.f32.mrf.mxu0  ;;  %v19395_v2 = vld [vmem:[#allocation8 + $0x20e0] ss:$8 sps:$4 sm:$0xff]   ;;  %12863 = vmatprep.subr.bf16.mxu0 %v19376_v45 }
 0x8f3   :  { %v11285_v24 = vpop.f32.mrf.mxu1  ;;  %12921 = vmatpush1.bf16.msra.mxu1 %v19395_v2  ;;  %v19386_v45 = vld [vmem:[#allocation8 + $0x1f80] ss:$8 sps:$4 sm:$0xff]   ;;  %v19394_v2 = vld [vmem:[#allocation8 + $0x2074] ss:$8 sps:$4 sm:$0xff]  }
 0x8f4   :  { %v11347_v26 = vadd.f32 %v11346_v61, %v11285_v24  ;;  %v11350_v15 = vpop.f32.mrf.mxu0  ;;  %v19374_v24 = vld [vmem:[#allocation8 + $0x1fc0] ss:$8 sps:$4 sm:$0xff]  }
 0x8f5   :  { %v11287_v47 = vpop.f32.mrf.mxu1  ;;  %12864 = vmatpush1.bf16.msra.mxu0 %v19374_v24 }
 0x8f6   :  { %v21920_v19 = vadd.f32 %v11347_v26, %v10912_v34  ;;  %v11349_v57 = vadd.f32 %v11348_v18, %v11287_v47  ;;  %v21922_v36 = vpop.f32.mrf.mxu0  ;;  %v19403_v18 = vld [vmem:[#allocation8 + $0x20d4] ss:$8 sps:$4 sm:$0xff]   ;;  %v19401_v47 = vld [vmem:[#allocation8 + $0x20d0] ss:$8 sps:$4 sm:$0xff]  }
 0x8f7   :  { %v11289_v55 = vpop.f32.mrf.mxu1  ;;  %12922 = vmatprep.subr.bf16.mxu1 %v19403_v18 }
 0x8f8   :  { %v21924_v56 = vadd.f32 %v11349_v57, %v10913_v21  ;;  %v11351_v7 = vadd.f32 %v11350_v15, %v11289_v55  ;;  %v11356_v28 = vpop.f32.mrf.mxu0  ;;  %v19409_v57 = vld [vmem:[#allocation8 + $0x20c4] ss:$8 sps:$4 sm:$0xff]   ;;  %12923 = vmatpush1.bf16.msra.mxu1 %v19401_v47 }
 0x8f9   :  { %v21926_v22 = vpop.f32.mrf.mxu1  ;;  %12924 = vmatprep.subr.bf16.mxu1 %v19409_v57  ;;  %v19412_v57 = vld [vmem:[#allocation8 + $0x2044] ss:$8 sps:$4 sm:$0xff]  }
 0x8fa   :  { %v21928_v34 = vadd.f32 %v11351_v7, %v10914_v52  ;;  %v11358_v63 = vpop.f32.mrf.mxu0  ;;  %v19379_v52 = vld [vmem:[#allocation8 + $0x1fb4] ss:$8 sps:$4 sm:$0xff]   ;;  %v19380_v7 = vld [vmem:[#allocation8 + $0x1fa0] ss:$8 sps:$4 sm:$0xff]  }
 0x8fb   :  { %v11295_v61 = vpop.f32.mrf.mxu1  ;;  %12865 = vmatprep.subr.bf16.mxu0 %v19379_v52 }
 0x8fc   :  { %v11357_v21 = vadd.f32 %v11356_v28, %v11295_v61  ;;  %v11360_v1 = vpop.f32.mrf.mxu0  ;;  %12866 = vmatpush1.bf16.msra.mxu0 %v19377_v17  ;;  %v19385_v28 = vld [vmem:[#allocation8 + $0x1f94] ss:$8 sps:$4 sm:$0xff]  }
 0x8fd   :  { %v11297_v35 = vpop.f32.mrf.mxu1  ;;  %12867 = vmatprep.subr.bf16.mxu0 %v19382_v12  ;;  %v19400_v1 = vld [vmem:[#allocation8 + $0x2064] ss:$8 sps:$4 sm:$0xff]   ;;  %v19410_v12 = vld [vmem:[#allocation8 + $0x2040] ss:$8 sps:$4 sm:$0xff]  }
 0x8fe   :  { %v21930_v60 = vadd.f32 %v11357_v21, %v10916_v4  ;;  %v11359_v26 = vadd.f32 %v11358_v63, %v11297_v35  ;;  %v11361_v15 = vpop.f32.mrf.mxu0  ;;  %v19407_v4 = vld [vmem:[#allocation8 + $0x20c0] ss:$8 sps:$4 sm:$0xff]   ;;  %v19392_v21 = vld [vmem:[#allocation8 + $0x2070] ss:$8 sps:$4 sm:$0xff]  }
 0x8ff   :  { %v11299_v8 = vpop.f32.mrf.mxu1  ;;  %12925 = vmatpush1.bf16.msra.mxu1 %v19407_v4  ;;  %v19406_v15 = vld [vmem:[#allocation8 + $0x2054] ss:$8 sps:$4 sm:$0xff]  }
 0x900   :  { %v21933_v14 = vadd.f32 %v11359_v26, %v21908_v43  ;;  %12868 = vmatpush1.bf16.msra.mxu0 %v19380_v7  ;;  %v19398_v26 = vld [vmem:[#allocation8 + $0x2060] ss:$8 sps:$4 sm:$0xff]   ;;  %v19404_v8 = vld [vmem:[#allocation8 + $0x2050] ss:$8 sps:$4 sm:$0xff]  }
 0x901   :  { %v11300_v55 = vpop.f32.mrf.mxu1  ;;  %12869 = vmatprep.subr.bf16.mxu0 %v19385_v28 }
 0x904   :  { %12870 = vmatpush1.bf16.msra.mxu0 %v19383_v40 }
 0x905   :  { %12871 = vmatprep.subr.bf16.mxu0 %v19388_v37 }
 0x908   :  { %12872 = vmatpush1.bf16.msra.mxu0 %v19386_v45 }
 0x909   :  { %12873 = vmatprep.subr.bf16.mxu0 %v19394_v2 }
 0x90b   :  { %v11839_v63 = vpop.f32.mrf.mxu1 }
 0x90c   :  { %12874 = vmatpush2.bf16.msra.mxu0 %v19392_v21 }
 0x90d   :  { %v11841_v43 = vpop.f32.mrf.mxu1  ;;  %12875 = vmatprep.subr.bf16.mxu0 %v19400_v1 }
 0x90f   :  { %v11843_v61 = vpop.f32.mrf.mxu1 }
 0x910   :  { %12876 = vmatpush2.bf16.msra.mxu0 %v19398_v26 }
 0x911   :  { %v21935_v18 = vpop.f32.mrf.mxu1  ;;  %12877 = vmatprep.subr.bf16.mxu0 %v19406_v15 }
 0x913   :  { %v11849_v35 = vpop.f32.mrf.mxu1 }
 0x914   :  { %12878 = vmatpush2.bf16.msra.mxu0 %v19404_v8 }
 0x915   :  { %v11851_v24 = vpop.f32.mrf.mxu1  ;;  %12879 = vmatprep.subr.bf16.mxu0 %v19412_v57 }
 0x917   :  { %v11853_v52 = vpop.f32.mrf.mxu1 }
 0x918   :  { %12880 = vmatpush2.bf16.msra.mxu0 %v19410_v12 }
 0x919   :  { %v21937_v47 = vpop.f32.mrf.mxu1 }
 0x91b   :  { %v11859_v55 = vpop.f32.mrf.mxu1 }
 0x91d   :  { %v11861_v17 = vpop.f32.mrf.mxu1 }
 0x91f   :  { %v11863_v4 = vpop.f32.mrf.mxu1 }
 0x921   :  { %v11864_v7 = vpop.f32.mrf.mxu1 }
 0x928   :  { %v11778_v28 = vpop.f32.mrf.mxu0 }
 0x929   :  { %v11840_v40 = vadd.f32 %v11839_v63, %v11778_v28 }
 0x92a   :  { %v11780_v37 = vpop.f32.mrf.mxu0 }
 0x92b   :  { %v11866_v45 = vadd.f32 %v11840_v40, %v21910_v53  ;;  %v11842_v2 = vadd.f32 %v11841_v43, %v11780_v37 }
 0x92c   :  { %v11782_v21 = vpop.f32.mrf.mxu0 }
 0x92d   :  { %v11867_v1 = vadd.f32 %v11842_v2, %v21914_v10  ;;  %v11844_v26 = vadd.f32 %v11843_v61, %v11782_v21  ;;  %v9940_v2 = vadd.f32 %v21793_v33, %v21852_v29  ;;  %v10898_v33 = vadd.f32 %v21902_v31, %v21906_v49 }
 0x92e   :  { %v11784_v15 = vpop.f32.mrf.mxu0 }
 0x92f   :  { %v11868_v25 = vadd.f32 %v11844_v26, %v21918_v6 }
 0x930   :  { %v11788_v38 = vpop.f32.mrf.mxu0 }
 0x931   :  { %v11850_v8 = vadd.f32 %v11849_v35, %v11788_v38 }
 0x932   :  { %v11790_v27 = vpop.f32.mrf.mxu0 }
 0x933   :  { %v21943_v57 = vadd.f32 %v11850_v8, %v21920_v19  ;;  %v11852_v12 = vadd.f32 %v11851_v24, %v11790_v27  ;;  %v9930_v24 = vadd.f32 %v21773_v50, %v21833_v62 }
 0x934   :  { %v11792_v4 = vpop.f32.mrf.mxu0 }
 0x935   :  { %v21946_v63 = vadd.f32 %v11852_v12, %v21924_v56  ;;  %v11854_v53 = vadd.f32 %v11853_v52, %v11792_v4  ;;  %v9380_v56 = vadd.f32 %v21729_v48, %v21737_v39  ;;  %v10385_v52 = vadd.f32 %v21880_v46, %v21885_v23 }
 0x936   :  { %v11794_v43 = vpop.f32.mrf.mxu0  ;;  %v11343_v48 = vadd.f32 %v21912_v59, %v21916_v42  ;;  %v11846_v23 = vadd.f32 %v21935_v18, %v11784_v15 }
 0x937   :  { %v21949_v7 = vadd.f32 %v11854_v53, %v21928_v34  ;;  %v9403_v34 = vadd.f32 %v9380_v56, %v21814_v58  ;;  %v11856_v49 = vadd.f32 %v21937_v47, %v11794_v43  ;;  %v19413_v47 = vld [vmem:[#allocation8 + $0x20b0] ss:$8 sps:$4 sm:$0xff]  }
 0x938   :  { %v11798_v10 = vpop.f32.mrf.mxu0 }
 0x939   :  { %v11860_v61 = vadd.f32 %v11859_v55, %v11798_v10 }
 0x93a   :  { %v11800_v28 = vpop.f32.mrf.mxu0 }
 0x93b   :  { %v21952_v6 = vadd.f32 %v11860_v61, %v21930_v60  ;;  %v11862_v38 = vadd.f32 %v11861_v17, %v11800_v28  ;;  %v9953_v60 = vadd.f32 %v9930_v24, %v9403_v34  ;;  %v10888_v17 = vadd.f32 %v21900_v0, %v21904_v44 }
 0x93c   :  { %v11802_v35 = vpop.f32.mrf.mxu0 }
 0x93d   :  { %v21955_v19 = vadd.f32 %v11862_v38, %v21933_v14  ;;  %v9390_v14 = vadd.f32 %v21745_v30, %v21751_v5  ;;  %v10408_v37 = vadd.f32 %v10385_v52, %v9953_v60  ;;  %v10395_v30 = vadd.f32 %v21891_v11, %v21894_v51 }
 0x93e   :  { %v11803_v27 = vpop.f32.mrf.mxu0  ;;  %v11353_v11 = vadd.f32 %v21922_v36, %v21926_v22 }
 0x93f   :  { %v10911_v46 = vadd.f32 %v10888_v17, %v10408_v37  ;;  %v9407_v8 = vadd.f32 %v9390_v14, %v21814_v58 }
 0x941   :  { %v11366_v5 = vadd.f32 %v11343_v48, %v10911_v46  ;;  %v9957_v53 = vadd.f32 %v9940_v2, %v9407_v8  ;;  %v19418_v8 = vld [vmem:[#allocation8 + $0x2034] ss:$8 sps:$4 sm:$0xff]  }
 0x942   :  { %12881 = vmatprep.subr.bf16.mxu0 %v19418_v8 }
 0x943   :  { %v11869_v29 = vadd.f32 %v11846_v23, %v11366_v5  ;;  %v10412_v28 = vadd.f32 %v10395_v30, %v9957_v53  ;;  %v19416_v23 = vld [vmem:[#allocation8 + $0x2030] ss:$8 sps:$4 sm:$0xff]   ;;  %v19421_v30 = vld [vmem:[#allocation8 + $0x20a4] ss:$8 sps:$4 sm:$0xff]  }
 0x944   :  { %12882 = vmatpush2.bf16.msra.mxu0 %v19416_v23 }
 0x945   :  { %v10915_v31 = vadd.f32 %v10898_v33, %v10412_v28 }
 0x947   :  { %v11370_v36 = vadd.f32 %v11353_v11, %v10915_v31 }
 0x948   :  { %v12294_v55 = vpop.f32.mrf.mxu0 }
 0x94a   :  { %v12296_v40 = vpop.f32.mrf.mxu0 }
 0x94b   :  { %v12233_v39 = vpop.f32.mrf.mxu1 }
 0x94c   :  { %v12295_v50 = vadd.f32 %v12294_v55, %v12233_v39  ;;  %v12298_v62 = vpop.f32.mrf.mxu0 }
 0x94d   :  { %v12235_v21 = vpop.f32.mrf.mxu1 }
 0x94e   :  { %v12321_v26 = vadd.f32 %v12295_v50, %v11866_v45  ;;  %v12297_v0 = vadd.f32 %v12296_v40, %v12235_v21  ;;  %v12300_v44 = vpop.f32.mrf.mxu0  ;;  %v11873_v21 = vadd.f32 %v11856_v49, %v11370_v36 }
 0x94f   :  { %v12237_v59 = vpop.f32.mrf.mxu1 }
 0x950   :  { %v12322_v42 = vadd.f32 %v12297_v0, %v11867_v1  ;;  %v12299_v12 = vadd.f32 %v12298_v62, %v12237_v59  ;;  %v12304_v4 = vpop.f32.mrf.mxu0  ;;  %v12341_v18 = vmul.f32 0.01, %v12321_v26  ;;  %vm12331_vm11 = vcmp.ge.f32.partialorder %v12321_v26, 0.0 }
 0x951   :  { %v12239_v15 = vpop.f32.mrf.mxu1 }
 0x952   :  { %vm12332_vm15 = vcmp.ge.f32.partialorder %v12322_v42, 0.0  ;;  %v12342_v45 = vmul.f32 0.01, %v12322_v42  ;;  %v12323_v10 = vadd.f32 %v12299_v12, %v11868_v25  ;;  %v12301_v61 = vadd.f32 %v12300_v44, %v12239_v15  ;;  %v12306_v58 = vpop.f32.mrf.mxu0 }
 0x953   :  { %v12243_v51 = vpop.f32.mrf.mxu1  ;;  %v12351_v55 = vsel %vm12331_vm11, %v12321_v26, %v12341_v18 }
 0x954   :  { %vm12333_vm13 = vcmp.ge.f32.partialorder %v12323_v10, 0.0  ;;  %v12343_v1 = vmul.f32 0.01, %v12323_v10  ;;  %v12324_v38 = vadd.f32 %v12301_v61, %v11869_v29  ;;  %v12305_v35 = vadd.f32 %v12304_v4, %v12243_v51  ;;  %v12308_v27 = vpop.f32.mrf.mxu0 }
 0x955   :  { %v12245_v56 = vpop.f32.mrf.mxu1  ;;  %v12352_v24 = vsel %vm12332_vm15, %v12322_v42, %v12342_v45 }
 0x956   :  { %vm12334_vm0 = vcmp.ge.f32.partialorder %v12324_v38, 0.0  ;;  %v12344_v25 = vmul.f32 0.01, %v12324_v38  ;;  %v12325_v34 = vadd.f32 %v12305_v35, %v21943_v57  ;;  %v12310_v52 = vpop.f32.mrf.mxu0  ;;  %v12353_v22 = vsel %vm12333_vm13, %v12323_v10, %v12343_v1  ;;  %v19415_v57 = vld [vmem:[#allocation8 + $0x20b4] ss:$8 sps:$4 sm:$0xff]  }
 0x957   :  { %v12307_v60 = vadd.f32 %v12306_v58, %v12245_v56  ;;  %v12247_v17 = vpop.f32.mrf.mxu1  ;;  %v17573_v40 = vpack.c.bf16 %v12352_v24, %v12351_v55  ;;  %12926 = vmatprep.subr.bf16.mxu1 %v19415_v57  ;;  %v19424_v58 = vld [vmem:[#allocation8 + $0x2024] ss:$8 sps:$4 sm:$0xff]   ;;  %vm22705_vm13 = vcmp.ge.s32.totalorder %v20324_v13, 22  ;;  %v19427_v56 = vld [vmem:[#allocation8 + $0x2094] ss:$8 sps:$4 sm:$0xff]  }
 0x958   :  { %v12354_v14 = vsel %vm12334_vm0, %v12324_v38, %v12344_v25  ;;  %vm12335_vm10 = vcmp.ge.f32.partialorder %v12325_v34, 0.0  ;;  %v12345_v37 = vmul.f32 0.01, %v12325_v34  ;;  %v12309_v48 = vadd.f32 %v12308_v27, %v12247_v17  ;;  %v12314_v39 = vpop.f32.mrf.mxu0  ;;  %12927 = vmatpush1.bf16.msra.mxu1 %v19413_v47  ;;  %vm22706_vm0 = vmmov %vm22705_vm13  ;;  %12883 = vmatprep.subr.bf16.mxu0 %v19424_v58  ;;  %v19425_v55 = vld [vmem:[#allocation8 + $0x2090] ss:$8 sps:$4 sm:$0xff]  }
 0x959   :  { %v17574_v43 = vpack.c.bf16 %v12354_v14, %v12353_v22  ;;  %v12326_v50 = vadd.f32 %v12307_v60, %v21946_v63  ;;  %v12249_v62 = vpop.f32.mrf.mxu1  ;;  %v12399_v2 = vshrl.u32 %v17573_v40, 16  ;;  %v12402_v46 = vshll.u32 %v17573_v40, 16  ;;  %v19419_v63 = vld [vmem:[#allocation8 + $0x20a0] ss:$8 sps:$4 sm:$0xff]   ;;  %12928 = vmatprep.subr.bf16.mxu1 %v19421_v30  ;;  %v19430_v13 = vld [vmem:[#allocation8 + $0x2014] ss:$8 sps:$4 sm:$0xff]  }
 0x95a   :  { %v12327_v26 = vadd.f32 %v12309_v48, %v21949_v7  ;;  %v12311_v0 = vadd.f32 %v12310_v52, %v12249_v62  ;;  %v12316_v44 = vpop.f32.mrf.mxu0  ;;  %v12355_v5 = vsel %vm12335_vm10, %v12325_v34, %v12345_v37  ;;  %v19422_v7 = vld [vmem:[#allocation8 + $0x2020] ss:$8 sps:$4 sm:$0xff]   ;;  %v19428_v17 = vld [vmem:[#allocation8 + $0x2010] ss:$8 sps:$4 sm:$0xff]   ;;  %v19439_v30 = vld [vmem:[#allocation8 + $0x2174] ss:$8 sps:$4 sm:$0xff]  }
 0x95b   :  { %vm12336_vm15 = vcmp.ge.f32.partialorder %v12326_v50, 0.0  ;;  %v12346_v59 = vmul.f32 0.01, %v12326_v50  ;;  %v12253_v42 = vpop.f32.mrf.mxu1  ;;  %v12401_v12 = vrot.slane %v12399_v2, 6  ;;  %v12404_v45 = vrot.slane %v12402_v46, 7  ;;  %12884 = vmatpush2.bf16.msra.mxu0 %v19422_v7 }
 0x95c   :  { %vm12337_vm11 = vcmp.ge.f32.partialorder %v12327_v26, 0.0  ;;  %v12347_v4 = vmul.f32 0.01, %v12327_v26  ;;  %v12328_v53 = vadd.f32 %v12311_v0, %v11873_v21  ;;  %v12315_v33 = vadd.f32 %v12314_v39, %v12253_v42  ;;  %v12318_v29 = vpop.f32.mrf.mxu0  ;;  %12929 = vmatpush1.bf16.msra.mxu1 %v19419_v63  ;;  %12885 = vmatprep.subr.bf16.mxu0 %v19430_v13  ;;  %v19433_v39 = vld [vmem:[#allocation8 + $0x2084] ss:$8 sps:$4 sm:$0xff]  }
 0x95d   :  { %v12356_v18 = vsel %vm12336_vm15, %v12326_v50, %v12346_v59  ;;  %v12255_v15 = vpop.f32.mrf.mxu1  ;;  %v12408_v10 = vshrl.u32 %v17574_v43, 16  ;;  %v12411_v61 = vshll.u32 %v17574_v43, 16  ;;  %v12365_v28 = vsel %vm22705_vm13, %v12355_v5, 0.0  ;;  %12930 = vmatprep.subr.bf16.mxu1 %v19427_v56  ;;  %v19431_v2 = vld [vmem:[#allocation8 + $0x2080] ss:$8 sps:$4 sm:$0xff]  }
 0x95e   :  { %v12366_v11 = vsel %vm22706_vm0, %v12356_v18, 0.0  ;;  %vm12338_vm10 = vcmp.ge.f32.partialorder %v12328_v53, 0.0  ;;  %v12348_v51 = vmul.f32 0.01, %v12328_v53  ;;  %v12319_v1 = vpop.f32.mrf.mxu0  ;;  %v12329_v35 = vadd.f32 %v12315_v33, %v21952_v6  ;;  %v19436_v46 = vld [vmem:[#allocation8 + $0x2004] ss:$8 sps:$4 sm:$0xff]  }
 0x95f   :  { %v17575_v38 = vpack.c.bf16 %v12366_v11, %v12365_v28  ;;  %v12317_v27 = vadd.f32 %v12316_v44, %v12255_v15  ;;  %v12405_v31 = vor.u32 %v12404_v45, %v12401_v12  ;;  %v12257_v49 = vpop.f32.mrf.mxu1  ;;  %v12357_v24 = vsel %vm12337_vm11, %v12327_v26, %v12347_v4  ;;  %12886 = vmatpush2.bf16.msra.mxu0 %v19428_v17  ;;  %v19434_v0 = vld [vmem:[#allocation8 + $0x2000] ss:$8 sps:$4 sm:$0xff]   ;;  %v19445_v63 = vld [vmem:[#allocation8 + $0x2274] ss:$8 sps:$4 sm:$0xff]   ;;  %v19448_v13 = vld [vmem:[#allocation8 + $0x2164] ss:$8 sps:$4 sm:$0xff]  }
 0x960   :  { %v12358_v25 = vsel %vm12338_vm10, %v12328_v53, %v12348_v51  ;;  %v12410_v34 = vrot.slane %v12408_v10, 6  ;;  %v12413_v52 = vrot.slane %v12411_v61, 7  ;;  %vm12339_vm15 = vcmp.ge.f32.partialorder %v12329_v35, 0.0  ;;  %12931 = vmatpush1.bf16.msra.mxu1 %v19425_v55  ;;  %12887 = vmatprep.subr.bf16.mxu0 %v19436_v46  ;;  %v12485_v51 = vld [vmem:[#allocation2 + $0x8] sm:$0xe] }
 0x961   :  { %v17576_v36 = vpack.c.bf16 %v12358_v25, %v12357_v24  ;;  %v12349_v22 = vmul.f32 0.01, %v12329_v35  ;;  %v12330_v60 = vadd.f32 %v12317_v27, %v21955_v19  ;;  %12447 = vrot.lane.b32.xlu0 %v12405_v31, %s20035_s25  ;;  %v12258_v6 = vpop.f32.mrf.mxu1  ;;  %v12406_v40 = vrot.slane %v12405_v31, 4  ;;  %12932 = vmatprep.subr.bf16.mxu1 %v19433_v39  ;;  %v19446_v39 = vld [vmem:[#allocation8 + $0x2160] ss:$8 sps:$4 sm:$0xff]  }
 0x962   :  { %v12414_v14 = vor.u32 %v12413_v52, %v12410_v34  ;;  %v12418_v37 = vshrl.u32 %v17575_v38, 16  ;;  %v12421_v48 = vshll.u32 %v17575_v38, 16  ;;  %vm22707_vm13 = vcmp.lt.s32.totalorder %v20331_v20, 38  ;;  %v19437_v34 = vld [vmem:[#allocation8 + $0x2170] ss:$8 sps:$4 sm:$0xff]  }
 0x963   :  { %v12359_v47 = vsel %vm12339_vm15, %v12329_v35, %v12349_v22  ;;  %vm12340_vm11 = vcmp.ge.f32.partialorder %v12330_v60, 0.0  ;;  %v12350_v43 = vmul.f32 0.01, %v12330_v60  ;;  %v12428_v50 = vshrl.u32 %v17576_v36, 16  ;;  %vm22708_vm0 = vmmov %vm22707_vm13  ;;  %12888 = vmatpush2.bf16.msra.mxu0 %v19434_v0  ;;  %v19922_v35 = vld [vmem:[#allocation2] sm:$0xee] }
 0x964   :  { %v12415_v62 = vsel %vm20105_vm3, %v12406_v40, %v12414_v14  ;;  %v12420_v19 = vrot.slane %v12418_v37, 6  ;;  %v12423_v23 = vrot.slane %v12421_v48, 7  ;;  %v12431_v26 = vshll.u32 %v17576_v36, 16  ;;  %12933 = vmatpush1.bf16.msra.mxu1 %v19431_v2  ;;  %13468 = vmatprep.subr.bf16.mxu0 %v19445_v63  ;;  %v19443_v40 = vld [vmem:[#allocation8 + $0x2270] ss:$8 sps:$4 sm:$0xff]  }
 0x965   :  { %v12360_v57 = vsel %vm12340_vm11, %v12330_v60, %v12350_v43  ;;  %12449 = vrot.lane.b32.xlu1 %v12415_v62, %s20035_s25  ;;  %v12430_v21 = vrot.slane %v12428_v50, 6  ;;  %v12369_v44 = vsel %vm22707_vm13, %v12359_v47, 0.0  ;;  %v12416_v59 = vrot.slane %v12414_v14, 4  ;;  %13407 = vmatprep.subr.bf16.mxu1 %v19439_v30  ;;  %v12499_v37 = vld [vmem:[#allocation2 + $0x44] sm:$0x3] }
 0x966   :  { %v12370_v8 = vsel %vm22708_vm0, %v12360_v57, 0.0  ;;  %v12424_v42 = vor.u32 %v12423_v23, %v12420_v19  ;;  %v12433_v12 = vrot.slane %v12431_v26, 7  ;;  %v19451_v47 = vld [vmem:[#allocation8 + $0x2264] ss:$8 sps:$4 sm:$0xff]   ;;  %v19449_v62 = vld [vmem:[#allocation8 + $0x2260] ss:$8 sps:$4 sm:$0xff]  }
 0x967   :  { %v17577_v5 = vpack.c.bf16 %v12370_v8, %v12369_v44  ;;  %v12496_v43 = vld [vmem:[#allocation2 + $0x3c] sm:$0x33]  ;;  %v19454_v19 = vld [vmem:[#allocation8 + $0x2154] ss:$8 sps:$4 sm:$0xff]   ;;  %v19452_v57 = vld [vmem:[#allocation8 + $0x2150] ss:$8 sps:$4 sm:$0xff]  }
 0x968   :  { %v12425_v4 = vsel %vm20105_vm3, %v12416_v59, %v12424_v42  ;;  %v12426_v53 = vrot.slane %v12424_v42, 4  ;;  %v12434_v33 = vor.u32 %v12433_v12, %v12430_v21  ;;  %v19461_v26 = vld [vmem:[#allocation8 + $0x2254] ss:$8 sps:$4 sm:$0xff]   ;;  %vm22727_vm13 = vcmask 1044480  }
 0x969   :  { %v12438_v29 = vshrl.u32 %v17577_v5, 16  ;;  %12451 = vrot.lane.b32.xlu0 %v12425_v4, %s20035_s25  ;;  %v12441_v20 = vshll.u32 %v17577_v5, 16  ;;  %v19464_v5 = vld [vmem:[#allocation8 + $0x2144] ss:$8 sps:$4 sm:$0xff]   ;;  %vm22730_vm0 = vmmov %vm22727_vm13 }
 0x96a   :  { %v12435_v7 = vsel %vm20105_vm3, %v12426_v53, %v12434_v33  ;;  %v12436_v45 = vrot.slane %v12434_v33, 4  ;;  %v19459_v53 = vld [vmem:[#allocation8 + $0x2250] ss:$8 sps:$4 sm:$0xff]  }
 0x96b   :  { %v12440_v18 = vrot.slane %v12438_v29, 6  ;;  %12453 = vrot.lane.b32.xlu1 %v12435_v7, %s20035_s25  ;;  %v12443_v15 = vrot.slane %v12441_v20, 7  ;;  %v19462_v20 = vld [vmem:[#allocation8 + $0x2140] ss:$8 sps:$4 sm:$0xff]   ;;  %v19467_v7 = vld [vmem:[#allocation8 + $0x2244] ss:$8 sps:$4 sm:$0xff]  }
 0x96d   :  { %v12444_v10 = vor.u32 %v12443_v15, %v12440_v18 }
 0x96f   :  { %v12445_v61 = vsel %vm20105_vm3, %v12436_v45, %v12444_v10  ;;  %v12446_v58 = vrot.slane %v12444_v10, 4  ;;  %v19472_v10 = vld [vmem:[#allocation8 + $0x2134] ss:$8 sps:$4 sm:$0xff]   ;;  %vm22711_vm3 = vcmask 1045504  }
 0x970   :  { %12455 = vrot.lane.b32.xlu0 %v12445_v61, %s20035_s25  ;;  %vm22723_vm15 = vmmov %vm22711_vm3 }
 0x971   :  { %12457 = vrot.lane.b32.xlu1 %v12446_v58, %s20035_s25  ;;  %v19465_v58 = vld [vmem:[#allocation8 + $0x2240] ss:$8 sps:$4 sm:$0xff]   ;;  %vm22725_vm11 = vmmov %vm22711_vm3 }
 0x9d3   :  { %v12448_v28 = vpop.permute.xlu0 %12447 }
 0x9d4   :  { %v12459_v11 = vrot.slane %v12448_v28, 4 }
 0x9d6   :  { %v12465_v1 = vsel %vm1709_vm6, %v12459_v11, %v12448_v28  ;;  %v12486_v38 = vsel %vm20379_vm12, %v12459_v11, %v12485_v51  ;;  %vm22717_vm12 = vmmov %vm22711_vm3 }
 0x9d7   :  { %v12483_v27 = vsel %vm20383_vm5, %v12465_v1, %v19922_v35  ;;  %12487 = vst [vmem:[#allocation2 + $0x8] sm:$0xe] %v12486_v38  ;;  %v12450_v16 = vpop.permute.xlu1 %12449 }
 0x9d8   :  { %12484 = vst [vmem:[#allocation2] sm:$0xee] %v12483_v27  ;;  %v12460_v31 = vrot.slane %v12450_v16, 4 }
 0x9da   :  { %v12466_v49 = vsel %vm1709_vm6, %v12460_v31, %v12450_v16  ;;  %12489 = vst.msk [vmem:[#allocation2 + $0x14] sm:$0xf] %vm1608_vm1, %v12460_v31 }
 0x9db   :  { %12488 = vst.msk [vmem:[#allocation2 + $0xc] sm:$0xff] %vm20392_vm14, %v12466_v49  ;;  %v12452_v56 = vpop.permute.xlu0 %12451  ;;  %v19470_v49 = vld [vmem:[#allocation8 + $0x2130] ss:$8 sps:$4 sm:$0xff]  }
 0x9dc   :  { %v12461_v24 = vrot.slane %v12452_v56, 4 }
 0x9dd   :  { %v12454_v25 = vpop.permute.xlu1 %12453 }
 0x9de   :  { %v12467_v54 = vsel %vm1709_vm6, %v12461_v24, %v12452_v56  ;;  %12491 = vst.msk [vmem:[#allocation2 + $0x20] sm:$0xf] %vm1608_vm1, %v12461_v24  ;;  %v12462_v3 = vrot.slane %v12454_v25, 4  ;;  %v13540_v0 = vld [vmem:[#allocation2 + $0x8] sm:$0xe] }
 0x9df   :  { %12490 = vst.msk [vmem:[#allocation2 + $0x18] sm:$0xff] %vm20392_vm14, %v12467_v54  ;;  %v12515_v36 = vld [vmem:[#allocation2] sm:$0xff]  ;;  %v12990_v42 = vld [vmem:[#allocation2 + $0x8] sm:$0xf] }
 0x9e0   :  { %v12468_v52 = vsel %vm1709_vm6, %v12462_v3, %v12454_v25  ;;  %12493 = vst.msk [vmem:[#allocation2 + $0x2c] sm:$0xf] %vm1608_vm1, %v12462_v3  ;;  %v13539_v29 = vld [vmem:[#allocation2] sm:$0xee] }
 0x9e1   :  { %v19440_v55 = vld [vmem:[#allocation2 + $0x8] ss:$12 sps:$4 sm:$0xff]   ;;  %12492 = vst.msk [vmem:[#allocation2 + $0x24] sm:$0xff] %vm20392_vm14, %v12468_v52  ;;  %v19479_v52 = vld [vmem:[#allocation8 + $0x2124] ss:$8 sps:$4 sm:$0xff]  }
 0x9e2   :  { %v22028_v22 = vld [vmem:[#allocation2 + $0xc] sm:$0xff]  ;;  %v12456_v60 = vpop.permute.xlu0 %12455  ;;  %12951 = vmatmul.mubr.bf16.vlgmr.msra.gmra.mxu1 %v19440_v55  ;;  %v22038_v2 = vld [vmem:[#allocation2 + $0x14] sm:$0xf] }
 0x9e3   :  { %v22031_v6 = vcombine.low %v12515_v36, %v22028_v22  ;;  %v22034_v17 = vcombine.high %v12515_v36, %v22028_v22  ;;  %v12463_v14 = vrot.slane %v12456_v60, 4  ;;  %13408 = vmatpush1.bf16.msra.mxu1 %v19437_v34  ;;  %v12458_v48 = vpop.permute.xlu1 %12457  ;;  %12960 = vmatprep.mubr.bf16.mxu1 %v22632_v9  ;;  %v22051_v59 = vcombine.low %v13540_v0, %v22038_v2  ;;  %v19476_v34 = vld [vmem:[#allocation8 + $0x2234] ss:$8 sps:$4 sm:$0xff]   ;;  %v19477_v36 = vld [vmem:[#allocation8 + $0x2120] ss:$8 sps:$4 sm:$0xff]  }
 0x9e4   :  { %v12464_v50 = vrot.slane %v12458_v48, 4  ;;  %13409 = vmatprep.subr.bf16.mxu1 %v19448_v13  ;;  %v22059_v63 = vcombine.low %v12990_v42, %v22038_v2  ;;  %v22068_v18 = vcombine.low %v13539_v29, %v22028_v22  ;;  %v22095_v55 = vcombine.high %v13539_v29, %v22028_v22  ;;  %v19474_v13 = vld [vmem:[#allocation8 + $0x2230] ss:$8 sps:$4 sm:$0xff]  }
 0x9e5   :  { %12889 = vmatprep.mubr.bf16.mxu0 %v22034_v17  ;;  %v12469_v46 = vsel %vm1709_vm6, %v12463_v14, %v12456_v60  ;;  %12495 = vst.msk [vmem:[#allocation2 + $0x38] sm:$0xf] %vm1608_vm1, %v12463_v14  ;;  %v13104_v32 = vshll.u32 %v22034_v17, 16  ;;  %v13604_v15 = vrot.slane %v22051_v59, 1  ;;  %v13102_v35 = vshrl.u32 %v22034_v17, 16 }
 0x9e6   :  { %12890 = vmatmul.mubr.bf16.vlgmr.msra.gmra.mxu0 %v22031_v6  ;;  %12494 = vst.msk [vmem:[#allocation2 + $0x30] sm:$0xff] %vm20392_vm14, %v12469_v46  ;;  %v12470_v23 = vsel %vm1709_vm6, %v12464_v50, %v12458_v48  ;;  %v12500_v21 = vsel %vm20426_vm7, %v12464_v50, %v12499_v37  ;;  %v13116_v11 = vshll.u32 %v22059_v63, 16  ;;  %v13598_v25 = vrot.slane %v22068_v18, 1  ;;  %v19482_v14 = vld [vmem:[#allocation8 + $0x2224] ss:$8 sps:$4 sm:$0xff]   ;;  %vm22719_vm7 = vmmov %vm22711_vm3 }
 0x9e7   :  { %13469 = vmatpush1.bf16.msra.mxu0 %v19443_v40  ;;  %v12497_v8 = vsel %vm20434_vm9, %v12470_v23, %v12496_v43  ;;  %12501 = vst [vmem:[#allocation2 + $0x44] sm:$0x3] %v12500_v21  ;;  %13410 = vmatpush1.bf16.msra.mxu1 %v19446_v39  ;;  %v19455_v30 = vld [vmem:[#allocation2 + $0x20] ss:$12 sps:$4 sm:$0xff]   ;;  %v13106_v61 = vrot.slane %v13104_v32, 1  ;;  %v13114_v48 = vshrl.u32 %v22059_v63, 16  ;;  %vm22720_vm9 = vmmov %vm22711_vm3 }
 0x9e8   :  { %13470 = vmatprep.subr.bf16.mxu0 %v19451_v47  ;;  %12498 = vst [vmem:[#allocation2 + $0x3c] sm:$0x33] %v12497_v8  ;;  %13411 = vmatprep.subr.bf16.mxu1 %v19454_v19  ;;  %v22053_v41 = vld [vmem:[#allocation2 + $0x1c] ss:$12 sps:$4 sm:$0xff]   ;;  %v22056_v12 = vld [vmem:[#allocation2 + $0x18] ss:$12 sps:$4 sm:$0xff]  }
 0x9e9   :  { %v22061_v4 = vld [vmem:[#allocation2 + $0x20] ss:$12 sps:$4 sm:$0xff]   ;;  %v22064_v33 = vshll.u32 %v22053_v41, 16  ;;  %12899 = vmatprep.mubr.bf16.mxu0 %v22053_v41  ;;  %v22605_v1 = vrot.slane %v22056_v12, 1  ;;  %v13107_v3 = vor.u32 %v13106_v61, %v13102_v35  ;;  %v13118_v60 = vrot.slane %v13116_v11, 1 }
 0x9ea   :  { %12961 = vmatmul.mubr.bf16.gmra.mxu1 %v19455_v30  ;;  %v13605_v45 = vrot.slane %v22061_v4, 1  ;;  %v22088_v56 = vshll.u32 %v22061_v4, 16  ;;  %v19485_v37 = vld [vmem:[#allocation8 + $0x2114] ss:$8 sps:$4 sm:$0xff]   ;;  %v14078_v50 = vshrl.u32 %v22051_v59, 16  ;;  %v22112_v19 = vshrl.u32 %v22061_v4, 16 }
 0x9eb   :  { %13471 = vmatpush1.bf16.msra.mxu0 %v19449_v62  ;;  %13412 = vmatpush1.bf16.msra.mxu1 %v19452_v57  ;;  %v22608_v27 = vrot.slane %v22064_v33, 1  ;;  %v22100_v17 = vsel %vm642_vm4, %v13598_v25, %v22605_v1  ;;  %v14497_v62 = vld [vmem:[#allocation2] sm:$0xcc]  ;;  %v22116_v57 = vshrl.u32 %v22053_v41, 16  ;;  %v14498_v21 = vld [vmem:[#allocation2 + $0x8] sm:$0xc] }
 0x9ec   :  { %13472 = vmatprep.subr.bf16.mxu0 %v19461_v26  ;;  %13413 = vmatprep.subr.bf16.mxu1 %v19464_v5  ;;  %v22078_v51 = vsel %vm642_vm4, %v13604_v15, %v13605_v45  ;;  %v22085_v16 = vld [vmem:[#allocation2 + $0x38] sm:$0xf]  ;;  %v13123_v47 = vrot.slane %v22088_v56, 1  ;;  %v22119_v23 = vcombine.low %v14497_v62, %v22028_v22  ;;  %v13119_v26 = vor.u32 %v13118_v60, %v13114_v48  ;;  %v22132_v5 = vld [vmem:[#allocation2] sm:$0x88] }
 0x9ed   :  { %v22073_v28 = vld [vmem:[#allocation2 + $0x30] sm:$0xff]  ;;  %12970 = vmatprep.mubr.bf16.mxu1 %v22632_v9  ;;  %v19473_v54 = vld [vmem:[#allocation2 + $0x38] ss:$0 sps:$4 sm:$0xff]   ;;  %v13112_v40 = vsel %vm443_vm2, %v13107_v3, %v22608_v27  ;;  %v22127_v8 = vcombine.high %v14497_v62, %v22028_v22  ;;  %v22130_v30 = vcombine.low %v14498_v21, %v22038_v2  ;;  %v22137_v63 = vshll.u32 %v22056_v12, 16 }
 0x9ee   :  { %12900 = vmatmul.mubr.bf16.gmra.mxu0 %v22056_v12  ;;  %v17196_v38 = vcombine.high %v22073_v28, %v22073_v28  ;;  %v13000_v31 = vld [vmem:[#allocation2 + $0x44] sm:$0x1]  ;;  %v17195_v39 = vcombine.low %v22073_v28, %v22073_v28  ;;  %v19480_v32 = vld [vmem:[#allocation8 + $0x2220] ss:$8 sps:$4 sm:$0xff]   ;;  %v22145_v15 = vsel %vm443_vm2, %v13119_v26, %v13123_v47  ;;  %v14081_v61 = vshll.u32 %v22051_v59, 16 }
 0x9ef   :  { %13473 = vmatpush1.bf16.msra.mxu0 %v19459_v53  ;;  %13414 = vmatpush1.bf16.msra.mxu1 %v19462_v20  ;;  %v22091_v24 = vcombine.low %v22085_v16, %v13000_v31  ;;  %v13995_v44 = vld [vmem:[#allocation2 + $0x44] sm:$0x3]  ;;  %v22140_v53 = vshrl.u32 %v22056_v12, 16  ;;  %v19483_v20 = vld [vmem:[#allocation8 + $0x2110] ss:$8 sps:$4 sm:$0xff]   ;;  %v14073_v11 = vrot.slane %v22116_v57, 1 }
 0x9f0   :  { %13474 = vmatprep.subr.bf16.mxu0 %v19467_v7  ;;  %12909 = vmatprep.mubr.bf16.mxu0 %v17196_v38  ;;  %v19488_v7 = vld [vmem:[#allocation8 + $0x2214] ss:$8 sps:$4 sm:$0xff]   ;;  %v14085_v38 = vrot.slane %v22112_v19, 1  ;;  %v14086_v35 = vrot.slane %v22088_v56, 2  ;;  %v22155_v31 = vcombine.low %v22085_v16, %v13995_v44  ;;  %v14559_v3 = vrot.slane %v22127_v8, 2 }
 0x9f1   :  { %13415 = vmatprep.subr.bf16.mxu1 %v19472_v10  ;;  %v22604_v43 = vrot.slane %v22091_v24, 1  ;;  %v14080_v10 = vrot.slane %v14078_v50, 1  ;;  %v13145_v25 = vshll.u32 %v22091_v24, 16  ;;  %v19489_v59 = vld [vmem:[#allocation8 + $0x2100] ss:$8 sps:$4 sm:$0xff]   ;;  %v14061_v21 = vrot.slane %v22140_v53, 1 }
 0x9f2   :  { %12971 = vmatmul.mubr.bf16.gmra.mxu1 %v19473_v54  ;;  %22710 = vst [vmem:[#allocation18_spill] sm:$0xff] %v22155_v31  ;;  %v14083_v54 = vrot.slane %v14081_v61, 2  ;;  %v14111_v60 = vshll.u32 %v22155_v31, 16  ;;  %v14062_v26 = vrot.slane %v22137_v63, 2  ;;  %v13994_v44 = vld [vmem:[#allocation2 + $0x3c] sm:$0x33] }
 0x9f3   :  { %13475 = vmatpush1.bf16.msra.mxu0 %v19465_v58  ;;  %13416 = vmatpush1.bf16.msra.mxu1 %v19470_v49  ;;  %v22124_v0 = vsel %vm642_vm4, %v13605_v45, %v22604_v43  ;;  %v22148_v45 = vor.u32 %v22112_v19, %v13123_v47  ;;  %v19491_v58 = vld [vmem:[#allocation8 + $0x2104] ss:$8 sps:$4 sm:$0xff]   ;;  %v19486_v49 = vld [vmem:[#allocation8 + $0x2210] ss:$8 sps:$4 sm:$0xff]   ;;  %v14057_v47 = vshll.u32 %v22068_v18, 16  ;;  %v22176_v61 = vcombine.high %v22073_v28, %v13994_v44 }
 0x9f4   :  { %13439 = vmatprep.mubr.bf16.mxu1 %v13112_v40  ;;  %13476 = vmatprep.subr.bf16.mxu0 %v19476_v34  ;;  %v14560_v34 = vrot.slane %v22053_v41, 2  ;;  %v19494_v40 = vld [vmem:[#allocation8 + $0x2204] ss:$8 sps:$4 sm:$0xff]   ;;  %v14113_v62 = vrot.slane %v14111_v60, 2  ;;  %vm22712_vm1 = vsmask.f32 6400 }
 0x9f5   :  { %13417 = vmatprep.subr.bf16.mxu1 %v19479_v52  ;;  %v14074_v52 = vrot.slane %v22064_v33, 2  ;;  %22713 = vst [vmem:[#allocation19_spill] sm:$0xff] %v22176_v61  ;;  %v14099_v60 = vshrl.u32 %v22176_v61, 16  ;;  %vm22715_vm5 = vmmov %vm22712_vm1  ;;  %v15032_v27 = vrot.slane %v22064_v33, 3  ;;  %v19513_v42 = vld [vmem:[#allocation8 + $0x22d0] ss:$8 sps:$4 sm:$0xff]  }
 0x9f6   :  { %12910 = vmatmul.mubr.bf16.gmra.mxu0 %v17195_v39  ;;  %v22166_v48 = vsel %vm22711_vm3, %v14559_v3, %v14560_v34  ;;  %v14054_v39 = vshrl.u32 %v22068_v18, 16  ;;  %v19502_v18 = vld [vmem:[#allocation8 + $0x22f4] ss:$8 sps:$4 sm:$0xff]   ;;  %v22183_v3 = vcombine.low %v22073_v28, %v13994_v44  ;;  %vm22716_vm6 = vmmov %vm22712_vm1 }
 0x9f7   :  { %13477 = vmatpush1.bf16.msra.mxu0 %v19474_v13  ;;  %13500 = vmatprep.mubr.bf16.mxu0 %v22632_v9  ;;  %v14087_v13 = vor.u32 %v14086_v35, %v14085_v38  ;;  %v19495_v38 = vld [vmem:[#allocation8 + $0x21f0] ss:$8 sps:$4 sm:$0xff]   ;;  %vm22718_vm14 = vmmov %vm22712_vm1 }
 0x9f8   :  { %13418 = vmatpush1.bf16.msra.mxu1 %v19477_v36  ;;  %13478 = vmatprep.subr.bf16.mxu0 %v19482_v14  ;;  %v14108_v36 = vshrl.u32 %v22155_v31, 16  ;;  %v19497_v14 = vld [vmem:[#allocation8 + $0x21f4] ss:$8 sps:$4 sm:$0xff]   ;;  %22714 = vst [vmem:[#allocation20_spill] sm:$0xff] %v22183_v3  ;;  %vm22722_vm10 = vmmov %vm22712_vm1 }
 0x9f9   :  { %13419 = vmatprep.subr.bf16.mxu1 %v19485_v37  ;;  %v14084_v37 = vor.u32 %v14083_v54, %v14080_v10  ;;  %v14059_v10 = vrot.slane %v14057_v47, 2  ;;  %v14063_v54 = vor.u32 %v14062_v26, %v14061_v21  ;;  %v19505_v47 = vld [vmem:[#allocation8 + $0x21e4] ss:$8 sps:$4 sm:$0xff]   ;;  %v14101_v26 = vrot.slane %v14099_v60, 1  ;;  %vm22733_vm3 = vmmov %vm22730_vm0 }
 0x9fa   :  { %v14110_v50 = vrot.slane %v14108_v36, 1  ;;  %v14557_v60 = vrot.slane %v22056_v12, 2 }
 0x9fb   :  { %13479 = vmatpush1.bf16.msra.mxu0 %v19480_v32  ;;  %v19492_v32 = vld [vmem:[#allocation8 + $0x2200] ss:$8 sps:$4 sm:$0xff]  }
 0x9fc   :  { %13420 = vmatpush1.bf16.msra.mxu1 %v19483_v20  ;;  %13480 = vmatprep.subr.bf16.mxu0 %v19488_v7  ;;  %v22173_v20 = vsel %vm22712_vm1, %v14084_v37, %v14087_v13  ;;  %v14056_v7 = vrot.slane %v14054_v39, 1  ;;  %v22180_v35 = vor.u32 %v14113_v62, %v14110_v50  ;;  %v14102_v37 = vshll.u32 %v22176_v61, 16  ;;  %vm22734_vm1 = vmmov %vm22730_vm0 }
 0x9fd   :  { %13421 = vmatprep.subr.bf16.mxu1 %v19491_v58  ;;  %v22178_v58 = vrot.slane %v13145_v25, 1  ;;  %v14562_v39 = vrot.slane %v22130_v30, 2  ;;  %v14090_v50 = vshrl.u32 %v22183_v3, 16  ;;  %v14093_v62 = vshll.u32 %v22183_v3, 16 }
 0x9fe   :  { %v14060_v36 = vor.u32 %v14059_v10, %v14056_v7  ;;  %v22190_v25 = vsel %vm22715_vm5, %v14087_v13, %v22180_v35  ;;  %v14104_v44 = vrot.slane %v14102_v37, 2  ;;  %v19503_v7 = vld [vmem:[#allocation8 + $0x21e0] ss:$8 sps:$4 sm:$0xff]   ;;  %v19511_v37 = vld [vmem:[#allocation8 + $0x21d4] ss:$8 sps:$4 sm:$0xff]   ;;  %vm22735_vm5 = vmmov %vm22730_vm0 }
 0x9ff   :  { %13481 = vmatpush1.bf16.msra.mxu0 %v19486_v49  ;;  %v14953_v49 = vld [vmem:[#allocation2 + $0x44] sm:$0x7]  ;;  %v14092_v10 = vrot.slane %v14090_v50, 1  ;;  %v14095_v43 = vrot.slane %v14093_v62, 2 }
 0xa00   :  { %13422 = vmatpush1.bf16.msra.mxu1 %v19489_v59  ;;  %13482 = vmatprep.subr.bf16.mxu0 %v19494_v40  ;;  %v14563_v59 = vrot.slane %v22061_v4, 2  ;;  %v22195_v40 = vor.u32 %v14074_v52, %v14073_v11  ;;  %v22198_v21 = vsel %vm22716_vm6, %v14060_v36, %v14063_v54  ;;  %v22204_v1 = vcombine.low %v22085_v16, %v14953_v49  ;;  %v19508_v11 = vld [vmem:[#allocation8 + $0x22e4] ss:$8 sps:$4 sm:$0xff]   ;;  %vm22736_vm6 = vmmov %vm22730_vm0 }
 0xa01   :  { %13423 = vmatprep.subr.bf16.mxu1 %v19497_v14  ;;  %v19500_v14 = vld [vmem:[#allocation8 + $0x22f0] ss:$8 sps:$4 sm:$0xff]   ;;  %v22206_v52 = vor.u32 %v14104_v44, %v14101_v26  ;;  %v14556_v36 = vrot.slane %v22119_v23, 2  ;;  %v22211_v50 = vor.u32 %v14095_v43, %v14092_v10  ;;  %v22609_v16 = vrot.slane %v22183_v3, 2  ;;  %v19515_v26 = vld [vmem:[#allocation8 + $0x22d4] ss:$8 sps:$4 sm:$0xff]  }
 0xa02   :  { %v22201_v13 = vsel %vm22717_vm12, %v14562_v39, %v14563_v59  ;;  %v22607_v39 = vrot.slane %v22155_v31, 2 }
 0xa03   :  { %13483 = vmatpush1.bf16.msra.mxu0 %v19492_v32  ;;  %v22606_v32 = vrot.slane %v22176_v61, 2  ;;  %v22220_v49 = vsel %vm22718_vm14, %v22195_v40, %v22206_v52  ;;  %v22223_v62 = vsel %vm22719_vm7, %v14556_v36, %v14557_v60  ;;  %v22236_v44 = vsel %vm22722_vm10, %v14063_v54, %v22211_v50  ;;  %v19518_v36 = vld [vmem:[#allocation8 + $0x21c4] ss:$8 sps:$4 sm:$0xff]  }
 0xa04   :  { %13424 = vmatpush2.bf16.msra.mxu1 %v19495_v38  ;;  %13862 = vmatprep.subr.bf16.mxu0 %v19502_v18  ;;  %v15024_v38 = vshrl.u32 %v22127_v8, 16  ;;  %v19506_v18 = vld [vmem:[#allocation8 + $0x22e0] ss:$8 sps:$4 sm:$0xff]   ;;  %v22241_v10 = vsel %vm22723_vm15, %v14563_v59, %v22607_v39  ;;  %v17508_v59 = vcombine.high %v22132_v5, %v22028_v22  ;;  %v15456_v39 = vld [vmem:[#allocation2 + $0x8] sm:$0x8] }
 0xa05   :  { %13425 = vmatprep.subr.bf16.mxu1 %v19505_v47  ;;  %v22230_v43 = vsel %vm22720_vm9, %v14560_v34, %v22606_v32  ;;  %v15027_v47 = vshll.u32 %v22127_v8, 16  ;;  %22724 = vst [vmem:[#allocation22_spill] sm:$0xff] %v22241_v10  ;;  %v22246_v34 = vsel %vm22725_vm11, %v14557_v60, %v22609_v16  ;;  %v15031_v32 = vrot.slane %v22116_v57, 2 }
 0xa06   :  { %13501 = vmatmul.mubr.bf16.vlgmr.msra.gmra.mxu0 %v22145_v15  ;;  %22721 = vst [vmem:[#allocation21_spill] sm:$0xff] %v22230_v43  ;;  %v19509_v15 = vld [vmem:[#allocation8 + $0x21d0] ss:$8 sps:$4 sm:$0xff]   ;;  %22726 = vst [vmem:[#allocation23_spill] sm:$0xff] %v22246_v34  ;;  %v15026_v8 = vrot.slane %v15024_v38, 2  ;;  %v15036_v60 = vshrl.u32 %v22130_v30, 16  ;;  %v17509_v46 = vcombine.low %v15456_v39, %v22038_v2 }
 0xa07   :  { %13863 = vmatpush1.bf16.msra.mxu0 %v19500_v14  ;;  %13510 = vmatprep.mubr.bf16.mxu0 %v22632_v9  ;;  %v13148_v14 = vsel %vm443_vm2, %v22148_v45, %v22178_v58  ;;  %v15029_v54 = vrot.slane %v15027_v47, 3  ;;  %v14952_v38 = vld [vmem:[#allocation2 + $0x3c] sm:$0x77]  ;;  %v15044_v45 = vrot.slane %v22088_v56, 3  ;;  %v15066_v47 = vshrl.u32 %v22204_v1, 16 }
 0xa08   :  { %13426 = vmatpush2.bf16.msra.mxu1 %v19503_v7  ;;  %13864 = vmatprep.subr.bf16.mxu0 %v19508_v11  ;;  %v15039_v7 = vshll.u32 %v22130_v30, 16  ;;  %v15043_v11 = vrot.slane %v22112_v19, 2  ;;  %v15069_v16 = vshll.u32 %v22204_v1, 16  ;;  %v22262_v29 = vor.u32 %v15032_v27, %v15031_v32  ;;  %v19516_v30 = vld [vmem:[#allocation8 + $0x21c0] ss:$8 sps:$4 sm:$0xff]  }
 0xa09   :  { %13427 = vmatprep.subr.bf16.mxu1 %v19511_v37  ;;  %v15030_v37 = vor.u32 %v15029_v54, %v15026_v8  ;;  %v15038_v3 = vrot.slane %v15036_v60, 2  ;;  %v19521_v19 = vld [vmem:[#allocation8 + $0x22c4] ss:$8 sps:$4 sm:$0xff]   ;;  %v15068_v34 = vrot.slane %v15066_v47, 2  ;;  %v22265_v10 = vcombine.high %v22073_v28, %v14952_v38  ;;  %v19524_v43 = vld [vmem:[#allocation8 + $0x21b4] ss:$8 sps:$4 sm:$0xff]  }
 0xa0a   :  { %v15041_v31 = vrot.slane %v15039_v7, 3  ;;  %v15045_v61 = vor.u32 %v15044_v45, %v15043_v11  ;;  %v15071_v56 = vrot.slane %v15069_v16, 3  ;;  %v15517_v32 = vrot.slane %v17508_v59, 3  ;;  %v19519_v8 = vld [vmem:[#allocation8 + $0x22c0] ss:$8 sps:$4 sm:$0xff]  }
 0xa0b   :  { %13865 = vmatpush1.bf16.msra.mxu0 %v19506_v18  ;;  %v22269_v2 = vsel %vm1201_vm8, %v15030_v37, %v22262_v29  ;;  %v22272_v39 = vcombine.low %v22073_v28, %v14952_v38  ;;  %v15012_v16 = vshrl.u32 %v22119_v23, 16  ;;  %v19527_v54 = vld [vmem:[#allocation8 + $0x22b4] ss:$8 sps:$4 sm:$0xff]   ;;  %v19532_v7 = vld [vmem:[#allocation8 + $0x21a4] ss:$8 sps:$4 sm:$0xff]   ;;  %v15057_v38 = vshrl.u32 %v22265_v10, 16 }
 0xa0c   :  { %13428 = vmatpush2.bf16.msra.mxu1 %v19509_v15  ;;  %13866 = vmatprep.subr.bf16.mxu0 %v19515_v26  ;;  %v15042_v27 = vor.u32 %v15041_v31, %v15038_v3  ;;  %v22274_v18 = vor.u32 %v15071_v56, %v15068_v34  ;;  %v15518_v15 = vrot.slane %v22053_v41, 3  ;;  %v15015_v26 = vshll.u32 %v22119_v23, 16  ;;  %v19525_v37 = vld [vmem:[#allocation8 + $0x22b0] ss:$8 sps:$4 sm:$0xff]  }
 0xa0d   :  { %13429 = vmatprep.subr.bf16.mxu1 %v19518_v36  ;;  %v13155_v36 = vshrl.u32 %v22091_v24, 16  ;;  %v15019_v3 = vrot.slane %v22140_v53, 2  ;;  %v15020_v34 = vrot.slane %v22137_v63, 3  ;;  %v15014_v59 = vrot.slane %v15012_v16, 2 }
 0xa0e   :  { %13511 = vmatmul.mubr.bf16.gmra.mxu0 %v13148_v14  ;;  %v22282_v31 = vsel %vm1201_vm8, %v15042_v27, %v15045_v61  ;;  %v19522_v14 = vld [vmem:[#allocation8 + $0x21b0] ss:$8 sps:$4 sm:$0xff]   ;;  %v22288_v23 = vsel %vm1201_vm8, %v15045_v61, %v22274_v18  ;;  %v15017_v60 = vrot.slane %v15015_v26, 3  ;;  %v15060_v45 = vshll.u32 %v22265_v10, 16 }
 0xa0f   :  { %13867 = vmatpush1.bf16.msra.mxu0 %v19513_v42  ;;  %13520 = vmatprep.mubr.bf16.mxu0 %v22632_v9  ;;  %v22291_v42 = vsel %vm22727_vm13, %v15517_v32, %v15518_v15  ;;  %v15021_v11 = vor.u32 %v15020_v34, %v15019_v3  ;;  %v15048_v47 = vshrl.u32 %v22272_v39, 16  ;;  %v15520_v61 = vrot.slane %v17509_v46, 3  ;;  %v12999_v32 = vld [vmem:[#allocation2 + $0x3c] sm:$0x11] }
 0xa10   :  { %13430 = vmatpush2.bf16.msra.mxu1 %v19516_v30  ;;  %13868 = vmatprep.subr.bf16.mxu0 %v19521_v19  ;;  %22728 = vst [vmem:[#allocation24_spill] sm:$0xff] %v22291_v42  ;;  %v15018_v30 = vor.u32 %v15017_v60, %v15014_v59  ;;  %v15051_v19 = vshll.u32 %v22272_v39, 16  ;;  %v15521_v56 = vrot.slane %v22061_v4, 3  ;;  %v13157_v27 = vor.u32 %v13155_v36, %v22178_v58  ;;  %v19530_v34 = vld [vmem:[#allocation8 + $0x21a0] ss:$8 sps:$4 sm:$0xff]  }
 0xa11   :  { %13431 = vmatprep.subr.bf16.mxu1 %v19524_v43  ;;  %v22729_v43 = vcombine.low %v22132_v5, %v22028_v22  ;;  %v15059_v26 = vrot.slane %v15057_v38, 2  ;;  %v15062_v3 = vrot.slane %v15060_v45, 3  ;;  %v19535_v42 = vld [vmem:[#allocation8 + $0x22a4] ss:$8 sps:$4 sm:$0xff]   ;;  %v15050_v46 = vrot.slane %v15048_v47, 2 }
 0xa12   :  { %v22303_v59 = vsel %vm1201_vm8, %v15018_v30, %v15021_v11  ;;  %v15053_v60 = vrot.slane %v15051_v19, 3  ;;  %v22306_v4 = vsel %vm22730_vm0, %v15520_v61, %v15521_v56  ;;  %v19538_v58 = vld [vmem:[#allocation8 + $0x2194] ss:$8 sps:$4 sm:$0xff]   ;;  %v15515_v22 = vrot.slane %v22056_v12, 3  ;;  %v19533_v30 = vld [vmem:[#allocation8 + $0x22a0] ss:$8 sps:$4 sm:$0xff]  }
 0xa13   :  { %13869 = vmatpush1.bf16.msra.mxu0 %v19519_v8  ;;  %v15514_v16 = vrot.slane %v22729_v43, 3  ;;  %v22308_v8 = vor.u32 %v15062_v3, %v15059_v26  ;;  %v15525_v5 = vrot.slane %v22265_v10, 3  ;;  %v15527_v36 = vrot.slane %v22204_v1, 3  ;;  %v19541_v26 = vld [vmem:[#allocation8 + $0x2294] ss:$8 sps:$4 sm:$0xff]  }
 0xa14   :  { %13432 = vmatpush2.bf16.msra.mxu1 %v19522_v14  ;;  %13870 = vmatprep.subr.bf16.mxu0 %v19527_v54  ;;  %v22731_v14 = vrot.slane %v22053_v41, 1  ;;  %v22732_v54 = vrot.slane %v22095_v55, 1  ;;  %v22319_v45 = vcombine.high %v22073_v28, %v12999_v32  ;;  %v22613_v47 = vrot.slane %v22272_v39, 3 }
 0xa15   :  { %13433 = vmatprep.subr.bf16.mxu1 %v19532_v7  ;;  %v22321_v7 = vor.u32 %v15053_v60, %v15050_v46  ;;  %v22327_v19 = vsel %vm1201_vm8, %v22262_v29, %v22308_v8  ;;  %v22330_v61 = vsel %vm22733_vm3, %v15514_v16, %v15515_v22  ;;  %v13092_v43 = vshll.u32 %v22031_v6, 16  ;;  %v19544_v16 = vld [vmem:[#allocation8 + $0x2184] ss:$8 sps:$4 sm:$0xff]  }
 0xa16   :  { %13521 = vmatmul.mubr.bf16.gmra.mxu0 %v13157_v27  ;;  %v13603_v38 = vsel %vm642_vm4, %v22732_v54, %v22731_v14  ;;  %v22335_v27 = vsel %vm22734_vm1, %v15518_v15, %v15525_v5  ;;  %v22345_v29 = vsel %vm22735_vm5, %v15521_v56, %v15527_v36  ;;  %v22350_v15 = vsel %vm22736_vm6, %v15515_v22, %v22613_v47  ;;  %v19547_v60 = vld [vmem:[#allocation8 + $0x2284] ss:$8 sps:$4 sm:$0xff]   ;;  %v19550_v14 = vld [vmem:[#allocation8 + $0x23f4] ss:$8 sps:$4 sm:$0xff]  }
 0xa17   :  { %13871 = vmatpush1.bf16.msra.mxu0 %v19525_v37  ;;  %13894 = vmatprep.mubr.bf16.mxu0 %v13603_v38  ;;  %v19536_v37 = vld [vmem:[#allocation8 + $0x2190] ss:$8 sps:$4 sm:$0xff]   ;;  %v22340_v3 = vsel %vm1201_vm8, %v15021_v11, %v22321_v7  ;;  %v13094_v46 = vrot.slane %v13092_v43, 1  ;;  %v19542_v11 = vld [vmem:[#allocation8 + $0x2180] ss:$8 sps:$4 sm:$0xff]   ;;  %v13090_v56 = vshrl.u32 %v22031_v6, 16  ;;  %v22356_v22 = vcombine.low %v22073_v28, %v12999_v32 }
 0xa18   :  { %13434 = vmatpush2.bf16.msra.mxu1 %v19530_v34  ;;  %13872 = vmatprep.subr.bf16.mxu0 %v19535_v42  ;;  %v19539_v42 = vld [vmem:[#allocation8 + $0x2290] ss:$8 sps:$4 sm:$0xff]   ;;  %v13137_v34 = vshll.u32 %v22319_v45, 16  ;;  %v13099_v54 = vrot.slane %v22137_v63, 1  ;;  %v19557_v47 = vld [vmem:[#allocation8 + $0x23e4] ss:$8 sps:$4 sm:$0xff]  }
 0xa19   :  { %13435 = vmatprep.subr.bf16.mxu1 %v19538_v58  ;;  %v19545_v58 = vld [vmem:[#allocation8 + $0x2280] ss:$8 sps:$4 sm:$0xff]   ;;  %v19548_v43 = vld [vmem:[#allocation8 + $0x23f0] ss:$8 sps:$4 sm:$0xff]   ;;  %v13129_v63 = vshll.u32 %v22356_v22, 16 }
 0xa1a   :  { %v13139_v38 = vrot.slane %v13137_v34, 1  ;;  %v19552_v32 = vld [vmem:[#allocation8 + $0x2370] ss:$8 sps:$4 sm:$0xff]   ;;  %v19560_v34 = vld [vmem:[#allocation8 + $0x2364] ss:$8 sps:$4 sm:$0xff]  }
 0xa1b   :  { %13873 = vmatpush1.bf16.msra.mxu0 %v19533_v30  ;;  %v13095_v30 = vor.u32 %v13094_v46, %v13090_v56  ;;  %v13131_v46 = vrot.slane %v13129_v63, 1  ;;  %v19567_v56 = vld [vmem:[#allocation8 + $0x2354] ss:$8 sps:$4 sm:$0xff]  }
 0xa1c   :  { %13436 = vmatpush2.bf16.msra.mxu1 %v19536_v37  ;;  %13874 = vmatprep.subr.bf16.mxu0 %v19541_v26  ;;  %v22737_v37 = vrot.slane %v22064_v33, 1  ;;  %v19564_v33 = vld [vmem:[#allocation8 + $0x23d4] ss:$8 sps:$4 sm:$0xff]  }
 0xa1d   :  { %13437 = vmatprep.subr.bf16.mxu1 %v19544_v16  ;;  %v19554_v16 = vld [vmem:[#allocation8 + $0x2374] ss:$8 sps:$4 sm:$0xff]   ;;  %v13100_v6 = vsel %vm443_vm2, %v13095_v30, %v13099_v54 }
 0xa1e   :  { %v13135_v26 = vor.u32 %v22116_v57, %v22737_v37  ;;  %v19558_v57 = vld [vmem:[#allocation8 + $0x2360] ss:$8 sps:$4 sm:$0xff]   ;;  %v19579_v63 = vld [vmem:[#allocation8 + $0x2334] ss:$8 sps:$4 sm:$0xff]  }
 0xa1f   :  { %13875 = vmatpush1.bf16.msra.mxu0 %v19539_v42  ;;  %v19555_v42 = vld [vmem:[#allocation8 + $0x23e0] ss:$8 sps:$4 sm:$0xff]  }
 0xa20   :  { %13438 = vmatpush2.bf16.msra.mxu1 %v19542_v11  ;;  %13876 = vmatprep.subr.bf16.mxu0 %v19547_v60  ;;  %v13140_v28 = vsel %vm443_vm2, %v13135_v26, %v13139_v38  ;;  %v13127_v11 = vor.u32 %v22140_v53, %v13099_v54  ;;  %v19562_v60 = vld [vmem:[#allocation8 + $0x23d0] ss:$8 sps:$4 sm:$0xff]   ;;  %v19568_v37 = vld [vmem:[#allocation8 + $0x23c0] ss:$8 sps:$4 sm:$0xff]   ;;  %v19573_v26 = vld [vmem:[#allocation8 + $0x2344] ss:$8 sps:$4 sm:$0xff]  }
 0xa21   :  { %13923 = vmatprep.subr.bf16.mxu1 %v19550_v14  ;;  %v13152_v14 = vshrl.u32 %v22319_v45, 16  ;;  %v19571_v53 = vld [vmem:[#allocation8 + $0x2340] ss:$8 sps:$4 sm:$0xff]   ;;  %v13149_v54 = vshrl.u32 %v22356_v22, 16 }
 0xa22   :  { %v13132_v30 = vsel %vm443_vm2, %v13127_v11, %v13131_v46  ;;  %v19586_v11 = vld [vmem:[#allocation8 + $0x2390] ss:$8 sps:$4 sm:$0xff]   ;;  %vm22741_vm2 = vmmov %vm22722_vm10 }
 0xa23   :  { %13877 = vmatpush1.bf16.msra.mxu0 %v19545_v58  ;;  %13440 = vmatmul.mubr.bf16.vlgmr.msra.gmra.mxu1 %v13100_v6  ;;  %v19570_v58 = vld [vmem:[#allocation8 + $0x23c4] ss:$8 sps:$4 sm:$0xff]   ;;  %v19574_v6 = vld [vmem:[#allocation8 + $0x23b0] ss:$8 sps:$4 sm:$0xff]  }
 0xa24   :  { %13449 = vmatprep.mubr.bf16.mxu1 %v13140_v28  ;;  %13924 = vmatpush1.bf16.msra.mxu1 %v19548_v43  ;;  %v13154_v43 = vor.u32 %v13152_v14, %v13139_v38  ;;  %v13151_v28 = vor.u32 %v13149_v54, %v13131_v46  ;;  %v19582_v38 = vld [vmem:[#allocation8 + $0x23a4] ss:$8 sps:$4 sm:$0xff]   ;;  %v19589_v14 = vld [vmem:[#allocation8 + $0x2310] ss:$8 sps:$4 sm:$0xff]   ;;  %v19605_v54 = vld [vmem:[#allocation8 + $0x2460] ss:$8 sps:$4 sm:$0xff]  }
 0xa25   :  { %13878 = vmatprep.subr.bf16.mxu0 %v19554_v16  ;;  %13925 = vmatprep.subr.bf16.mxu1 %v19557_v47  ;;  %v19565_v47 = vld [vmem:[#allocation8 + $0x2350] ss:$8 sps:$4 sm:$0xff]   ;;  %v19576_v16 = vld [vmem:[#allocation8 + $0x23b4] ss:$8 sps:$4 sm:$0xff]   ;;  %v19594_v46 = vld [vmem:[#allocation8 + $0x2384] ss:$8 sps:$4 sm:$0xff]  }
 0xa27   :  { %13879 = vmatpush2.bf16.msra.mxu0 %v19552_v32  ;;  %v19577_v32 = vld [vmem:[#allocation8 + $0x2330] ss:$8 sps:$4 sm:$0xff]  }
 0xa28   :  { %13926 = vmatpush1.bf16.msra.mxu1 %v19555_v42  ;;  %13880 = vmatprep.subr.bf16.mxu0 %v19560_v34  ;;  %v19580_v42 = vld [vmem:[#allocation8 + $0x23a0] ss:$8 sps:$4 sm:$0xff]   ;;  %v19585_v34 = vld [vmem:[#allocation8 + $0x2324] ss:$8 sps:$4 sm:$0xff]  }
 0xa29   :  { %13927 = vmatprep.subr.bf16.mxu1 %v19564_v33  ;;  %v19588_v33 = vld [vmem:[#allocation8 + $0x2394] ss:$8 sps:$4 sm:$0xff]  }
 0xa2b   :  { %13881 = vmatpush2.bf16.msra.mxu0 %v19558_v57  ;;  %13450 = vmatmul.mubr.bf16.gmra.mxu1 %v13132_v30  ;;  %v19583_v57 = vld [vmem:[#allocation8 + $0x2320] ss:$8 sps:$4 sm:$0xff]   ;;  %v19601_v30 = vld [vmem:[#allocation8 + $0x2474] ss:$8 sps:$4 sm:$0xff]  }
 0xa2c   :  { %13459 = vmatprep.mubr.bf16.mxu1 %v13154_v43  ;;  %13928 = vmatpush1.bf16.msra.mxu1 %v19562_v60  ;;  %v19591_v60 = vld [vmem:[#allocation8 + $0x2314] ss:$8 sps:$4 sm:$0xff]   ;;  %v19595_v43 = vld [vmem:[#allocation8 + $0x2300] ss:$8 sps:$4 sm:$0xff]  }
 0xa2d   :  { %13882 = vmatprep.subr.bf16.mxu0 %v19567_v56  ;;  %13929 = vmatprep.subr.bf16.mxu1 %v19570_v58  ;;  %v19592_v56 = vld [vmem:[#allocation8 + $0x2380] ss:$8 sps:$4 sm:$0xff]   ;;  %v19597_v58 = vld [vmem:[#allocation8 + $0x2304] ss:$8 sps:$4 sm:$0xff]  }
 0xa2f   :  { %13883 = vmatpush2.bf16.msra.mxu0 %v19565_v47  ;;  %v19599_v47 = vld [vmem:[#allocation8 + $0x2470] ss:$8 sps:$4 sm:$0xff]  }
 0xa30   :  { %13930 = vmatpush1.bf16.msra.mxu1 %v19568_v37  ;;  %13884 = vmatprep.subr.bf16.mxu0 %v19573_v26  ;;  %v19604_v37 = vld [vmem:[#allocation8 + $0x2574] ss:$8 sps:$4 sm:$0xff]   ;;  %v19607_v26 = vld [vmem:[#allocation8 + $0x2464] ss:$8 sps:$4 sm:$0xff]  }
 0xa31   :  { %13931 = vmatprep.subr.bf16.mxu1 %v19576_v16  ;;  %v13609_v16 = vrot.slane %v22319_v45, 1  ;;  %v19608_v45 = vld [vmem:[#allocation8 + $0x2560] ss:$8 sps:$4 sm:$0xff]  }
 0xa33   :  { %13885 = vmatpush2.bf16.msra.mxu0 %v19571_v53  ;;  %13460 = vmatmul.mubr.bf16.gmra.mxu1 %v13151_v28  ;;  %v19602_v53 = vld [vmem:[#allocation8 + $0x2570] ss:$8 sps:$4 sm:$0xff]   ;;  %v22738_v28 = vrot.slane %v22053_v41, 1 }
 0xa34   :  { %13932 = vmatpush1.bf16.msra.mxu1 %v19574_v6  ;;  %13886 = vmatprep.subr.bf16.mxu0 %v19579_v63  ;;  %v19610_v6 = vld [vmem:[#allocation8 + $0x2564] ss:$8 sps:$4 sm:$0xff]   ;;  %v19613_v63 = vld [vmem:[#allocation8 + $0x2454] ss:$8 sps:$4 sm:$0xff]   ;;  %v19614_v41 = vld [vmem:[#allocation8 + $0x2550] ss:$8 sps:$4 sm:$0xff]  }
 0xa35   :  { %13933 = vmatprep.subr.bf16.mxu1 %v19582_v38  ;;  %13955 = vmatprep.mubr.bf16.mxu1 %v22632_v9  ;;  %v13610_v38 = vsel %vm642_vm4, %v22738_v28, %v13609_v16  ;;  %v19641_v28 = vld [vmem:[#allocation8 + $0x2400] ss:$8 sps:$4 sm:$0xff]  }
 0xa37   :  { %13887 = vmatpush2.bf16.msra.mxu0 %v19577_v32  ;;  %v19616_v32 = vld [vmem:[#allocation8 + $0x2554] ss:$8 sps:$4 sm:$0xff]  }
 0xa38   :  { %13934 = vmatpush1.bf16.msra.mxu1 %v19580_v42  ;;  %13888 = vmatprep.subr.bf16.mxu0 %v19585_v34  ;;  %v13607_v42 = vrot.slane %v22356_v22, 1  ;;  %v19619_v34 = vld [vmem:[#allocation8 + $0x2444] ss:$8 sps:$4 sm:$0xff]   ;;  %v19625_v22 = vld [vmem:[#allocation8 + $0x2434] ss:$8 sps:$4 sm:$0xff]  }
 0xa39   :  { %13935 = vmatprep.subr.bf16.mxu1 %v19588_v33  ;;  %v14066_v33 = vshrl.u32 %v22095_v55, 16 }
 0xa3b   :  { %13889 = vmatpush2.bf16.msra.mxu0 %v19583_v57  ;;  %v14069_v57 = vshll.u32 %v22095_v55, 16  ;;  %v19620_v55 = vld [vmem:[#allocation8 + $0x2540] ss:$8 sps:$4 sm:$0xff]  }
 0xa3c   :  { %13936 = vmatpush1.bf16.msra.mxu1 %v19586_v11  ;;  %13890 = vmatprep.subr.bf16.mxu0 %v19591_v60  ;;  %v19622_v11 = vld [vmem:[#allocation8 + $0x2544] ss:$8 sps:$4 sm:$0xff]   ;;  %v22739_v60 = vrot.slane %v22056_v12, 1  ;;  %v22740_v12 = vrot.slane %v22091_v24, 1  ;;  %v19635_v24 = vld [vmem:[#allocation8 + $0x2410] ss:$8 sps:$4 sm:$0xff]  }
 0xa3d   :  { %13937 = vmatprep.subr.bf16.mxu1 %v19594_v46 }
 0xa3e   :  { %v13608_v46 = vsel %vm642_vm4, %v22739_v60, %v13607_v42  ;;  %v19659_v60 = vld [vmem:[#allocation8 + $0x24d0] ss:$8 sps:$4 sm:$0xff]  }
 0xa3f   :  { %13891 = vmatpush2.bf16.msra.mxu0 %v19589_v14  ;;  %v14068_v14 = vrot.slane %v14066_v33, 1  ;;  %v19650_v33 = vld [vmem:[#allocation8 + $0x25f0] ss:$8 sps:$4 sm:$0xff]  }
 0xa40   :  { %13938 = vmatpush1.bf16.msra.mxu1 %v19592_v56  ;;  %13892 = vmatprep.subr.bf16.mxu0 %v19597_v58  ;;  %v14071_v56 = vrot.slane %v14069_v57, 2  ;;  %v19653_v57 = vld [vmem:[#allocation8 + $0x24e0] ss:$8 sps:$4 sm:$0xff]  }
 0xa41   :  { %14365 = vmatprep.subr.bf16.mxu1 %v19601_v30  ;;  %v19628_v30 = vld [vmem:[#allocation8 + $0x2534] ss:$8 sps:$4 sm:$0xff]  }
 0xa42   :  { %v14072_v58 = vor.u32 %v14071_v56, %v14068_v14  ;;  %v19663_v14 = vld [vmem:[#allocation8 + $0x25d0] ss:$8 sps:$4 sm:$0xff]   ;;  %v19666_v56 = vld [vmem:[#allocation8 + $0x24c0] ss:$8 sps:$4 sm:$0xff]  }
 0xa43   :  { %13893 = vmatpush2.bf16.msra.mxu0 %v19595_v43  ;;  %13956 = vmatmul.mubr.bf16.vlgmr.msra.gmra.mxu1 %v22078_v51  ;;  %v19611_v51 = vld [vmem:[#allocation8 + $0x2450] ss:$8 sps:$4 sm:$0xff]   ;;  %v19631_v43 = vld [vmem:[#allocation8 + $0x2424] ss:$8 sps:$4 sm:$0xff]  }
 0xa44   :  { %14366 = vmatpush1.bf16.msra.mxu1 %v19599_v47  ;;  %14426 = vmatprep.subr.bf16.mxu0 %v19604_v37  ;;  %v14076_v47 = vsel %vm22741_vm2, %v14072_v58, %v22195_v40  ;;  %v19626_v37 = vld [vmem:[#allocation8 + $0x2530] ss:$8 sps:$4 sm:$0xff]  }
 0xa45   :  { %14367 = vmatprep.subr.bf16.mxu1 %v19607_v26  ;;  %13965 = vmatprep.mubr.bf16.mxu1 %v22632_v9  ;;  %v19629_v26 = vld [vmem:[#allocation8 + $0x2420] ss:$8 sps:$4 sm:$0xff]   ;;  %v19638_v40 = vld [vmem:[#allocation8 + $0x2510] ss:$8 sps:$4 sm:$0xff]  }
 0xa46   :  { %13895 = vmatmul.mubr.bf16.vlgmr.msra.gmra.mxu0 %v22100_v17  ;;  %v19617_v17 = vld [vmem:[#allocation8 + $0x2440] ss:$8 sps:$4 sm:$0xff]   ;;  %v19672_v58 = vld [vmem:[#allocation8 + $0x24b0] ss:$8 sps:$4 sm:$0xff]  }
 0xa47   :  { %13904 = vmatprep.mubr.bf16.mxu0 %v13610_v38  ;;  %14427 = vmatpush1.bf16.msra.mxu0 %v19602_v53  ;;  %v19637_v53 = vld [vmem:[#allocation8 + $0x2414] ss:$8 sps:$4 sm:$0xff]   ;;  %v19646_v38 = vld [vmem:[#allocation8 + $0x2504] ss:$8 sps:$4 sm:$0xff]  }
 0xa48   :  { %14368 = vmatpush1.bf16.msra.mxu1 %v19605_v54  ;;  %14428 = vmatprep.subr.bf16.mxu0 %v19610_v6  ;;  %v19632_v54 = vld [vmem:[#allocation8 + $0x2520] ss:$8 sps:$4 sm:$0xff]   ;;  %v19640_v6 = vld [vmem:[#allocation8 + $0x2514] ss:$8 sps:$4 sm:$0xff]  }
 0xa49   :  { %14369 = vmatprep.subr.bf16.mxu1 %v19613_v63  ;;  %v19643_v63 = vld [vmem:[#allocation8 + $0x2404] ss:$8 sps:$4 sm:$0xff]  }
 0xa4b   :  { %14429 = vmatpush1.bf16.msra.mxu0 %v19608_v45  ;;  %13966 = vmatmul.mubr.bf16.gmra.mxu1 %v22124_v0  ;;  %v19623_v0 = vld [vmem:[#allocation8 + $0x2430] ss:$8 sps:$4 sm:$0xff]   ;;  %v19649_v45 = vld [vmem:[#allocation8 + $0x24f4] ss:$8 sps:$4 sm:$0xff]  }
 0xa4c   :  { %14370 = vmatpush1.bf16.msra.mxu1 %v19611_v51  ;;  %14430 = vmatprep.subr.bf16.mxu0 %v19616_v32  ;;  %v19644_v51 = vld [vmem:[#allocation8 + $0x2500] ss:$8 sps:$4 sm:$0xff]   ;;  %v19647_v32 = vld [vmem:[#allocation8 + $0x24f0] ss:$8 sps:$4 sm:$0xff]  }
 0xa4d   :  { %14371 = vmatprep.subr.bf16.mxu1 %v19619_v34  ;;  %13975 = vmatprep.mubr.bf16.mxu1 %v22632_v9  ;;  %v19655_v34 = vld [vmem:[#allocation8 + $0x24e4] ss:$8 sps:$4 sm:$0xff]  }
 0xa4e   :  { %13905 = vmatmul.mubr.bf16.gmra.mxu0 %v13608_v46  ;;  %v19665_v46 = vld [vmem:[#allocation8 + $0x25d4] ss:$8 sps:$4 sm:$0xff]  }
 0xa4f   :  { %13914 = vmatprep.mubr.bf16.mxu0 %v13609_v16  ;;  %14431 = vmatpush1.bf16.msra.mxu0 %v19614_v41  ;;  %v19634_v16 = vld [vmem:[#allocation8 + $0x2524] ss:$8 sps:$4 sm:$0xff]  }
 0xa50   :  { %14372 = vmatpush1.bf16.msra.mxu1 %v19617_v17  ;;  %14432 = vmatprep.subr.bf16.mxu0 %v19622_v11  ;;  %v19658_v41 = vld [vmem:[#allocation8 + $0x25e4] ss:$8 sps:$4 sm:$0xff]   ;;  %v19661_v17 = vld [vmem:[#allocation8 + $0x24d4] ss:$8 sps:$4 sm:$0xff]   ;;  %v19656_v11 = vld [vmem:[#allocation8 + $0x25e0] ss:$8 sps:$4 sm:$0xff]  }
 0xa51   :  { %14373 = vmatprep.subr.bf16.mxu1 %v19625_v22  ;;  %v19668_v22 = vld [vmem:[#allocation8 + $0x24c4] ss:$8 sps:$4 sm:$0xff]  }
 0xa53   :  { %14433 = vmatpush1.bf16.msra.mxu0 %v19620_v55  ;;  %13976 = vmatmul.mubr.bf16.gmra.mxu1 %v22740_v12  ;;  %v19671_v55 = vld [vmem:[#allocation8 + $0x25c4] ss:$8 sps:$4 sm:$0xff]   ;;  %v19675_v12 = vld [vmem:[#allocation8 + $0x25b0] ss:$8 sps:$4 sm:$0xff]  }
 0xa54   :  { %14374 = vmatpush1.bf16.msra.mxu1 %v19623_v0  ;;  %14397 = vmatprep.mubr.bf16.mxu1 %v14076_v47  ;;  %v19674_v0 = vld [vmem:[#allocation8 + $0x24b4] ss:$8 sps:$4 sm:$0xff]   ;;  %v19680_v47 = vld [vmem:[#allocation8 + $0x24a0] ss:$8 sps:$4 sm:$0xff]  }
 0xa55   :  { %14434 = vmatprep.subr.bf16.mxu0 %v19628_v30  ;;  %14375 = vmatprep.subr.bf16.mxu1 %v19631_v43  ;;  %v19677_v30 = vld [vmem:[#allocation8 + $0x25b4] ss:$8 sps:$4 sm:$0xff]   ;;  %v19682_v43 = vld [vmem:[#allocation8 + $0x24a4] ss:$8 sps:$4 sm:$0xff]  }
 0xa56   :  { %13915 = vmatmul.mubr.bf16.gmra.mxu0 %v13607_v42  ;;  %v19652_v42 = vld [vmem:[#allocation8 + $0x25f4] ss:$8 sps:$4 sm:$0xff]  }
 0xa57   :  { %14435 = vmatpush1.bf16.msra.mxu0 %v19626_v37  ;;  %14458 = vmatprep.mubr.bf16.mxu0 %v22632_v9  ;;  %v19685_v37 = vld [vmem:[#allocation8 + $0x25a4] ss:$8 sps:$4 sm:$0xff]  }
 0xa58   :  { %14376 = vmatpush1.bf16.msra.mxu1 %v19629_v26  ;;  %14436 = vmatprep.subr.bf16.mxu0 %v19634_v16  ;;  %v19688_v26 = vld [vmem:[#allocation8 + $0x2494] ss:$8 sps:$4 sm:$0xff]   ;;  %v19686_v16 = vld [vmem:[#allocation8 + $0x2490] ss:$8 sps:$4 sm:$0xff]  }
 0xa59   :  { %14377 = vmatprep.subr.bf16.mxu1 %v19637_v53  ;;  %v19691_v53 = vld [vmem:[#allocation8 + $0x2594] ss:$8 sps:$4 sm:$0xff]  }
 0xa5b   :  { %14437 = vmatpush1.bf16.msra.mxu0 %v19632_v54  ;;  %v19694_v54 = vld [vmem:[#allocation8 + $0x2484] ss:$8 sps:$4 sm:$0xff]  }
 0xa5c   :  { %14378 = vmatpush1.bf16.msra.mxu1 %v19635_v24  ;;  %14438 = vmatprep.subr.bf16.mxu0 %v19640_v6  ;;  %v19689_v24 = vld [vmem:[#allocation8 + $0x2590] ss:$8 sps:$4 sm:$0xff]   ;;  %v19692_v6 = vld [vmem:[#allocation8 + $0x2480] ss:$8 sps:$4 sm:$0xff]  }
 0xa5d   :  { %14379 = vmatprep.subr.bf16.mxu1 %v19643_v63  ;;  %v19697_v63 = vld [vmem:[#allocation8 + $0x2584] ss:$8 sps:$4 sm:$0xff]  }
 0xa5f   :  { %14439 = vmatpush1.bf16.msra.mxu0 %v19638_v40  ;;  %v19700_v40 = vld [vmem:[#allocation8 + $0x26f4] ss:$8 sps:$4 sm:$0xff]  }
 0xa60   :  { %14380 = vmatpush1.bf16.msra.mxu1 %v19641_v28  ;;  %14440 = vmatprep.subr.bf16.mxu0 %v19646_v38  ;;  %v19704_v28 = vld [vmem:[#allocation8 + $0x2674] ss:$8 sps:$4 sm:$0xff]   ;;  %v19707_v38 = vld [vmem:[#allocation8 + $0x26e4] ss:$8 sps:$4 sm:$0xff]  }
 0xa61   :  { %14381 = vmatprep.subr.bf16.mxu1 %v19649_v45  ;;  %v19702_v45 = vld [vmem:[#allocation8 + $0x2670] ss:$8 sps:$4 sm:$0xff]  }
 0xa63   :  { %14441 = vmatpush1.bf16.msra.mxu0 %v19644_v51  ;;  %v19705_v51 = vld [vmem:[#allocation8 + $0x26e0] ss:$8 sps:$4 sm:$0xff]  }
 0xa64   :  { %14382 = vmatpush2.bf16.msra.mxu1 %v19647_v32  ;;  %14820 = vmatprep.subr.bf16.mxu0 %v19652_v42  ;;  %v19710_v32 = vld [vmem:[#allocation8 + $0x2664] ss:$8 sps:$4 sm:$0xff]   ;;  %v19714_v42 = vld [vmem:[#allocation8 + $0x26d4] ss:$8 sps:$4 sm:$0xff]  }
 0xa65   :  { %14383 = vmatprep.subr.bf16.mxu1 %v19655_v34  ;;  %v19708_v34 = vld [vmem:[#allocation8 + $0x2660] ss:$8 sps:$4 sm:$0xff]  }
 0xa66   :  { %14459 = vmatmul.mubr.bf16.vlgmr.msra.gmra.mxu0 %v22173_v20  ;;  %v19669_v20 = vld [vmem:[#allocation8 + $0x25c0] ss:$8 sps:$4 sm:$0xff]  }
 0xa67   :  { %14821 = vmatpush1.bf16.msra.mxu0 %v19650_v33  ;;  %14468 = vmatprep.mubr.bf16.mxu0 %v22632_v9  ;;  %v19712_v33 = vld [vmem:[#allocation8 + $0x26d0] ss:$8 sps:$4 sm:$0xff]  }
 0xa68   :  { %14384 = vmatpush2.bf16.msra.mxu1 %v19653_v57  ;;  %14822 = vmatprep.subr.bf16.mxu0 %v19658_v41  ;;  %v19717_v57 = vld [vmem:[#allocation8 + $0x2654] ss:$8 sps:$4 sm:$0xff]   ;;  %v19720_v41 = vld [vmem:[#allocation8 + $0x26c4] ss:$8 sps:$4 sm:$0xff]  }
 0xa69   :  { %14385 = vmatprep.subr.bf16.mxu1 %v19661_v17  ;;  %v19723_v17 = vld [vmem:[#allocation8 + $0x2644] ss:$8 sps:$4 sm:$0xff]  }
 0xa6b   :  { %14823 = vmatpush1.bf16.msra.mxu0 %v19656_v11  ;;  %v19726_v11 = vld [vmem:[#allocation8 + $0x26b4] ss:$8 sps:$4 sm:$0xff]  }
 0xa6c   :  { %14386 = vmatpush2.bf16.msra.mxu1 %v19659_v60  ;;  %14824 = vmatprep.subr.bf16.mxu0 %v19665_v46  ;;  %v19721_v60 = vld [vmem:[#allocation8 + $0x2640] ss:$8 sps:$4 sm:$0xff]   ;;  %v19724_v46 = vld [vmem:[#allocation8 + $0x26b0] ss:$8 sps:$4 sm:$0xff]  }
 0xa6d   :  { %14387 = vmatprep.subr.bf16.mxu1 %v19668_v22  ;;  %v19729_v22 = vld [vmem:[#allocation8 + $0x2634] ss:$8 sps:$4 sm:$0xff]  }
 0xa6e   :  { %14469 = vmatmul.mubr.bf16.gmra.mxu0 %v22190_v25  ;;  %v19683_v25 = vld [vmem:[#allocation8 + $0x25a0] ss:$8 sps:$4 sm:$0xff]  }
 0xa6f   :  { %14825 = vmatpush1.bf16.msra.mxu0 %v19663_v14  ;;  %14478 = vmatprep.mubr.bf16.mxu0 %v22632_v9  ;;  %v19732_v14 = vld [vmem:[#allocation8 + $0x26a4] ss:$8 sps:$4 sm:$0xff]  }
 0xa70   :  { %14388 = vmatpush2.bf16.msra.mxu1 %v19666_v56  ;;  %14826 = vmatprep.subr.bf16.mxu0 %v19671_v55  ;;  %v19735_v56 = vld [vmem:[#allocation8 + $0x2624] ss:$8 sps:$4 sm:$0xff]   ;;  %v19738_v55 = vld [vmem:[#allocation8 + $0x2694] ss:$8 sps:$4 sm:$0xff]  }
 0xa71   :  { %14389 = vmatprep.subr.bf16.mxu1 %v19674_v0  ;;  %v19733_v0 = vld [vmem:[#allocation8 + $0x2620] ss:$8 sps:$4 sm:$0xff]  }
 0xa73   :  { %14827 = vmatpush1.bf16.msra.mxu0 %v19669_v20  ;;  %v19736_v20 = vld [vmem:[#allocation8 + $0x2690] ss:$8 sps:$4 sm:$0xff]  }
 0xa74   :  { %14390 = vmatpush2.bf16.msra.mxu1 %v19672_v58  ;;  %14828 = vmatprep.subr.bf16.mxu0 %v19677_v30  ;;  %v19741_v58 = vld [vmem:[#allocation8 + $0x2614] ss:$8 sps:$4 sm:$0xff]   ;;  %v19744_v30 = vld [vmem:[#allocation8 + $0x2684] ss:$8 sps:$4 sm:$0xff]  }
 0xa75   :  { %14391 = vmatprep.subr.bf16.mxu1 %v19682_v43  ;;  %v19739_v43 = vld [vmem:[#allocation8 + $0x2610] ss:$8 sps:$4 sm:$0xff]  }
 0xa76   :  { %14479 = vmatmul.mubr.bf16.gmra.mxu0 %v22180_v35  ;;  %v19695_v35 = vld [vmem:[#allocation8 + $0x2580] ss:$8 sps:$4 sm:$0xff]  }
 0xa77   :  { %14829 = vmatpush1.bf16.msra.mxu0 %v19675_v12  ;;  %14852 = vmatprep.mubr.bf16.mxu0 %v22166_v48  ;;  %v19698_v48 = vld [vmem:[#allocation8 + $0x26f0] ss:$8 sps:$4 sm:$0xff]   ;;  %v19747_v12 = vld [vmem:[#allocation8 + $0x2604] ss:$8 sps:$4 sm:$0xff]  }
 0xa78   :  { %14392 = vmatpush2.bf16.msra.mxu1 %v19680_v47  ;;  %14830 = vmatprep.subr.bf16.mxu0 %v19685_v37  ;;  %v19751_v47 = vld [vmem:[#allocation8 + $0x2774] ss:$8 sps:$4 sm:$0xff]   ;;  %v19745_v37 = vld [vmem:[#allocation8 + $0x2600] ss:$8 sps:$4 sm:$0xff]  }
 0xa79   :  { %14393 = vmatprep.subr.bf16.mxu1 %v19688_v26  ;;  %v19749_v26 = vld [vmem:[#allocation8 + $0x2770] ss:$8 sps:$4 sm:$0xff]  }
 0xa7b   :  { %14831 = vmatpush1.bf16.msra.mxu0 %v19683_v25  ;;  %v19754_v25 = vld [vmem:[#allocation8 + $0x2874] ss:$8 sps:$4 sm:$0xff]  }
 0xa7c   :  { %14394 = vmatpush2.bf16.msra.mxu1 %v19686_v16  ;;  %14832 = vmatprep.subr.bf16.mxu0 %v19691_v53  ;;  %v19757_v16 = vld [vmem:[#allocation8 + $0x2764] ss:$8 sps:$4 sm:$0xff]  }
 0xa7d   :  { %14395 = vmatprep.subr.bf16.mxu1 %v19694_v54  ;;  %v19752_v54 = vld [vmem:[#allocation8 + $0x2870] ss:$8 sps:$4 sm:$0xff]  }
 0xa7f   :  { %14833 = vmatpush1.bf16.msra.mxu0 %v19689_v24  ;;  %v19755_v24 = vld [vmem:[#allocation8 + $0x2760] ss:$8 sps:$4 sm:$0xff]  }
 0xa80   :  { %14396 = vmatpush2.bf16.msra.mxu1 %v19692_v6  ;;  %14834 = vmatprep.subr.bf16.mxu0 %v19697_v63  ;;  %v19760_v6 = vld [vmem:[#allocation8 + $0x2864] ss:$8 sps:$4 sm:$0xff]  }
 0xa81   :  { %14881 = vmatprep.subr.bf16.mxu1 %v19700_v40  ;;  %v19763_v40 = vld [vmem:[#allocation8 + $0x2754] ss:$8 sps:$4 sm:$0xff]  }
 0xa83   :  { %14835 = vmatpush1.bf16.msra.mxu0 %v19695_v35  ;;  %14398 = vmatmul.mubr.bf16.vlgmr.msra.gmra.mxu1 %v22198_v21  ;;  %v19715_v21 = vld [vmem:[#allocation8 + $0x2650] ss:$8 sps:$4 sm:$0xff]  }
 0xa84   :  { %14407 = vmatprep.mubr.bf16.mxu1 %v22220_v49  ;;  %14882 = vmatpush1.bf16.msra.mxu1 %v19698_v48  ;;  %v19718_v49 = vld [vmem:[#allocation8 + $0x26c0] ss:$8 sps:$4 sm:$0xff]  }
 0xa85   :  { %14836 = vmatprep.subr.bf16.mxu0 %v19704_v28  ;;  %14883 = vmatprep.subr.bf16.mxu1 %v19707_v38  ;;  %v22742_v28 = vld [vmem:[#allocation21_spill] sm:$0xff] }
 0xa86   :  { %v19758_v38 = vld [vmem:[#allocation8 + $0x2860] ss:$8 sps:$4 sm:$0xff]  }
 0xa87   :  { %14837 = vmatpush2.bf16.msra.mxu0 %v19702_v45 }
 0xa88   :  { %14884 = vmatpush1.bf16.msra.mxu1 %v19705_v51  ;;  %14838 = vmatprep.subr.bf16.mxu0 %v19710_v32  ;;  %v19761_v51 = vld [vmem:[#allocation8 + $0x2750] ss:$8 sps:$4 sm:$0xff]   ;;  %v19766_v32 = vld [vmem:[#allocation8 + $0x2854] ss:$8 sps:$4 sm:$0xff]  }
 0xa89   :  { %14885 = vmatprep.subr.bf16.mxu1 %v19714_v42 }
 0xa8b   :  { %14839 = vmatpush2.bf16.msra.mxu0 %v19708_v34  ;;  %14408 = vmatmul.mubr.bf16.gmra.mxu1 %v22236_v44  ;;  %v19727_v44 = vld [vmem:[#allocation8 + $0x2630] ss:$8 sps:$4 sm:$0xff]  }
 0xa8c   :  { %14417 = vmatprep.mubr.bf16.mxu1 %v22206_v52  ;;  %14886 = vmatpush1.bf16.msra.mxu1 %v19712_v33  ;;  %v19730_v52 = vld [vmem:[#allocation8 + $0x26a0] ss:$8 sps:$4 sm:$0xff]   ;;  %v19769_v33 = vld [vmem:[#allocation8 + $0x2744] ss:$8 sps:$4 sm:$0xff]  }
 0xa8d   :  { %14840 = vmatprep.subr.bf16.mxu0 %v19717_v57  ;;  %14887 = vmatprep.subr.bf16.mxu1 %v19720_v41  ;;  %v22743_v41 = vld [vmem:[#allocation22_spill] sm:$0xff] }
 0xa8f   :  { %14841 = vmatpush2.bf16.msra.mxu0 %v19715_v21 }
 0xa90   :  { %14888 = vmatpush1.bf16.msra.mxu1 %v19718_v49  ;;  %14842 = vmatprep.subr.bf16.mxu0 %v19723_v17  ;;  %v19764_v49 = vld [vmem:[#allocation8 + $0x2850] ss:$8 sps:$4 sm:$0xff]  }
 0xa91   :  { %14889 = vmatprep.subr.bf16.mxu1 %v19726_v11  ;;  %v19767_v11 = vld [vmem:[#allocation8 + $0x2740] ss:$8 sps:$4 sm:$0xff]  }
 0xa93   :  { %14843 = vmatpush2.bf16.msra.mxu0 %v19721_v60  ;;  %14418 = vmatmul.mubr.bf16.gmra.mxu1 %v22211_v50  ;;  %v19742_v50 = vld [vmem:[#allocation8 + $0x2680] ss:$8 sps:$4 sm:$0xff]   ;;  %v19772_v60 = vld [vmem:[#allocation8 + $0x2844] ss:$8 sps:$4 sm:$0xff]  }
 0xa94   :  { %14890 = vmatpush1.bf16.msra.mxu1 %v19724_v46  ;;  %14844 = vmatprep.subr.bf16.mxu0 %v19729_v22 }
 0xa95   :  { %14891 = vmatprep.subr.bf16.mxu1 %v19732_v14  ;;  %14913 = vmatprep.mubr.bf16.mxu1 %v22632_v9  ;;  %v19775_v14 = vld [vmem:[#allocation8 + $0x2734] ss:$8 sps:$4 sm:$0xff]  }
 0xa97   :  { %14845 = vmatpush2.bf16.msra.mxu0 %v19727_v44  ;;  %v22744_v44 = vld [vmem:[#allocation23_spill] sm:$0xff] }
 0xa98   :  { %14892 = vmatpush1.bf16.msra.mxu1 %v19730_v52  ;;  %14846 = vmatprep.subr.bf16.mxu0 %v19735_v56 }
 0xa99   :  { %14893 = vmatprep.subr.bf16.mxu1 %v19738_v55  ;;  %v22745_v55 = vld [vmem:[#allocation19_spill] sm:$0xff] }
 0xa9b   :  { %14847 = vmatpush2.bf16.msra.mxu0 %v19733_v0  ;;  %v22746_v0 = vrot.slane %v22745_v55, 2  ;;  %v19794_v55 = vld [vmem:[#allocation8 + $0x2800] ss:$8 sps:$4 sm:$0xff]  }
 0xa9c   :  { %14894 = vmatpush1.bf16.msra.mxu1 %v19736_v20  ;;  %14848 = vmatprep.subr.bf16.mxu0 %v19741_v58  ;;  %v19770_v58 = vld [vmem:[#allocation8 + $0x2840] ss:$8 sps:$4 sm:$0xff]  }
 0xa9d   :  { %14895 = vmatprep.subr.bf16.mxu1 %v19744_v30 }
 0xa9f   :  { %14849 = vmatpush2.bf16.msra.mxu0 %v19739_v43  ;;  %v19773_v43 = vld [vmem:[#allocation8 + $0x2730] ss:$8 sps:$4 sm:$0xff]  }
 0xaa0   :  { %14896 = vmatpush1.bf16.msra.mxu1 %v19742_v50  ;;  %14850 = vmatprep.subr.bf16.mxu0 %v19747_v12 }
 0xaa1   :  { %15323 = vmatprep.subr.bf16.mxu1 %v19751_v47  ;;  %v19778_v47 = vld [vmem:[#allocation8 + $0x2834] ss:$8 sps:$4 sm:$0xff]  }
 0xaa2   :  { %v12952_v53 = vpop.f32.mrf.mxu1 }
 0xaa3   :  { %14851 = vmatpush2.bf16.msra.mxu0 %v19745_v37  ;;  %14914 = vmatmul.mubr.bf16.vlgmr.msra.gmra.mxu1 %v22201_v13  ;;  %v19781_v37 = vld [vmem:[#allocation8 + $0x2724] ss:$8 sps:$4 sm:$0xff]  }
 0xaa4   :  { %15324 = vmatpush1.bf16.msra.mxu1 %v19749_v26  ;;  %15384 = vmatprep.subr.bf16.mxu0 %v19754_v25  ;;  %v12954_v63 = vpop.f32.mrf.mxu1 }
 0xaa5   :  { %15325 = vmatprep.subr.bf16.mxu1 %v19757_v16  ;;  %14923 = vmatprep.mubr.bf16.mxu1 %v22632_v9  ;;  %v22747_v16 = vld [vmem:[#allocation18_spill] sm:$0xff] }
 0xaa6   :  { %14853 = vmatmul.mubr.bf16.vlgmr.msra.gmra.mxu0 %v22223_v62  ;;  %v12891_v35 = vpop.f32.mrf.mxu0  ;;  %v12956_v13 = vpop.f32.mrf.mxu1 }
 0xaa7   :  { %v22404_v48 = vadd.f32 %v12952_v53, %v12891_v35  ;;  %14862 = vmatprep.mubr.bf16.mxu0 %v22742_v28  ;;  %15385 = vmatpush1.bf16.msra.mxu0 %v19752_v54  ;;  %v22748_v53 = vrot.slane %v22747_v16, 2 }
 0xaa8   :  { %v12893_v45 = vpop.f32.mrf.mxu0  ;;  %15326 = vmatpush1.bf16.msra.mxu1 %v19755_v24  ;;  %15386 = vmatprep.subr.bf16.mxu0 %v19760_v6  ;;  %v12958_v34 = vpop.f32.mrf.mxu1  ;;  %v19776_v24 = vld [vmem:[#allocation8 + $0x2830] ss:$8 sps:$4 sm:$0xff]  }
 0xaa9   :  { %v22407_v42 = vadd.f32 %v12954_v63, %v12893_v45  ;;  %15327 = vmatprep.subr.bf16.mxu1 %v19763_v40  ;;  %v19779_v63 = vld [vmem:[#allocation8 + $0x2720] ss:$8 sps:$4 sm:$0xff]   ;;  %v19784_v40 = vld [vmem:[#allocation8 + $0x2824] ss:$8 sps:$4 sm:$0xff]  }
 0xaaa   :  { %v12895_v57 = vpop.f32.mrf.mxu0  ;;  %v12962_v21 = vpop.f32.mrf.mxu1 }
 0xaab   :  { %v22409_v62 = vadd.f32 %v12956_v13, %v12895_v57  ;;  %15387 = vmatpush1.bf16.msra.mxu0 %v19758_v38  ;;  %14924 = vmatmul.mubr.bf16.gmra.mxu1 %v22743_v41  ;;  %v19787_v13 = vld [vmem:[#allocation8 + $0x2714] ss:$8 sps:$4 sm:$0xff]   ;;  %v22749_v38 = vld [vmem:[#allocation20_spill] sm:$0xff]  ;;  %v19785_v57 = vld [vmem:[#allocation8 + $0x2710] ss:$8 sps:$4 sm:$0xff]  }
 0xaac   :  { %v12897_v17 = vpop.f32.mrf.mxu0  ;;  %15328 = vmatpush1.bf16.msra.mxu1 %v19761_v51  ;;  %15388 = vmatprep.subr.bf16.mxu0 %v19766_v32  ;;  %v12964_v22 = vpop.f32.mrf.mxu1  ;;  %v22750_v45 = vrot.slane %v22749_v38, 2  ;;  %v19790_v41 = vld [vmem:[#allocation8 + $0x2814] ss:$8 sps:$4 sm:$0xff]  }
 0xaad   :  { %v22412_v46 = vadd.f32 %v12958_v34, %v12897_v17  ;;  %15329 = vmatprep.subr.bf16.mxu1 %v19769_v33  ;;  %14933 = vmatprep.mubr.bf16.mxu1 %v22632_v9  ;;  %v19782_v33 = vld [vmem:[#allocation8 + $0x2820] ss:$8 sps:$4 sm:$0xff]   ;;  %v19793_v17 = vld [vmem:[#allocation8 + $0x2704] ss:$8 sps:$4 sm:$0xff]  }
 0xaae   :  { %14863 = vmatmul.mubr.bf16.gmra.mxu0 %v22744_v44  ;;  %v12901_v52 = vpop.f32.mrf.mxu0  ;;  %v12966_v20 = vpop.f32.mrf.mxu1  ;;  %v19796_v44 = vld [vmem:[#allocation8 + $0x2804] ss:$8 sps:$4 sm:$0xff]  }
 0xaaf   :  { %v22416_v56 = vadd.f32 %v12962_v21, %v12901_v52  ;;  %14872 = vmatprep.mubr.bf16.mxu0 %v22746_v0  ;;  %15389 = vmatpush1.bf16.msra.mxu0 %v19764_v49  ;;  %v19799_v52 = vld [vmem:[#allocation8 + $0x27f4] ss:$8 sps:$4 sm:$0xff]   ;;  %v19797_v0 = vld [vmem:[#allocation8 + $0x27f0] ss:$8 sps:$4 sm:$0xff]  }
 0xab0   :  { %v12903_v30 = vpop.f32.mrf.mxu0  ;;  %15330 = vmatpush1.bf16.msra.mxu1 %v19767_v11  ;;  %15390 = vmatprep.subr.bf16.mxu0 %v19772_v60  ;;  %v12968_v12 = vpop.f32.mrf.mxu1  ;;  %v19788_v60 = vld [vmem:[#allocation8 + $0x2810] ss:$8 sps:$4 sm:$0xff]  }
 0xab1   :  { %v22420_v50 = vadd.f32 %v12964_v22, %v12903_v30  ;;  %15331 = vmatprep.subr.bf16.mxu1 %v19775_v14  ;;  %v19791_v14 = vld [vmem:[#allocation8 + $0x2700] ss:$8 sps:$4 sm:$0xff]   ;;  %v19800_v30 = vld [vmem:[#allocation8 + $0x28f0] ss:$8 sps:$4 sm:$0xff]  }
 0xab2   :  { %v12905_v26 = vpop.f32.mrf.mxu0  ;;  %v12972_v54 = vpop.f32.mrf.mxu1 }
 0xab3   :  { %v22422_v25 = vadd.f32 %v12966_v20, %v12905_v26  ;;  %15391 = vmatpush1.bf16.msra.mxu0 %v19770_v58  ;;  %14934 = vmatmul.mubr.bf16.gmra.mxu1 %v22748_v53  ;;  %v19802_v20 = vld [vmem:[#allocation8 + $0x28f4] ss:$8 sps:$4 sm:$0xff]   ;;  %v19805_v58 = vld [vmem:[#allocation8 + $0x27e4] ss:$8 sps:$4 sm:$0xff]   ;;  %v19806_v26 = vld [vmem:[#allocation8 + $0x28e0] ss:$8 sps:$4 sm:$0xff]  }
 0xab4   :  { %v12907_v6 = vpop.f32.mrf.mxu0  ;;  %15332 = vmatpush1.bf16.msra.mxu1 %v19773_v43  ;;  %15355 = vmatprep.mubr.bf16.mxu1 %v22269_v2  ;;  %v12974_v28 = vpop.f32.mrf.mxu1  ;;  %v19803_v43 = vld [vmem:[#allocation8 + $0x27e0] ss:$8 sps:$4 sm:$0xff]   ;;  %v19809_v53 = vld [vmem:[#allocation8 + $0x27d0] ss:$8 sps:$4 sm:$0xff]  }
 0xab5   :  { %v22427_v35 = vadd.f32 %v12968_v12, %v12907_v6  ;;  %15392 = vmatprep.subr.bf16.mxu0 %v19778_v47  ;;  %15333 = vmatprep.subr.bf16.mxu1 %v19781_v37  ;;  %v19808_v12 = vld [vmem:[#allocation8 + $0x28e4] ss:$8 sps:$4 sm:$0xff]   ;;  %v19811_v47 = vld [vmem:[#allocation8 + $0x27d4] ss:$8 sps:$4 sm:$0xff]  }
 0xab6   :  { %14873 = vmatmul.mubr.bf16.gmra.mxu0 %v22750_v45  ;;  %v12911_v51 = vpop.f32.mrf.mxu0  ;;  %v12976_v34 = vpop.f32.mrf.mxu1  ;;  %v19819_v45 = vld [vmem:[#allocation8 + $0x28c0] ss:$8 sps:$4 sm:$0xff]  }
 0xab7   :  { %v22431_v32 = vadd.f32 %v12972_v54, %v12911_v51  ;;  %15393 = vmatpush1.bf16.msra.mxu0 %v19776_v24  ;;  %15416 = vmatprep.mubr.bf16.mxu0 %v22632_v9  ;;  %v19815_v54 = vld [vmem:[#allocation8 + $0x28d4] ss:$8 sps:$4 sm:$0xff]   ;;  %v19818_v24 = vld [vmem:[#allocation8 + $0x27c4] ss:$8 sps:$4 sm:$0xff]   ;;  %v19822_v34 = vld [vmem:[#allocation8 + $0x27b0] ss:$8 sps:$4 sm:$0xff]  }
 0xab8   :  { %v12913_v2 = vpop.f32.mrf.mxu0  ;;  %15334 = vmatpush1.bf16.msra.mxu1 %v19779_v63  ;;  %15394 = vmatprep.subr.bf16.mxu0 %v19784_v40  ;;  %v12977_v49 = vpop.f32.mrf.mxu1  ;;  %v19813_v63 = vld [vmem:[#allocation8 + $0x28d0] ss:$8 sps:$4 sm:$0xff]  }
 0xab9   :  { %v22434_v21 = vadd.f32 %v12974_v28, %v12913_v2  ;;  %15335 = vmatprep.subr.bf16.mxu1 %v19787_v13  ;;  %v19821_v28 = vld [vmem:[#allocation8 + $0x28c4] ss:$8 sps:$4 sm:$0xff]   ;;  %v19824_v13 = vld [vmem:[#allocation8 + $0x27b4] ss:$8 sps:$4 sm:$0xff]  }
 0xaba   :  { %v12915_v11 = vpop.f32.mrf.mxu0  ;;  %v19832_v2 = vld [vmem:[#allocation8 + $0x27a4] ss:$8 sps:$4 sm:$0xff]  }
 0xabb   :  { %15395 = vmatpush1.bf16.msra.mxu0 %v19782_v33  ;;  %v19827_v33 = vld [vmem:[#allocation8 + $0x28b4] ss:$8 sps:$4 sm:$0xff]  }
 0xabc   :  { %v12916_v22 = vpop.f32.mrf.mxu0  ;;  %15336 = vmatpush1.bf16.msra.mxu1 %v19785_v57  ;;  %15396 = vmatprep.subr.bf16.mxu0 %v19790_v41  ;;  %v19825_v41 = vld [vmem:[#allocation8 + $0x28b0] ss:$8 sps:$4 sm:$0xff]   ;;  %v19838_v11 = vld [vmem:[#allocation8 + $0x2794] ss:$8 sps:$4 sm:$0xff]  }
 0xabd   :  { %15337 = vmatprep.subr.bf16.mxu1 %v19793_v17  ;;  %v19835_v17 = vld [vmem:[#allocation8 + $0x28a4] ss:$8 sps:$4 sm:$0xff]  }
 0xabe   :  { %v22751_v22 = vld [vmem:[#allocation24_spill] sm:$0xff] }
 0xabf   :  { %15397 = vmatpush1.bf16.msra.mxu0 %v19788_v60 }
 0xac0   :  { %15338 = vmatpush1.bf16.msra.mxu1 %v19791_v14  ;;  %15398 = vmatprep.subr.bf16.mxu0 %v19796_v44  ;;  %v19833_v14 = vld [vmem:[#allocation8 + $0x28a0] ss:$8 sps:$4 sm:$0xff]  }
 0xac1   :  { %15339 = vmatprep.subr.bf16.mxu1 %v19799_v52  ;;  %v19836_v52 = vld [vmem:[#allocation8 + $0x2790] ss:$8 sps:$4 sm:$0xff]  }
 0xac3   :  { %15399 = vmatpush1.bf16.msra.mxu0 %v19794_v55  ;;  %v19841_v55 = vld [vmem:[#allocation8 + $0x2894] ss:$8 sps:$4 sm:$0xff]  }
 0xac4   :  { %15340 = vmatpush2.bf16.msra.mxu1 %v19797_v0  ;;  %15778 = vmatprep.subr.bf16.mxu0 %v19802_v20  ;;  %v19844_v0 = vld [vmem:[#allocation8 + $0x2784] ss:$8 sps:$4 sm:$0xff]  }
 0xac5   :  { %15341 = vmatprep.subr.bf16.mxu1 %v19805_v58  ;;  %v19839_v58 = vld [vmem:[#allocation8 + $0x2890] ss:$8 sps:$4 sm:$0xff]  }
 0xac6   :  { %v22436_v37 = vpop.f32.mrf.mxu0  ;;  %15417 = vmatmul.mubr.bf16.vlgmr.msra.gmra.mxu0 %v22282_v31  ;;  %v19816_v31 = vld [vmem:[#allocation8 + $0x27c0] ss:$8 sps:$4 sm:$0xff]  }
 0xac7   :  { %15779 = vmatpush1.bf16.msra.mxu0 %v19800_v30  ;;  %15426 = vmatprep.mubr.bf16.mxu0 %v22632_v9 }
 0xac8   :  { %v22440_v16 = vpop.f32.mrf.mxu0  ;;  %15342 = vmatpush2.bf16.msra.mxu1 %v19803_v43  ;;  %15780 = vmatprep.subr.bf16.mxu0 %v19808_v12  ;;  %v19842_v43 = vld [vmem:[#allocation8 + $0x2780] ss:$8 sps:$4 sm:$0xff]   ;;  %v12503_v12 = vld [vmem:[#allocation9 + $0x4] ss:$8 sm:$0x3] }
 0xac9   :  { %15343 = vmatprep.subr.bf16.mxu1 %v19811_v47  ;;  %v19850_v47 = vld [vmem:[#allocation8 + $0x29f4] ss:$8 sps:$4 sm:$0xff]  }
 0xaca   :  { %v22442_v6 = vpop.f32.mrf.mxu0 }
 0xacb   :  { %15781 = vmatpush1.bf16.msra.mxu0 %v19806_v26  ;;  %v19845_v26 = vld [vmem:[#allocation8 + $0x2880] ss:$8 sps:$4 sm:$0xff]  }
 0xacc   :  { %v22444_v40 = vpop.f32.mrf.mxu0  ;;  %15344 = vmatpush2.bf16.msra.mxu1 %v19809_v53  ;;  %15782 = vmatprep.subr.bf16.mxu0 %v19815_v54  ;;  %v22752_v53 = vld [vmem:[#allocation16_spill] sm:$0xff] }
 0xacd   :  { %15345 = vmatprep.subr.bf16.mxu1 %v19818_v24  ;;  %v22463_v54 = vrot.slane %v12503_v12, %v22752_v53  ;;  %v19848_v24 = vld [vmem:[#allocation8 + $0x29f0] ss:$8 sps:$4 sm:$0xff]  }
 0xace   :  { %v22446_v38 = vpop.f32.mrf.mxu0  ;;  %15427 = vmatmul.mubr.bf16.gmra.mxu0 %v22288_v23  ;;  %v19830_v23 = vld [vmem:[#allocation8 + $0x27a0] ss:$8 sps:$4 sm:$0xff]  }
 0xacf   :  { %15783 = vmatpush1.bf16.msra.mxu0 %v19813_v63  ;;  %15436 = vmatprep.mubr.bf16.mxu0 %v22632_v9  ;;  %v19854_v63 = vld [vmem:[#allocation8 + $0x2974] ss:$8 sps:$4 sm:$0xff]  }
 0xad0   :  { %v22450_v51 = vpop.f32.mrf.mxu0  ;;  %15346 = vmatpush2.bf16.msra.mxu1 %v19816_v31  ;;  %15784 = vmatprep.subr.bf16.mxu0 %v19821_v28  ;;  %v19857_v31 = vld [vmem:[#allocation8 + $0x29e4] ss:$8 sps:$4 sm:$0xff]  }
 0xad1   :  { %15347 = vmatprep.subr.bf16.mxu1 %v19824_v13  ;;  %v22753_v28 = vld [vmem:[#allocation17_spill] sm:$0xff] }
 0xad2   :  { %v22452_v57 = vpop.f32.mrf.mxu0  ;;  %v22466_v13 = vrot.slane %v12503_v12, %v22753_v28 }
 0xad3   :  { %15785 = vmatpush1.bf16.msra.mxu0 %v19819_v45 }
 0xad4   :  { %v22454_v49 = vpop.f32.mrf.mxu0  ;;  %15348 = vmatpush2.bf16.msra.mxu1 %v19822_v34  ;;  %15786 = vmatprep.subr.bf16.mxu0 %v19827_v33  ;;  %v19852_v34 = vld [vmem:[#allocation8 + $0x2970] ss:$8 sps:$4 sm:$0xff]   ;;  %v12979_v33 = vadd.f32 %v22404_v48, %v22463_v54 }
 0xad5   :  { %15349 = vmatprep.subr.bf16.mxu1 %v19832_v2 }
 0xad6   :  { %v22456_v60 = vpop.f32.mrf.mxu0  ;;  %15437 = vmatmul.mubr.bf16.gmra.mxu0 %v22274_v18  ;;  %v19847_v18 = vld [vmem:[#allocation8 + $0x2884] ss:$8 sps:$4 sm:$0xff]  }
 0xad7   :  { %15787 = vmatpush1.bf16.msra.mxu0 %v19825_v41  ;;  %15810 = vmatprep.mubr.bf16.mxu0 %v22751_v22  ;;  %v19855_v41 = vld [vmem:[#allocation8 + $0x29e0] ss:$8 sps:$4 sm:$0xff]   ;;  %v12980_v22 = vadd.f32 %v22407_v42, %v22466_v13  ;;  %v19867_v42 = vld [vmem:[#allocation8 + $0x2954] ss:$8 sps:$4 sm:$0xff]  }
 0xad8   :  { %v22460_v44 = vpop.f32.mrf.mxu0  ;;  %15350 = vmatpush2.bf16.msra.mxu1 %v19830_v23  ;;  %15788 = vmatprep.subr.bf16.mxu0 %v19835_v17  ;;  %v19860_v23 = vld [vmem:[#allocation8 + $0x2964] ss:$8 sps:$4 sm:$0xff]  }
 0xad9   :  { %15351 = vmatprep.subr.bf16.mxu1 %v19838_v11  ;;  %v19864_v11 = vld [vmem:[#allocation8 + $0x29d4] ss:$8 sps:$4 sm:$0xff]  }
 0xada   :  { %v13526_v20 = vpop.f32.mrf.mxu0 }
 0xadb   :  { %15789 = vmatpush1.bf16.msra.mxu0 %v19833_v14 }
 0xadc   :  { %v13527_v30 = vpop.f32.mrf.mxu0  ;;  %15352 = vmatpush2.bf16.msra.mxu1 %v19836_v52  ;;  %15790 = vmatprep.subr.bf16.mxu0 %v19841_v55  ;;  %v19858_v52 = vld [vmem:[#allocation8 + $0x2960] ss:$8 sps:$4 sm:$0xff]  }
 0xadd   :  { %15353 = vmatprep.subr.bf16.mxu1 %v19844_v0  ;;  %v19862_v0 = vld [vmem:[#allocation8 + $0x29d0] ss:$8 sps:$4 sm:$0xff]  }
 0xadf   :  { %15791 = vmatpush1.bf16.msra.mxu0 %v19839_v58  ;;  %v19870_v58 = vld [vmem:[#allocation8 + $0x29c4] ss:$8 sps:$4 sm:$0xff]  }
 0xae0   :  { %15354 = vmatpush2.bf16.msra.mxu1 %v19842_v43  ;;  %15792 = vmatprep.subr.bf16.mxu0 %v19847_v18  ;;  %v19865_v18 = vld [vmem:[#allocation8 + $0x2950] ss:$8 sps:$4 sm:$0xff]  }
 0xae1   :  { %15839 = vmatprep.subr.bf16.mxu1 %v19850_v47 }
 0xae3   :  { %15793 = vmatpush1.bf16.msra.mxu0 %v19845_v26  ;;  %v13441_v45 = vpop.f32.mrf.mxu1  ;;  %15356 = vmatmul.mubr.bf16.vlgmr.msra.gmra.mxu1 %v22303_v59  ;;  %v19873_v26 = vld [vmem:[#allocation8 + $0x2944] ss:$8 sps:$4 sm:$0xff]  }
 0xae4   :  { %v13503_v2 = vadd.f32 %v22436_v37, %v13441_v45  ;;  %15365 = vmatprep.mubr.bf16.mxu1 %v22327_v19  ;;  %15840 = vmatpush1.bf16.msra.mxu1 %v19848_v24  ;;  %v12981_v19 = vadd.f32 %v22409_v62, %v22463_v54  ;;  %v19874_v45 = vld [vmem:[#allocation8 + $0x29b0] ss:$8 sps:$4 sm:$0xff]  }
 0xae5   :  { %v13443_v17 = vpop.f32.mrf.mxu1  ;;  %15794 = vmatprep.subr.bf16.mxu0 %v19854_v63  ;;  %15841 = vmatprep.subr.bf16.mxu1 %v19857_v31  ;;  %v19871_v31 = vld [vmem:[#allocation8 + $0x2940] ss:$8 sps:$4 sm:$0xff]  }
 0xae6   :  { %v22475_v14 = vadd.f32 %v13503_v2, %v12979_v33  ;;  %v13505_v59 = vadd.f32 %v22440_v16, %v13443_v17  ;;  %v12982_v16 = vadd.f32 %v22412_v46, %v22466_v13  ;;  %v19868_v46 = vld [vmem:[#allocation8 + $0x29c0] ss:$8 sps:$4 sm:$0xff]  }
 0xae7   :  { %15795 = vmatpush2.bf16.msra.mxu0 %v19852_v34  ;;  %v13445_v48 = vpop.f32.mrf.mxu1  ;;  %v19879_v34 = vld [vmem:[#allocation8 + $0x2934] ss:$8 sps:$4 sm:$0xff]  }
 0xae8   :  { %v22480_v37 = vadd.f32 %v13505_v59, %v12980_v22  ;;  %v13507_v55 = vadd.f32 %v22442_v6, %v13445_v48  ;;  %15842 = vmatpush1.bf16.msra.mxu1 %v19855_v41  ;;  %15796 = vmatprep.subr.bf16.mxu0 %v19860_v23  ;;  %v12983_v6 = vadd.f32 %v22416_v56, %v22463_v54  ;;  %v19877_v23 = vld [vmem:[#allocation8 + $0x2930] ss:$8 sps:$4 sm:$0xff]   ;;  %v19880_v22 = vld [vmem:[#allocation8 + $0x29a0] ss:$8 sps:$4 sm:$0xff]   ;;  %v19888_v48 = vld [vmem:[#allocation8 + $0x2994] ss:$8 sps:$4 sm:$0xff]  }
 0xae9   :  { %v13447_v20 = vpop.f32.mrf.mxu1  ;;  %15843 = vmatprep.subr.bf16.mxu1 %v19864_v11 }
 0xaea   :  { %v22485_v30 = vadd.f32 %v13507_v55, %v12981_v19  ;;  %v13509_v43 = vadd.f32 %v22444_v40, %v13447_v20  ;;  %v19876_v40 = vld [vmem:[#allocation8 + $0x29b4] ss:$8 sps:$4 sm:$0xff]   ;;  %v19886_v19 = vld [vmem:[#allocation8 + $0x2990] ss:$8 sps:$4 sm:$0xff]   ;;  %v19894_v20 = vld [vmem:[#allocation8 + $0x2984] ss:$8 sps:$4 sm:$0xff]  }
 0xaeb   :  { %15797 = vmatpush2.bf16.msra.mxu0 %v19858_v52  ;;  %v13451_v62 = vpop.f32.mrf.mxu1  ;;  %15366 = vmatmul.mubr.bf16.gmra.mxu1 %v22340_v3  ;;  %v12984_v3 = vadd.f32 %v22420_v50, %v22466_v13  ;;  %v19882_v50 = vld [vmem:[#allocation8 + $0x29a4] ss:$8 sps:$4 sm:$0xff]   ;;  %v19883_v52 = vld [vmem:[#allocation8 + $0x2920] ss:$8 sps:$4 sm:$0xff]   ;;  %v19891_v55 = vld [vmem:[#allocation8 + $0x2914] ss:$8 sps:$4 sm:$0xff]  }
 0xaec   :  { %v22491_v12 = vadd.f32 %v13509_v43, %v12982_v16  ;;  %v13513_v47 = vadd.f32 %v22446_v38, %v13451_v62  ;;  %15375 = vmatprep.mubr.bf16.mxu1 %v22308_v8  ;;  %15844 = vmatpush1.bf16.msra.mxu1 %v19862_v0  ;;  %v12985_v8 = vadd.f32 %v22422_v25, %v22463_v54 }
 0xaed   :  { %v13453_v53 = vpop.f32.mrf.mxu1  ;;  %15798 = vmatprep.subr.bf16.mxu0 %v19867_v42  ;;  %15845 = vmatprep.subr.bf16.mxu1 %v19870_v58  ;;  %v19889_v42 = vld [vmem:[#allocation8 + $0x2910] ss:$8 sps:$4 sm:$0xff]  }
 0xaee   :  { %v22497_v24 = vadd.f32 %v13513_v47, %v12983_v6  ;;  %v13515_v56 = vadd.f32 %v22450_v51, %v13453_v53  ;;  %v12986_v51 = vadd.f32 %v22427_v35, %v22466_v13  ;;  %v19885_v35 = vld [vmem:[#allocation8 + $0x2924] ss:$8 sps:$4 sm:$0xff]  }
 0xaef   :  { %15799 = vmatpush2.bf16.msra.mxu0 %v19865_v18  ;;  %v13455_v63 = vpop.f32.mrf.mxu1 }
 0xaf0   :  { %v22502_v38 = vadd.f32 %v13515_v56, %v12984_v3  ;;  %v13517_v28 = vadd.f32 %v22452_v57, %v13455_v63  ;;  %15846 = vmatpush1.bf16.msra.mxu1 %v19868_v46  ;;  %15800 = vmatprep.subr.bf16.mxu0 %v19873_v26  ;;  %v12987_v57 = vadd.f32 %v22431_v32, %v22463_v54 }
 0xaf1   :  { %v13457_v33 = vpop.f32.mrf.mxu1  ;;  %15847 = vmatprep.subr.bf16.mxu1 %v19876_v40 }
 0xaf2   :  { %v22507_v2 = vadd.f32 %v13517_v28, %v12985_v8  ;;  %v13519_v41 = vadd.f32 %v22454_v49, %v13457_v33 }
 0xaf3   :  { %15801 = vmatpush2.bf16.msra.mxu0 %v19871_v31  ;;  %v13461_v25 = vpop.f32.mrf.mxu1  ;;  %15376 = vmatmul.mubr.bf16.gmra.mxu1 %v22321_v7  ;;  %v12988_v7 = vadd.f32 %v22434_v21, %v22466_v13  ;;  %v19892_v21 = vld [vmem:[#allocation8 + $0x2980] ss:$8 sps:$4 sm:$0xff]   ;;  %v19897_v13 = vld [vmem:[#allocation8 + $0x2904] ss:$8 sps:$4 sm:$0xff]  }
 0xaf4   :  { %v22513_v17 = vadd.f32 %v13519_v41, %v12986_v51  ;;  %v13523_v11 = vadd.f32 %v22456_v60, %v13461_v25  ;;  %15848 = vmatpush1.bf16.msra.mxu1 %v19874_v45  ;;  %15802 = vmatprep.subr.bf16.mxu0 %v19879_v34  ;;  %v22754_v41 = vrot.slane %v22272_v39, 3 }
 0xaf5   :  { %v13463_v59 = vpop.f32.mrf.mxu1  ;;  %15849 = vmatprep.subr.bf16.mxu1 %v19882_v50  ;;  %15871 = vmatprep.mubr.bf16.mxu1 %v22632_v9 }
 0xaf6   :  { %v22519_v49 = vadd.f32 %v13523_v11, %v12987_v57  ;;  %v13525_v32 = vadd.f32 %v22460_v44, %v13463_v59  ;;  %v19895_v44 = vld [vmem:[#allocation8 + $0x2900] ss:$8 sps:$4 sm:$0xff]  }
 0xaf7   :  { %15803 = vmatpush2.bf16.msra.mxu0 %v19877_v23  ;;  %v13465_v54 = vpop.f32.mrf.mxu1 }
 0xaf8   :  { %v22522_v60 = vadd.f32 %v13525_v32, %v12988_v7  ;;  %15850 = vmatpush1.bf16.msra.mxu1 %v19880_v22  ;;  %15804 = vmatprep.subr.bf16.mxu0 %v19885_v35 }
 0xaf9   :  { %v13466_v0 = vpop.f32.mrf.mxu1  ;;  %15851 = vmatprep.subr.bf16.mxu1 %v19888_v48 }
 0xafb   :  { %15805 = vmatpush2.bf16.msra.mxu0 %v19883_v52 }
 0xafc   :  { %15852 = vmatpush1.bf16.msra.mxu1 %v19886_v19  ;;  %15806 = vmatprep.subr.bf16.mxu0 %v19891_v55 }
 0xafd   :  { %15853 = vmatprep.subr.bf16.mxu1 %v19894_v20 }
 0xaff   :  { %15807 = vmatpush2.bf16.msra.mxu0 %v19889_v42 }
 0xb00   :  { %15854 = vmatpush1.bf16.msra.mxu1 %v19892_v21  ;;  %15808 = vmatprep.subr.bf16.mxu0 %v19897_v13 }
 0xb03   :  { %15809 = vmatpush2.bf16.msra.mxu0 %v19895_v44  ;;  %v13957_v58 = vpop.f32.mrf.mxu1  ;;  %15872 = vmatmul.mubr.bf16.vlgmr.msra.gmra.mxu1 %v22306_v4 }
 0xb04   :  { %15881 = vmatprep.mubr.bf16.mxu1 %v22632_v9 }
 0xb05   :  { %v13959_v16 = vpop.f32.mrf.mxu1 }
 0xb06   :  { %v13896_v43 = vpop.f32.mrf.mxu0  ;;  %15811 = vmatmul.mubr.bf16.vlgmr.msra.gmra.mxu0 %v22330_v61 }
 0xb07   :  { %v13958_v62 = vadd.f32 %v13957_v58, %v13896_v43  ;;  %15820 = vmatprep.mubr.bf16.mxu0 %v22335_v27  ;;  %v13961_v18 = vpop.f32.mrf.mxu1 }
 0xb08   :  { %v13898_v6 = vpop.f32.mrf.mxu0 }
 0xb09   :  { %v13984_v47 = vadd.f32 %v13958_v62, %v22475_v14  ;;  %v13960_v46 = vadd.f32 %v13959_v16, %v13898_v6  ;;  %v13963_v26 = vpop.f32.mrf.mxu1 }
 0xb0a   :  { %v13900_v53 = vpop.f32.mrf.mxu0 }
 0xb0b   :  { %v13985_v40 = vadd.f32 %v13960_v46, %v22480_v37  ;;  %v13962_v3 = vadd.f32 %v13961_v18, %v13900_v53  ;;  %v13967_v4 = vpop.f32.mrf.mxu1  ;;  %15882 = vmatmul.mubr.bf16.gmra.mxu1 %v22345_v29 }
 0xb0c   :  { %v13902_v56 = vpop.f32.mrf.mxu0  ;;  %15891 = vmatprep.mubr.bf16.mxu1 %v22632_v9 }
 0xb0d   :  { %v13986_v61 = vadd.f32 %v13962_v3, %v22485_v30  ;;  %v13964_v63 = vadd.f32 %v13963_v26, %v13902_v56  ;;  %v13969_v27 = vpop.f32.mrf.mxu1 }
 0xb0e   :  { %v13906_v31 = vpop.f32.mrf.mxu0  ;;  %15821 = vmatmul.mubr.bf16.gmra.mxu0 %v22350_v15 }
 0xb0f   :  { %v13987_v14 = vadd.f32 %v13964_v63, %v22491_v12  ;;  %v13968_v8 = vadd.f32 %v13967_v4, %v13906_v31  ;;  %15830 = vmatprep.mubr.bf16.mxu0 %v15525_v5  ;;  %v13971_v37 = vpop.f32.mrf.mxu1 }
 0xb10   :  { %v13908_v28 = vpop.f32.mrf.mxu0 }
 0xb11   :  { %v13988_v29 = vadd.f32 %v13968_v8, %v22497_v24  ;;  %v13970_v45 = vadd.f32 %v13969_v27, %v13908_v28  ;;  %v13973_v34 = vpop.f32.mrf.mxu1 }
 0xb12   :  { %v13910_v9 = vpop.f32.mrf.mxu0 }
 0xb13   :  { %v13989_v30 = vadd.f32 %v13970_v45, %v22502_v38  ;;  %v13972_v33 = vadd.f32 %v13971_v37, %v13910_v9  ;;  %v13977_v50 = vpop.f32.mrf.mxu1  ;;  %15892 = vmatmul.mubr.bf16.gmra.mxu1 %v15527_v36 }
 0xb14   :  { %v13912_v15 = vpop.f32.mrf.mxu0 }
 0xb15   :  { %v13990_v12 = vadd.f32 %v13972_v33, %v22507_v2  ;;  %v13974_v51 = vadd.f32 %v13973_v34, %v13912_v15  ;;  %v13979_v10 = vpop.f32.mrf.mxu1 }
 0xb16   :  { %v13916_v5 = vpop.f32.mrf.mxu0  ;;  %15831 = vmatmul.mubr.bf16.gmra.mxu0 %v22754_v41 }
 0xb17   :  { %v13991_v24 = vadd.f32 %v13974_v51, %v22513_v17  ;;  %v13978_v25 = vadd.f32 %v13977_v50, %v13916_v5  ;;  %v13981_v23 = vpop.f32.mrf.mxu1 }
 0xb18   :  { %v13918_v57 = vpop.f32.mrf.mxu0 }
 0xb19   :  { %v13992_v38 = vadd.f32 %v13978_v25, %v22519_v49  ;;  %v13980_v11 = vadd.f32 %v13979_v10, %v13918_v57  ;;  %v13982_v22 = vpop.f32.mrf.mxu1 }
 0xb1a   :  { %v13920_v1 = vpop.f32.mrf.mxu0 }
 0xb1b   :  { %v13993_v36 = vadd.f32 %v13980_v11, %v22522_v60 }
 0xb1c   :  { %v13921_v35 = vpop.f32.mrf.mxu0 }
 0xb26   :  { %v14460_v2 = vpop.f32.mrf.mxu0 }
 0xb28   :  { %v14462_v59 = vpop.f32.mrf.mxu0 }
 0xb2a   :  { %v14464_v48 = vpop.f32.mrf.mxu0 }
 0xb2c   :  { %v14466_v7 = vpop.f32.mrf.mxu0 }
 0xb2e   :  { %v14470_v32 = vpop.f32.mrf.mxu0 }
 0xb30   :  { %v14472_v39 = vpop.f32.mrf.mxu0 }
 0xb32   :  { %v14474_v54 = vpop.f32.mrf.mxu0 }
 0xb34   :  { %v14476_v52 = vpop.f32.mrf.mxu0 }
 0xb36   :  { %v14480_v17 = vpop.f32.mrf.mxu0 }
 0xb38   :  { %v14482_v19 = vpop.f32.mrf.mxu0 }
 0xb3a   :  { %v14484_v55 = vpop.f32.mrf.mxu0 }
 0xb3c   :  { %v14485_v0 = vpop.f32.mrf.mxu0 }
 0xb43   :  { %v14399_v20 = vpop.f32.mrf.mxu1 }
 0xb44   :  { %v14461_v49 = vadd.f32 %v14460_v2, %v14399_v20 }
 0xb45   :  { %v14401_v42 = vpop.f32.mrf.mxu1 }
 0xb46   :  { %v14487_v21 = vadd.f32 %v14461_v49, %v13984_v47  ;;  %v14463_v13 = vadd.f32 %v14462_v59, %v14401_v42 }
 0xb47   :  { %v14403_v44 = vpop.f32.mrf.mxu1 }
 0xb48   :  { %v14488_v60 = vadd.f32 %v14463_v13, %v13985_v40  ;;  %v14465_v58 = vadd.f32 %v14464_v48, %v14403_v44 }
 0xb49   :  { %v14405_v16 = vpop.f32.mrf.mxu1 }
 0xb4a   :  { %v14489_v43 = vadd.f32 %v14465_v58, %v13986_v61  ;;  %v14467_v62 = vadd.f32 %v14466_v7, %v14405_v16 }
 0xb4b   :  { %v14409_v18 = vpop.f32.mrf.mxu1 }
 0xb4c   :  { %v14490_v6 = vadd.f32 %v14467_v62, %v13987_v14  ;;  %v14471_v46 = vadd.f32 %v14470_v32, %v14409_v18 }
 0xb4d   :  { %v14411_v26 = vpop.f32.mrf.mxu1 }
 0xb4e   :  { %v14491_v53 = vadd.f32 %v14471_v46, %v13988_v29  ;;  %v14473_v3 = vadd.f32 %v14472_v39, %v14411_v26 }
 0xb4f   :  { %v14413_v4 = vpop.f32.mrf.mxu1 }
 0xb50   :  { %v14492_v56 = vadd.f32 %v14473_v3, %v13989_v30  ;;  %v14475_v63 = vadd.f32 %v14474_v54, %v14413_v4 }
 0xb51   :  { %v14415_v27 = vpop.f32.mrf.mxu1 }
 0xb52   :  { %v14493_v31 = vadd.f32 %v14475_v63, %v13990_v12  ;;  %v14477_v8 = vadd.f32 %v14476_v52, %v14415_v27 }
 0xb53   :  { %v14419_v47 = vpop.f32.mrf.mxu1 }
 0xb54   :  { %v14494_v37 = vadd.f32 %v14477_v8, %v13991_v24  ;;  %v14481_v28 = vadd.f32 %v14480_v17, %v14419_v47 }
 0xb55   :  { %v14421_v40 = vpop.f32.mrf.mxu1 }
 0xb56   :  { %v14495_v45 = vadd.f32 %v14481_v28, %v13992_v38  ;;  %v14483_v34 = vadd.f32 %v14482_v19, %v14421_v40 }
 0xb57   :  { %v14423_v61 = vpop.f32.mrf.mxu1 }
 0xb58   :  { %v14496_v9 = vadd.f32 %v14483_v34, %v13993_v36 }
 0xb59   :  { %v14424_v33 = vpop.f32.mrf.mxu1 }
 0xb63   :  { %v14915_v14 = vpop.f32.mrf.mxu1 }
 0xb65   :  { %v14917_v50 = vpop.f32.mrf.mxu1 }
 0xb66   :  { %v14854_v15 = vpop.f32.mrf.mxu0 }
 0xb67   :  { %v14916_v29 = vadd.f32 %v14915_v14, %v14854_v15  ;;  %v14919_v51 = vpop.f32.mrf.mxu1 }
 0xb68   :  { %v14856_v10 = vpop.f32.mrf.mxu0 }
 0xb69   :  { %v22547_v30 = vadd.f32 %v14916_v29, %v14487_v21  ;;  %v14918_v5 = vadd.f32 %v14917_v50, %v14856_v10  ;;  %v14921_v12 = vpop.f32.mrf.mxu1 }
 0xb6a   :  { %v14858_v41 = vpop.f32.mrf.mxu0 }
 0xb6b   :  { %v22549_v25 = vadd.f32 %v14918_v5, %v14488_v60  ;;  %v14920_v24 = vadd.f32 %v14919_v51, %v14858_v41  ;;  %v14925_v23 = vpop.f32.mrf.mxu1 }
 0xb6c   :  { %v14860_v57 = vpop.f32.mrf.mxu0 }
 0xb6d   :  { %v22551_v38 = vadd.f32 %v14920_v24, %v14489_v43  ;;  %v14922_v11 = vadd.f32 %v14921_v12, %v14860_v57  ;;  %v14927_v22 = vpop.f32.mrf.mxu1 }
 0xb6e   :  { %v14864_v1 = vpop.f32.mrf.mxu0 }
 0xb6f   :  { %v22553_v36 = vadd.f32 %v14922_v11, %v14490_v6  ;;  %v14926_v35 = vadd.f32 %v14925_v23, %v14864_v1  ;;  %v14929_v2 = vpop.f32.mrf.mxu1 }
 0xb70   :  { %v14866_v59 = vpop.f32.mrf.mxu0 }
 0xb71   :  { %v22555_v48 = vadd.f32 %v14926_v35, %v14491_v53  ;;  %v14928_v7 = vadd.f32 %v14927_v22, %v14866_v59  ;;  %v14931_v32 = vpop.f32.mrf.mxu1 }
 0xb72   :  { %v14868_v39 = vpop.f32.mrf.mxu0 }
 0xb73   :  { %v22557_v54 = vadd.f32 %v14928_v7, %v14492_v56  ;;  %v14930_v52 = vadd.f32 %v14929_v2, %v14868_v39  ;;  %v14935_v17 = vpop.f32.mrf.mxu1 }
 0xb74   :  { %v14870_v19 = vpop.f32.mrf.mxu0 }
 0xb75   :  { %v22559_v55 = vadd.f32 %v14930_v52, %v14493_v31  ;;  %v14932_v0 = vadd.f32 %v14931_v32, %v14870_v19  ;;  %v14937_v20 = vpop.f32.mrf.mxu1 }
 0xb76   :  { %v14874_v49 = vpop.f32.mrf.mxu0 }
 0xb77   :  { %v22561_v42 = vadd.f32 %v14932_v0, %v14494_v37  ;;  %v14936_v21 = vadd.f32 %v14935_v17, %v14874_v49  ;;  %v14939_v13 = vpop.f32.mrf.mxu1 }
 0xb78   :  { %v14876_v44 = vpop.f32.mrf.mxu0 }
 0xb79   :  { %v22563_v60 = vadd.f32 %v14936_v21, %v14495_v45  ;;  %v14938_v58 = vadd.f32 %v14937_v20, %v14876_v44  ;;  %v14940_v16 = vpop.f32.mrf.mxu1 }
 0xb7a   :  { %v14878_v43 = vpop.f32.mrf.mxu0 }
 0xb7b   :  { %v22565_v62 = vadd.f32 %v14938_v58, %v14496_v9 }
 0xb7c   :  { %v14879_v18 = vpop.f32.mrf.mxu0 }
 0xb86   :  { %v15418_v6 = vpop.f32.mrf.mxu0 }
 0xb88   :  { %v15420_v46 = vpop.f32.mrf.mxu0 }
 0xb8a   :  { %v15422_v26 = vpop.f32.mrf.mxu0 }
 0xb8c   :  { %v15424_v53 = vpop.f32.mrf.mxu0 }
 0xb8e   :  { %v15428_v3 = vpop.f32.mrf.mxu0 }
 0xb90   :  { %v15430_v4 = vpop.f32.mrf.mxu0 }
 0xb92   :  { %v15432_v56 = vpop.f32.mrf.mxu0 }
 0xb94   :  { %v15434_v63 = vpop.f32.mrf.mxu0 }
 0xb96   :  { %v15438_v27 = vpop.f32.mrf.mxu0 }
 0xb98   :  { %v22567_v31 = vpop.f32.mrf.mxu0 }
 0xb9a   :  { %v15442_v8 = vpop.f32.mrf.mxu0 }
 0xb9c   :  { %v15443_v47 = vpop.f32.mrf.mxu0 }
 0xba3   :  { %v15357_v37 = vpop.f32.mrf.mxu1 }
 0xba4   :  { %v15419_v51 = vadd.f32 %v15418_v6, %v15357_v37 }
 0xba5   :  { %v15359_v28 = vpop.f32.mrf.mxu1 }
 0xba6   :  { %v15421_v5 = vadd.f32 %v15420_v46, %v15359_v28  ;;  %v15445_v24 = vadd.f32 %v15419_v51, %v22547_v30 }
 0xba7   :  { %v15361_v40 = vpop.f32.mrf.mxu1 }
 0xba8   :  { %v15423_v23 = vadd.f32 %v15422_v26, %v15361_v40  ;;  %v15446_v1 = vadd.f32 %v15421_v5, %v22549_v25 }
 0xba9   :  { %v15363_v45 = vpop.f32.mrf.mxu1 }
 0xbaa   :  { %v15425_v35 = vadd.f32 %v15424_v53, %v15363_v45  ;;  %v15447_v39 = vadd.f32 %v15423_v23, %v22551_v38 }
 0xbab   :  { %v15367_v34 = vpop.f32.mrf.mxu1 }
 0xbac   :  { %v15429_v52 = vadd.f32 %v15428_v3, %v15367_v34  ;;  %v15448_v30 = vadd.f32 %v15425_v35, %v22553_v36 }
 0xbad   :  { %v15369_v61 = vpop.f32.mrf.mxu1 }
 0xbae   :  { %v15431_v49 = vadd.f32 %v15430_v4, %v15369_v61  ;;  %v15449_v58 = vadd.f32 %v15429_v52, %v22555_v48 }
 0xbaf   :  { %v15371_v9 = vpop.f32.mrf.mxu1 }
 0xbb0   :  { %v15433_v16 = vadd.f32 %v15432_v56, %v15371_v9  ;;  %v15450_v46 = vadd.f32 %v15431_v49, %v22557_v54 }
 0xbb1   :  { %v15373_v33 = vpop.f32.mrf.mxu1 }
 0xbb2   :  { %v15435_v26 = vadd.f32 %v15434_v63, %v15373_v33  ;;  %v15451_v8 = vadd.f32 %v15433_v16, %v22559_v55 }
 0xbb3   :  { %v15377_v14 = vpop.f32.mrf.mxu1 }
 0xbb4   :  { %v15439_v47 = vadd.f32 %v15438_v27, %v15377_v14  ;;  %v15452_v40 = vadd.f32 %v15435_v26, %v22561_v42 }
 0xbb5   :  { %v15379_v50 = vpop.f32.mrf.mxu1 }
 0xbb6   :  { %v15441_v45 = vadd.f32 %v22567_v31, %v15379_v50  ;;  %v15453_v9 = vadd.f32 %v15439_v47, %v22563_v60 }
 0xbb7   :  { %v15381_v15 = vpop.f32.mrf.mxu1 }
 0xbb8   :  { %v15454_v15 = vadd.f32 %v15441_v45, %v22565_v62 }
 0xbb9   :  { %v15382_v29 = vpop.f32.mrf.mxu1 }
 0xbc3   :  { %v15873_v10 = vpop.f32.mrf.mxu1 }
 0xbc5   :  { %v15875_v12 = vpop.f32.mrf.mxu1 }
 0xbc6   :  { %v15812_v41 = vpop.f32.mrf.mxu0 }
 0xbc7   :  { %v15874_v57 = vadd.f32 %v15873_v10, %v15812_v41  ;;  %v15877_v11 = vpop.f32.mrf.mxu1 }
 0xbc8   :  { %v15814_v22 = vpop.f32.mrf.mxu0 }
 0xbc9   :  { %v15900_v2 = vadd.f32 %v15874_v57, %v15445_v24  ;;  %v15876_v59 = vadd.f32 %v15875_v12, %v15814_v22  ;;  %v15879_v7 = vpop.f32.mrf.mxu1 }
 0xbca   :  { %v15816_v32 = vpop.f32.mrf.mxu0 }
 0xbcb   :  { %15910 = vst [vmem:[#allocation11] sm:$0xff] %v15900_v2  ;;  %v15901_v17 = vadd.f32 %v15876_v59, %v15446_v1  ;;  %v15878_v19 = vadd.f32 %v15877_v11, %v15816_v32  ;;  %v15883_v0 = vpop.f32.mrf.mxu1 }
 0xbcc   :  { %v15818_v20 = vpop.f32.mrf.mxu0 }
 0xbcd   :  { %15911 = vst [vmem:[#allocation11 + $0x8] sm:$0xff] %v15901_v17  ;;  %v15902_v21 = vadd.f32 %v15878_v19, %v15447_v39  ;;  %v15880_v13 = vadd.f32 %v15879_v7, %v15818_v20  ;;  %v15885_v25 = vpop.f32.mrf.mxu1 }
 0xbce   :  { %v15822_v44 = vpop.f32.mrf.mxu0 }
 0xbcf   :  { %15912 = vst [vmem:[#allocation11 + $0x10] sm:$0xff] %v15902_v21  ;;  %v15903_v43 = vadd.f32 %v15880_v13, %v15448_v30  ;;  %v15884_v38 = vadd.f32 %v15883_v0, %v15822_v44  ;;  %v15887_v18 = vpop.f32.mrf.mxu1 }
 0xbd0   :  { %v15824_v6 = vpop.f32.mrf.mxu0 }
 0xbd1   :  { %15913 = vst [vmem:[#allocation11 + $0x18] sm:$0xff] %v15903_v43  ;;  %v15904_v53 = vadd.f32 %v15884_v38, %v15449_v58  ;;  %v15886_v36 = vadd.f32 %v15885_v25, %v15824_v6  ;;  %v15889_v3 = vpop.f32.mrf.mxu1 }
 0xbd2   :  { %v15826_v4 = vpop.f32.mrf.mxu0 }
 0xbd3   :  { %15914 = vst [vmem:[#allocation11 + $0x20] sm:$0xff] %v15904_v53  ;;  %v15905_v37 = vadd.f32 %v15886_v36, %v15450_v46  ;;  %v15888_v48 = vadd.f32 %v15887_v18, %v15826_v4  ;;  %v15893_v56 = vpop.f32.mrf.mxu1 }
 0xbd4   :  { %v15828_v28 = vpop.f32.mrf.mxu0 }
 0xbd5   :  { %15915 = vst [vmem:[#allocation11 + $0x28] sm:$0xff] %v15905_v37  ;;  %v15906_v54 = vadd.f32 %v15888_v48, %v15451_v8  ;;  %v15890_v63 = vadd.f32 %v15889_v3, %v15828_v28  ;;  %v15895_v34 = vpop.f32.mrf.mxu1 }
 0xbd6   :  { %v15832_v61 = vpop.f32.mrf.mxu0 }
 0xbd7   :  { %15916 = vst [vmem:[#allocation11 + $0x30] sm:$0xff] %v15906_v54  ;;  %v15907_v33 = vadd.f32 %v15890_v63, %v15452_v40  ;;  %v15894_v55 = vadd.f32 %v15893_v56, %v15832_v61  ;;  %v15897_v27 = vpop.f32.mrf.mxu1 }
 0xbd8   :  { %v15834_v14 = vpop.f32.mrf.mxu0 }
 0xbd9   :  { %15917 = vst [vmem:[#allocation11 + $0x38] sm:$0xff] %v15907_v33  ;;  %v15908_v42 = vadd.f32 %v15894_v55, %v15453_v9  ;;  %v15896_v29 = vadd.f32 %v15895_v34, %v15834_v14  ;;  %v15898_v31 = vpop.f32.mrf.mxu1 }
 0xbda   :  { %v15836_v50 = vpop.f32.mrf.mxu0 }
 0xbdb   :  { %15918 = vst [vmem:[#allocation11 + $0x40] sm:$0xff] %v15908_v42  ;;  %v15909_v51 = vadd.f32 %v15896_v29, %v15454_v15 }
 0xbdc   :  { %v15837_v10 = vpop.f32.mrf.mxu0 }
 0xbdd   :  { %15919 = vst [vmem:[#allocation11 + $0x48] sm:$0xff] %v15909_v51 }
 0xbde   :  { %20014 = shalt.err (!%p20011_p10)
}
 0xbdf   :  { %s20042_s13 = smov 256   ;;  %s20043_s14 = smov 16  }
 0xbe0   :  { %15931 = dma.vmem_to_hbm [thread:$0]  %s15926_s11, 1280, %s22587_s4, [#allocation5], %s20042_s13, %s20042_s13, %s20043_s14  }
 0xbe1   :  { %20029 = dma.done.wait [#allocation5], 1280  }
 0xbe2   :  { %20030 = vsyncadd [#allocation5], 4294966016 }
 0xbe3   :  { %15935 = vsyncpa [#allocation4], 1 }
 0xbe4   :  { %15936 = vsyncpa [#allocation7], 1 }
 0xbe5   :  { %15937 = vsyncpa [#allocation10], 1 }
 0xbe6   :  { %15938 = vsyncpa [#allocation5], 1 }

</bundles_post_ra>
